<compile_context>
chip_gen: v6e
topology: v6e:2x2x1
jax: 0.10.0
libtpu: 0.0.40
codegen_flags: <defaults>
</compile_context>

<pallas_src>
import functools
import math

import jax
import jax.numpy as jnp
from jax.experimental import pallas as pl
from jax.experimental.pallas import tpu as pltpu


def _round_up(x, m):
    return ((x + m - 1) // m) * m


# ----------------------------------------------------------------------------
# Fused forward kernel (single invocation, everything resident in VMEM)
# ----------------------------------------------------------------------------
def _fused_forward_kernel(xe_ref, n_ref, adj_ref, pvec_ref, wA_ref, wB_ref,
                          out_ref, *, num_layers, heads, d_model, d_ff,
                          d_node, bn_eps, ln_eps):
    dm = d_model
    dh = dm // heads

    # ---- packed small-parameter slab: one row per vector, lane offset 0 -----
    row_counter = [0]

    def pvec(width):
        r = row_counter[0]
        row_counter[0] += 1
        return pvec_ref[r:r + 1, 0:width]            # [1, width] f32

    fc1_w = pvec(d_node); fc1_b = pvec(d_node)
    bn4_g = pvec(d_node); bn4_b = pvec(d_node)
    conv1_b = pvec(dm); conv2_b = pvec(dm)
    bn1_g = pvec(dm); bn1_b = pvec(dm)
    bn2_g = pvec(dm); bn2_b = pvec(dm)
    bn3_g = pvec(dm); bn3_b = pvec(dm)
    lay_v = []
    for _ in range(num_layers):
        lay_v.append(dict(in_b=pvec(3 * dm), out_b=pvec(dm),
                          ln1_g=pvec(dm), ln1_b=pvec(dm),
                          ln2_g=pvec(dm), ln2_b=pvec(dm),
                          ff1_b=pvec(d_ff), ff2_b=pvec(dm)))
    head_b = pvec(128)

    # ---- bf16 weight slab A: contraction dim == d_model (lane-concatenated) --
    colA = [0]

    def wA(width):
        o = colA[0]
        colA[0] += width
        return wA_ref[:, o:o + width]                # [dm, width] bf16

    conv2_w = wA(dm)
    lay_w = []
    for _ in range(num_layers):
        lay_w.append(dict(in_w=wA(3 * dm), out_w=wA(dm), ff1_w=wA(d_ff)))
    head_w = wA(128)

    # ---- bf16 weight slab B: conv1_w + per-layer ff2_w (sublane-concatenated)
    dnp = _round_up(d_node, 8)
    conv1_w = wB_ref[0:d_node, :]                    # [D, dm] bf16
    ff2_ws = [wB_ref[dnp + l * d_ff: dnp + (l + 1) * d_ff, :]
              for l in range(num_layers)]

    # ---- helpers: bf16 MXU inputs / f32 accumulation; f32 elementwise --------
    def mm(a, w_bf16):
        return jnp.dot(a.astype(jnp.bfloat16), w_bf16,
                       preferred_element_type=jnp.float32)

    def batchnorm(x, g, b):
        # Training-mode biased batch statistics (matches the reference module
        # in train mode; running stats are not tracked).
        mean = jnp.mean(x, axis=0, keepdims=True)
        var = jnp.mean(jnp.square(x - mean), axis=0, keepdims=True)
        return (x - mean) * jax.lax.rsqrt(var + bn_eps) * g + b

    def layernorm(x, g, b):
        mean = jnp.mean(x, axis=-1, keepdims=True)
        var = jnp.mean(jnp.square(x - mean), axis=-1, keepdims=True)
        return (x - mean) * jax.lax.rsqrt(var + ln_eps) * g + b

    def leaky(x):
        return jnp.where(x > 0, x, 0.01 * x)

    # ---- edge features: fc1(||pos_col - pos_row||) -> BN4 --------------------
    nvec = n_ref[...]                                # [E, 1] f32 (norm precomputed)
    ef = nvec * fc1_w + fc1_b                        # Linear(1, D)
    ef = batchnorm(ef, bn4_g, bn4_b)
    x = xe_ref[...] + ef                             # [E, D]

    adj = adj_ref[...]                               # [E, E] bf16

    # ---- GCN stack:  A_hat @ (X @ W) + b  (all MXU inputs bf16) --------------
    h1 = jnp.dot(adj, mm(x, conv1_w).astype(jnp.bfloat16),
                 preferred_element_type=jnp.float32) + conv1_b
    h = batchnorm(leaky(h1), bn1_g, bn1_b)
    h2 = jnp.dot(adj, mm(h, conv2_w).astype(jnp.bfloat16),
                 preferred_element_type=jnp.float32) + conv2_b
    h = batchnorm(leaky(h + h2), bn2_g, bn2_b)       # [E, dm]

    E = h.shape[0]

    # ---- transformer encoder (post-norm, ReLU FFN; dropout == eval mode) -----
    # 1/sqrt(dh) is pre-folded into the Q columns of in_w / in_b (wrapper).
    for l in range(num_layers):
        Lv, Lw = lay_v[l], lay_w[l]
        qkv = mm(h, Lw["in_w"]) + Lv["in_b"]         # [E, 3*dm]
        q = qkv[:, 0:dm]
        k = qkv[:, dm:2 * dm]
        v = qkv[:, 2 * dm:3 * dm]
        out_w = Lw["out_w"]                          # [dm, dm] bf16
        # Per-head attention; head outputs are folded straight through the
        # matching rows of out_w (no 64-lane concatenate / XLU relayout).
        a = jnp.zeros((E, dm), jnp.float32)
        for hh in range(heads):                      # static loop (heads small)
            lo, hi = hh * dh, (hh + 1) * dh
            qh = q[:, lo:hi].astype(jnp.bfloat16)
            kh = k[:, lo:hi].astype(jnp.bfloat16)
            vh = v[:, lo:hi].astype(jnp.bfloat16)
            s = jax.lax.dot_general(qh, kh, (((1,), (1,)), ((), ())),
                                    preferred_element_type=jnp.float32)
            m = jnp.max(s, axis=-1, keepdims=True)
            p = jnp.exp(s - m)
            p = p * pl.reciprocal(jnp.sum(p, axis=-1, keepdims=True),
                                  approx=True)       # EUP slot
            oh = jnp.dot(p.astype(jnp.bfloat16), vh,
                         preferred_element_type=jnp.float32)
            a = a + jnp.dot(oh.astype(jnp.bfloat16), out_w[lo:hi, :],
                            preferred_element_type=jnp.float32)
        a = a + Lv["out_b"]
        h = layernorm(h + a, Lv["ln1_g"], Lv["ln1_b"])
        f = jnp.maximum(mm(h, Lw["ff1_w"]) + Lv["ff1_b"], 0.0)
        f = mm(f, ff2_ws[l]) + Lv["ff2_b"]
        h = layernorm(h + f, Lv["ln2_g"], Lv["ln2_b"])

    # ---- leaky_relu -> BN3 -> merged (fc3 | fc4) head, lane-dense output -----
    h = batchnorm(leaky(h), bn3_g, bn3_b)
    out_ref[...] = mm(h, head_w) + head_b            # [E, 128]


# ----------------------------------------------------------------------------
# Glue: dense normalized adjacency for GCNConv (self loops, sym-normalize)
# ----------------------------------------------------------------------------
def gcn_norm_adj(edge_index, num_nodes):
    row, col = edge_index[0], edge_index[1]
    loops = jnp.arange(num_nodes, dtype=edge_index.dtype)
    row = jnp.concatenate([row, loops])
    col = jnp.concatenate([col, loops])
    deg = jnp.zeros((num_nodes,), jnp.float32).at[col].add(1.0)
    dinv = jnp.where(deg > 0, jax.lax.rsqrt(deg), 0.0)
    norm = dinv[row] * dinv[col]
    # out[i] = sum_{edges j->i} norm * x_j   ==>   A_hat[i, j] += norm
    return jnp.zeros((num_nodes, num_nodes), jnp.float32).at[col, row].add(norm)


# ----------------------------------------------------------------------------
# One-time parameter packing (OUTSIDE the per-call jit): bf16 casts, merged
# fc3|fc4 head, folded 1/sqrt(dh) attention scale, DMA-friendly slabs.
# ----------------------------------------------------------------------------
def prepare_params(params, heads):
    dm = params["conv1_w"].shape[1]
    D = params["conv1_w"].shape[0]
    dff = params["layers"][0]["ff1_w"].shape[1]
    scale = 1.0 / math.sqrt(dm // heads)

    # merged, lane-padded output head: col 0 = fc3, cols 1..9 = fc4
    head_w = jnp.zeros((dm, 128), jnp.float32)
    head_w = head_w.at[:, 0:1].set(params["fc3_w"])
    head_w = head_w.at[:, 1:10].set(params["fc4_w"])
    head_b = jnp.zeros((128,), jnp.float32)
    head_b = head_b.at[0:1].set(params["fc3_b"].reshape(-1))
    head_b = head_b.at[1:10].set(params["fc4_b"].reshape(-1))

    # --- small-vector slab: one row per parameter vector, width = dff ---------
    rows = []

    def add(vec, width):
        v = jnp.reshape(vec, (-1,))[:width].astype(jnp.float32)
        rows.append(jnp.pad(v, (0, dff - width)))

    add(params["fc1_w"], D); add(params["fc1_b"], D)
    add(params["bn4_g"], D); add(params["bn4_b"], D)
    add(params["conv1_b"], dm); add(params["conv2_b"], dm)
    for i in (1, 2, 3):
        add(params[f"bn{i}_g"], dm); add(params[f"bn{i}_b"], dm)
    for L in params["layers"]:
        in_b = jnp.reshape(L["in_b"], (-1,)).at[:dm].multiply(scale)  # fold Q scale
        add(in_b, 3 * dm)
        add(L["out_b"], dm)
        add(L["ln1_g"], dm); add(L["ln1_b"], dm)
        add(L["ln2_g"], dm); add(L["ln2_b"], dm)
        add(L["ff1_b"], dff); add(L["ff2_b"], dm)
    add(head_b, 128)
    pvec = jnp.stack(rows)
    rp = _round_up(pvec.shape[0], 8)
    pvec = jnp.pad(pvec, ((0, rp - pvec.shape[0]), (0, 0)))

    # --- weight slab A (contraction dim == d_model), lane-concatenated, bf16 --
    colsA = [params["conv2_w"]]
    for L in params["layers"]:
        in_w = L["in_w"].at[:, :dm].multiply(scale)   # fold attention scale
        colsA += [in_w, L["out_w"], L["ff1_w"]]
    colsA.append(head_w)
    wA = jnp.concatenate(colsA, axis=1).astype(jnp.bfloat16)

    # --- weight slab B (conv1_w, ff2_w), sublane-concatenated, bf16 -----------
    dnp = _round_up(D, 8)
    rowsB = [jnp.pad(params["conv1_w"], ((0, dnp - D), (0, 0)))]
    for L in params["layers"]:
        rowsB.append(L["ff2_w"])
    wB = jnp.concatenate(rowsB, axis=0).astype(jnp.bfloat16)

    return dict(embedding=params["embedding"].astype(jnp.float32),
                pvec=pvec, wA=wA, wB=wB)


# ----------------------------------------------------------------------------
# Per-call wrapper: gathers + adjacency in plain JAX, one fused pallas_call
# ----------------------------------------------------------------------------
def graph_transformer_forward(packed, x_idx, edge_index, pos, y, *,
                              heads, num_layers):
    # TODO(synk): atom-string -> index mapping is Python-side glue; integer
    # indices are taken directly.
    emb = packed["embedding"]
    dm = packed["wA"].shape[0]
    dff = packed["pvec"].shape[1]
    D = emb.shape[1]

    x = emb[x_idx]                                   # [N, D]
    ei = edge_index - 1                              # 1-indexed -> 0-indexed
    row, col = ei[0], ei[1]
    diff = (pos[col] - pos[row]).astype(jnp.float32)
    n = jnp.sqrt(jnp.sum(diff * diff, axis=-1, keepdims=True))    # [E, 1]
    xe_base = (x[row] + x[col]).astype(jnp.float32)  # [E, D]
    E = xe_base.shape[0]

    adj = gcn_norm_adj(y, E).astype(jnp.bfloat16)    # [E, E] bf16

    # advisory cost estimate (helps XLA schedule the surrounding glue ops)
    flops = 2 * E * D * dm + 2 * E * E * dm                      # conv1
    flops += 2 * E * dm * dm + 2 * E * E * dm                    # conv2
    flops += num_layers * (2 * E * dm * 3 * dm + 4 * E * E * dm
                           + 2 * E * dm * dm + 4 * E * dm * dff)  # encoder
    flops += 2 * E * dm * 128                                    # merged head
    transcendentals = num_layers * heads * E * E + 8 * E
    bytes_accessed = sum(int(a.size) * a.dtype.itemsize for a in
                         (xe_base, n, adj, packed["pvec"],
                          packed["wA"], packed["wB"]))
    bytes_accessed += E * 128 * 4

    out = pl.pallas_call(
        functools.partial(_fused_forward_kernel, num_layers=num_layers,
                          heads=heads, d_model=dm, d_ff=dff, d_node=D,
                          bn_eps=1e-6, ln_eps=1e-5),
        out_shape=jax.ShapeDtypeStruct((E, 128), jnp.float32),
        compiler_params=pltpu.CompilerParams(
            vmem_limit_bytes=32 * 1024 * 1024),
        cost_estimate=pl.CostEstimate(flops=flops,
                                      transcendentals=transcendentals,
                                      bytes_accessed=bytes_accessed),
    )(xe_base, n, adj, packed["pvec"], packed["wA"], packed["wB"])

    sym_out = out[:, 0:1]                            # [E, 1]  (fc3)
    asym_out = out[:, 1:10]                          # [E, 9]  (fc4)
    return sym_out, asym_out


# ----------------------------------------------------------------------------
# Deterministic parameter construction
# ----------------------------------------------------------------------------
def init_params(key, D, vocab, d_model=256, dff=2048, num_layers=2):
    keys = iter(jax.random.split(key, 64))

    def nrm(shape, std):
        return jax.random.normal(next(keys), shape, jnp.float32) * std

    p = {}
    p["embedding"] = nrm((vocab, D), 1.0)
    p["fc1_w"] = nrm((1, D), math.sqrt(2.0 / 1.0))   # kaiming (fan_in=1), transposed
    p["fc1_b"] = nrm((1, D), 1e-6)
    p["bn4_g"], p["bn4_b"] = jnp.ones((1, D)), jnp.zeros((1, D))
    p["conv1_w"] = nrm((D, d_model), math.sqrt(1.0 / D))
    p["conv1_b"] = jnp.zeros((1, d_model))
    p["conv2_w"] = nrm((d_model, d_model), math.sqrt(1.0 / d_model))
    p["conv2_b"] = jnp.zeros((1, d_model))
    for i in (1, 2, 3):
        p[f"bn{i}_g"], p[f"bn{i}_b"] = jnp.ones((1, d_model)), jnp.zeros((1, d_model))
    layers = []
    for _ in range(num_layers):
        layers.append({
            "in_w": nrm((d_model, 3 * d_model), math.sqrt(1.0 / d_model)),
            "in_b": jnp.zeros((1, 3 * d_model)),
            "out_w": nrm((d_model, d_model), math.sqrt(1.0 / d_model)),
            "out_b": jnp.zeros((1, d_model)),
            "ln1_g": jnp.ones((1, d_model)), "ln1_b": jnp.zeros((1, d_model)),
            "ln2_g": jnp.ones((1, d_model)), "ln2_b": jnp.zeros((1, d_model)),
            "ff1_w": nrm((d_model, dff), math.sqrt(1.0 / d_model)),
            "ff1_b": jnp.zeros((1, dff)),
            "ff2_w": nrm((dff, d_model), math.sqrt(1.0 / dff)),
            "ff2_b": jnp.zeros((1, d_model)),
        })
    p["layers"] = layers
    p["fc3_w"] = nrm((d_model, 1), math.sqrt(2.0 / d_model))
    p["fc3_b"] = nrm((1, 1), 1e-6)
    p["fc4_w"] = nrm((d_model, 9), math.sqrt(2.0 / d_model))
    p["fc4_b"] = nrm((1, 9), 1e-6)
    return p


# ----------------------------------------------------------------------------
if __name__ == "__main__":
    key = jax.random.PRNGKey(0)
    D = 32              # node_features == embedding_dim (needed by x[row]+x[col]+edge_features)
    vocab = 10
    N = 12              # atoms / nodes
    E = 16              # edges (sequence length for the transformer)
    Ey = 24             # edges of the GCN graph over edge-features
    heads = 4
    num_layers = 2

    kp, kx, ke, kpos, ky = jax.random.split(key, 5)
    params = init_params(kp, D, vocab, num_layers=num_layers)
    packed = prepare_params(params, heads=heads)     # one-time packing (not per call)

    x_idx = jax.random.randint(kx, (N,), 0, vocab, dtype=jnp.int32)          # atom indices
    edge_index = jax.random.randint(ke, (2, E), 1, N + 1, dtype=jnp.int32)   # 1-indexed
    pos = jax.random.normal(kpos, (N, 3), jnp.float32)
    y = jax.random.randint(ky, (2, Ey), 0, E, dtype=jnp.int32)               # GCN graph over E edge-nodes

    fwd = jax.jit(functools.partial(graph_transformer_forward,
                                    heads=heads, num_layers=num_layers))
    sym, asym = fwd(packed, x_idx, edge_index, pos, y)
    jax.block_until_ready((sym, asym))

    assert sym.shape == (E, 1) and asym.shape == (E, 9)
    assert bool(jnp.all(jnp.isfinite(sym))) and bool(jnp.all(jnp.isfinite(asym)))
    print("KERNEL_OK")
</pallas_src>

<mosaic_0001>
module attributes {stable_mosaic.version = 11 : i64} {
  func.func private @main(%arg0: i32) attributes {dimension_semantics = [#tpu.dimension_semantics<core_parallel>], iteration_bounds = array<i64: 2>, tpu.core_type = #tpu.core_type<sc_scalar_subcore>, window_params = []} {
    return
  }
}

module attributes {stable_mosaic.version = 11 : i64} {
  func.func private @main(%arg0: i32) attributes {dimension_semantics = [#tpu.dimension_semantics<core_parallel>], iteration_bounds = array<i64: 2>, tpu.core_type = #tpu.core_type<sc_scalar_subcore>, window_params = []} {
    return
  }
}

module attributes {stable_mosaic.version = 11 : i64} {
  func.func @_fused_forward_kernel(%arg0: memref<16x32xf32, #tpu.memory_space<vmem>>, %arg1: memref<16x1xf32, #tpu.memory_space<vmem>>, %arg2: memref<16x16xbf16, #tpu.memory_space<vmem>>, %arg3: memref<32x2048xf32, #tpu.memory_space<vmem>>, %arg4: memref<256x6528xbf16, #tpu.memory_space<vmem>>, %arg5: memref<4128x256xbf16, #tpu.memory_space<vmem>>, %arg6: memref<16x128xf32, #tpu.memory_space<vmem>>) attributes {dimension_semantics = [], scalar_prefetch = 0 : i64, scratch_operands = 0 : i64, tpu.core_type = #tpu.core_type<tc>} {
    %c0 = arith.constant 0 : index
    %c0_0 = arith.constant 0 : index
    %0 = vector.load %arg3[%c0, %c0_0] : memref<32x2048xf32, #tpu.memory_space<vmem>>, vector<1x32xf32>
    %c1 = arith.constant 1 : index
    %c0_1 = arith.constant 0 : index
    %1 = vector.load %arg3[%c1, %c0_1] : memref<32x2048xf32, #tpu.memory_space<vmem>>, vector<1x32xf32>
    %c2 = arith.constant 2 : index
    %c0_2 = arith.constant 0 : index
    %2 = vector.load %arg3[%c2, %c0_2] : memref<32x2048xf32, #tpu.memory_space<vmem>>, vector<1x32xf32>
    %c3 = arith.constant 3 : index
    %c0_3 = arith.constant 0 : index
    %3 = vector.load %arg3[%c3, %c0_3] : memref<32x2048xf32, #tpu.memory_space<vmem>>, vector<1x32xf32>
    %c4 = arith.constant 4 : index
    %c0_4 = arith.constant 0 : index
    %4 = vector.load %arg3[%c4, %c0_4] : memref<32x2048xf32, #tpu.memory_space<vmem>>, vector<1x256xf32>
    %c5 = arith.constant 5 : index
    %c0_5 = arith.constant 0 : index
    %5 = vector.load %arg3[%c5, %c0_5] : memref<32x2048xf32, #tpu.memory_space<vmem>>, vector<1x256xf32>
    %c6 = arith.constant 6 : index
    %c0_6 = arith.constant 0 : index
    %6 = vector.load %arg3[%c6, %c0_6] : memref<32x2048xf32, #tpu.memory_space<vmem>>, vector<1x256xf32>
    %c7 = arith.constant 7 : index
    %c0_7 = arith.constant 0 : index
    %7 = vector.load %arg3[%c7, %c0_7] : memref<32x2048xf32, #tpu.memory_space<vmem>>, vector<1x256xf32>
    %c8 = arith.constant 8 : index
    %c0_8 = arith.constant 0 : index
    %8 = vector.load %arg3[%c8, %c0_8] : memref<32x2048xf32, #tpu.memory_space<vmem>>, vector<1x256xf32>
    %c9 = arith.constant 9 : index
    %c0_9 = arith.constant 0 : index
    %9 = vector.load %arg3[%c9, %c0_9] : memref<32x2048xf32, #tpu.memory_space<vmem>>, vector<1x256xf32>
    %c10 = arith.constant 10 : index
    %c0_10 = arith.constant 0 : index
    %10 = vector.load %arg3[%c10, %c0_10] : memref<32x2048xf32, #tpu.memory_space<vmem>>, vector<1x256xf32>
    %c11 = arith.constant 11 : index
    %c0_11 = arith.constant 0 : index
    %11 = vector.load %arg3[%c11, %c0_11] : memref<32x2048xf32, #tpu.memory_space<vmem>>, vector<1x256xf32>
    %c12 = arith.constant 12 : index
    %c0_12 = arith.constant 0 : index
    %12 = vector.load %arg3[%c12, %c0_12] : memref<32x2048xf32, #tpu.memory_space<vmem>>, vector<1x768xf32>
    %c13 = arith.constant 13 : index
    %c0_13 = arith.constant 0 : index
    %13 = vector.load %arg3[%c13, %c0_13] : memref<32x2048xf32, #tpu.memory_space<vmem>>, vector<1x256xf32>
    %c14 = arith.constant 14 : index
    %c0_14 = arith.constant 0 : index
    %14 = vector.load %arg3[%c14, %c0_14] : memref<32x2048xf32, #tpu.memory_space<vmem>>, vector<1x256xf32>
    %c15 = arith.constant 15 : index
    %c0_15 = arith.constant 0 : index
    %15 = vector.load %arg3[%c15, %c0_15] : memref<32x2048xf32, #tpu.memory_space<vmem>>, vector<1x256xf32>
    %c16 = arith.constant 16 : index
    %c0_16 = arith.constant 0 : index
    %16 = vector.load %arg3[%c16, %c0_16] : memref<32x2048xf32, #tpu.memory_space<vmem>>, vector<1x256xf32>
    %c17 = arith.constant 17 : index
    %c0_17 = arith.constant 0 : index
    %17 = vector.load %arg3[%c17, %c0_17] : memref<32x2048xf32, #tpu.memory_space<vmem>>, vector<1x256xf32>
    %c18 = arith.constant 18 : index
    %c0_18 = arith.constant 0 : index
    %18 = vector.load %arg3[%c18, %c0_18] : memref<32x2048xf32, #tpu.memory_space<vmem>>, vector<1x2048xf32>
    %c19 = arith.constant 19 : index
    %c0_19 = arith.constant 0 : index
    %19 = vector.load %arg3[%c19, %c0_19] : memref<32x2048xf32, #tpu.memory_space<vmem>>, vector<1x256xf32>
    %c20 = arith.constant 20 : index
    %c0_20 = arith.constant 0 : index
    %20 = vector.load %arg3[%c20, %c0_20] : memref<32x2048xf32, #tpu.memory_space<vmem>>, vector<1x768xf32>
    %c21 = arith.constant 21 : index
    %c0_21 = arith.constant 0 : index
    %21 = vector.load %arg3[%c21, %c0_21] : memref<32x2048xf32, #tpu.memory_space<vmem>>, vector<1x256xf32>
    %c22 = arith.constant 22 : index
    %c0_22 = arith.constant 0 : index
    %22 = vector.load %arg3[%c22, %c0_22] : memref<32x2048xf32, #tpu.memory_space<vmem>>, vector<1x256xf32>
    %c23 = arith.constant 23 : index
    %c0_23 = arith.constant 0 : index
    %23 = vector.load %arg3[%c23, %c0_23] : memref<32x2048xf32, #tpu.memory_space<vmem>>, vector<1x256xf32>
    %c24 = arith.constant 24 : index
    %c0_24 = arith.constant 0 : index
    %24 = vector.load %arg3[%c24, %c0_24] : memref<32x2048xf32, #tpu.memory_space<vmem>>, vector<1x256xf32>
    %c25 = arith.constant 25 : index
    %c0_25 = arith.constant 0 : index
    %25 = vector.load %arg3[%c25, %c0_25] : memref<32x2048xf32, #tpu.memory_space<vmem>>, vector<1x256xf32>
    %c26 = arith.constant 26 : index
    %c0_26 = arith.constant 0 : index
    %26 = vector.load %arg3[%c26, %c0_26] : memref<32x2048xf32, #tpu.memory_space<vmem>>, vector<1x2048xf32>
    %c27 = arith.constant 27 : index
    %c0_27 = arith.constant 0 : index
    %27 = vector.load %arg3[%c27, %c0_27] : memref<32x2048xf32, #tpu.memory_space<vmem>>, vector<1x256xf32>
    %c28 = arith.constant 28 : index
    %c0_28 = arith.constant 0 : index
    %28 = vector.load %arg3[%c28, %c0_28] : memref<32x2048xf32, #tpu.memory_space<vmem>>, vector<1x128xf32>
    %c0_29 = arith.constant 0 : index
    %c0_30 = arith.constant 0 : index
    %29 = vector.load %arg4[%c0_29, %c0_30] : memref<256x6528xbf16, #tpu.memory_space<vmem>>, vector<256x256xbf16>
    %c0_31 = arith.constant 0 : index
    %c256 = arith.constant 256 : index
    %30 = vector.load %arg4[%c0_31, %c256] : memref<256x6528xbf16, #tpu.memory_space<vmem>>, vector<256x768xbf16>
    %c0_32 = arith.constant 0 : index
    %c1024 = arith.constant 1024 : index
    %31 = vector.load %arg4[%c0_32, %c1024] : memref<256x6528xbf16, #tpu.memory_space<vmem>>, vector<256x256xbf16>
    %c0_33 = arith.constant 0 : index
    %c1280 = arith.constant 1280 : index
    %32 = vector.load %arg4[%c0_33, %c1280] : memref<256x6528xbf16, #tpu.memory_space<vmem>>, vector<256x2048xbf16>
    %c0_34 = arith.constant 0 : index
    %c3328 = arith.constant 3328 : index
    %33 = vector.load %arg4[%c0_34, %c3328] : memref<256x6528xbf16, #tpu.memory_space<vmem>>, vector<256x768xbf16>
    %c0_35 = arith.constant 0 : index
    %c4096 = arith.constant 4096 : index
    %34 = vector.load %arg4[%c0_35, %c4096] : memref<256x6528xbf16, #tpu.memory_space<vmem>>, vector<256x256xbf16>
    %c0_36 = arith.constant 0 : index
    %c4352 = arith.constant 4352 : index
    %35 = vector.load %arg4[%c0_36, %c4352] : memref<256x6528xbf16, #tpu.memory_space<vmem>>, vector<256x2048xbf16>
    %c0_37 = arith.constant 0 : index
    %c6400 = arith.constant 6400 : index
    %36 = vector.load %arg4[%c0_37, %c6400] : memref<256x6528xbf16, #tpu.memory_space<vmem>>, vector<256x128xbf16>
    %c0_38 = arith.constant 0 : index
    %c0_39 = arith.constant 0 : index
    %37 = vector.load %arg5[%c0_38, %c0_39] : memref<4128x256xbf16, #tpu.memory_space<vmem>>, vector<32x256xbf16>
    %c32 = arith.constant 32 : index
    %c0_40 = arith.constant 0 : index
    %38 = vector.load %arg5[%c32, %c0_40] : memref<4128x256xbf16, #tpu.memory_space<vmem>>, vector<2048x256xbf16>
    %c2080 = arith.constant 2080 : index
    %c0_41 = arith.constant 0 : index
    %39 = vector.load %arg5[%c2080, %c0_41] : memref<4128x256xbf16, #tpu.memory_space<vmem>>, vector<2048x256xbf16>
    %c0_42 = arith.constant 0 : index
    %c0_43 = arith.constant 0 : index
    %40 = vector.load %arg1[%c0_42, %c0_43] : memref<16x1xf32, #tpu.memory_space<vmem>>, vector<16x1xf32>
    %41 = vector.broadcast %40 : vector<16x1xf32> to vector<16x32xf32>
    %42 = vector.broadcast %0 : vector<1x32xf32> to vector<16x32xf32>
    %43 = arith.mulf %41, %42 : vector<16x32xf32>
    %44 = vector.broadcast %1 : vector<1x32xf32> to vector<16x32xf32>
    %45 = arith.addf %43, %44 : vector<16x32xf32>
    %cst = arith.constant dense<0.000000e+00> : vector<32xf32>
    %46 = vector.multi_reduction <add>, %45, %cst [0] : vector<16x32xf32> to vector<32xf32>
    %47 = vector.shape_cast %46 : vector<32xf32> to vector<1x32xf32>
    %cst_44 = arith.constant 1.600000e+01 : f32
    %48 = vector.broadcast %cst_44 : f32 to vector<1x32xf32>
    %49 = arith.divf %47, %48 : vector<1x32xf32>
    %50 = vector.broadcast %49 : vector<1x32xf32> to vector<16x32xf32>
    %51 = arith.subf %45, %50 : vector<16x32xf32>
    %52 = arith.mulf %51, %51 : vector<16x32xf32>
    %cst_45 = arith.constant dense<0.000000e+00> : vector<32xf32>
    %53 = vector.multi_reduction <add>, %52, %cst_45 [0] : vector<16x32xf32> to vector<32xf32>
    %54 = vector.shape_cast %53 : vector<32xf32> to vector<1x32xf32>
    %cst_46 = arith.constant 1.600000e+01 : f32
    %55 = vector.broadcast %cst_46 : f32 to vector<1x32xf32>
    %56 = arith.divf %54, %55 : vector<1x32xf32>
    %57 = vector.broadcast %49 : vector<1x32xf32> to vector<16x32xf32>
    %58 = arith.subf %45, %57 : vector<16x32xf32>
    %cst_47 = arith.constant 9.99999997E-7 : f32
    %59 = vector.broadcast %cst_47 : f32 to vector<1x32xf32>
    %60 = arith.addf %56, %59 : vector<1x32xf32>
    %61 = math.rsqrt %60 : vector<1x32xf32>
    %62 = vector.broadcast %61 : vector<1x32xf32> to vector<16x32xf32>
    %63 = arith.mulf %58, %62 : vector<16x32xf32>
    %64 = vector.broadcast %2 : vector<1x32xf32> to vector<16x32xf32>
    %65 = arith.mulf %63, %64 : vector<16x32xf32>
    %66 = vector.broadcast %3 : vector<1x32xf32> to vector<16x32xf32>
    %67 = arith.addf %65, %66 : vector<16x32xf32>
    %c0_48 = arith.constant 0 : index
    %c0_49 = arith.constant 0 : index
    %68 = vector.load %arg0[%c0_48, %c0_49] : memref<16x32xf32, #tpu.memory_space<vmem>>, vector<16x32xf32>
    %69 = arith.addf %68, %67 : vector<16x32xf32>
    %c0_50 = arith.constant 0 : index
    %c0_51 = arith.constant 0 : index
    %70 = vector.load %arg2[%c0_50, %c0_51] : memref<16x16xbf16, #tpu.memory_space<vmem>>, vector<16x16xbf16>
    %71 = arith.truncf %69 : vector<16x32xf32> to vector<16x32xbf16>
    %cst_52 = arith.constant dense<0.000000e+00> : vector<16x256xf32>
    %72 = tpu.matmul %71, %37, %cst_52 {dimension_numbers = #tpu.dot_dimension_numbers<[1], [0], [0], [1], [0, 0, 1, 1], [], []>} : vector<16x32xbf16>, vector<32x256xbf16>, vector<16x256xf32> -> vector<16x256xf32>
    %73 = arith.truncf %72 : vector<16x256xf32> to vector<16x256xbf16>
    %cst_53 = arith.constant dense<0.000000e+00> : vector<16x256xf32>
    %74 = tpu.matmul %70, %73, %cst_53 {dimension_numbers = #tpu.dot_dimension_numbers<[1], [0], [0], [1], [0, 0, 1, 1], [], []>} : vector<16x16xbf16>, vector<16x256xbf16>, vector<16x256xf32> -> vector<16x256xf32>
    %75 = vector.broadcast %4 : vector<1x256xf32> to vector<16x256xf32>
    %76 = arith.addf %74, %75 : vector<16x256xf32>
    %cst_54 = arith.constant 0.000000e+00 : f32
    %77 = vector.broadcast %cst_54 : f32 to vector<16x256xf32>
    %78 = arith.cmpf ogt, %76, %77 : vector<16x256xf32>
    %cst_55 = arith.constant 0.00999999977 : f32
    %79 = vector.broadcast %cst_55 : f32 to vector<16x256xf32>
    %80 = arith.mulf %79, %76 : vector<16x256xf32>
    %81 = arith.select %78, %76, %80 : vector<16x256xi1>, vector<16x256xf32>
    %cst_56 = arith.constant dense<0.000000e+00> : vector<256xf32>
    %82 = vector.multi_reduction <add>, %81, %cst_56 [0] : vector<16x256xf32> to vector<256xf32>
    %83 = vector.shape_cast %82 : vector<256xf32> to vector<1x256xf32>
    %cst_57 = arith.constant 1.600000e+01 : f32
    %84 = vector.broadcast %cst_57 : f32 to vector<1x256xf32>
    %85 = arith.divf %83, %84 : vector<1x256xf32>
    %86 = vector.broadcast %85 : vector<1x256xf32> to vector<16x256xf32>
    %87 = arith.subf %81, %86 : vector<16x256xf32>
    %88 = arith.mulf %87, %87 : vector<16x256xf32>
    %cst_58 = arith.constant dense<0.000000e+00> : vector<256xf32>
    %89 = vector.multi_reduction <add>, %88, %cst_58 [0] : vector<16x256xf32> to vector<256xf32>
    %90 = vector.shape_cast %89 : vector<256xf32> to vector<1x256xf32>
    %cst_59 = arith.constant 1.600000e+01 : f32
    %91 = vector.broadcast %cst_59 : f32 to vector<1x256xf32>
    %92 = arith.divf %90, %91 : vector<1x256xf32>
    %93 = vector.broadcast %85 : vector<1x256xf32> to vector<16x256xf32>
    %94 = arith.subf %81, %93 : vector<16x256xf32>
    %cst_60 = arith.constant 9.99999997E-7 : f32
    %95 = vector.broadcast %cst_60 : f32 to vector<1x256xf32>
    %96 = arith.addf %92, %95 : vector<1x256xf32>
    %97 = math.rsqrt %96 : vector<1x256xf32>
    %98 = vector.broadcast %97 : vector<1x256xf32> to vector<16x256xf32>
    %99 = arith.mulf %94, %98 : vector<16x256xf32>
    %100 = vector.broadcast %6 : vector<1x256xf32> to vector<16x256xf32>
    %101 = arith.mulf %99, %100 : vector<16x256xf32>
    %102 = vector.broadcast %7 : vector<1x256xf32> to vector<16x256xf32>
    %103 = arith.addf %101, %102 : vector<16x256xf32>
    %104 = arith.truncf %103 : vector<16x256xf32> to vector<16x256xbf16>
    %cst_61 = arith.constant dense<0.000000e+00> : vector<16x256xf32>
    %105 = tpu.matmul %104, %29, %cst_61 {dimension_numbers = #tpu.dot_dimension_numbers<[1], [0], [0], [1], [0, 0, 1, 1], [], []>} : vector<16x256xbf16>, vector<256x256xbf16>, vector<16x256xf32> -> vector<16x256xf32>
    %106 = arith.truncf %105 : vector<16x256xf32> to vector<16x256xbf16>
    %cst_62 = arith.constant dense<0.000000e+00> : vector<16x256xf32>
    %107 = tpu.matmul %70, %106, %cst_62 {dimension_numbers = #tpu.dot_dimension_numbers<[1], [0], [0], [1], [0, 0, 1, 1], [], []>} : vector<16x16xbf16>, vector<16x256xbf16>, vector<16x256xf32> -> vector<16x256xf32>
    %108 = vector.broadcast %5 : vector<1x256xf32> to vector<16x256xf32>
    %109 = arith.addf %107, %108 : vector<16x256xf32>
    %110 = arith.addf %103, %109 : vector<16x256xf32>
    %cst_63 = arith.constant 0.000000e+00 : f32
    %111 = vector.broadcast %cst_63 : f32 to vector<16x256xf32>
    %112 = arith.cmpf ogt, %110, %111 : vector<16x256xf32>
    %cst_64 = arith.constant 0.00999999977 : f32
    %113 = vector.broadcast %cst_64 : f32 to vector<16x256xf32>
    %114 = arith.mulf %113, %110 : vector<16x256xf32>
    %115 = arith.select %112, %110, %114 : vector<16x256xi1>, vector<16x256xf32>
    %cst_65 = arith.constant dense<0.000000e+00> : vector<256xf32>
    %116 = vector.multi_reduction <add>, %115, %cst_65 [0] : vector<16x256xf32> to vector<256xf32>
    %117 = vector.shape_cast %116 : vector<256xf32> to vector<1x256xf32>
    %cst_66 = arith.constant 1.600000e+01 : f32
    %118 = vector.broadcast %cst_66 : f32 to vector<1x256xf32>
    %119 = arith.divf %117, %118 : vector<1x256xf32>
    %120 = vector.broadcast %119 : vector<1x256xf32> to vector<16x256xf32>
    %121 = arith.subf %115, %120 : vector<16x256xf32>
    %122 = arith.mulf %121, %121 : vector<16x256xf32>
    %cst_67 = arith.constant dense<0.000000e+00> : vector<256xf32>
    %123 = vector.multi_reduction <add>, %122, %cst_67 [0] : vector<16x256xf32> to vector<256xf32>
    %124 = vector.shape_cast %123 : vector<256xf32> to vector<1x256xf32>
    %cst_68 = arith.constant 1.600000e+01 : f32
    %125 = vector.broadcast %cst_68 : f32 to vector<1x256xf32>
    %126 = arith.divf %124, %125 : vector<1x256xf32>
    %127 = vector.broadcast %119 : vector<1x256xf32> to vector<16x256xf32>
    %128 = arith.subf %115, %127 : vector<16x256xf32>
    %cst_69 = arith.constant 9.99999997E-7 : f32
    %129 = vector.broadcast %cst_69 : f32 to vector<1x256xf32>
    %130 = arith.addf %126, %129 : vector<1x256xf32>
    %131 = math.rsqrt %130 : vector<1x256xf32>
    %132 = vector.broadcast %131 : vector<1x256xf32> to vector<16x256xf32>
    %133 = arith.mulf %128, %132 : vector<16x256xf32>
    %134 = vector.broadcast %8 : vector<1x256xf32> to vector<16x256xf32>
    %135 = arith.mulf %133, %134 : vector<16x256xf32>
    %136 = vector.broadcast %9 : vector<1x256xf32> to vector<16x256xf32>
    %137 = arith.addf %135, %136 : vector<16x256xf32>
    %138 = arith.truncf %137 : vector<16x256xf32> to vector<16x256xbf16>
    %cst_70 = arith.constant dense<0.000000e+00> : vector<16x768xf32>
    %139 = tpu.matmul %138, %30, %cst_70 {dimension_numbers = #tpu.dot_dimension_numbers<[1], [0], [0], [1], [0, 0, 1, 1], [], []>} : vector<16x256xbf16>, vector<256x768xbf16>, vector<16x768xf32> -> vector<16x768xf32>
    %140 = vector.broadcast %12 : vector<1x768xf32> to vector<16x768xf32>
    %141 = arith.addf %139, %140 : vector<16x768xf32>
    %142 = vector.extract_strided_slice %141 {offsets = [0, 0], sizes = [16, 256], strides = [1, 1]} : vector<16x768xf32> to vector<16x256xf32>
    %143 = vector.extract_strided_slice %141 {offsets = [0, 256], sizes = [16, 256], strides = [1, 1]} : vector<16x768xf32> to vector<16x256xf32>
    %144 = vector.extract_strided_slice %141 {offsets = [0, 512], sizes = [16, 256], strides = [1, 1]} : vector<16x768xf32> to vector<16x256xf32>
    %cst_71 = arith.constant 0.000000e+00 : f32
    %145 = vector.broadcast %cst_71 : f32 to vector<16x256xf32>
    %146 = vector.extract_strided_slice %142 {offsets = [0, 0], sizes = [16, 64], strides = [1, 1]} : vector<16x256xf32> to vector<16x64xf32>
    %147 = arith.truncf %146 : vector<16x64xf32> to vector<16x64xbf16>
    %148 = vector.extract_strided_slice %143 {offsets = [0, 0], sizes = [16, 64], strides = [1, 1]} : vector<16x256xf32> to vector<16x64xf32>
    %149 = arith.truncf %148 : vector<16x64xf32> to vector<16x64xbf16>
    %150 = vector.extract_strided_slice %144 {offsets = [0, 0], sizes = [16, 64], strides = [1, 1]} : vector<16x256xf32> to vector<16x64xf32>
    %151 = arith.truncf %150 : vector<16x64xf32> to vector<16x64xbf16>
    %cst_72 = arith.constant dense<0.000000e+00> : vector<16x16xf32>
    %152 = tpu.matmul %147, %149, %cst_72 {dimension_numbers = #tpu.dot_dimension_numbers<[1], [1], [0], [0], [0, 0, 1, 0], [], []>} : vector<16x64xbf16>, vector<16x64xbf16>, vector<16x16xf32> -> vector<16x16xf32>
    %cst_73 = arith.constant dense<0xFF800000> : vector<16xf32>
    %153 = vector.multi_reduction <maximumf>, %152, %cst_73 [1] : vector<16x16xf32> to vector<16xf32>
    %154 = vector.shape_cast %153 : vector<16xf32> to vector<16x1xf32>
    %155 = vector.broadcast %154 : vector<16x1xf32> to vector<16x16xf32>
    %156 = arith.subf %152, %155 : vector<16x16xf32>
    %157 = math.exp %156 : vector<16x16xf32>
    %cst_74 = arith.constant dense<0.000000e+00> : vector<16xf32>
    %158 = vector.multi_reduction <add>, %157, %cst_74 [1] : vector<16x16xf32> to vector<16xf32>
    %159 = vector.shape_cast %158 : vector<16xf32> to vector<16x1xf32>
    %160 = tpu.reciprocal %159 {approx = true} : vector<16x1xf32> -> vector<16x1xf32>
    %161 = vector.broadcast %160 : vector<16x1xf32> to vector<16x16xf32>
    %162 = arith.mulf %157, %161 : vector<16x16xf32>
    %163 = arith.truncf %162 : vector<16x16xf32> to vector<16x16xbf16>
    %cst_75 = arith.constant dense<0.000000e+00> : vector<16x64xf32>
    %164 = tpu.matmul %163, %151, %cst_75 {dimension_numbers = #tpu.dot_dimension_numbers<[1], [0], [0], [1], [0, 0, 1, 1], [], []>} : vector<16x16xbf16>, vector<16x64xbf16>, vector<16x64xf32> -> vector<16x64xf32>
    %165 = arith.truncf %164 : vector<16x64xf32> to vector<16x64xbf16>
    %166 = vector.extract_strided_slice %31 {offsets = [0, 0], sizes = [64, 256], strides = [1, 1]} : vector<256x256xbf16> to vector<64x256xbf16>
    %cst_76 = arith.constant dense<0.000000e+00> : vector<16x256xf32>
    %167 = tpu.matmul %165, %166, %cst_76 {dimension_numbers = #tpu.dot_dimension_numbers<[1], [0], [0], [1], [0, 0, 1, 1], [], []>} : vector<16x64xbf16>, vector<64x256xbf16>, vector<16x256xf32> -> vector<16x256xf32>
    %168 = arith.addf %145, %167 : vector<16x256xf32>
    %169 = vector.extract_strided_slice %142 {offsets = [0, 64], sizes = [16, 64], strides = [1, 1]} : vector<16x256xf32> to vector<16x64xf32>
    %170 = arith.truncf %169 : vector<16x64xf32> to vector<16x64xbf16>
    %171 = vector.extract_strided_slice %143 {offsets = [0, 64], sizes = [16, 64], strides = [1, 1]} : vector<16x256xf32> to vector<16x64xf32>
    %172 = arith.truncf %171 : vector<16x64xf32> to vector<16x64xbf16>
    %173 = vector.extract_strided_slice %144 {offsets = [0, 64], sizes = [16, 64], strides = [1, 1]} : vector<16x256xf32> to vector<16x64xf32>
    %174 = arith.truncf %173 : vector<16x64xf32> to vector<16x64xbf16>
    %cst_77 = arith.constant dense<0.000000e+00> : vector<16x16xf32>
    %175 = tpu.matmul %170, %172, %cst_77 {dimension_numbers = #tpu.dot_dimension_numbers<[1], [1], [0], [0], [0, 0, 1, 0], [], []>} : vector<16x64xbf16>, vector<16x64xbf16>, vector<16x16xf32> -> vector<16x16xf32>
    %cst_78 = arith.constant dense<0xFF800000> : vector<16xf32>
    %176 = vector.multi_reduction <maximumf>, %175, %cst_78 [1] : vector<16x16xf32> to vector<16xf32>
    %177 = vector.shape_cast %176 : vector<16xf32> to vector<16x1xf32>
    %178 = vector.broadcast %177 : vector<16x1xf32> to vector<16x16xf32>
    %179 = arith.subf %175, %178 : vector<16x16xf32>
    %180 = math.exp %179 : vector<16x16xf32>
    %cst_79 = arith.constant dense<0.000000e+00> : vector<16xf32>
    %181 = vector.multi_reduction <add>, %180, %cst_79 [1] : vector<16x16xf32> to vector<16xf32>
    %182 = vector.shape_cast %181 : vector<16xf32> to vector<16x1xf32>
    %183 = tpu.reciprocal %182 {approx = true} : vector<16x1xf32> -> vector<16x1xf32>
    %184 = vector.broadcast %183 : vector<16x1xf32> to vector<16x16xf32>
    %185 = arith.mulf %180, %184 : vector<16x16xf32>
    %186 = arith.truncf %185 : vector<16x16xf32> to vector<16x16xbf16>
    %cst_80 = arith.constant dense<0.000000e+00> : vector<16x64xf32>
    %187 = tpu.matmul %186, %174, %cst_80 {dimension_numbers = #tpu.dot_dimension_numbers<[1], [0], [0], [1], [0, 0, 1, 1], [], []>} : vector<16x16xbf16>, vector<16x64xbf16>, vector<16x64xf32> -> vector<16x64xf32>
    %188 = arith.truncf %187 : vector<16x64xf32> to vector<16x64xbf16>
    %189 = vector.extract_strided_slice %31 {offsets = [64, 0], sizes = [64, 256], strides = [1, 1]} : vector<256x256xbf16> to vector<64x256xbf16>
    %cst_81 = arith.constant dense<0.000000e+00> : vector<16x256xf32>
    %190 = tpu.matmul %188, %189, %cst_81 {dimension_numbers = #tpu.dot_dimension_numbers<[1], [0], [0], [1], [0, 0, 1, 1], [], []>} : vector<16x64xbf16>, vector<64x256xbf16>, vector<16x256xf32> -> vector<16x256xf32>
    %191 = arith.addf %168, %190 : vector<16x256xf32>
    %192 = vector.extract_strided_slice %142 {offsets = [0, 128], sizes = [16, 64], strides = [1, 1]} : vector<16x256xf32> to vector<16x64xf32>
    %193 = arith.truncf %192 : vector<16x64xf32> to vector<16x64xbf16>
    %194 = vector.extract_strided_slice %143 {offsets = [0, 128], sizes = [16, 64], strides = [1, 1]} : vector<16x256xf32> to vector<16x64xf32>
    %195 = arith.truncf %194 : vector<16x64xf32> to vector<16x64xbf16>
    %196 = vector.extract_strided_slice %144 {offsets = [0, 128], sizes = [16, 64], strides = [1, 1]} : vector<16x256xf32> to vector<16x64xf32>
    %197 = arith.truncf %196 : vector<16x64xf32> to vector<16x64xbf16>
    %cst_82 = arith.constant dense<0.000000e+00> : vector<16x16xf32>
    %198 = tpu.matmul %193, %195, %cst_82 {dimension_numbers = #tpu.dot_dimension_numbers<[1], [1], [0], [0], [0, 0, 1, 0], [], []>} : vector<16x64xbf16>, vector<16x64xbf16>, vector<16x16xf32> -> vector<16x16xf32>
    %cst_83 = arith.constant dense<0xFF800000> : vector<16xf32>
    %199 = vector.multi_reduction <maximumf>, %198, %cst_83 [1] : vector<16x16xf32> to vector<16xf32>
    %200 = vector.shape_cast %199 : vector<16xf32> to vector<16x1xf32>
    %201 = vector.broadcast %200 : vector<16x1xf32> to vector<16x16xf32>
    %202 = arith.subf %198, %201 : vector<16x16xf32>
    %203 = math.exp %202 : vector<16x16xf32>
    %cst_84 = arith.constant dense<0.000000e+00> : vector<16xf32>
    %204 = vector.multi_reduction <add>, %203, %cst_84 [1] : vector<16x16xf32> to vector<16xf32>
    %205 = vector.shape_cast %204 : vector<16xf32> to vector<16x1xf32>
    %206 = tpu.reciprocal %205 {approx = true} : vector<16x1xf32> -> vector<16x1xf32>
    %207 = vector.broadcast %206 : vector<16x1xf32> to vector<16x16xf32>
    %208 = arith.mulf %203, %207 : vector<16x16xf32>
    %209 = arith.truncf %208 : vector<16x16xf32> to vector<16x16xbf16>
    %cst_85 = arith.constant dense<0.000000e+00> : vector<16x64xf32>
    %210 = tpu.matmul %209, %197, %cst_85 {dimension_numbers = #tpu.dot_dimension_numbers<[1], [0], [0], [1], [0, 0, 1, 1], [], []>} : vector<16x16xbf16>, vector<16x64xbf16>, vector<16x64xf32> -> vector<16x64xf32>
    %211 = arith.truncf %210 : vector<16x64xf32> to vector<16x64xbf16>
    %212 = vector.extract_strided_slice %31 {offsets = [128, 0], sizes = [64, 256], strides = [1, 1]} : vector<256x256xbf16> to vector<64x256xbf16>
    %cst_86 = arith.constant dense<0.000000e+00> : vector<16x256xf32>
    %213 = tpu.matmul %211, %212, %cst_86 {dimension_numbers = #tpu.dot_dimension_numbers<[1], [0], [0], [1], [0, 0, 1, 1], [], []>} : vector<16x64xbf16>, vector<64x256xbf16>, vector<16x256xf32> -> vector<16x256xf32>
    %214 = arith.addf %191, %213 : vector<16x256xf32>
    %215 = vector.extract_strided_slice %142 {offsets = [0, 192], sizes = [16, 64], strides = [1, 1]} : vector<16x256xf32> to vector<16x64xf32>
    %216 = arith.truncf %215 : vector<16x64xf32> to vector<16x64xbf16>
    %217 = vector.extract_strided_slice %143 {offsets = [0, 192], sizes = [16, 64], strides = [1, 1]} : vector<16x256xf32> to vector<16x64xf32>
    %218 = arith.truncf %217 : vector<16x64xf32> to vector<16x64xbf16>
    %219 = vector.extract_strided_slice %144 {offsets = [0, 192], sizes = [16, 64], strides = [1, 1]} : vector<16x256xf32> to vector<16x64xf32>
    %220 = arith.truncf %219 : vector<16x64xf32> to vector<16x64xbf16>
    %cst_87 = arith.constant dense<0.000000e+00> : vector<16x16xf32>
    %221 = tpu.matmul %216, %218, %cst_87 {dimension_numbers = #tpu.dot_dimension_numbers<[1], [1], [0], [0], [0, 0, 1, 0], [], []>} : vector<16x64xbf16>, vector<16x64xbf16>, vector<16x16xf32> -> vector<16x16xf32>
    %cst_88 = arith.constant dense<0xFF800000> : vector<16xf32>
    %222 = vector.multi_reduction <maximumf>, %221, %cst_88 [1] : vector<16x16xf32> to vector<16xf32>
    %223 = vector.shape_cast %222 : vector<16xf32> to vector<16x1xf32>
    %224 = vector.broadcast %223 : vector<16x1xf32> to vector<16x16xf32>
    %225 = arith.subf %221, %224 : vector<16x16xf32>
    %226 = math.exp %225 : vector<16x16xf32>
    %cst_89 = arith.constant dense<0.000000e+00> : vector<16xf32>
    %227 = vector.multi_reduction <add>, %226, %cst_89 [1] : vector<16x16xf32> to vector<16xf32>
    %228 = vector.shape_cast %227 : vector<16xf32> to vector<16x1xf32>
    %229 = tpu.reciprocal %228 {approx = true} : vector<16x1xf32> -> vector<16x1xf32>
    %230 = vector.broadcast %229 : vector<16x1xf32> to vector<16x16xf32>
    %231 = arith.mulf %226, %230 : vector<16x16xf32>
    %232 = arith.truncf %231 : vector<16x16xf32> to vector<16x16xbf16>
    %cst_90 = arith.constant dense<0.000000e+00> : vector<16x64xf32>
    %233 = tpu.matmul %232, %220, %cst_90 {dimension_numbers = #tpu.dot_dimension_numbers<[1], [0], [0], [1], [0, 0, 1, 1], [], []>} : vector<16x16xbf16>, vector<16x64xbf16>, vector<16x64xf32> -> vector<16x64xf32>
    %234 = arith.truncf %233 : vector<16x64xf32> to vector<16x64xbf16>
    %235 = vector.extract_strided_slice %31 {offsets = [192, 0], sizes = [64, 256], strides = [1, 1]} : vector<256x256xbf16> to vector<64x256xbf16>
    %cst_91 = arith.constant dense<0.000000e+00> : vector<16x256xf32>
    %236 = tpu.matmul %234, %235, %cst_91 {dimension_numbers = #tpu.dot_dimension_numbers<[1], [0], [0], [1], [0, 0, 1, 1], [], []>} : vector<16x64xbf16>, vector<64x256xbf16>, vector<16x256xf32> -> vector<16x256xf32>
    %237 = arith.addf %214, %236 : vector<16x256xf32>
    %238 = vector.broadcast %13 : vector<1x256xf32> to vector<16x256xf32>
    %239 = arith.addf %237, %238 : vector<16x256xf32>
    %240 = arith.addf %137, %239 : vector<16x256xf32>
    %cst_92 = arith.constant dense<0.000000e+00> : vector<16xf32>
    %241 = vector.multi_reduction <add>, %240, %cst_92 [1] : vector<16x256xf32> to vector<16xf32>
    %242 = vector.shape_cast %241 : vector<16xf32> to vector<16x1xf32>
    %cst_93 = arith.constant 2.560000e+02 : f32
    %243 = vector.broadcast %cst_93 : f32 to vector<16x1xf32>
    %244 = arith.divf %242, %243 : vector<16x1xf32>
    %245 = vector.broadcast %244 : vector<16x1xf32> to vector<16x256xf32>
    %246 = arith.subf %240, %245 : vector<16x256xf32>
    %247 = arith.mulf %246, %246 : vector<16x256xf32>
    %cst_94 = arith.constant dense<0.000000e+00> : vector<16xf32>
    %248 = vector.multi_reduction <add>, %247, %cst_94 [1] : vector<16x256xf32> to vector<16xf32>
    %249 = vector.shape_cast %248 : vector<16xf32> to vector<16x1xf32>
    %cst_95 = arith.constant 2.560000e+02 : f32
    %250 = vector.broadcast %cst_95 : f32 to vector<16x1xf32>
    %251 = arith.divf %249, %250 : vector<16x1xf32>
    %252 = vector.broadcast %244 : vector<16x1xf32> to vector<16x256xf32>
    %253 = arith.subf %240, %252 : vector<16x256xf32>
    %cst_96 = arith.constant 9.99999974E-6 : f32
    %254 = vector.broadcast %cst_96 : f32 to vector<16x1xf32>
    %255 = arith.addf %251, %254 : vector<16x1xf32>
    %256 = math.rsqrt %255 : vector<16x1xf32>
    %257 = vector.broadcast %256 : vector<16x1xf32> to vector<16x256xf32>
    %258 = arith.mulf %253, %257 : vector<16x256xf32>
    %259 = vector.broadcast %14 : vector<1x256xf32> to vector<16x256xf32>
    %260 = arith.mulf %258, %259 : vector<16x256xf32>
    %261 = vector.broadcast %15 : vector<1x256xf32> to vector<16x256xf32>
    %262 = arith.addf %260, %261 : vector<16x256xf32>
    %263 = arith.truncf %262 : vector<16x256xf32> to vector<16x256xbf16>
    %cst_97 = arith.constant dense<0.000000e+00> : vector<16x2048xf32>
    %264 = tpu.matmul %263, %32, %cst_97 {dimension_numbers = #tpu.dot_dimension_numbers<[1], [0], [0], [1], [0, 0, 1, 1], [], []>} : vector<16x256xbf16>, vector<256x2048xbf16>, vector<16x2048xf32> -> vector<16x2048xf32>
    %265 = vector.broadcast %18 : vector<1x2048xf32> to vector<16x2048xf32>
    %266 = arith.addf %264, %265 : vector<16x2048xf32>
    %cst_98 = arith.constant 0.000000e+00 : f32
    %267 = vector.broadcast %cst_98 : f32 to vector<16x2048xf32>
    %268 = arith.maximumf %266, %267 : vector<16x2048xf32>
    %269 = arith.truncf %268 : vector<16x2048xf32> to vector<16x2048xbf16>
    %cst_99 = arith.constant dense<0.000000e+00> : vector<16x256xf32>
    %270 = tpu.matmul %269, %38, %cst_99 {dimension_numbers = #tpu.dot_dimension_numbers<[1], [0], [0], [1], [0, 0, 1, 1], [], []>} : vector<16x2048xbf16>, vector<2048x256xbf16>, vector<16x256xf32> -> vector<16x256xf32>
    %271 = vector.broadcast %19 : vector<1x256xf32> to vector<16x256xf32>
    %272 = arith.addf %270, %271 : vector<16x256xf32>
    %273 = arith.addf %262, %272 : vector<16x256xf32>
    %cst_100 = arith.constant dense<0.000000e+00> : vector<16xf32>
    %274 = vector.multi_reduction <add>, %273, %cst_100 [1] : vector<16x256xf32> to vector<16xf32>
    %275 = vector.shape_cast %274 : vector<16xf32> to vector<16x1xf32>
    %cst_101 = arith.constant 2.560000e+02 : f32
    %276 = vector.broadcast %cst_101 : f32 to vector<16x1xf32>
    %277 = arith.divf %275, %276 : vector<16x1xf32>
    %278 = vector.broadcast %277 : vector<16x1xf32> to vector<16x256xf32>
    %279 = arith.subf %273, %278 : vector<16x256xf32>
    %280 = arith.mulf %279, %279 : vector<16x256xf32>
    %cst_102 = arith.constant dense<0.000000e+00> : vector<16xf32>
    %281 = vector.multi_reduction <add>, %280, %cst_102 [1] : vector<16x256xf32> to vector<16xf32>
    %282 = vector.shape_cast %281 : vector<16xf32> to vector<16x1xf32>
    %cst_103 = arith.constant 2.560000e+02 : f32
    %283 = vector.broadcast %cst_103 : f32 to vector<16x1xf32>
    %284 = arith.divf %282, %283 : vector<16x1xf32>
    %285 = vector.broadcast %277 : vector<16x1xf32> to vector<16x256xf32>
    %286 = arith.subf %273, %285 : vector<16x256xf32>
    %cst_104 = arith.constant 9.99999974E-6 : f32
    %287 = vector.broadcast %cst_104 : f32 to vector<16x1xf32>
    %288 = arith.addf %284, %287 : vector<16x1xf32>
    %289 = math.rsqrt %288 : vector<16x1xf32>
    %290 = vector.broadcast %289 : vector<16x1xf32> to vector<16x256xf32>
    %291 = arith.mulf %286, %290 : vector<16x256xf32>
    %292 = vector.broadcast %16 : vector<1x256xf32> to vector<16x256xf32>
    %293 = arith.mulf %291, %292 : vector<16x256xf32>
    %294 = vector.broadcast %17 : vector<1x256xf32> to vector<16x256xf32>
    %295 = arith.addf %293, %294 : vector<16x256xf32>
    %296 = arith.truncf %295 : vector<16x256xf32> to vector<16x256xbf16>
    %cst_105 = arith.constant dense<0.000000e+00> : vector<16x768xf32>
    %297 = tpu.matmul %296, %33, %cst_105 {dimension_numbers = #tpu.dot_dimension_numbers<[1], [0], [0], [1], [0, 0, 1, 1], [], []>} : vector<16x256xbf16>, vector<256x768xbf16>, vector<16x768xf32> -> vector<16x768xf32>
    %298 = vector.broadcast %20 : vector<1x768xf32> to vector<16x768xf32>
    %299 = arith.addf %297, %298 : vector<16x768xf32>
    %300 = vector.extract_strided_slice %299 {offsets = [0, 0], sizes = [16, 256], strides = [1, 1]} : vector<16x768xf32> to vector<16x256xf32>
    %301 = vector.extract_strided_slice %299 {offsets = [0, 256], sizes = [16, 256], strides = [1, 1]} : vector<16x768xf32> to vector<16x256xf32>
    %302 = vector.extract_strided_slice %299 {offsets = [0, 512], sizes = [16, 256], strides = [1, 1]} : vector<16x768xf32> to vector<16x256xf32>
    %cst_106 = arith.constant 0.000000e+00 : f32
    %303 = vector.broadcast %cst_106 : f32 to vector<16x256xf32>
    %304 = vector.extract_strided_slice %300 {offsets = [0, 0], sizes = [16, 64], strides = [1, 1]} : vector<16x256xf32> to vector<16x64xf32>
    %305 = arith.truncf %304 : vector<16x64xf32> to vector<16x64xbf16>
    %306 = vector.extract_strided_slice %301 {offsets = [0, 0], sizes = [16, 64], strides = [1, 1]} : vector<16x256xf32> to vector<16x64xf32>
    %307 = arith.truncf %306 : vector<16x64xf32> to vector<16x64xbf16>
    %308 = vector.extract_strided_slice %302 {offsets = [0, 0], sizes = [16, 64], strides = [1, 1]} : vector<16x256xf32> to vector<16x64xf32>
    %309 = arith.truncf %308 : vector<16x64xf32> to vector<16x64xbf16>
    %cst_107 = arith.constant dense<0.000000e+00> : vector<16x16xf32>
    %310 = tpu.matmul %305, %307, %cst_107 {dimension_numbers = #tpu.dot_dimension_numbers<[1], [1], [0], [0], [0, 0, 1, 0], [], []>} : vector<16x64xbf16>, vector<16x64xbf16>, vector<16x16xf32> -> vector<16x16xf32>
    %cst_108 = arith.constant dense<0xFF800000> : vector<16xf32>
    %311 = vector.multi_reduction <maximumf>, %310, %cst_108 [1] : vector<16x16xf32> to vector<16xf32>
    %312 = vector.shape_cast %311 : vector<16xf32> to vector<16x1xf32>
    %313 = vector.broadcast %312 : vector<16x1xf32> to vector<16x16xf32>
    %314 = arith.subf %310, %313 : vector<16x16xf32>
    %315 = math.exp %314 : vector<16x16xf32>
    %cst_109 = arith.constant dense<0.000000e+00> : vector<16xf32>
    %316 = vector.multi_reduction <add>, %315, %cst_109 [1] : vector<16x16xf32> to vector<16xf32>
    %317 = vector.shape_cast %316 : vector<16xf32> to vector<16x1xf32>
    %318 = tpu.reciprocal %317 {approx = true} : vector<16x1xf32> -> vector<16x1xf32>
    %319 = vector.broadcast %318 : vector<16x1xf32> to vector<16x16xf32>
    %320 = arith.mulf %315, %319 : vector<16x16xf32>
    %321 = arith.truncf %320 : vector<16x16xf32> to vector<16x16xbf16>
    %cst_110 = arith.constant dense<0.000000e+00> : vector<16x64xf32>
    %322 = tpu.matmul %321, %309, %cst_110 {dimension_numbers = #tpu.dot_dimension_numbers<[1], [0], [0], [1], [0, 0, 1, 1], [], []>} : vector<16x16xbf16>, vector<16x64xbf16>, vector<16x64xf32> -> vector<16x64xf32>
    %323 = arith.truncf %322 : vector<16x64xf32> to vector<16x64xbf16>
    %324 = vector.extract_strided_slice %34 {offsets = [0, 0], sizes = [64, 256], strides = [1, 1]} : vector<256x256xbf16> to vector<64x256xbf16>
    %cst_111 = arith.constant dense<0.000000e+00> : vector<16x256xf32>
    %325 = tpu.matmul %323, %324, %cst_111 {dimension_numbers = #tpu.dot_dimension_numbers<[1], [0], [0], [1], [0, 0, 1, 1], [], []>} : vector<16x64xbf16>, vector<64x256xbf16>, vector<16x256xf32> -> vector<16x256xf32>
    %326 = arith.addf %303, %325 : vector<16x256xf32>
    %327 = vector.extract_strided_slice %300 {offsets = [0, 64], sizes = [16, 64], strides = [1, 1]} : vector<16x256xf32> to vector<16x64xf32>
    %328 = arith.truncf %327 : vector<16x64xf32> to vector<16x64xbf16>
    %329 = vector.extract_strided_slice %301 {offsets = [0, 64], sizes = [16, 64], strides = [1, 1]} : vector<16x256xf32> to vector<16x64xf32>
    %330 = arith.truncf %329 : vector<16x64xf32> to vector<16x64xbf16>
    %331 = vector.extract_strided_slice %302 {offsets = [0, 64], sizes = [16, 64], strides = [1, 1]} : vector<16x256xf32> to vector<16x64xf32>
    %332 = arith.truncf %331 : vector<16x64xf32> to vector<16x64xbf16>
    %cst_112 = arith.constant dense<0.000000e+00> : vector<16x16xf32>
    %333 = tpu.matmul %328, %330, %cst_112 {dimension_numbers = #tpu.dot_dimension_numbers<[1], [1], [0], [0], [0, 0, 1, 0], [], []>} : vector<16x64xbf16>, vector<16x64xbf16>, vector<16x16xf32> -> vector<16x16xf32>
    %cst_113 = arith.constant dense<0xFF800000> : vector<16xf32>
    %334 = vector.multi_reduction <maximumf>, %333, %cst_113 [1] : vector<16x16xf32> to vector<16xf32>
    %335 = vector.shape_cast %334 : vector<16xf32> to vector<16x1xf32>
    %336 = vector.broadcast %335 : vector<16x1xf32> to vector<16x16xf32>
    %337 = arith.subf %333, %336 : vector<16x16xf32>
    %338 = math.exp %337 : vector<16x16xf32>
    %cst_114 = arith.constant dense<0.000000e+00> : vector<16xf32>
    %339 = vector.multi_reduction <add>, %338, %cst_114 [1] : vector<16x16xf32> to vector<16xf32>
    %340 = vector.shape_cast %339 : vector<16xf32> to vector<16x1xf32>
    %341 = tpu.reciprocal %340 {approx = true} : vector<16x1xf32> -> vector<16x1xf32>
    %342 = vector.broadcast %341 : vector<16x1xf32> to vector<16x16xf32>
    %343 = arith.mulf %338, %342 : vector<16x16xf32>
    %344 = arith.truncf %343 : vector<16x16xf32> to vector<16x16xbf16>
    %cst_115 = arith.constant dense<0.000000e+00> : vector<16x64xf32>
    %345 = tpu.matmul %344, %332, %cst_115 {dimension_numbers = #tpu.dot_dimension_numbers<[1], [0], [0], [1], [0, 0, 1, 1], [], []>} : vector<16x16xbf16>, vector<16x64xbf16>, vector<16x64xf32> -> vector<16x64xf32>
    %346 = arith.truncf %345 : vector<16x64xf32> to vector<16x64xbf16>
    %347 = vector.extract_strided_slice %34 {offsets = [64, 0], sizes = [64, 256], strides = [1, 1]} : vector<256x256xbf16> to vector<64x256xbf16>
    %cst_116 = arith.constant dense<0.000000e+00> : vector<16x256xf32>
    %348 = tpu.matmul %346, %347, %cst_116 {dimension_numbers = #tpu.dot_dimension_numbers<[1], [0], [0], [1], [0, 0, 1, 1], [], []>} : vector<16x64xbf16>, vector<64x256xbf16>, vector<16x256xf32> -> vector<16x256xf32>
    %349 = arith.addf %326, %348 : vector<16x256xf32>
    %350 = vector.extract_strided_slice %300 {offsets = [0, 128], sizes = [16, 64], strides = [1, 1]} : vector<16x256xf32> to vector<16x64xf32>
    %351 = arith.truncf %350 : vector<16x64xf32> to vector<16x64xbf16>
    %352 = vector.extract_strided_slice %301 {offsets = [0, 128], sizes = [16, 64], strides = [1, 1]} : vector<16x256xf32> to vector<16x64xf32>
    %353 = arith.truncf %352 : vector<16x64xf32> to vector<16x64xbf16>
    %354 = vector.extract_strided_slice %302 {offsets = [0, 128], sizes = [16, 64], strides = [1, 1]} : vector<16x256xf32> to vector<16x64xf32>
    %355 = arith.truncf %354 : vector<16x64xf32> to vector<16x64xbf16>
    %cst_117 = arith.constant dense<0.000000e+00> : vector<16x16xf32>
    %356 = tpu.matmul %351, %353, %cst_117 {dimension_numbers = #tpu.dot_dimension_numbers<[1], [1], [0], [0], [0, 0, 1, 0], [], []>} : vector<16x64xbf16>, vector<16x64xbf16>, vector<16x16xf32> -> vector<16x16xf32>
    %cst_118 = arith.constant dense<0xFF800000> : vector<16xf32>
    %357 = vector.multi_reduction <maximumf>, %356, %cst_118 [1] : vector<16x16xf32> to vector<16xf32>
    %358 = vector.shape_cast %357 : vector<16xf32> to vector<16x1xf32>
    %359 = vector.broadcast %358 : vector<16x1xf32> to vector<16x16xf32>
    %360 = arith.subf %356, %359 : vector<16x16xf32>
    %361 = math.exp %360 : vector<16x16xf32>
    %cst_119 = arith.constant dense<0.000000e+00> : vector<16xf32>
    %362 = vector.multi_reduction <add>, %361, %cst_119 [1] : vector<16x16xf32> to vector<16xf32>
    %363 = vector.shape_cast %362 : vector<16xf32> to vector<16x1xf32>
    %364 = tpu.reciprocal %363 {approx = true} : vector<16x1xf32> -> vector<16x1xf32>
    %365 = vector.broadcast %364 : vector<16x1xf32> to vector<16x16xf32>
    %366 = arith.mulf %361, %365 : vector<16x16xf32>
    %367 = arith.truncf %366 : vector<16x16xf32> to vector<16x16xbf16>
    %cst_120 = arith.constant dense<0.000000e+00> : vector<16x64xf32>
    %368 = tpu.matmul %367, %355, %cst_120 {dimension_numbers = #tpu.dot_dimension_numbers<[1], [0], [0], [1], [0, 0, 1, 1], [], []>} : vector<16x16xbf16>, vector<16x64xbf16>, vector<16x64xf32> -> vector<16x64xf32>
    %369 = arith.truncf %368 : vector<16x64xf32> to vector<16x64xbf16>
    %370 = vector.extract_strided_slice %34 {offsets = [128, 0], sizes = [64, 256], strides = [1, 1]} : vector<256x256xbf16> to vector<64x256xbf16>
    %cst_121 = arith.constant dense<0.000000e+00> : vector<16x256xf32>
    %371 = tpu.matmul %369, %370, %cst_121 {dimension_numbers = #tpu.dot_dimension_numbers<[1], [0], [0], [1], [0, 0, 1, 1], [], []>} : vector<16x64xbf16>, vector<64x256xbf16>, vector<16x256xf32> -> vector<16x256xf32>
    %372 = arith.addf %349, %371 : vector<16x256xf32>
    %373 = vector.extract_strided_slice %300 {offsets = [0, 192], sizes = [16, 64], strides = [1, 1]} : vector<16x256xf32> to vector<16x64xf32>
    %374 = arith.truncf %373 : vector<16x64xf32> to vector<16x64xbf16>
    %375 = vector.extract_strided_slice %301 {offsets = [0, 192], sizes = [16, 64], strides = [1, 1]} : vector<16x256xf32> to vector<16x64xf32>
    %376 = arith.truncf %375 : vector<16x64xf32> to vector<16x64xbf16>
    %377 = vector.extract_strided_slice %302 {offsets = [0, 192], sizes = [16, 64], strides = [1, 1]} : vector<16x256xf32> to vector<16x64xf32>
    %378 = arith.truncf %377 : vector<16x64xf32> to vector<16x64xbf16>
    %cst_122 = arith.constant dense<0.000000e+00> : vector<16x16xf32>
    %379 = tpu.matmul %374, %376, %cst_122 {dimension_numbers = #tpu.dot_dimension_numbers<[1], [1], [0], [0], [0, 0, 1, 0], [], []>} : vector<16x64xbf16>, vector<16x64xbf16>, vector<16x16xf32> -> vector<16x16xf32>
    %cst_123 = arith.constant dense<0xFF800000> : vector<16xf32>
    %380 = vector.multi_reduction <maximumf>, %379, %cst_123 [1] : vector<16x16xf32> to vector<16xf32>
    %381 = vector.shape_cast %380 : vector<16xf32> to vector<16x1xf32>
    %382 = vector.broadcast %381 : vector<16x1xf32> to vector<16x16xf32>
    %383 = arith.subf %379, %382 : vector<16x16xf32>
    %384 = math.exp %383 : vector<16x16xf32>
    %cst_124 = arith.constant dense<0.000000e+00> : vector<16xf32>
    %385 = vector.multi_reduction <add>, %384, %cst_124 [1] : vector<16x16xf32> to vector<16xf32>
    %386 = vector.shape_cast %385 : vector<16xf32> to vector<16x1xf32>
    %387 = tpu.reciprocal %386 {approx = true} : vector<16x1xf32> -> vector<16x1xf32>
    %388 = vector.broadcast %387 : vector<16x1xf32> to vector<16x16xf32>
    %389 = arith.mulf %384, %388 : vector<16x16xf32>
    %390 = arith.truncf %389 : vector<16x16xf32> to vector<16x16xbf16>
    %cst_125 = arith.constant dense<0.000000e+00> : vector<16x64xf32>
    %391 = tpu.matmul %390, %378, %cst_125 {dimension_numbers = #tpu.dot_dimension_numbers<[1], [0], [0], [1], [0, 0, 1, 1], [], []>} : vector<16x16xbf16>, vector<16x64xbf16>, vector<16x64xf32> -> vector<16x64xf32>
    %392 = arith.truncf %391 : vector<16x64xf32> to vector<16x64xbf16>
    %393 = vector.extract_strided_slice %34 {offsets = [192, 0], sizes = [64, 256], strides = [1, 1]} : vector<256x256xbf16> to vector<64x256xbf16>
    %cst_126 = arith.constant dense<0.000000e+00> : vector<16x256xf32>
    %394 = tpu.matmul %392, %393, %cst_126 {dimension_numbers = #tpu.dot_dimension_numbers<[1], [0], [0], [1], [0, 0, 1, 1], [], []>} : vector<16x64xbf16>, vector<64x256xbf16>, vector<16x256xf32> -> vector<16x256xf32>
    %395 = arith.addf %372, %394 : vector<16x256xf32>
    %396 = vector.broadcast %21 : vector<1x256xf32> to vector<16x256xf32>
    %397 = arith.addf %395, %396 : vector<16x256xf32>
    %398 = arith.addf %295, %397 : vector<16x256xf32>
    %cst_127 = arith.constant dense<0.000000e+00> : vector<16xf32>
    %399 = vector.multi_reduction <add>, %398, %cst_127 [1] : vector<16x256xf32> to vector<16xf32>
    %400 = vector.shape_cast %399 : vector<16xf32> to vector<16x1xf32>
    %cst_128 = arith.constant 2.560000e+02 : f32
    %401 = vector.broadcast %cst_128 : f32 to vector<16x1xf32>
    %402 = arith.divf %400, %401 : vector<16x1xf32>
    %403 = vector.broadcast %402 : vector<16x1xf32> to vector<16x256xf32>
    %404 = arith.subf %398, %403 : vector<16x256xf32>
    %405 = arith.mulf %404, %404 : vector<16x256xf32>
    %cst_129 = arith.constant dense<0.000000e+00> : vector<16xf32>
    %406 = vector.multi_reduction <add>, %405, %cst_129 [1] : vector<16x256xf32> to vector<16xf32>
    %407 = vector.shape_cast %406 : vector<16xf32> to vector<16x1xf32>
    %cst_130 = arith.constant 2.560000e+02 : f32
    %408 = vector.broadcast %cst_130 : f32 to vector<16x1xf32>
    %409 = arith.divf %407, %408 : vector<16x1xf32>
    %410 = vector.broadcast %402 : vector<16x1xf32> to vector<16x256xf32>
    %411 = arith.subf %398, %410 : vector<16x256xf32>
    %cst_131 = arith.constant 9.99999974E-6 : f32
    %412 = vector.broadcast %cst_131 : f32 to vector<16x1xf32>
    %413 = arith.addf %409, %412 : vector<16x1xf32>
    %414 = math.rsqrt %413 : vector<16x1xf32>
    %415 = vector.broadcast %414 : vector<16x1xf32> to vector<16x256xf32>
    %416 = arith.mulf %411, %415 : vector<16x256xf32>
    %417 = vector.broadcast %22 : vector<1x256xf32> to vector<16x256xf32>
    %418 = arith.mulf %416, %417 : vector<16x256xf32>
    %419 = vector.broadcast %23 : vector<1x256xf32> to vector<16x256xf32>
    %420 = arith.addf %418, %419 : vector<16x256xf32>
    %421 = arith.truncf %420 : vector<16x256xf32> to vector<16x256xbf16>
    %cst_132 = arith.constant dense<0.000000e+00> : vector<16x2048xf32>
    %422 = tpu.matmul %421, %35, %cst_132 {dimension_numbers = #tpu.dot_dimension_numbers<[1], [0], [0], [1], [0, 0, 1, 1], [], []>} : vector<16x256xbf16>, vector<256x2048xbf16>, vector<16x2048xf32> -> vector<16x2048xf32>
    %423 = vector.broadcast %26 : vector<1x2048xf32> to vector<16x2048xf32>
    %424 = arith.addf %422, %423 : vector<16x2048xf32>
    %cst_133 = arith.constant 0.000000e+00 : f32
    %425 = vector.broadcast %cst_133 : f32 to vector<16x2048xf32>
    %426 = arith.maximumf %424, %425 : vector<16x2048xf32>
    %427 = arith.truncf %426 : vector<16x2048xf32> to vector<16x2048xbf16>
    %cst_134 = arith.constant dense<0.000000e+00> : vector<16x256xf32>
    %428 = tpu.matmul %427, %39, %cst_134 {dimension_numbers = #tpu.dot_dimension_numbers<[1], [0], [0], [1], [0, 0, 1, 1], [], []>} : vector<16x2048xbf16>, vector<2048x256xbf16>, vector<16x256xf32> -> vector<16x256xf32>
    %429 = vector.broadcast %27 : vector<1x256xf32> to vector<16x256xf32>
    %430 = arith.addf %428, %429 : vector<16x256xf32>
    %431 = arith.addf %420, %430 : vector<16x256xf32>
    %cst_135 = arith.constant dense<0.000000e+00> : vector<16xf32>
    %432 = vector.multi_reduction <add>, %431, %cst_135 [1] : vector<16x256xf32> to vector<16xf32>
    %433 = vector.shape_cast %432 : vector<16xf32> to vector<16x1xf32>
    %cst_136 = arith.constant 2.560000e+02 : f32
    %434 = vector.broadcast %cst_136 : f32 to vector<16x1xf32>
    %435 = arith.divf %433, %434 : vector<16x1xf32>
    %436 = vector.broadcast %435 : vector<16x1xf32> to vector<16x256xf32>
    %437 = arith.subf %431, %436 : vector<16x256xf32>
    %438 = arith.mulf %437, %437 : vector<16x256xf32>
    %cst_137 = arith.constant dense<0.000000e+00> : vector<16xf32>
    %439 = vector.multi_reduction <add>, %438, %cst_137 [1] : vector<16x256xf32> to vector<16xf32>
    %440 = vector.shape_cast %439 : vector<16xf32> to vector<16x1xf32>
    %cst_138 = arith.constant 2.560000e+02 : f32
    %441 = vector.broadcast %cst_138 : f32 to vector<16x1xf32>
    %442 = arith.divf %440, %441 : vector<16x1xf32>
    %443 = vector.broadcast %435 : vector<16x1xf32> to vector<16x256xf32>
    %444 = arith.subf %431, %443 : vector<16x256xf32>
    %cst_139 = arith.constant 9.99999974E-6 : f32
    %445 = vector.broadcast %cst_139 : f32 to vector<16x1xf32>
    %446 = arith.addf %442, %445 : vector<16x1xf32>
    %447 = math.rsqrt %446 : vector<16x1xf32>
    %448 = vector.broadcast %447 : vector<16x1xf32> to vector<16x256xf32>
    %449 = arith.mulf %444, %448 : vector<16x256xf32>
    %450 = vector.broadcast %24 : vector<1x256xf32> to vector<16x256xf32>
    %451 = arith.mulf %449, %450 : vector<16x256xf32>
    %452 = vector.broadcast %25 : vector<1x256xf32> to vector<16x256xf32>
    %453 = arith.addf %451, %452 : vector<16x256xf32>
    %cst_140 = arith.constant 0.000000e+00 : f32
    %454 = vector.broadcast %cst_140 : f32 to vector<16x256xf32>
    %455 = arith.cmpf ogt, %453, %454 : vector<16x256xf32>
    %cst_141 = arith.constant 0.00999999977 : f32
    %456 = vector.broadcast %cst_141 : f32 to vector<16x256xf32>
    %457 = arith.mulf %456, %453 : vector<16x256xf32>
    %458 = arith.select %455, %453, %457 : vector<16x256xi1>, vector<16x256xf32>
    %cst_142 = arith.constant dense<0.000000e+00> : vector<256xf32>
    %459 = vector.multi_reduction <add>, %458, %cst_142 [0] : vector<16x256xf32> to vector<256xf32>
    %460 = vector.shape_cast %459 : vector<256xf32> to vector<1x256xf32>
    %cst_143 = arith.constant 1.600000e+01 : f32
    %461 = vector.broadcast %cst_143 : f32 to vector<1x256xf32>
    %462 = arith.divf %460, %461 : vector<1x256xf32>
    %463 = vector.broadcast %462 : vector<1x256xf32> to vector<16x256xf32>
    %464 = arith.subf %458, %463 : vector<16x256xf32>
    %465 = arith.mulf %464, %464 : vector<16x256xf32>
    %cst_144 = arith.constant dense<0.000000e+00> : vector<256xf32>
    %466 = vector.multi_reduction <add>, %465, %cst_144 [0] : vector<16x256xf32> to vector<256xf32>
    %467 = vector.shape_cast %466 : vector<256xf32> to vector<1x256xf32>
    %cst_145 = arith.constant 1.600000e+01 : f32
    %468 = vector.broadcast %cst_145 : f32 to vector<1x256xf32>
    %469 = arith.divf %467, %468 : vector<1x256xf32>
    %470 = vector.broadcast %462 : vector<1x256xf32> to vector<16x256xf32>
    %471 = arith.subf %458, %470 : vector<16x256xf32>
    %cst_146 = arith.constant 9.99999997E-7 : f32
    %472 = vector.broadcast %cst_146 : f32 to vector<1x256xf32>
    %473 = arith.addf %469, %472 : vector<1x256xf32>
    %474 = math.rsqrt %473 : vector<1x256xf32>
    %475 = vector.broadcast %474 : vector<1x256xf32> to vector<16x256xf32>
    %476 = arith.mulf %471, %475 : vector<16x256xf32>
    %477 = vector.broadcast %10 : vector<1x256xf32> to vector<16x256xf32>
    %478 = arith.mulf %476, %477 : vector<16x256xf32>
    %479 = vector.broadcast %11 : vector<1x256xf32> to vector<16x256xf32>
    %480 = arith.addf %478, %479 : vector<16x256xf32>
    %481 = arith.truncf %480 : vector<16x256xf32> to vector<16x256xbf16>
    %cst_147 = arith.constant dense<0.000000e+00> : vector<16x128xf32>
    %482 = tpu.matmul %481, %36, %cst_147 {dimension_numbers = #tpu.dot_dimension_numbers<[1], [0], [0], [1], [0, 0, 1, 1], [], []>} : vector<16x256xbf16>, vector<256x128xbf16>, vector<16x128xf32> -> vector<16x128xf32>
    %483 = vector.broadcast %28 : vector<1x128xf32> to vector<16x128xf32>
    %484 = arith.addf %482, %483 : vector<16x128xf32>
    %c0_148 = arith.constant 0 : index
    %c0_149 = arith.constant 0 : index
    %485 = vector.load %arg6[%c0_148, %c0_149] : memref<16x128xf32, #tpu.memory_space<vmem>>, vector<16x128xf32>
    tpu.vector_store %arg6[%c0_148, %c0_149], %484 {strides = array<i32>} : memref<16x128xf32, #tpu.memory_space<vmem>>, vector<16x128xf32>,
    return
  }
}

</mosaic_0001>

<bundles_post_ra>
// kernel: mul.3
= control target key start
LH: loop header
LB: loop body
LE: loop exit
PB: predicated region body
PF: predicated region fallthrough
CT: control target
= control target key end

     0   :  { %s34_s0 = inlined_call_operand.vmem [shape: f32[40], index: 0, kind: input, shape index: {}]   ;;  %s35_s1 = inlined_call_operand.vmem [shape: f32[40], index: 1, kind: input, shape index: {}]   ;;  %s36_s2 = inlined_call_operand.vmem [shape: f32[40], index: 2, kind: output, shape index: {}]  }
   0x1   :  { %v3_v0 = vld [vmem:[%s34_s0] sm:$0x1] }
   0x2   :  { %v4_v1 = vld [vmem:[%s35_s1] sm:$0x1] }
   0x3   :  { %v7_v2 = vmul.f32 %v4_v1, %v3_v0 }
   0x5   :  { %9 = vst [vmem:[%s36_s2] sm:$0x1] %v7_v2 }

// kernel: graph_transformer_forward.1
= control target key start
LH: loop header
LB: loop body
LE: loop exit
PB: predicated region body
PF: predicated region fallthrough
CT: control target
= control target key end

     0   :  { %v15980_v0 = vmov 0   ;;  %vm1457_vm0 = vcmask 261120   ;;  %vm1582_vm1 = vcmask 130048   ;;  %vm15982_vm10 = vmmov 0   ;;  %s15983_s27 = smov 64   ;;  %s20870_s1 = inlined_call_operand.vmem [shape: f32[16,1], index: 1, kind: input, shape index: {}]   ;;  %s20871_s5 = inlined_call_operand.vmem [shape: bf16[4128,256], index: 5, kind: input, shape index: {}]   ;;  %s20872_s3 = inlined_call_operand.vmem [shape: f32[32,2048], index: 3, kind: input, shape index: {}]   ;;  %s20873_s0 = inlined_call_operand.vmem [shape: f32[16,32], index: 0, kind: input, shape index: {}]   ;;  %s20874_s2 = inlined_call_operand.vmem [shape: bf16[16,16], index: 2, kind: input, shape index: {}]   ;;  %s20875_s4 = inlined_call_operand.vmem [shape: bf16[256,6528], index: 4, kind: input, shape index: {}]   ;;  %s20876_s6 = inlined_call_operand.vmem [shape: f32[16,128], index: 6, kind: output, shape index: {}]  }
   0x1   :  { %13893 = vset.pattern.permute.xlu0 %v15980_v0  ;;  %v1441_v1 = vld [vmem:[%s20870_s1] sm:$0xff]  ;;  %1553 = vmatprep.mubr.bf16.mxu0 %v15980_v0  ;;  %v1442_v2 = vld [vmem:[%s20870_s1 + $0x8] sm:$0xff]  ;;  %v13894_v3 = vld [vmem:[%s20871_s5 + $0x14] ss:$8 sps:$4 sm:$0xff]   ;;  %vm2719_vm11 = vcmask 523264  }
   0x2   :  { %1445 = vperm.xlu0 %13893, %v1441_v1   ;;  %1618 = vmatprep.mubr.bf16.mxu1 %v15980_v0  ;;  %v13896_v4 = vld [vmem:[%s20871_s5 + $0x10] ss:$8 sps:$4 sm:$0xff]   ;;  %v13897_v5 = vld [vmem:[%s20871_s5 + $0x4] ss:$8 sps:$4 sm:$0xff]   ;;  %v13899_v6 = vld [vmem:[%s20871_s5] ss:$8 sps:$4 sm:$0xff]  }
   0x3   :  { %1533 = vmatprep.subr.bf16.mxu0 %v13894_v3  ;;  %v24_v7 = vld [vmem:[%s20872_s3] ss:$0 sm:$0xff]  ;;  %v25_v8 = vld [vmem:[%s20872_s3 + $0x1] ss:$0 sm:$0xff]  ;;  %v26_v40 = vld [vmem:[%s20872_s3 + $0x2] ss:$0 sm:$0xff] }
   0x4   :  { %1534 = vmatpush1.bf16.msra.mxu0 %v13896_v4  ;;  %v27_v42 = vld [vmem:[%s20872_s3 + $0x3] ss:$0 sm:$0xff]  ;;  %v1492_v46 = vld [vmem:[%s20873_s0 + $0x8] sm:$0xff]  ;;  %v13904_v1 = vld [vmem:[%s20875_s4 + $0x990] ss:$204 sps:$4 sm:$0xff]  }
   0x5   :  { %1535 = vmatprep.subr.bf16.mxu0 %v13897_v5  ;;  %v1491_v45 = vld [vmem:[%s20873_s0] sm:$0xff]  ;;  %v13901_v61 = vld [vmem:[%s20875_s4 + $0xb28] ss:$204 sps:$4 sm:$0xff]   ;;  %v13903_v62 = vld [vmem:[%s20875_s4 + $0xb2c] ss:$204 sps:$4 sm:$0xff]  }
   0x6   :  { %1450 = vperm.xlu0 %13893, %v1442_v2   ;;  %v13900_v60 = vld [vmem:[%s20874_s2] sm:$0xff]   ;;  %v13909_v2 = vld [vmem:[%s20875_s4 + $0x7fc] ss:$204 sps:$4 sm:$0xff]  }
   0x7   :  { %v13906_v63 = vld [vmem:[%s20875_s4 + $0x994] ss:$204 sps:$4 sm:$0xff]   ;;  %v13907_v3 = vld [vmem:[%s20875_s4 + $0x7f8] ss:$204 sps:$4 sm:$0xff]  }
   0x8   :  { %1536 = vmatpush1.bf16.msra.mxu0 %v13899_v6  ;;  %v13912_v4 = vld [vmem:[%s20875_s4 + $0x664] ss:$204 sps:$4 sm:$0xff]   ;;  %v13910_v5 = vld [vmem:[%s20875_s4 + $0x660] ss:$204 sps:$4 sm:$0xff]  }
   0x9   :  { %v13915_v6 = vld [vmem:[%s20875_s4 + $0x4cc] ss:$204 sps:$4 sm:$0xff]  }
  0x7d   :  { %v1446_v9 = vpop.permute.xlu0 %1445 }
  0x7e   :  { %v1453_v10 = vmul.f32 %v1446_v9, %v24_v7  ;;  %v13916_v9 = vld [vmem:[%s20875_s4 + $0x330] ss:$204 sps:$4 sm:$0xff]  }
  0x80   :  { %v1455_v12 = vadd.f32 %v1453_v10, %v25_v8  ;;  %v13921_v10 = vld [vmem:[%s20875_s4 + $0x19c] ss:$204 sps:$4 sm:$0xff]  }
  0x81   :  { %v1451_v11 = vpop.permute.xlu0 %1450 }
  0x82   :  { %v1454_v13 = vmul.f32 %v1451_v11, %v24_v7  ;;  %v1458_v15 = vsel %vm1457_vm0, %v1455_v12, 0.0  ;;  %v13913_v7 = vld [vmem:[%s20875_s4 + $0x4c8] ss:$204 sps:$4 sm:$0xff]   ;;  %v13919_v11 = vld [vmem:[%s20875_s4 + $0x198] ss:$204 sps:$4 sm:$0xff]  }
  0x84   :  { %v1456_v14 = vadd.f32 %v1454_v13, %v25_v8  ;;  %v13918_v8 = vld [vmem:[%s20875_s4 + $0x334] ss:$204 sps:$4 sm:$0xff]  }
  0x85   :  { %v13922_v13 = vld [vmem:[%s20875_s4] ss:$204 sps:$4 sm:$0xff]  }
  0x86   :  { %v1459_v16 = vsel %vm1457_vm0, %v1456_v14, 0.0 }
  0x87   :  { %v1460_v17 = vadd.f32 %v1459_v16, %v1458_v15  ;;  %v13925_v15 = vld [vmem:[%s20875_s4 + $0x17e8] ss:$204 sps:$4 sm:$0xff]  }
  0x88   :  { %v13930_v16 = vld [vmem:[%s20875_s4 + $0x1654] ss:$204 sps:$4 sm:$0xff]  }
  0x89   :  { %v1461_v18 = vrot.slane %v1460_v17, 4 }
  0x8b   :  { %v1462_v19 = vadd.f32 %v1461_v18, %v1460_v17  ;;  %v13928_v17 = vld [vmem:[%s20875_s4 + $0x1650] ss:$204 sps:$4 sm:$0xff]  }
  0x8c   :  { %v13933_v18 = vld [vmem:[%s20875_s4 + $0x14bc] ss:$204 sps:$4 sm:$0xff]  }
  0x8d   :  { %v1463_v20 = vrot.slane %v1462_v19, 2 }
  0x8f   :  { %v1464_v21 = vadd.f32 %v1463_v20, %v1462_v19  ;;  %v13931_v19 = vld [vmem:[%s20875_s4 + $0x14b8] ss:$204 sps:$4 sm:$0xff]  }
  0x90   :  { %v13936_v20 = vld [vmem:[%s20875_s4 + $0x1324] ss:$204 sps:$4 sm:$0xff]  }
  0x91   :  { %v1465_v22 = vrot.slane %v1464_v21, 1 }
  0x93   :  { %v1466_v23 = vadd.f32 %v1465_v22, %v1464_v21  ;;  %v13934_v21 = vld [vmem:[%s20875_s4 + $0x1320] ss:$204 sps:$4 sm:$0xff]  }
  0x94   :  { %v13939_v22 = vld [vmem:[%s20875_s4 + $0x118c] ss:$204 sps:$4 sm:$0xff]  }
  0x95   :  { %v1468_v24 = vmul.f32 0.0625, %v1466_v23  ;;  %v13937_v23 = vld [vmem:[%s20875_s4 + $0x1188] ss:$204 sps:$4 sm:$0xff]  }
  0x97   :  { %v1469_v25 = vsub.f32 %v1455_v12, %v1468_v24  ;;  %v1470_v26 = vsub.f32 %v1456_v14, %v1468_v24  ;;  %v13924_v12 = vld [vmem:[%s20875_s4 + $0x4] ss:$204 sps:$4 sm:$0xff]   ;;  %v13927_v14 = vld [vmem:[%s20875_s4 + $0x17ec] ss:$204 sps:$4 sm:$0xff]   ;;  %v13942_v24 = vld [vmem:[%s20875_s4 + $0xff4] ss:$204 sps:$4 sm:$0xff]  }
  0x99   :  { %v1471_v27 = vmul.f32 %v1469_v25, %v1469_v25  ;;  %v1472_v28 = vmul.f32 %v1470_v26, %v1470_v26 }
  0x9b   :  { %v1473_v29 = vsel %vm1457_vm0, %v1471_v27, 0.0  ;;  %v1474_v30 = vsel %vm1457_vm0, %v1472_v28, 0.0  ;;  %v13943_v27 = vld [vmem:[%s20875_s4 + $0xe58] ss:$204 sps:$4 sm:$0xff]  }
  0x9c   :  { %v1475_v31 = vadd.f32 %v1474_v30, %v1473_v29  ;;  %v13948_v28 = vld [vmem:[%s20875_s4 + $0xcc4] ss:$204 sps:$4 sm:$0xff]   ;;  %v13946_v29 = vld [vmem:[%s20875_s4 + $0xcc0] ss:$204 sps:$4 sm:$0xff]   ;;  %v1567_v30 = vlaneseq }
  0x9e   :  { %v1476_v32 = vrot.slane %v1475_v31, 4 }
  0xa0   :  { %v1477_v33 = vadd.f32 %v1476_v32, %v1475_v31  ;;  %v16164_v31 = vshrl.u32 %v1567_v30, 7  ;;  %v12347_v32 = vld [vmem:[%s20872_s3 + $0x4] ss:$8 sm:$0x3] }
  0xa2   :  { %v1478_v34 = vrot.slane %v1477_v33, 2 }
  0xa4   :  { %v1479_v35 = vadd.f32 %v1478_v34, %v1477_v33  ;;  %v16170_v33 = vsub.s32 0, %v16164_v31  ;;  %v16173_v34 = vsub.s32 1, %v16164_v31 }
  0xa6   :  { %v1480_v36 = vrot.slane %v1479_v35, 1 }
  0xa8   :  { %v1481_v37 = vadd.f32 %v1480_v36, %v1479_v35  ;;  %v1570_v35 = vrot.slane %v12347_v32, %v16170_v33  ;;  %v1574_v36 = vrot.slane %v12347_v32, %v16173_v34 }
  0xaa   :  { %v1482_v38 = vmul.f32 0.0625, %v1481_v37 }
  0xac   :  { %v1483_v39 = vadd.f32 1e-06, %v1482_v38 }
  0xae   :  { %15885 = vrsqrt.f32 %v1483_v39 }
  0xbb   :  { %v15886_v41 = vpop.eup %15885 }
  0xbc   :  { %v1485_v43 = vmul.f32 %v15886_v41, %v1469_v25  ;;  %v1486_v44 = vmul.f32 %v15886_v41, %v1470_v26  ;;  %v13940_v25 = vld [vmem:[%s20875_s4 + $0xff0] ss:$204 sps:$4 sm:$0xff]  }
  0xbd   :  { %v13945_v26 = vld [vmem:[%s20875_s4 + $0xe5c] ss:$204 sps:$4 sm:$0xff]  }
  0xbe   :  { %v1487_v47 = vmul.f32 %v1485_v43, %v26_v40  ;;  %v1488_v48 = vmul.f32 %v1486_v44, %v26_v40 }
  0xc0   :  { %v1490_v49 = vadd.f32 %v1488_v48, %v27_v42  ;;  %v1489_v50 = vadd.f32 %v1487_v47, %v27_v42 }
  0xc2   :  { %v1493_v51 = vadd.f32 %v1491_v45, %v1489_v50  ;;  %v1494_v52 = vadd.f32 %v1492_v46, %v1490_v49 }
  0xc4   :  { %v1497_v53 = vpack.c.bf16 %v1494_v52, %v1493_v51 }
  0xc6   :  { %12383 = vmatmul.mubr.msk.bf16.vlgmr.msra.gmra.mxu0 %vm1457_vm0, %v1497_v53 }
  0xc7   :  { %1969 = vmatprep.mubr.bf16.mxu0 %v15980_v0 }
 0x186   :  { %v1555_v54 = vpop.f32.mrf.mxu0 }
 0x188   :  { %v1557_v55 = vpop.f32.mrf.mxu0 }
 0x18a   :  { %v1559_v56 = vpop.f32.mrf.mxu0 }
 0x18b   :  { %v1564_v59 = vpack.c.bf16 %v1559_v56, %v1555_v54 }
 0x18c   :  { %v1561_v57 = vpop.f32.mrf.mxu0 }
 0x18d   :  { %v1565_v58 = vpack.c.bf16 %v1561_v57, %v1557_v55 }
 0x18f   :  { %1600 = vmatprep.subr.bf16.mxu1 %v1565_v58 }
 0x190   :  { %1601 = vmatpush1.bf16.msra.mxu1 %v1564_v59 }
 0x191   :  { %1881 = vmatprep.subr.bf16.mxu1 %v13903_v62 }
 0x193   :  { %12385 = vmatmul.mubr.msk.bf16.vlgmr.msra.gmra.mxu1 %vm1582_vm1, %v13900_v60 }
 0x194   :  { %1882 = vmatpush1.bf16.msra.mxu1 %v13901_v61 }
 0x195   :  { %1883 = vmatprep.subr.bf16.mxu1 %v13906_v63 }
 0x198   :  { %1884 = vmatpush1.bf16.msra.mxu1 %v13904_v1 }
 0x199   :  { %1885 = vmatprep.subr.bf16.mxu1 %v13909_v2 }
 0x19c   :  { %1886 = vmatpush1.bf16.msra.mxu1 %v13907_v3 }
 0x19d   :  { %1887 = vmatprep.subr.bf16.mxu1 %v13912_v4 }
 0x1a0   :  { %1888 = vmatpush1.bf16.msra.mxu1 %v13910_v5 }
 0x1a1   :  { %1889 = vmatprep.subr.bf16.mxu1 %v13915_v6 }
 0x1a4   :  { %1890 = vmatpush1.bf16.msra.mxu1 %v13913_v7 }
 0x1a5   :  { %1891 = vmatprep.subr.bf16.mxu1 %v13918_v8 }
 0x1a8   :  { %1892 = vmatpush1.bf16.msra.mxu1 %v13916_v9 }
 0x1a9   :  { %1893 = vmatprep.subr.bf16.mxu1 %v13921_v10 }
 0x1ac   :  { %1894 = vmatpush1.bf16.msra.mxu1 %v13919_v11 }
 0x1ad   :  { %1895 = vmatprep.subr.bf16.mxu1 %v13924_v12 }
 0x1b0   :  { %1896 = vmatpush1.bf16.msra.mxu1 %v13922_v13 }
 0x1b1   :  { %1897 = vmatprep.subr.bf16.mxu1 %v13927_v14 }
 0x1b4   :  { %1898 = vmatpush2.bf16.msra.mxu1 %v13925_v15 }
 0x1b5   :  { %1899 = vmatprep.subr.bf16.mxu1 %v13930_v16 }
 0x1b8   :  { %1900 = vmatpush2.bf16.msra.mxu1 %v13928_v17 }
 0x1b9   :  { %1901 = vmatprep.subr.bf16.mxu1 %v13933_v18 }
 0x1bc   :  { %1902 = vmatpush2.bf16.msra.mxu1 %v13931_v19 }
 0x1bd   :  { %1903 = vmatprep.subr.bf16.mxu1 %v13936_v20 }
 0x1c0   :  { %1904 = vmatpush2.bf16.msra.mxu1 %v13934_v21 }
 0x1c1   :  { %1905 = vmatprep.subr.bf16.mxu1 %v13939_v22 }
 0x1c4   :  { %1906 = vmatpush2.bf16.msra.mxu1 %v13937_v23 }
 0x1c5   :  { %1907 = vmatprep.subr.bf16.mxu1 %v13942_v24 }
 0x1c8   :  { %1908 = vmatpush2.bf16.msra.mxu1 %v13940_v25 }
 0x1c9   :  { %1909 = vmatprep.subr.bf16.mxu1 %v13945_v26 }
 0x1cc   :  { %1910 = vmatpush2.bf16.msra.mxu1 %v13943_v27 }
 0x1cd   :  { %1911 = vmatprep.subr.bf16.mxu1 %v13948_v28 }
 0x1d0   :  { %1912 = vmatpush2.bf16.msra.mxu1 %v13946_v29 }
 0x253   :  { %v1620_v37 = vpop.f32.mrf.mxu1 }
 0x254   :  { %v1621_v38 = vadd.f32 %v1620_v37, %v1570_v35 }
 0x255   :  { %v1622_v39 = vpop.f32.mrf.mxu1 }
 0x256   :  { %v1623_v40 = vadd.f32 %v1622_v39, %v1574_v36  ;;  %v1633_v42 = vmul.f32 0.01, %v1621_v38  ;;  %vm1629_vm2 = vcmp.gt.f32.partialorder %v1621_v38, 0.0 }
 0x257   :  { %v1624_v41 = vpop.f32.mrf.mxu1 }
 0x258   :  { %v1625_v43 = vadd.f32 %v1624_v41, %v1570_v35  ;;  %v1634_v44 = vmul.f32 0.01, %v1623_v40  ;;  %vm1630_vm4 = vcmp.gt.f32.partialorder %v1623_v40, 0.0  ;;  %v1637_v48 = vsel %vm1629_vm2, %v1621_v38, %v1633_v42  ;;  %v12349_v35 = vld [vmem:[%s20872_s3 + $0x6] ss:$8 sm:$0x3] }
 0x259   :  { %v1626_v45 = vpop.f32.mrf.mxu1  ;;  %v1693_v37 = vrot.slane %v12349_v35, %v16170_v33  ;;  %v1697_v41 = vrot.slane %v12349_v35, %v16173_v34  ;;  %v13994_v35 = vld [vmem:[%s20875_s4 + $0x10] ss:$204 sps:$4 sm:$0xff]  }
 0x25a   :  { %vm1631_vm3 = vcmp.gt.f32.partialorder %v1625_v43, 0.0  ;;  %v1635_v46 = vmul.f32 0.01, %v1625_v43  ;;  %v1627_v47 = vadd.f32 %v1626_v45, %v1574_v36  ;;  %v1638_v52 = vsel %vm1630_vm4, %v1623_v40, %v1634_v44  ;;  %v12350_v36 = vld [vmem:[%s20872_s3 + $0x7] ss:$8 sm:$0x3] }
 0x25b   :  { %v1712_v44 = vrot.slane %v12350_v36, %v16173_v34 }
 0x25c   :  { %v1639_v49 = vsel %vm1631_vm3, %v1625_v43, %v1635_v46  ;;  %vm1632_vm5 = vcmp.gt.f32.partialorder %v1627_v47, 0.0  ;;  %v1636_v50 = vmul.f32 0.01, %v1627_v47  ;;  %v1708_v43 = vrot.slane %v12350_v36, %v16170_v33  ;;  %v13999_v36 = vld [vmem:[%s20875_s4 + $0x17f4] ss:$204 sps:$4 sm:$0xff]  }
 0x25d   :  { %v1641_v51 = vadd.f32 %v1639_v49, %v1637_v48 }
 0x25e   :  { %v1640_v53 = vsel %vm1632_vm5, %v1627_v47, %v1636_v50 }
 0x25f   :  { %v1642_v54 = vrot.slane %v1641_v51, 4  ;;  %v1648_v55 = vadd.f32 %v1640_v53, %v1638_v52 }
 0x261   :  { %v1643_v56 = vadd.f32 %v1642_v54, %v1641_v51  ;;  %v1649_v57 = vrot.slane %v1648_v55, 4 }
 0x263   :  { %v1644_v58 = vrot.slane %v1643_v56, 2  ;;  %v1650_v59 = vadd.f32 %v1649_v57, %v1648_v55 }
 0x265   :  { %v1645_v60 = vadd.f32 %v1644_v58, %v1643_v56  ;;  %v1651_v61 = vrot.slane %v1650_v59, 2 }
 0x267   :  { %v1646_v62 = vrot.slane %v1645_v60, 1  ;;  %v1652_v63 = vadd.f32 %v1651_v61, %v1650_v59 }
 0x269   :  { %v1647_v1 = vadd.f32 %v1646_v62, %v1645_v60  ;;  %v1653_v2 = vrot.slane %v1652_v63, 1 }
 0x26b   :  { %v1655_v3 = vmul.f32 0.0625, %v1647_v1  ;;  %v1654_v4 = vadd.f32 %v1653_v2, %v1652_v63  ;;  %v15979_v63 = vld [vmem:[%s20874_s2] sm:$0xff]   ;;  %v13949_v2 = vld [vmem:[%s20875_s4 + $0xb30] ss:$204 sps:$4 sm:$0xff]  }
 0x26c   :  { %v13951_v1 = vld [vmem:[%s20875_s4 + $0xb34] ss:$204 sps:$4 sm:$0xff]  }
 0x26d   :  { %v1657_v5 = vsub.f32 %v1637_v48, %v1655_v3  ;;  %v1659_v6 = vsub.f32 %v1639_v49, %v1655_v3  ;;  %v1656_v7 = vmul.f32 0.0625, %v1654_v4  ;;  %v13954_v3 = vld [vmem:[%s20875_s4 + $0xb3c] ss:$204 sps:$4 sm:$0xff]   ;;  %v13952_v4 = vld [vmem:[%s20875_s4 + $0xb38] ss:$204 sps:$4 sm:$0xff]  }
 0x26e   :  { %2630 = vmatprep.subr.bf16.mxu1 %v13954_v3  ;;  %v14036_v3 = vld [vmem:[%s20875_s4 + $0xe68] ss:$204 sps:$4 sm:$0xff]  }
 0x26f   :  { %v1661_v8 = vmul.f32 %v1657_v5, %v1657_v5  ;;  %v1663_v9 = vmul.f32 %v1659_v6, %v1659_v6  ;;  %v1658_v10 = vsub.f32 %v1638_v52, %v1656_v7  ;;  %v1660_v11 = vsub.f32 %v1640_v53, %v1656_v7  ;;  %v13960_v7 = vld [vmem:[%s20875_s4 + $0x9a4] ss:$204 sps:$4 sm:$0xff]  }
 0x271   :  { %v1665_v12 = vadd.f32 %v1663_v9, %v1661_v8  ;;  %v1662_v13 = vmul.f32 %v1658_v10, %v1658_v10  ;;  %v1664_v14 = vmul.f32 %v1660_v11, %v1660_v11  ;;  %v13958_v8 = vld [vmem:[%s20875_s4 + $0x9a0] ss:$204 sps:$4 sm:$0xff]   ;;  %v13963_v9 = vld [vmem:[%s20875_s4 + $0x804] ss:$204 sps:$4 sm:$0xff]  }
 0x273   :  { %v1666_v15 = vrot.slane %v1665_v12, 4  ;;  %v1672_v16 = vadd.f32 %v1664_v14, %v1662_v13  ;;  %v13969_v13 = vld [vmem:[%s20875_s4 + $0x66c] ss:$204 sps:$4 sm:$0xff]   ;;  %v13967_v14 = vld [vmem:[%s20875_s4 + $0x668] ss:$204 sps:$4 sm:$0xff]  }
 0x275   :  { %v1667_v17 = vadd.f32 %v1666_v15, %v1665_v12  ;;  %v1673_v18 = vrot.slane %v1672_v16, 4  ;;  %v13964_v12 = vld [vmem:[%s20875_s4 + $0x808] ss:$204 sps:$4 sm:$0xff]  }
 0x276   :  { %v13972_v15 = vld [vmem:[%s20875_s4 + $0x674] ss:$204 sps:$4 sm:$0xff]  }
 0x277   :  { %v1668_v19 = vrot.slane %v1667_v17, 2  ;;  %v1674_v20 = vadd.f32 %v1673_v18, %v1672_v16  ;;  %v13970_v16 = vld [vmem:[%s20875_s4 + $0x670] ss:$204 sps:$4 sm:$0xff]  }
 0x278   :  { %v13973_v18 = vld [vmem:[%s20875_s4 + $0x4d0] ss:$204 sps:$4 sm:$0xff]  }
 0x279   :  { %v1669_v21 = vadd.f32 %v1668_v19, %v1667_v17  ;;  %v1675_v22 = vrot.slane %v1674_v20, 2  ;;  %v13975_v17 = vld [vmem:[%s20875_s4 + $0x4d4] ss:$204 sps:$4 sm:$0xff]   ;;  %v13978_v19 = vld [vmem:[%s20875_s4 + $0x4dc] ss:$204 sps:$4 sm:$0xff]  }
 0x27b   :  { %v1670_v23 = vrot.slane %v1669_v21, 1  ;;  %v1676_v24 = vadd.f32 %v1675_v22, %v1674_v20  ;;  %v13976_v20 = vld [vmem:[%s20875_s4 + $0x4d8] ss:$204 sps:$4 sm:$0xff]  }
 0x27c   :  { %v13979_v22 = vld [vmem:[%s20875_s4 + $0x338] ss:$204 sps:$4 sm:$0xff]  }
 0x27d   :  { %v1671_v25 = vadd.f32 %v1670_v23, %v1669_v21  ;;  %v1677_v26 = vrot.slane %v1676_v24, 1  ;;  %v13981_v21 = vld [vmem:[%s20875_s4 + $0x33c] ss:$204 sps:$4 sm:$0xff]   ;;  %v13984_v23 = vld [vmem:[%s20875_s4 + $0x344] ss:$204 sps:$4 sm:$0xff]  }
 0x27f   :  { %v1679_v27 = vmul.f32 0.0625, %v1671_v25  ;;  %v1678_v28 = vadd.f32 %v1677_v26, %v1676_v24  ;;  %v13982_v24 = vld [vmem:[%s20875_s4 + $0x340] ss:$204 sps:$4 sm:$0xff]   ;;  %v13987_v25 = vld [vmem:[%s20875_s4 + $0x1a4] ss:$204 sps:$4 sm:$0xff]  }
 0x280   :  { %v13985_v26 = vld [vmem:[%s20875_s4 + $0x1a0] ss:$204 sps:$4 sm:$0xff]  }
 0x281   :  { %v1681_v29 = vadd.f32 1e-06, %v1679_v27  ;;  %v1680_v30 = vmul.f32 0.0625, %v1678_v28  ;;  %v13990_v27 = vld [vmem:[%s20875_s4 + $0x1ac] ss:$204 sps:$4 sm:$0xff]  }
 0x282   :  { %v13988_v28 = vld [vmem:[%s20875_s4 + $0x1a8] ss:$204 sps:$4 sm:$0xff]  }
 0x283   :  { %15887 = vrsqrt.f32 %v1681_v29  ;;  %v1682_v32 = vadd.f32 1e-06, %v1680_v30  ;;  %v13993_v29 = vld [vmem:[%s20875_s4 + $0xc] ss:$204 sps:$4 sm:$0xff]   ;;  %v13991_v30 = vld [vmem:[%s20875_s4 + $0x8] ss:$204 sps:$4 sm:$0xff]  }
 0x285   :  { %15889 = vrsqrt.f32 %v1682_v32  ;;  %v13996_v32 = vld [vmem:[%s20875_s4 + $0x14] ss:$204 sps:$4 sm:$0xff]  }
 0x290   :  { %v15888_v38 = vpop.eup %15887 }
 0x291   :  { %v1685_v39 = vmul.f32 %v15888_v38, %v1657_v5  ;;  %v1687_v40 = vmul.f32 %v15888_v38, %v1659_v6  ;;  %v13957_v5 = vld [vmem:[%s20875_s4 + $0x99c] ss:$204 sps:$4 sm:$0xff]   ;;  %v13955_v6 = vld [vmem:[%s20875_s4 + $0x998] ss:$204 sps:$4 sm:$0xff]  }
 0x292   :  { %v15890_v42 = vpop.eup %15889  ;;  %v14002_v38 = vld [vmem:[%s20875_s4 + $0x17fc] ss:$204 sps:$4 sm:$0xff]  }
 0x293   :  { %v1702_v45 = vmul.f32 %v1693_v37, %v1687_v40  ;;  %v1688_v46 = vmul.f32 %v15890_v42, %v1660_v11  ;;  %v1686_v47 = vmul.f32 %v15890_v42, %v1658_v10  ;;  %v1700_v48 = vmul.f32 %v1693_v37, %v1685_v39  ;;  %v13961_v10 = vld [vmem:[%s20875_s4 + $0x800] ss:$204 sps:$4 sm:$0xff]   ;;  %v13997_v37 = vld [vmem:[%s20875_s4 + $0x17f0] ss:$204 sps:$4 sm:$0xff]   ;;  %v14000_v39 = vld [vmem:[%s20875_s4 + $0x17f8] ss:$204 sps:$4 sm:$0xff]  }
 0x294   :  { %v13966_v11 = vld [vmem:[%s20875_s4 + $0x80c] ss:$204 sps:$4 sm:$0xff]   ;;  %v14005_v40 = vld [vmem:[%s20875_s4 + $0x165c] ss:$204 sps:$4 sm:$0xff]   ;;  %v14008_v42 = vld [vmem:[%s20875_s4 + $0x1664] ss:$204 sps:$4 sm:$0xff]  }
 0x295   :  { %v1701_v49 = vmul.f32 %v1697_v41, %v1686_v47  ;;  %v1703_v50 = vmul.f32 %v1697_v41, %v1688_v46  ;;  %v16187_v51 = vadd.f32 %v1708_v43, %v1700_v48  ;;  %v16189_v52 = vadd.f32 %v1708_v43, %v1702_v45  ;;  %v14003_v41 = vld [vmem:[%s20875_s4 + $0x1658] ss:$204 sps:$4 sm:$0xff]   ;;  %v14006_v43 = vld [vmem:[%s20875_s4 + $0x1660] ss:$204 sps:$4 sm:$0xff]   ;;  %v14012_v47 = vld [vmem:[%s20875_s4 + $0x14c8] ss:$204 sps:$4 sm:$0xff]  }
 0x296   :  { %v14009_v45 = vld [vmem:[%s20875_s4 + $0x14c0] ss:$204 sps:$4 sm:$0xff]  }
 0x297   :  { %v16191_v53 = vadd.f32 %v1712_v44, %v1701_v49  ;;  %v16193_v54 = vadd.f32 %v1712_v44, %v1703_v50  ;;  %v1719_v56 = vpack.c.bf16 %v16189_v52, %v16187_v51  ;;  %v14011_v44 = vld [vmem:[%s20875_s4 + $0x14c4] ss:$204 sps:$4 sm:$0xff]   ;;  %v14014_v46 = vld [vmem:[%s20875_s4 + $0x14cc] ss:$204 sps:$4 sm:$0xff]   ;;  %v14015_v49 = vld [vmem:[%s20875_s4 + $0x1328] ss:$204 sps:$4 sm:$0xff]  }
 0x298   :  { %v14017_v48 = vld [vmem:[%s20875_s4 + $0x132c] ss:$204 sps:$4 sm:$0xff]   ;;  %v14020_v50 = vld [vmem:[%s20875_s4 + $0x1334] ss:$204 sps:$4 sm:$0xff]  }
 0x299   :  { %v1720_v55 = vpack.c.bf16 %v16193_v54, %v16191_v53 }
 0x29b   :  { %1913 = vmatprep.mubr.bf16.mxu1 %v1720_v55  ;;  %v14018_v55 = vld [vmem:[%s20875_s4 + $0x1330] ss:$204 sps:$4 sm:$0xff]  }
 0x29c   :  { %1914 = vmatmul.mubr.bf16.vlgmr.msra.gmra.mxu1 %v1719_v56  ;;  %v14023_v56 = vld [vmem:[%s20875_s4 + $0x1194] ss:$204 sps:$4 sm:$0xff]  }
 0x29d   :  { %2631 = vmatpush1.bf16.msra.mxu1 %v13952_v4  ;;  %v14038_v4 = vld [vmem:[%s20875_s4 + $0xe6c] ss:$204 sps:$4 sm:$0xff]  }
 0x29e   :  { %2632 = vmatprep.subr.bf16.mxu1 %v13960_v7  ;;  %v14039_v7 = vld [vmem:[%s20875_s4 + $0xcc8] ss:$204 sps:$4 sm:$0xff]  }
 0x2a1   :  { %2633 = vmatpush1.bf16.msra.mxu1 %v13958_v8  ;;  %v14042_v8 = vld [vmem:[%s20875_s4 + $0xcd0] ss:$204 sps:$4 sm:$0xff]  }
 0x2a2   :  { %2634 = vmatprep.subr.bf16.mxu1 %v13966_v11 }
 0x2a5   :  { %2635 = vmatpush1.bf16.msra.mxu1 %v13964_v12 }
 0x2a6   :  { %2636 = vmatprep.subr.bf16.mxu1 %v13972_v15 }
 0x2a9   :  { %2637 = vmatpush1.bf16.msra.mxu1 %v13970_v16 }
 0x2aa   :  { %2638 = vmatprep.subr.bf16.mxu1 %v13978_v19 }
 0x2ad   :  { %2639 = vmatpush1.bf16.msra.mxu1 %v13976_v20 }
 0x2ae   :  { %2640 = vmatprep.subr.bf16.mxu1 %v13984_v23 }
 0x2b1   :  { %2641 = vmatpush1.bf16.msra.mxu1 %v13982_v24 }
 0x2b2   :  { %2642 = vmatprep.subr.bf16.mxu1 %v13990_v27 }
 0x2b5   :  { %2643 = vmatpush1.bf16.msra.mxu1 %v13988_v28 }
 0x2b6   :  { %2644 = vmatprep.subr.bf16.mxu1 %v13996_v32 }
 0x2b9   :  { %2645 = vmatpush1.bf16.msra.mxu1 %v13994_v35 }
 0x2ba   :  { %2646 = vmatprep.subr.bf16.mxu1 %v14002_v38 }
 0x2bd   :  { %2647 = vmatpush2.bf16.msra.mxu1 %v14000_v39 }
 0x2be   :  { %2648 = vmatprep.subr.bf16.mxu1 %v14008_v42 }
 0x2c1   :  { %2649 = vmatpush2.bf16.msra.mxu1 %v14006_v43 }
 0x2c2   :  { %2650 = vmatprep.subr.bf16.mxu1 %v14014_v46 }
 0x2c5   :  { %2651 = vmatpush2.bf16.msra.mxu1 %v14012_v47 }
 0x2c6   :  { %2652 = vmatprep.subr.bf16.mxu1 %v14020_v50 }
 0x2c9   :  { %2653 = vmatpush2.bf16.msra.mxu1 %v14018_v55 }
 0x35c   :  { %v1915_v57 = vpop.f32.mrf.mxu1 }
 0x35e   :  { %v1917_v58 = vpop.f32.mrf.mxu1 }
 0x360   :  { %v1919_v59 = vpop.f32.mrf.mxu1 }
 0x361   :  { %v1924_v62 = vpack.c.bf16 %v1919_v59, %v1915_v57  ;;  %v14021_v57 = vld [vmem:[%s20875_s4 + $0x1190] ss:$204 sps:$4 sm:$0xff]   ;;  %v14024_v59 = vld [vmem:[%s20875_s4 + $0x1198] ss:$204 sps:$4 sm:$0xff]  }
 0x362   :  { %v1921_v60 = vpop.f32.mrf.mxu1 }
 0x363   :  { %v1925_v61 = vpack.c.bf16 %v1921_v60, %v1917_v58  ;;  %v14026_v58 = vld [vmem:[%s20875_s4 + $0x119c] ss:$204 sps:$4 sm:$0xff]  }
 0x364   :  { %2654 = vmatprep.subr.bf16.mxu1 %v14026_v58  ;;  %v14029_v60 = vld [vmem:[%s20875_s4 + $0xffc] ss:$204 sps:$4 sm:$0xff]  }
 0x365   :  { %1951 = vmatprep.subr.bf16.mxu0 %v1925_v61  ;;  %2655 = vmatpush2.bf16.msra.mxu1 %v14024_v59  ;;  %v14027_v61 = vld [vmem:[%s20875_s4 + $0xff8] ss:$204 sps:$4 sm:$0xff]  }
 0x366   :  { %1952 = vmatpush1.bf16.msra.mxu0 %v1924_v62  ;;  %v14032_v62 = vld [vmem:[%s20875_s4 + $0x1004] ss:$204 sps:$4 sm:$0xff]  }
 0x367   :  { %2587 = vmatprep.subr.bf16.mxu0 %v13951_v1  ;;  %2656 = vmatprep.subr.bf16.mxu1 %v14032_v62  ;;  %v14033_v1 = vld [vmem:[%s20875_s4 + $0xe60] ss:$204 sps:$4 sm:$0xff]  }
 0x369   :  { %12418 = vmatmul.mubr.msk.bf16.vlgmr.msra.gmra.mxu0 %vm1582_vm1, %v15979_v63  ;;  %v14030_v63 = vld [vmem:[%s20875_s4 + $0x1000] ss:$204 sps:$4 sm:$0xff]  }
 0x36a   :  { %2588 = vmatpush1.bf16.msra.mxu0 %v13949_v2  ;;  %v14035_v2 = vld [vmem:[%s20875_s4 + $0xe64] ss:$204 sps:$4 sm:$0xff]   ;;  %2657 = vmatpush2.bf16.msra.mxu1 %v14030_v63 }
 0x36b   :  { %2589 = vmatprep.subr.bf16.mxu0 %v13957_v5  ;;  %v14041_v5 = vld [vmem:[%s20875_s4 + $0xccc] ss:$204 sps:$4 sm:$0xff]   ;;  %2658 = vmatprep.subr.bf16.mxu1 %v14038_v4 }
 0x36e   :  { %2590 = vmatpush1.bf16.msra.mxu0 %v13955_v6  ;;  %v14044_v6 = vld [vmem:[%s20875_s4 + $0xcd4] ss:$204 sps:$4 sm:$0xff]   ;;  %2659 = vmatpush2.bf16.msra.mxu1 %v14036_v3 }
 0x36f   :  { %2591 = vmatprep.subr.bf16.mxu0 %v13963_v9  ;;  %2660 = vmatprep.subr.bf16.mxu1 %v14044_v6  ;;  %v14047_v9 = vld [vmem:[%s20875_s4 + $0xb44] ss:$204 sps:$4 sm:$0xff]  }
 0x372   :  { %2592 = vmatpush1.bf16.msra.mxu0 %v13961_v10  ;;  %2661 = vmatpush2.bf16.msra.mxu1 %v14042_v8  ;;  %v12348_v10 = vld [vmem:[%s20872_s3 + $0x5] ss:$8 sm:$0x3] }
 0x373   :  { %2593 = vmatprep.subr.bf16.mxu0 %v13969_v13  ;;  %v1930_v11 = vrot.slane %v12348_v10, %v16170_v33  ;;  %v1934_v12 = vrot.slane %v12348_v10, %v16173_v34 }
 0x376   :  { %2594 = vmatpush1.bf16.msra.mxu0 %v13967_v14 }
 0x377   :  { %2595 = vmatprep.subr.bf16.mxu0 %v13975_v17 }
 0x37a   :  { %2596 = vmatpush1.bf16.msra.mxu0 %v13973_v18 }
 0x37b   :  { %2597 = vmatprep.subr.bf16.mxu0 %v13981_v21 }
 0x37e   :  { %2598 = vmatpush1.bf16.msra.mxu0 %v13979_v22 }
 0x37f   :  { %2599 = vmatprep.subr.bf16.mxu0 %v13987_v25 }
 0x382   :  { %2600 = vmatpush1.bf16.msra.mxu0 %v13985_v26 }
 0x383   :  { %2601 = vmatprep.subr.bf16.mxu0 %v13993_v29 }
 0x386   :  { %2602 = vmatpush1.bf16.msra.mxu0 %v13991_v30 }
 0x387   :  { %2603 = vmatprep.subr.bf16.mxu0 %v13999_v36 }
 0x38a   :  { %2604 = vmatpush2.bf16.msra.mxu0 %v13997_v37 }
 0x38b   :  { %2605 = vmatprep.subr.bf16.mxu0 %v14005_v40 }
 0x38e   :  { %2606 = vmatpush2.bf16.msra.mxu0 %v14003_v41 }
 0x38f   :  { %2607 = vmatprep.subr.bf16.mxu0 %v14011_v44 }
 0x392   :  { %2608 = vmatpush2.bf16.msra.mxu0 %v14009_v45 }
 0x393   :  { %2609 = vmatprep.subr.bf16.mxu0 %v14017_v48 }
 0x396   :  { %2610 = vmatpush2.bf16.msra.mxu0 %v14015_v49 }
 0x397   :  { %2611 = vmatprep.subr.bf16.mxu0 %v14023_v56 }
 0x39a   :  { %2612 = vmatpush2.bf16.msra.mxu0 %v14021_v57 }
 0x39b   :  { %2613 = vmatprep.subr.bf16.mxu0 %v14029_v60 }
 0x39e   :  { %2614 = vmatpush2.bf16.msra.mxu0 %v14027_v61 }
 0x39f   :  { %2615 = vmatprep.subr.bf16.mxu0 %v14035_v2 }
 0x3a2   :  { %2616 = vmatpush2.bf16.msra.mxu0 %v14033_v1 }
 0x3a3   :  { %2617 = vmatprep.subr.bf16.mxu0 %v14041_v5 }
 0x3a6   :  { %2618 = vmatpush2.bf16.msra.mxu0 %v14039_v7 }
 0x3a7   :  { %2673 = vmatprep.subr.bf16.mxu0 %v14047_v9 }
 0x429   :  { %v1971_v13 = vpop.f32.mrf.mxu0 }
 0x42a   :  { %v1972_v14 = vadd.f32 %v1971_v13, %v1930_v11 }
 0x42b   :  { %v1973_v15 = vpop.f32.mrf.mxu0 }
 0x42c   :  { %v1980_v16 = vadd.f32 %v1972_v14, %v16187_v51  ;;  %v1974_v17 = vadd.f32 %v1973_v15, %v1934_v12  ;;  %v12351_v15 = vld [vmem:[%s20872_s3 + $0x80] ss:$8 sm:$0x3] }
 0x42d   :  { %v1975_v18 = vpop.f32.mrf.mxu0 }
 0x42e   :  { %v1976_v19 = vadd.f32 %v1975_v18, %v1930_v11  ;;  %v1981_v20 = vadd.f32 %v1974_v17, %v16191_v53  ;;  %v1988_v22 = vmul.f32 0.01, %v1980_v16  ;;  %vm1984_vm6 = vcmp.gt.f32.partialorder %v1980_v16, 0.0  ;;  %v12352_v18 = vld [vmem:[%s20872_s3 + $0x81] ss:$8 sm:$0x3] }
 0x42f   :  { %v1977_v21 = vpop.f32.mrf.mxu0 }
 0x430   :  { %v1982_v23 = vadd.f32 %v1976_v19, %v16189_v52  ;;  %v1978_v24 = vadd.f32 %v1977_v21, %v1934_v12  ;;  %v1989_v26 = vmul.f32 0.01, %v1981_v20  ;;  %v1992_v28 = vsel %vm1984_vm6, %v1980_v16, %v1988_v22 }
 0x431   :  { %vm1985_vm8 = vcmp.gt.f32.partialorder %v1981_v20, 0.0  ;;  %v2048_v16 = vrot.slane %v12351_v15, %v16170_v33  ;;  %v2052_v21 = vrot.slane %v12351_v15, %v16173_v34 }
 0x432   :  { %vm1986_vm7 = vcmp.gt.f32.partialorder %v1982_v23, 0.0  ;;  %v1990_v25 = vmul.f32 0.01, %v1982_v23  ;;  %v1983_v27 = vadd.f32 %v1978_v24, %v16193_v54  ;;  %v1993_v32 = vsel %vm1985_vm8, %v1981_v20, %v1989_v26 }
 0x434   :  { %v1994_v29 = vsel %vm1986_vm7, %v1982_v23, %v1990_v25  ;;  %vm1987_vm9 = vcmp.gt.f32.partialorder %v1983_v27, 0.0  ;;  %v1991_v30 = vmul.f32 0.01, %v1983_v27  ;;  %v2063_v23 = vrot.slane %v12352_v18, %v16170_v33 }
 0x435   :  { %v1996_v51 = vadd.f32 %v1994_v29, %v1992_v28 }
 0x436   :  { %v1995_v53 = vsel %vm1987_vm9, %v1983_v27, %v1991_v30 }
 0x437   :  { %v1997_v35 = vrot.slane %v1996_v51, 4  ;;  %v2003_v36 = vadd.f32 %v1995_v53, %v1993_v32 }
 0x439   :  { %v1998_v37 = vadd.f32 %v1997_v35, %v1996_v51  ;;  %v2004_v38 = vrot.slane %v2003_v36, 4 }
 0x43b   :  { %v1999_v52 = vrot.slane %v1998_v37, 2  ;;  %v2005_v39 = vadd.f32 %v2004_v38, %v2003_v36 }
 0x43d   :  { %v2000_v40 = vadd.f32 %v1999_v52, %v1998_v37  ;;  %v2006_v41 = vrot.slane %v2005_v39, 2  ;;  %v14045_v37 = vld [vmem:[%s20875_s4 + $0xb40] ss:$204 sps:$4 sm:$0xff]  }
 0x43e   :  { %v14050_v52 = vld [vmem:[%s20875_s4 + $0x9ac] ss:$204 sps:$4 sm:$0xff]  }
 0x43f   :  { %v2001_v42 = vrot.slane %v2000_v40, 1  ;;  %v2007_v43 = vadd.f32 %v2006_v41, %v2005_v39  ;;  %v14048_v39 = vld [vmem:[%s20875_s4 + $0x9a8] ss:$204 sps:$4 sm:$0xff]   ;;  %v14051_v41 = vld [vmem:[%s20875_s4 + $0x810] ss:$204 sps:$4 sm:$0xff]  }
 0x441   :  { %v2002_v44 = vadd.f32 %v2001_v42, %v2000_v40  ;;  %v2008_v54 = vrot.slane %v2007_v43, 1  ;;  %v14053_v40 = vld [vmem:[%s20875_s4 + $0x814] ss:$204 sps:$4 sm:$0xff]   ;;  %v14056_v42 = vld [vmem:[%s20875_s4 + $0x67c] ss:$204 sps:$4 sm:$0xff]  }
 0x443   :  { %v2010_v45 = vmul.f32 0.0625, %v2002_v44  ;;  %v2009_v46 = vadd.f32 %v2008_v54, %v2007_v43  ;;  %v14054_v43 = vld [vmem:[%s20875_s4 + $0x678] ss:$204 sps:$4 sm:$0xff]   ;;  %v14057_v54 = vld [vmem:[%s20875_s4 + $0x4e0] ss:$204 sps:$4 sm:$0xff]  }
 0x444   :  { %v14059_v44 = vld [vmem:[%s20875_s4 + $0x4e4] ss:$204 sps:$4 sm:$0xff]  }
 0x445   :  { %v2012_v47 = vsub.f32 %v1992_v28, %v2010_v45  ;;  %v2014_v48 = vsub.f32 %v1994_v29, %v2010_v45  ;;  %v2011_v49 = vmul.f32 0.0625, %v2009_v46  ;;  %v2067_v28 = vrot.slane %v12352_v18, %v16173_v34  ;;  %v14062_v45 = vld [vmem:[%s20875_s4 + $0x34c] ss:$204 sps:$4 sm:$0xff]   ;;  %v14060_v46 = vld [vmem:[%s20875_s4 + $0x348] ss:$204 sps:$4 sm:$0xff]  }
 0x447   :  { %v2016_v50 = vmul.f32 %v2012_v47, %v2012_v47  ;;  %v2018_v55 = vmul.f32 %v2014_v48, %v2014_v48  ;;  %v2015_v56 = vsub.f32 %v1995_v53, %v2011_v49  ;;  %v2013_v57 = vsub.f32 %v1993_v32, %v2011_v49  ;;  %v14068_v49 = vld [vmem:[%s20875_s4 + $0x1c] ss:$204 sps:$4 sm:$0xff]  }
 0x449   :  { %v2020_v58 = vadd.f32 %v2018_v55, %v2016_v50  ;;  %v2019_v59 = vmul.f32 %v2015_v56, %v2015_v56  ;;  %v2017_v60 = vmul.f32 %v2013_v57, %v2013_v57  ;;  %v14066_v50 = vld [vmem:[%s20875_s4 + $0x18] ss:$204 sps:$4 sm:$0xff]  }
 0x44a   :  { %v14071_v55 = vld [vmem:[%s20875_s4 + $0x1804] ss:$204 sps:$4 sm:$0xff]  }
 0x44b   :  { %v2021_v61 = vrot.slane %v2020_v58, 4  ;;  %v2027_v62 = vadd.f32 %v2019_v59, %v2017_v60  ;;  %v14077_v59 = vld [vmem:[%s20875_s4 + $0x14d4] ss:$204 sps:$4 sm:$0xff]   ;;  %v14075_v60 = vld [vmem:[%s20875_s4 + $0x14d0] ss:$204 sps:$4 sm:$0xff]  }
 0x44d   :  { %v2022_v63 = vadd.f32 %v2021_v61, %v2020_v58  ;;  %v2028_v1 = vrot.slane %v2027_v62, 4  ;;  %v14072_v58 = vld [vmem:[%s20875_s4 + $0x1668] ss:$204 sps:$4 sm:$0xff]  }
 0x44e   :  { %v14080_v61 = vld [vmem:[%s20875_s4 + $0x133c] ss:$204 sps:$4 sm:$0xff]  }
 0x44f   :  { %v2023_v2 = vrot.slane %v2022_v63, 2  ;;  %v2029_v3 = vadd.f32 %v2028_v1, %v2027_v62  ;;  %v14078_v62 = vld [vmem:[%s20875_s4 + $0x1338] ss:$204 sps:$4 sm:$0xff]   ;;  %v14081_v1 = vld [vmem:[%s20875_s4 + $0x11a0] ss:$204 sps:$4 sm:$0xff]  }
 0x451   :  { %v2024_v4 = vadd.f32 %v2023_v2, %v2022_v63  ;;  %v2030_v5 = vrot.slane %v2029_v3, 2  ;;  %v14083_v63 = vld [vmem:[%s20875_s4 + $0x11a4] ss:$204 sps:$4 sm:$0xff]   ;;  %v14086_v2 = vld [vmem:[%s20875_s4 + $0x100c] ss:$204 sps:$4 sm:$0xff]  }
 0x453   :  { %v2025_v6 = vrot.slane %v2024_v4, 1  ;;  %v2031_v7 = vadd.f32 %v2030_v5, %v2029_v3  ;;  %v14084_v3 = vld [vmem:[%s20875_s4 + $0x1008] ss:$204 sps:$4 sm:$0xff]   ;;  %v14087_v5 = vld [vmem:[%s20875_s4 + $0xe70] ss:$204 sps:$4 sm:$0xff]  }
 0x455   :  { %v2026_v8 = vadd.f32 %v2025_v6, %v2024_v4  ;;  %v2032_v9 = vrot.slane %v2031_v7, 1  ;;  %v14089_v4 = vld [vmem:[%s20875_s4 + $0xe74] ss:$204 sps:$4 sm:$0xff]   ;;  %v14092_v6 = vld [vmem:[%s20875_s4 + $0xcdc] ss:$204 sps:$4 sm:$0xff]  }
 0x457   :  { %v2034_v10 = vmul.f32 0.0625, %v2026_v8  ;;  %v2033_v11 = vadd.f32 %v2032_v9, %v2031_v7  ;;  %v14090_v7 = vld [vmem:[%s20875_s4 + $0xcd8] ss:$204 sps:$4 sm:$0xff]   ;;  %v15981_v8 = vmov 0.0  }
 0x458   :  { %13799 = vmatprep.subr.bf16.mxu1 %v15981_v8  ;;  %v12355_v9 = vld [vmem:[%s20872_s3 + $0x84] ss:$8 sm:$0xf] }
 0x459   :  { %v2036_v12 = vadd.f32 1e-06, %v2034_v10  ;;  %v2035_v13 = vmul.f32 0.0625, %v2033_v11  ;;  %v12356_v10 = vld [vmem:[%s20872_s3 + $0x84] ss:$8 sm:$0x30] }
 0x45a   :  { %v16539_v11 = vor.u32 %v12356_v10, %v12355_v9 }
 0x45b   :  { %15891 = vrsqrt.f32 %v2036_v12  ;;  %v2037_v14 = vadd.f32 1e-06, %v2035_v13  ;;  %v16542_v12 = vsub.s32 2, %v16164_v31 }
 0x45d   :  { %15893 = vrsqrt.f32 %v2037_v14  ;;  %v2088_v15 = vrot.slane %v16539_v11, %v16542_v12 }
 0x468   :  { %v15892_v17 = vpop.eup %15891 }
 0x469   :  { %v2042_v19 = vmul.f32 %v15892_v17, %v2014_v48  ;;  %v2040_v20 = vmul.f32 %v15892_v17, %v2012_v47  ;;  %v14065_v47 = vld [vmem:[%s20875_s4 + $0x1b4] ss:$204 sps:$4 sm:$0xff]   ;;  %v14063_v48 = vld [vmem:[%s20875_s4 + $0x1b0] ss:$204 sps:$4 sm:$0xff]  }
 0x46a   :  { %v15894_v22 = vpop.eup %15893 }
 0x46b   :  { %v2055_v24 = vmul.f32 %v2048_v16, %v2040_v20  ;;  %v2057_v25 = vmul.f32 %v2048_v16, %v2042_v19  ;;  %v2041_v26 = vmul.f32 %v15894_v22, %v2013_v57  ;;  %v2043_v27 = vmul.f32 %v15894_v22, %v2015_v56  ;;  %v14069_v56 = vld [vmem:[%s20875_s4 + $0x1800] ss:$204 sps:$4 sm:$0xff]  }
 0x46c   :  { %v14074_v57 = vld [vmem:[%s20875_s4 + $0x166c] ss:$204 sps:$4 sm:$0xff]   ;;  %v2080_v20 = vrot.slane %v16539_v11, %v16170_v33 }
 0x46d   :  { %v2056_v29 = vmul.f32 %v2052_v21, %v2041_v26  ;;  %v2058_v51 = vmul.f32 %v2052_v21, %v2043_v27  ;;  %v16417_v30 = vadd.f32 %v2063_v23, %v2055_v24  ;;  %v16419_v32 = vadd.f32 %v2063_v23, %v2057_v25 }
 0x46f   :  { %v16421_v35 = vadd.f32 %v2067_v28, %v2056_v29  ;;  %v16423_v53 = vadd.f32 %v2067_v28, %v2058_v51  ;;  %v16432_v38 = vpack.c.bf16 %v16419_v32, %v16417_v30  ;;  %v16560_v28 = vsub.s32 4, %v16164_v31 }
 0x471   :  { %v2075_v36 = vpack.c.bf16 %v16423_v53, %v16421_v35 }
 0x473   :  { %2619 = vmatprep.mubr.bf16.mxu0 %v2075_v36  ;;  %2662 = vmatprep.mubr.bf16.mxu1 %v2075_v36 }
 0x474   :  { %2620 = vmatmul.mubr.bf16.vlgmr.msra.gmra.mxu0 %v16432_v38  ;;  %2663 = vmatmul.mubr.bf16.vlgmr.msra.gmra.mxu1 %v16432_v38 }
 0x475   :  { %2674 = vmatpush1.bf16.msra.mxu0 %v14045_v37  ;;  %2705 = vmatprep.mubr.bf16.mxu0 %v2075_v36  ;;  %v2096_v36 = vrot.slane %v16539_v11, %v16560_v28 }
 0x476   :  { %2675 = vmatprep.subr.bf16.mxu0 %v14050_v52  ;;  %13801 = vmatprep.mubr.msk.bf16.mxu1 %vm15982_vm10, %v15981_v8 }
 0x479   :  { %2676 = vmatpush1.bf16.msra.mxu0 %v14048_v39 }
 0x47a   :  { %2677 = vmatprep.subr.bf16.mxu0 %v14053_v40 }
 0x47d   :  { %2678 = vmatpush1.bf16.msra.mxu0 %v14051_v41 }
 0x47e   :  { %2679 = vmatprep.subr.bf16.mxu0 %v14056_v42 }
 0x481   :  { %2680 = vmatpush1.bf16.msra.mxu0 %v14054_v43 }
 0x482   :  { %2681 = vmatprep.subr.bf16.mxu0 %v14059_v44 }
 0x485   :  { %2682 = vmatpush1.bf16.msra.mxu0 %v14057_v54 }
 0x486   :  { %2683 = vmatprep.subr.bf16.mxu0 %v14062_v45 }
 0x489   :  { %2684 = vmatpush1.bf16.msra.mxu0 %v14060_v46 }
 0x48a   :  { %2685 = vmatprep.subr.bf16.mxu0 %v14065_v47 }
 0x48d   :  { %2686 = vmatpush1.bf16.msra.mxu0 %v14063_v48 }
 0x48e   :  { %2687 = vmatprep.subr.bf16.mxu0 %v14068_v49 }
 0x491   :  { %2688 = vmatpush1.bf16.msra.mxu0 %v14066_v50 }
 0x492   :  { %2689 = vmatprep.subr.bf16.mxu0 %v14071_v55 }
 0x495   :  { %2690 = vmatpush2.bf16.msra.mxu0 %v14069_v56 }
 0x496   :  { %2691 = vmatprep.subr.bf16.mxu0 %v14074_v57 }
 0x499   :  { %2692 = vmatpush2.bf16.msra.mxu0 %v14072_v58 }
 0x49a   :  { %2693 = vmatprep.subr.bf16.mxu0 %v14077_v59 }
 0x49d   :  { %2694 = vmatpush2.bf16.msra.mxu0 %v14075_v60 }
 0x49e   :  { %2695 = vmatprep.subr.bf16.mxu0 %v14080_v61 }
 0x4a1   :  { %2696 = vmatpush2.bf16.msra.mxu0 %v14078_v62 }
 0x4a2   :  { %2697 = vmatprep.subr.bf16.mxu0 %v14083_v63 }
 0x4a5   :  { %2698 = vmatpush2.bf16.msra.mxu0 %v14081_v1 }
 0x4a6   :  { %2699 = vmatprep.subr.bf16.mxu0 %v14086_v2 }
 0x4a9   :  { %2700 = vmatpush2.bf16.msra.mxu0 %v14084_v3 }
 0x4aa   :  { %2701 = vmatprep.subr.bf16.mxu0 %v14089_v4 }
 0x4ad   :  { %2702 = vmatpush2.bf16.msra.mxu0 %v14087_v5 }
 0x4ae   :  { %2703 = vmatprep.subr.bf16.mxu0 %v14092_v6 }
 0x4b1   :  { %2704 = vmatpush2.bf16.msra.mxu0 %v14090_v7 }
 0x4b2   :  { %13793 = vmatprep.subr.bf16.mxu0 %v15981_v8 }
 0x4b4   :  { %2706 = vmatmul.mubr.bf16.vlgmr.msra.gmra.mxu0 %v16432_v38 }
 0x4b5   :  { %13795 = vmatprep.mubr.msk.bf16.mxu0 %vm15982_vm10, %v15981_v8 }
 0x534   :  { %v2621_v13 = vpop.f32.mrf.mxu0  ;;  %v2664_v14 = vpop.f32.mrf.mxu1 }
 0x535   :  { %v2665_v21 = vadd.f32 %v2664_v14, %v2088_v15  ;;  %v2622_v25 = vadd.f32 %v2621_v13, %v2080_v20 }
 0x536   :  { %v16546_v16 = vpop.f32.mrf.mxu0  ;;  %v16548_v17 = vpop.f32.mrf.mxu1 }
 0x538   :  { %v2625_v18 = vpop.f32.mrf.mxu0  ;;  %v2668_v19 = vpop.f32.mrf.mxu1 }
 0x539   :  { %v2669_v22 = vadd.f32 %v2668_v19, %v2088_v15  ;;  %v2626_v23 = vadd.f32 %v2625_v18, %v2080_v20 }
 0x53a   :  { %v16562_v29 = vpop.f32.mrf.mxu0 }
 0x53b   :  { %v2717_v24 = vpack.c.bf16 %v2669_v22, %v2665_v21  ;;  %v2716_v27 = vpack.c.bf16 %v2626_v23, %v2622_v25  ;;  %v16583_v22 = vsub.s32 3, %v16164_v31  ;;  %v2670_v23 = vpop.f32.mrf.mxu1 }
 0x53d   :  { %2839 = vrot.lane.b32.xlu1 %v2717_v24, %s15983_s27  ;;  %v2724_v26 = vsel %vm2719_vm11, %v2717_v24, 0  ;;  %v2092_v24 = vrot.slane %v16539_v11, %v16583_v22 }
 0x53e   :  { %13794 = vmatpush3.bf16.xpose.msra.mxu0 %v2724_v26 }
 0x53f   :  { %13805 = vmatprep.subr.bf16.mxu0 %v15981_v8  ;;  %v2671_v25 = vadd.f32 %v2670_v23, %v2092_v24  ;;  %v2667_v26 = vadd.f32 %v16548_v17, %v2092_v24  ;;  %v14105_v17 = vld [vmem:[%s20875_s4 + $0xb48] ss:$204 sps:$4 sm:$0xff]  }
 0x541   :  { %2836 = vrot.lane.b32.xlu1 %v2716_v27, %s15983_s27 }
 0x545   :  { %13796 = vmatmul.mubr.msk.bf16.vlgmr.msra.gmra.mxu0 %vm2719_vm11, %v2716_v27  ;;  %v16589_v27 = vpack.c.bf16 %v2671_v25, %v2667_v26 }
 0x546   :  { %13807 = vmatprep.mubr.msk.bf16.mxu0 %vm15982_vm10, %v15981_v8 }
 0x547   :  { %v3139_v26 = vsel %vm2719_vm11, %v16589_v27, 0 }
 0x574   :  { %v2707_v51 = vpop.f32.mrf.mxu0 }
 0x575   :  { %v2708_v52 = vadd.f32 %v2707_v51, %v2096_v36 }
 0x576   :  { %v16566_v37 = vpop.f32.mrf.mxu0 }
 0x578   :  { %v2711_v38 = vpop.f32.mrf.mxu0 }
 0x579   :  { %v2712_v39 = vadd.f32 %v2711_v38, %v2096_v36 }
 0x57a   :  { %v16572_v44 = vpop.f32.mrf.mxu0 }
 0x57b   :  { %v2718_v40 = vpack.c.bf16 %v2712_v39, %v2708_v52 }
 0x57d   :  { %13800 = vmatpush3.bf16.msra.mxu1 %v2718_v40 }
 0x57e   :  { %13811 = vmatprep.subr.bf16.mxu1 %v15981_v8 }
 0x5af   :  { %v2840_v41 = vpop.permute.xlu1 %2839 }
 0x5b0   :  { %v2845_v42 = vsel %vm2719_vm11, %v2840_v41, 0 }
 0x5b1   :  { %13806 = vmatpush3.bf16.xpose.msra.mxu0 %v2845_v42 }
 0x5b3   :  { %v2837_v43 = vpop.permute.xlu1 %2836 }
 0x5b8   :  { %13808 = vmatmul.mubr.msk.bf16.vlgmr.msra.gmra.mxu0 %vm2719_vm11, %v2837_v43  ;;  %v14110_v43 = vld [vmem:[%s20875_s4 + $0x9b4] ss:$204 sps:$4 sm:$0xff]  }
 0x5b9   :  { %3035 = vmatprep.mubr.bf16.mxu0 %v15980_v0 }
 0x605   :  { %v2760_v54 = vpop.f32.mrf.mxu0 }
 0x606   :  { %v2767_v45 = vsel %vm1582_vm1, %v2760_v54, -inf }
 0x607   :  { %2768 = vmax.xlane.f32.xlu0 %v2767_v45  ;;  %v13797_v46 = vpop.f32.mrf.mxu0  ;;  %v14113_v45 = vld [vmem:[%s20875_s4 + $0x81c] ss:$204 sps:$4 sm:$0xff]  }
 0x608   :  { %v14111_v46 = vld [vmem:[%s20875_s4 + $0x818] ss:$204 sps:$4 sm:$0xff]  }
 0x609   :  { %v2763_v47 = vpop.f32.mrf.mxu0 }
 0x60a   :  { %v2770_v48 = vsel %vm1582_vm1, %v2763_v47, -inf }
 0x60b   :  { %2771 = vmax.xlane.f32.xlu1 %v2770_v48  ;;  %v13798_v49 = vpop.f32.mrf.mxu0  ;;  %v14095_v48 = vld [vmem:[%s20875_s4 + $0x4ec] ss:$204 sps:$4 sm:$0xff]  }
 0x678   :  { %v2881_v50 = vpop.f32.mrf.mxu0 }
 0x679   :  { %v2888_v55 = vsel %vm1582_vm1, %v2881_v50, -inf }
 0x67a   :  { %2889 = vmax.xlane.f32.xlu0 %v2888_v55  ;;  %v13809_v56 = vpop.f32.mrf.mxu0 }
 0x67c   :  { %v2884_v57 = vpop.f32.mrf.mxu0 }
 0x67d   :  { %v2891_v58 = vsel %vm1582_vm1, %v2884_v57, -inf }
 0x67e   :  { %2892 = vmax.xlane.f32.xlu0 %v2891_v58  ;;  %v13810_v59 = vpop.f32.mrf.mxu0 }
 0x67f   :  { %v14093_v59 = vld [vmem:[%s20875_s4 + $0x4e8] ss:$204 sps:$4 sm:$0xff]  }
 0x690   :  { %v2769_v60 = vpop.xlane.xlu0 %2768 }
 0x691   :  { %v2773_v61 = vsub.f32 %v2760_v54, %v2769_v60  ;;  %v14108_v54 = vld [vmem:[%s20875_s4 + $0x9b0] ss:$204 sps:$4 sm:$0xff]  }
 0x693   :  { %v2775_v62 = vmul.f32 1.442695, %v2773_v61  ;;  %v14098_v61 = vld [vmem:[%s20875_s4 + $0x354] ss:$204 sps:$4 sm:$0xff]  }
 0x694   :  { %v2772_v63 = vpop.xlane.xlu1 %2771 }
 0x695   :  { %15895 = vpow2.f32 %v2775_v62  ;;  %v2774_v1 = vsub.f32 %v2763_v47, %v2772_v63  ;;  %v14096_v62 = vld [vmem:[%s20875_s4 + $0x350] ss:$204 sps:$4 sm:$0xff]  }
 0x696   :  { %v14101_v63 = vld [vmem:[%s20875_s4 + $0x1bc] ss:$204 sps:$4 sm:$0xff]  }
 0x697   :  { %v2777_v2 = vmul.f32 1.442695, %v2774_v1  ;;  %v14099_v1 = vld [vmem:[%s20875_s4 + $0x1b8] ss:$204 sps:$4 sm:$0xff]  }
 0x699   :  { %15897 = vpow2.f32 %v2777_v2  ;;  %v14104_v2 = vld [vmem:[%s20875_s4 + $0x24] ss:$204 sps:$4 sm:$0xff]  }
 0x6a2   :  { %v15896_v3 = vpop.eup %15895 }
 0x6a3   :  { %v2779_v4 = vsel %vm1582_vm1, %v15896_v3, 0.0 }
 0x6a4   :  { %2780 = vadd.xlane.f32.xlu1 %v2779_v4  ;;  %v14116_v4 = vld [vmem:[%s20875_s4 + $0x684] ss:$204 sps:$4 sm:$0xff]  }
 0x6a6   :  { %v15898_v5 = vpop.eup %15897 }
 0x6a7   :  { %v2782_v6 = vsel %vm1582_vm1, %v15898_v5, 0.0 }
 0x6a8   :  { %2783 = vadd.xlane.f32.xlu0 %v2782_v6  ;;  %v16649_v6 = vsub.s32 5, %v16164_v31 }
 0x703   :  { %v2890_v7 = vpop.xlane.xlu0 %2889 }
 0x704   :  { %v2894_v9 = vsub.f32 %v2881_v50, %v2890_v7  ;;  %v2100_v7 = vrot.slane %v16539_v11, %v16649_v6 }
 0x706   :  { %v2896_v10 = vmul.f32 1.442695, %v2894_v9 }
 0x707   :  { %v2893_v13 = vpop.xlane.xlu0 %2892 }
 0x708   :  { %15899 = vpow2.f32 %v2896_v10  ;;  %v2895_v14 = vsub.f32 %v2884_v57, %v2893_v13  ;;  %v2714_v10 = vadd.f32 %v16572_v44, %v2100_v7 }
 0x70a   :  { %v2898_v15 = vmul.f32 1.442695, %v2895_v14  ;;  %v2710_v14 = vadd.f32 %v16566_v37, %v2100_v7  ;;  %v2084_v37 = vrot.slane %v16539_v11, %v16173_v34 }
 0x70c   :  { %15901 = vpow2.f32 %v2898_v15 }
 0x715   :  { %v15900_v18 = vpop.eup %15899 }
 0x716   :  { %v2900_v19 = vsel %vm1582_vm1, %v15900_v18, 0.0 }
 0x717   :  { %2901 = vadd.xlane.f32.xlu1 %v2900_v19  ;;  %v16655_v19 = vpack.c.bf16 %v2714_v10, %v2710_v14  ;;  %v14126_v14 = vld [vmem:[%s20875_s4 + $0xce0] ss:$204 sps:$4 sm:$0xff]  }
 0x719   :  { %v15902_v20 = vpop.eup %15901 }
 0x71a   :  { %v2903_v21 = vsel %vm1582_vm1, %v15902_v20, 0.0 }
 0x71b   :  { %2904 = vadd.xlane.f32.xlu0 %v2903_v21 }
 0x728   :  { %2912 = vrot.lane.b32.xlu1 %v2718_v40, %s15983_s27  ;;  %v14107_v40 = vld [vmem:[%s20875_s4 + $0xb4c] ss:$204 sps:$4 sm:$0xff]  }
 0x729   :  { %3011 = vmatprep.subr.bf16.mxu0 %v14107_v40 }
 0x72a   :  { %3012 = vmatpush1.bf16.msra.mxu0 %v14105_v17 }
 0x72b   :  { %3013 = vmatprep.subr.bf16.mxu0 %v14110_v43 }
 0x72c   :  { %3344 = vrot.lane.b32.xlu1 %v16589_v27, %s15983_s27 }
 0x72d   :  { %v2781_v51 = vpop.xlane.xlu1 %2780 }
 0x72e   :  { %15903 = vrcp.f32 %v2781_v51  ;;  %3014 = vmatpush1.bf16.msra.mxu0 %v14108_v54  ;;  %v2628_v51 = vadd.f32 %v16562_v29, %v2084_v37 }
 0x72f   :  { %3015 = vmatprep.subr.bf16.mxu0 %v14113_v45 }
 0x731   :  { %v2784_v36 = vpop.xlane.xlu0 %2783 }
 0x732   :  { %15905 = vrcp.f32 %v2784_v36  ;;  %3016 = vmatpush1.bf16.msra.mxu0 %v14111_v46  ;;  %v2624_v36 = vadd.f32 %v16546_v16, %v2084_v37 }
 0x733   :  { %3017 = vmatprep.subr.bf16.mxu0 %v14116_v4 }
 0x73b   :  { %v15904_v38 = vpop.eup %15903 }
 0x73c   :  { %v2787_v39 = vmul.f32 %v15904_v38, %v15896_v3  ;;  %v14102_v3 = vld [vmem:[%s20875_s4 + $0x20] ss:$204 sps:$4 sm:$0xff]   ;;  %v3132_v38 = vpack.c.bf16 %v2628_v51, %v2624_v36 }
 0x73f   :  { %v15906_v52 = vpop.eup %15905 }
 0x740   :  { %v2788_v41 = vmul.f32 %v15906_v52, %v15898_v5  ;;  %v14114_v5 = vld [vmem:[%s20875_s4 + $0x680] ss:$204 sps:$4 sm:$0xff]  }
 0x741   :  { %3018 = vmatpush1.bf16.msra.mxu0 %v14114_v5 }
 0x742   :  { %v2789_v42 = vpack.c.bf16 %v2788_v41, %v2787_v39  ;;  %13817 = vmatprep.subr.bf16.mxu0 %v15981_v8 }
 0x744   :  { %13802 = vmatmul.mubr.msk.bf16.vlgmr.msra.gmra.mxu1 %vm1582_vm1, %v2789_v42 }
 0x745   :  { %13813 = vmatprep.mubr.msk.bf16.mxu1 %vm15982_vm10, %v15981_v8 }
 0x7a0   :  { %v2902_v47 = vpop.xlane.xlu1 %2901 }
 0x7a1   :  { %15907 = vrcp.f32 %v2902_v47 }
 0x7a4   :  { %v2913_v49 = vpop.permute.xlu1 %2912  ;;  %v2905_v50 = vpop.xlane.xlu0 %2904 }
 0x7a5   :  { %15909 = vrcp.f32 %v2905_v50  ;;  %13812 = vmatpush3.bf16.msra.mxu1 %v2913_v49 }
 0x7a6   :  { %3097 = vmatprep.subr.bf16.mxu1 %v14095_v48 }
 0x7a8   :  { %v3345_v7 = vpop.permute.xlu1 %3344 }
 0x7a9   :  { %v3350_v10 = vsel %vm2719_vm11, %v3345_v7, 0 }
 0x7ae   :  { %v15908_v55 = vpop.eup %15907 }
 0x7af   :  { %v2908_v57 = vmul.f32 %v15908_v55, %v15900_v18 }
 0x7b2   :  { %v15910_v56 = vpop.eup %15909 }
 0x7b3   :  { %v2909_v58 = vmul.f32 %v15910_v56, %v15902_v20 }
 0x7b5   :  { %v2910_v60 = vpack.c.bf16 %v2909_v58, %v2908_v57  ;;  %v14117_v57 = vld [vmem:[%s20875_s4 + $0x11a8] ss:$204 sps:$4 sm:$0xff]   ;;  %v14119_v58 = vld [vmem:[%s20875_s4 + $0x11ac] ss:$204 sps:$4 sm:$0xff]  }
 0x7b7   :  { %13814 = vmatmul.mubr.msk.bf16.vlgmr.msra.gmra.mxu1 %vm1582_vm1, %v2910_v60  ;;  %v14120_v60 = vld [vmem:[%s20875_s4 + $0x1010] ss:$204 sps:$4 sm:$0xff]  }
 0x7b8   :  { %3098 = vmatpush1.bf16.msra.mxu1 %v14093_v59  ;;  %3121 = vmatprep.mubr.bf16.mxu1 %v15980_v0  ;;  %v14122_v59 = vld [vmem:[%s20875_s4 + $0x1014] ss:$204 sps:$4 sm:$0xff]  }
 0x7b9   :  { %3099 = vmatprep.subr.bf16.mxu1 %v14098_v61  ;;  %v14125_v61 = vld [vmem:[%s20875_s4 + $0xe7c] ss:$204 sps:$4 sm:$0xff]  }
 0x7bc   :  { %3100 = vmatpush1.bf16.msra.mxu1 %v14096_v62  ;;  %v14123_v62 = vld [vmem:[%s20875_s4 + $0xe78] ss:$204 sps:$4 sm:$0xff]  }
 0x7bd   :  { %3101 = vmatprep.subr.bf16.mxu1 %v14101_v63 }
 0x7c0   :  { %3102 = vmatpush1.bf16.msra.mxu1 %v14099_v1 }
 0x7c1   :  { %3103 = vmatprep.subr.bf16.mxu1 %v14104_v2 }
 0x7c4   :  { %3104 = vmatpush1.bf16.msra.mxu1 %v14102_v3 }
 0x7c5   :  { %13823 = vmatprep.subr.bf16.mxu1 %v15981_v8 }
 0x804   :  { %v2827_v9 = vpop.f32.mrf.mxu1 }
 0x806   :  { %v13803_v13 = vpop.f32.mrf.mxu1 }
 0x808   :  { %v2830_v15 = vpop.f32.mrf.mxu1 }
 0x809   :  { %v2834_v18 = vpack.c.bf16 %v2830_v15, %v2827_v9  ;;  %v14128_v15 = vld [vmem:[%s20875_s4 + $0xce4] ss:$204 sps:$4 sm:$0xff]  }
 0x80a   :  { %v13804_v20 = vpop.f32.mrf.mxu1 }
 0x80b   :  { %12536 = vmatmul.mubr.msk.bf16.vlgmr.msra.gmra.mxu1 %vm2719_vm11, %v2834_v18 }
 0x80c   :  { %13824 = vmatpush3.bf16.msra.mxu1 %v16655_v19  ;;  %13825 = vmatprep.mubr.msk.bf16.mxu1 %vm15982_vm10, %v15981_v8 }
 0x80d   :  { %13829 = vmatprep.subr.bf16.mxu1 %v15981_v8 }
 0x877   :  { %v2952_v21 = vpop.f32.mrf.mxu1 }
 0x879   :  { %v13815_v23 = vpop.f32.mrf.mxu1 }
 0x87b   :  { %v2955_v44 = vpop.f32.mrf.mxu1 }
 0x87c   :  { %v2959_v24 = vpack.c.bf16 %v2955_v44, %v2952_v21 }
 0x87d   :  { %v13816_v25 = vpop.f32.mrf.mxu1 }
 0x87e   :  { %12527 = vmatmul.mubr.msk.bf16.vlgmr.msra.gmra.mxu0 %vm2719_vm11, %v2959_v24 }
 0x87f   :  { %13818 = vmatpush3.bf16.xpose.msra.mxu0 %v3139_v26  ;;  %13819 = vmatprep.mubr.msk.bf16.mxu0 %vm15982_vm10, %v15981_v8 }
 0x880   :  { %3301 = vmatprep.subr.bf16.mxu0 %v14119_v58  ;;  %v14135_v58 = vld [vmem:[%s20875_s4 + $0x14d8] ss:$204 sps:$4 sm:$0xff]  }
 0x886   :  { %13820 = vmatmul.mubr.msk.bf16.vlgmr.msra.gmra.mxu0 %vm2719_vm11, %v3132_v38 }
 0x887   :  { %3325 = vmatprep.mubr.bf16.mxu0 %v15980_v0  ;;  %3302 = vmatpush1.bf16.msra.mxu0 %v14117_v57  ;;  %v14132_v57 = vld [vmem:[%s20875_s4 + $0x1670] ss:$204 sps:$4 sm:$0xff]  }
 0x888   :  { %3303 = vmatprep.subr.bf16.mxu0 %v14122_v59 }
 0x88b   :  { %3304 = vmatpush1.bf16.msra.mxu0 %v14120_v60 }
 0x88c   :  { %3305 = vmatprep.subr.bf16.mxu0 %v14125_v61 }
 0x88f   :  { %3306 = vmatpush1.bf16.msra.mxu0 %v14123_v62 }
 0x890   :  { %3307 = vmatprep.subr.bf16.mxu0 %v14128_v15 }
 0x893   :  { %3308 = vmatpush1.bf16.msra.mxu0 %v14126_v14 }
 0x8cb   :  { %v16718_v18 = vpop.f32.mrf.mxu1 }
 0x8cd   :  { %v16720_v20 = vpop.f32.mrf.mxu1 }
 0x8cf   :  { %v16722_v21 = vpop.f32.mrf.mxu1 }
 0x8d1   :  { %v16724_v23 = vpop.f32.mrf.mxu1 }
 0x93e   :  { %v16673_v52 = vpop.f32.mrf.mxu0 }
 0x940   :  { %v16675_v11 = vpop.f32.mrf.mxu0 }
 0x942   :  { %v16677_v39 = vpop.f32.mrf.mxu0 }
 0x944   :  { %v16679_v27 = vpop.f32.mrf.mxu0 }
 0x946   :  { %v3175_v41 = vpop.f32.mrf.mxu0 }
 0x947   :  { %v3182_v42 = vsel %vm1582_vm1, %v3175_v41, -inf }
 0x948   :  { %3183 = vmax.xlane.f32.xlu0 %v3182_v42  ;;  %v13821_v29 = vpop.f32.mrf.mxu0 }
 0x94a   :  { %v3178_v17 = vpop.f32.mrf.mxu0 }
 0x94b   :  { %v3185_v16 = vsel %vm1582_vm1, %v3178_v17, -inf }
 0x94c   :  { %3186 = vmax.xlane.f32.xlu0 %v3185_v16  ;;  %v13822_v40 = vpop.f32.mrf.mxu0 }
 0x9d1   :  { %v3184_v43 = vpop.xlane.xlu0 %3183 }
 0x9d2   :  { %v3188_v54 = vsub.f32 %v3175_v41, %v3184_v43 }
 0x9d4   :  { %v3190_v45 = vmul.f32 1.442695, %v3188_v54 }
 0x9d5   :  { %v3187_v46 = vpop.xlane.xlu0 %3186 }
 0x9d6   :  { %15911 = vpow2.f32 %v3190_v45  ;;  %v3189_v47 = vsub.f32 %v3178_v17, %v3187_v46 }
 0x9d8   :  { %v3192_v48 = vmul.f32 1.442695, %v3189_v47 }
 0x9da   :  { %15913 = vpow2.f32 %v3192_v48 }
 0x9e3   :  { %v15912_v49 = vpop.eup %15911 }
 0x9e4   :  { %v3194_v50 = vsel %vm1582_vm1, %v15912_v49, 0.0 }
 0x9e5   :  { %3195 = vadd.xlane.f32.xlu0 %v3194_v50  ;;  %v14129_v50 = vld [vmem:[%s20875_s4 + $0x1808] ss:$204 sps:$4 sm:$0xff]  }
 0x9e7   :  { %v15914_v55 = vpop.eup %15913 }
 0x9e8   :  { %v3197_v56 = vsel %vm1582_vm1, %v15914_v55, 0.0 }
 0x9e9   :  { %3198 = vadd.xlane.f32.xlu0 %v3197_v56  ;;  %v14134_v56 = vld [vmem:[%s20875_s4 + $0x1674] ss:$204 sps:$4 sm:$0xff]  }
 0x9ff   :  { %3341 = vrot.lane.b32.xlu0 %v3132_v38, %s15983_s27 }
 0xa6e   :  { %v3196_v63 = vpop.xlane.xlu0 %3195 }
 0xa6f   :  { %15915 = vrcp.f32 %v3196_v63 }
 0xa72   :  { %v3199_v1 = vpop.xlane.xlu0 %3198 }
 0xa73   :  { %15917 = vrcp.f32 %v3199_v1 }
 0xa76   :  { %v3342_v13 = vpop.permute.xlu0 %3341 }
 0xa7c   :  { %v15916_v2 = vpop.eup %15915 }
 0xa7d   :  { %v3202_v4 = vmul.f32 %v15916_v2, %v15912_v49 }
 0xa80   :  { %v15918_v3 = vpop.eup %15917 }
 0xa81   :  { %v3203_v5 = vmul.f32 %v15918_v3, %v15914_v55  ;;  %v14131_v55 = vld [vmem:[%s20875_s4 + $0x180c] ss:$204 sps:$4 sm:$0xff]  }
 0xa82   :  { %3516 = vmatprep.subr.bf16.mxu0 %v14131_v55 }
 0xa83   :  { %v3204_v9 = vpack.c.bf16 %v3203_v5, %v3202_v4  ;;  %v14138_v4 = vld [vmem:[%s20875_s4 + $0x1340] ss:$204 sps:$4 sm:$0xff]   ;;  %v14140_v5 = vld [vmem:[%s20875_s4 + $0x1344] ss:$204 sps:$4 sm:$0xff]  }
 0xa85   :  { %13826 = vmatmul.mubr.msk.bf16.vlgmr.msra.gmra.mxu1 %vm1582_vm1, %v3204_v9 }
 0xa86   :  { %13830 = vmatpush3.bf16.xpose.msra.mxu1 %v3350_v10  ;;  %13831 = vmatprep.mubr.msk.bf16.mxu1 %vm15982_vm10, %v15981_v8 }
 0xa87   :  { %13835 = vmatprep.subr.bf16.mxu1 %v15981_v8 }
 0xa8d   :  { %13832 = vmatmul.mubr.msk.bf16.vlgmr.msra.gmra.mxu1 %vm2719_vm11, %v3342_v13 }
 0xa8e   :  { %13837 = vmatprep.mubr.msk.bf16.mxu1 %vm15982_vm10, %v15981_v8 }
 0xb45   :  { %v3242_v44 = vpop.f32.mrf.mxu1 }
 0xb47   :  { %v13827_v24 = vpop.f32.mrf.mxu1 }
 0xb49   :  { %v3245_v25 = vpop.f32.mrf.mxu1 }
 0xb4a   :  { %v3249_v37 = vpack.c.bf16 %v3245_v25, %v3242_v44  ;;  %v12357_v25 = vld [vmem:[%s20872_s3 + $0x85] ss:$8 sm:$0x3] }
 0xb4b   :  { %v13828_v26 = vpop.f32.mrf.mxu1 }
 0xb4c   :  { %12547 = vmatmul.mubr.msk.bf16.vlgmr.msra.gmra.mxu0 %vm2719_vm11, %v3249_v37  ;;  %v3124_v37 = vadd.f32 %v16718_v18, %v16673_v52 }
 0xb4d   :  { %v3386_v51 = vpop.f32.mrf.mxu1  ;;  %3540 = vmatprep.mubr.bf16.mxu0 %v15980_v0  ;;  %3517 = vmatpush1.bf16.msra.mxu0 %v14129_v50 }
 0xb4e   :  { %v3393_v36 = vsel %vm1582_vm1, %v3386_v51, -inf  ;;  %3518 = vmatprep.subr.bf16.mxu0 %v14134_v56 }
 0xb4f   :  { %3394 = vmax.xlane.f32.xlu1 %v3393_v36  ;;  %v13833_v38 = vpop.f32.mrf.mxu1 }
 0xb50   :  { %v3559_v38 = vrot.slane %v12357_v25, %v16170_v33 }
 0xb51   :  { %v3389_v41 = vpop.f32.mrf.mxu1  ;;  %3519 = vmatpush1.bf16.msra.mxu0 %v14132_v57  ;;  %v14149_v57 = vld [vmem:[%s20875_s4 + $0x9bc] ss:$204 sps:$4 sm:$0xff]  }
 0xb52   :  { %v3396_v42 = vsel %vm1582_vm1, %v3389_v41, -inf }
 0xb53   :  { %3397 = vmax.xlane.f32.xlu0 %v3396_v42  ;;  %v13834_v29 = vpop.f32.mrf.mxu1  ;;  %v3128_v42 = vadd.f32 %v16722_v21, %v16677_v39 }
 0xbd8   :  { %v3395_v17 = vpop.xlane.xlu1 %3394 }
 0xbd9   :  { %v3399_v16 = vsub.f32 %v3386_v51, %v3395_v17  ;;  %v3126_v51 = vadd.f32 %v16720_v20, %v16675_v11 }
 0xbdb   :  { %v3401_v40 = vmul.f32 1.442695, %v3399_v16  ;;  %v3563_v16 = vrot.slane %v12357_v25, %v16173_v34  ;;  %v14182_v25 = vld [vmem:[%s20875_s4 + $0x1cc] ss:$204 sps:$4 sm:$0xff]  }
 0xbdc   :  { %v3398_v43 = vpop.xlane.xlu0 %3397 }
 0xbdd   :  { %15919 = vpow2.f32 %v3401_v40  ;;  %v3400_v54 = vsub.f32 %v3389_v41, %v3398_v43  ;;  %v3130_v43 = vadd.f32 %v16724_v23, %v16679_v27 }
 0xbdf   :  { %v3403_v45 = vmul.f32 1.442695, %v3400_v54 }
 0xbe1   :  { %15921 = vpow2.f32 %v3403_v45 }
 0xbea   :  { %v15920_v46 = vpop.eup %15919 }
 0xbeb   :  { %v3405_v47 = vsel %vm1582_vm1, %v15920_v46, 0.0 }
 0xbec   :  { %3406 = vadd.xlane.f32.xlu1 %v3405_v47 }
 0xbee   :  { %v15922_v48 = vpop.eup %15921 }
 0xbef   :  { %v3408_v49 = vsel %vm1582_vm1, %v15922_v48, 0.0 }
 0xbf0   :  { %3409 = vadd.xlane.f32.xlu1 %v3408_v49 }
 0xc01   :  { %3417 = vrot.lane.b32.xlu1 %v16655_v19, %s15983_s27  ;;  %v14137_v19 = vld [vmem:[%s20875_s4 + $0x14dc] ss:$204 sps:$4 sm:$0xff]  }
 0xc02   :  { %3520 = vmatprep.subr.bf16.mxu0 %v14137_v19  ;;  %v14152_v19 = vld [vmem:[%s20875_s4 + $0x9c4] ss:$204 sps:$4 sm:$0xff]  }
 0xc03   :  { %3521 = vmatpush1.bf16.msra.mxu0 %v14135_v58  ;;  %v14147_v58 = vld [vmem:[%s20875_s4 + $0x9b8] ss:$204 sps:$4 sm:$0xff]  }
 0xc04   :  { %3522 = vmatprep.subr.bf16.mxu0 %v14140_v5  ;;  %v14167_v5 = vld [vmem:[%s20875_s4 + $0x4f4] ss:$204 sps:$4 sm:$0xff]  }
 0xc07   :  { %3523 = vmatpush1.bf16.msra.mxu0 %v14138_v4  ;;  %v14162_v4 = vld [vmem:[%s20875_s4 + $0x690] ss:$204 sps:$4 sm:$0xff]  }
 0xc0c   :  { %v3327_v15 = vpop.f32.mrf.mxu0 }
 0xc0d   :  { %v3336_v36 = vadd.f32 %v3327_v15, %v3124_v37  ;;  %v14171_v15 = vld [vmem:[%s20875_s4 + $0x358] ss:$204 sps:$4 sm:$0xff]   ;;  %v14177_v37 = vld [vmem:[%s20875_s4 + $0x1c0] ss:$204 sps:$4 sm:$0xff]  }
 0xc0e   :  { %v3329_v44 = vpop.f32.mrf.mxu0 }
 0xc0f   :  { %v3337_v29 = vadd.f32 %v3329_v44, %v3126_v51  ;;  %v14174_v44 = vld [vmem:[%s20875_s4 + $0x360] ss:$204 sps:$4 sm:$0xff]  }
 0xc10   :  { %v3331_v24 = vpop.f32.mrf.mxu0  ;;  %v14185_v51 = vld [vmem:[%s20875_s4 + $0x2c] ss:$204 sps:$4 sm:$0xff]  }
 0xc11   :  { %v3338_v52 = vadd.f32 %v3331_v24, %v3128_v42  ;;  %v14179_v24 = vld [vmem:[%s20875_s4 + $0x1c4] ss:$204 sps:$4 sm:$0xff]   ;;  %v14191_v42 = vld [vmem:[%s20875_s4 + $0x1814] ss:$204 sps:$4 sm:$0xff]  }
 0xc12   :  { %v3333_v26 = vpop.f32.mrf.mxu0 }
 0xc13   :  { %v3339_v11 = vadd.f32 %v3333_v26, %v3130_v43  ;;  %v14180_v26 = vld [vmem:[%s20875_s4 + $0x1c8] ss:$204 sps:$4 sm:$0xff]  }
 0xc75   :  { %v3407_v59 = vpop.xlane.xlu1 %3406 }
 0xc76   :  { %15923 = vrcp.f32 %v3407_v59  ;;  %v14150_v59 = vld [vmem:[%s20875_s4 + $0x9c0] ss:$204 sps:$4 sm:$0xff]  }
 0xc79   :  { %v3410_v60 = vpop.xlane.xlu1 %3409 }
 0xc7a   :  { %15925 = vrcp.f32 %v3410_v60  ;;  %v14155_v60 = vld [vmem:[%s20875_s4 + $0x824] ss:$204 sps:$4 sm:$0xff]  }
 0xc7d   :  { %v3418_v61 = vpop.permute.xlu1 %3417 }
 0xc7e   :  { %13836 = vmatpush3.bf16.msra.mxu1 %v3418_v61  ;;  %v14158_v61 = vld [vmem:[%s20875_s4 + $0x82c] ss:$204 sps:$4 sm:$0xff]  }
 0xc83   :  { %v15924_v62 = vpop.eup %15923 }
 0xc84   :  { %v3413_v1 = vmul.f32 %v15924_v62, %v15920_v46  ;;  %v14153_v62 = vld [vmem:[%s20875_s4 + $0x820] ss:$204 sps:$4 sm:$0xff]  }
 0xc87   :  { %v15926_v63 = vpop.eup %15925 }
 0xc88   :  { %v3414_v2 = vmul.f32 %v15926_v63, %v15922_v48  ;;  %v14156_v63 = vld [vmem:[%s20875_s4 + $0x828] ss:$204 sps:$4 sm:$0xff]  }
 0xc8a   :  { %v3415_v3 = vpack.c.bf16 %v3414_v2, %v3413_v1  ;;  %v14161_v1 = vld [vmem:[%s20875_s4 + $0x68c] ss:$204 sps:$4 sm:$0xff]   ;;  %v14164_v2 = vld [vmem:[%s20875_s4 + $0x694] ss:$204 sps:$4 sm:$0xff]  }
 0xc8c   :  { %13838 = vmatmul.mubr.msk.bf16.vlgmr.msra.gmra.mxu1 %vm1582_vm1, %v3415_v3  ;;  %v14159_v3 = vld [vmem:[%s20875_s4 + $0x688] ss:$204 sps:$4 sm:$0xff]  }
 0xd4c   :  { %v3457_v7 = vpop.f32.mrf.mxu1 }
 0xd4e   :  { %v13839_v9 = vpop.f32.mrf.mxu1 }
 0xd4f   :  { %v14165_v9 = vld [vmem:[%s20875_s4 + $0x4f0] ss:$204 sps:$4 sm:$0xff]  }
 0xd50   :  { %v3460_v10 = vpop.f32.mrf.mxu1 }
 0xd51   :  { %v3464_v13 = vpack.c.bf16 %v3460_v10, %v3457_v7  ;;  %v14170_v7 = vld [vmem:[%s20875_s4 + $0x4fc] ss:$204 sps:$4 sm:$0xff]   ;;  %v14168_v10 = vld [vmem:[%s20875_s4 + $0x4f8] ss:$204 sps:$4 sm:$0xff]  }
 0xd52   :  { %v13840_v14 = vpop.f32.mrf.mxu1 }
 0xd53   :  { %12558 = vmatmul.mubr.msk.bf16.vlgmr.msra.gmra.mxu0 %vm2719_vm11, %v3464_v13  ;;  %v14173_v13 = vld [vmem:[%s20875_s4 + $0x35c] ss:$204 sps:$4 sm:$0xff]   ;;  %v14176_v14 = vld [vmem:[%s20875_s4 + $0x364] ss:$204 sps:$4 sm:$0xff]  }
 0xe13   :  { %v3542_v41 = vpop.f32.mrf.mxu0 }
 0xe14   :  { %v3551_v17 = vadd.f32 %v3542_v41, %v3336_v36  ;;  %v14188_v36 = vld [vmem:[%s20875_s4 + $0x34] ss:$204 sps:$4 sm:$0xff]   ;;  %v14186_v41 = vld [vmem:[%s20875_s4 + $0x30] ss:$204 sps:$4 sm:$0xff]  }
 0xe15   :  { %v3544_v40 = vpop.f32.mrf.mxu0 }
 0xe16   :  { %v3566_v18 = vadd.f32 %v3559_v38, %v3551_v17  ;;  %v3552_v54 = vadd.f32 %v3544_v40, %v3337_v29  ;;  %v14194_v29 = vld [vmem:[%s20875_s4 + $0x181c] ss:$204 sps:$4 sm:$0xff]  }
 0xe17   :  { %v3546_v45 = vpop.f32.mrf.mxu0  ;;  %v14189_v17 = vld [vmem:[%s20875_s4 + $0x1810] ss:$204 sps:$4 sm:$0xff]  }
 0xe18   :  { %v3567_v20 = vadd.f32 %v3563_v16, %v3552_v54  ;;  %v3553_v46 = vadd.f32 %v3546_v45, %v3338_v52  ;;  %v16774_v39 = vadd.f32 %v3566_v18, %v16417_v30  ;;  %v14141_v30 = vld [vmem:[%s20875_s4 + $0xb50] ss:$204 sps:$4 sm:$0xff]  }
 0xe19   :  { %v3548_v47 = vpop.f32.mrf.mxu0 }
 0xe1a   :  { %v3568_v48 = vadd.f32 %v3559_v38, %v3553_v46  ;;  %v3554_v49 = vadd.f32 %v3548_v47, %v3339_v11  ;;  %v16777_v21 = vadd.f32 %v3567_v20, %v16421_v35  ;;  %v14143_v35 = vld [vmem:[%s20875_s4 + $0xb54] ss:$204 sps:$4 sm:$0xff]  }
 0xe1b   :  { %5001 = vmatprep.subr.bf16.mxu1 %v14143_v35  ;;  %v14183_v38 = vld [vmem:[%s20875_s4 + $0x28] ss:$204 sps:$4 sm:$0xff]   ;;  %v14201_v35 = vld [vmem:[%s20875_s4 + $0x14e0] ss:$204 sps:$4 sm:$0xff]  }
 0xe1c   :  { %v3569_v50 = vadd.f32 %v3563_v16, %v3554_v49  ;;  %v3574_v27 = vadd.f32 %v16777_v21, %v16774_v39  ;;  %v16782_v23 = vadd.f32 %v3568_v48, %v16419_v32  ;;  %v14144_v32 = vld [vmem:[%s20875_s4 + $0xb58] ss:$204 sps:$4 sm:$0xff]   ;;  %5002 = vmatpush1.bf16.msra.mxu1 %v14141_v30 }
 0xe1d   :  { %5003 = vmatprep.subr.bf16.mxu1 %v14149_v57  ;;  %v14192_v16 = vld [vmem:[%s20875_s4 + $0x1818] ss:$204 sps:$4 sm:$0xff]   ;;  %v14212_v57 = vld [vmem:[%s20875_s4 + $0x1354] ss:$204 sps:$4 sm:$0xff]  }
 0xe1e   :  { %3575 = vadd.xlane.f32.xlu0 %v3574_v27  ;;  %v16785_v55 = vadd.f32 %v3569_v50, %v16423_v53  ;;  %v14146_v53 = vld [vmem:[%s20875_s4 + $0xb5c] ss:$204 sps:$4 sm:$0xff]   ;;  %v14200_v27 = vld [vmem:[%s20875_s4 + $0x1684] ss:$204 sps:$4 sm:$0xff]   ;;  %v14206_v30 = vld [vmem:[%s20875_s4 + $0x14ec] ss:$204 sps:$4 sm:$0xff]  }
 0xe1f   :  { %5044 = vmatprep.subr.bf16.mxu0 %v14146_v53  ;;  %v14197_v50 = vld [vmem:[%s20875_s4 + $0x167c] ss:$204 sps:$4 sm:$0xff]   ;;  %v14209_v53 = vld [vmem:[%s20875_s4 + $0x134c] ss:$204 sps:$4 sm:$0xff]  }
 0xe20   :  { %v3577_v56 = vadd.f32 %v16785_v55, %v16782_v23  ;;  %5045 = vmatpush1.bf16.msra.mxu0 %v14144_v32  ;;  %5004 = vmatpush1.bf16.msra.mxu1 %v14147_v58  ;;  %v14204_v32 = vld [vmem:[%s20875_s4 + $0x14e8] ss:$204 sps:$4 sm:$0xff]   ;;  %v14210_v58 = vld [vmem:[%s20875_s4 + $0x1350] ss:$204 sps:$4 sm:$0xff]  }
 0xe21   :  { %5046 = vmatprep.subr.bf16.mxu0 %v14152_v19  ;;  %5005 = vmatprep.subr.bf16.mxu1 %v14155_v60  ;;  %v14207_v19 = vld [vmem:[%s20875_s4 + $0x1348] ss:$204 sps:$4 sm:$0xff]  }
 0xe22   :  { %3578 = vadd.xlane.f32.xlu0 %v3577_v56  ;;  %v14203_v56 = vld [vmem:[%s20875_s4 + $0x14e4] ss:$204 sps:$4 sm:$0xff]   ;;  %v14218_v60 = vld [vmem:[%s20875_s4 + $0x11bc] ss:$204 sps:$4 sm:$0xff]  }
 0xe24   :  { %5047 = vmatpush1.bf16.msra.mxu0 %v14150_v59  ;;  %5006 = vmatpush1.bf16.msra.mxu1 %v14153_v62  ;;  %v14215_v59 = vld [vmem:[%s20875_s4 + $0x11b4] ss:$204 sps:$4 sm:$0xff]   ;;  %v14216_v62 = vld [vmem:[%s20875_s4 + $0x11b8] ss:$204 sps:$4 sm:$0xff]  }
 0xe25   :  { %5048 = vmatprep.subr.bf16.mxu0 %v14158_v61  ;;  %5007 = vmatprep.subr.bf16.mxu1 %v14161_v1  ;;  %v14213_v61 = vld [vmem:[%s20875_s4 + $0x11b0] ss:$204 sps:$4 sm:$0xff]  }
 0xe26   :  { %v14224_v1 = vld [vmem:[%s20875_s4 + $0x1024] ss:$204 sps:$4 sm:$0xff]  }
 0xe28   :  { %5049 = vmatpush1.bf16.msra.mxu0 %v14156_v63  ;;  %5008 = vmatpush1.bf16.msra.mxu1 %v14159_v3  ;;  %v14221_v63 = vld [vmem:[%s20875_s4 + $0x101c] ss:$204 sps:$4 sm:$0xff]   ;;  %v14222_v3 = vld [vmem:[%s20875_s4 + $0x1020] ss:$204 sps:$4 sm:$0xff]  }
 0xe29   :  { %5050 = vmatprep.subr.bf16.mxu0 %v14164_v2  ;;  %5009 = vmatprep.subr.bf16.mxu1 %v14167_v5  ;;  %v14219_v2 = vld [vmem:[%s20875_s4 + $0x1018] ss:$204 sps:$4 sm:$0xff]  }
 0xe2a   :  { %v14230_v5 = vld [vmem:[%s20875_s4 + $0xe8c] ss:$204 sps:$4 sm:$0xff]  }
 0xe2c   :  { %5051 = vmatpush1.bf16.msra.mxu0 %v14162_v4  ;;  %5010 = vmatpush1.bf16.msra.mxu1 %v14165_v9  ;;  %v14227_v4 = vld [vmem:[%s20875_s4 + $0xe84] ss:$204 sps:$4 sm:$0xff]   ;;  %v14228_v9 = vld [vmem:[%s20875_s4 + $0xe88] ss:$204 sps:$4 sm:$0xff]  }
 0xe2d   :  { %5052 = vmatprep.subr.bf16.mxu0 %v14170_v7  ;;  %5011 = vmatprep.subr.bf16.mxu1 %v14173_v13  ;;  %v14225_v7 = vld [vmem:[%s20875_s4 + $0xe80] ss:$204 sps:$4 sm:$0xff]  }
 0xe2e   :  { %v14236_v13 = vld [vmem:[%s20875_s4 + $0xcf4] ss:$204 sps:$4 sm:$0xff]  }
 0xe30   :  { %5053 = vmatpush1.bf16.msra.mxu0 %v14168_v10  ;;  %5012 = vmatpush1.bf16.msra.mxu1 %v14171_v15  ;;  %v14233_v10 = vld [vmem:[%s20875_s4 + $0xcec] ss:$204 sps:$4 sm:$0xff]   ;;  %v14234_v15 = vld [vmem:[%s20875_s4 + $0xcf0] ss:$204 sps:$4 sm:$0xff]  }
 0xe31   :  { %5054 = vmatprep.subr.bf16.mxu0 %v14176_v14  ;;  %5013 = vmatprep.subr.bf16.mxu1 %v14179_v24  ;;  %v14231_v14 = vld [vmem:[%s20875_s4 + $0xce8] ss:$204 sps:$4 sm:$0xff]   ;;  %v14242_v24 = vld [vmem:[%s20875_s4 + $0xb6c] ss:$204 sps:$4 sm:$0xff]  }
 0xe34   :  { %5055 = vmatpush1.bf16.msra.mxu0 %v14174_v44  ;;  %5014 = vmatpush1.bf16.msra.mxu1 %v14177_v37  ;;  %v14239_v44 = vld [vmem:[%s20875_s4 + $0xb64] ss:$204 sps:$4 sm:$0xff]  }
 0xe35   :  { %5056 = vmatprep.subr.bf16.mxu0 %v14182_v25  ;;  %5015 = vmatprep.subr.bf16.mxu1 %v14185_v51 }
 0xe38   :  { %5057 = vmatpush1.bf16.msra.mxu0 %v14180_v26  ;;  %5016 = vmatpush1.bf16.msra.mxu1 %v14183_v38 }
 0xe39   :  { %5058 = vmatprep.subr.bf16.mxu0 %v14188_v36  ;;  %5017 = vmatprep.subr.bf16.mxu1 %v14191_v42 }
 0xe3c   :  { %5059 = vmatpush1.bf16.msra.mxu0 %v14186_v41  ;;  %5018 = vmatpush2.bf16.msra.mxu1 %v14189_v17  ;;  %v12358_v41 = vld [vmem:[%s20872_s3 + $0x86] ss:$8 sm:$0x3] }
 0xe3d   :  { %5060 = vmatprep.subr.bf16.mxu0 %v14194_v29  ;;  %5019 = vmatprep.subr.bf16.mxu1 %v14197_v50  ;;  %v12359_v29 = vld [vmem:[%s20872_s3 + $0x87] ss:$8 sm:$0x3]  ;;  %v3611_v17 = vrot.slane %v12358_v41, %v16170_v33 }
 0xe40   :  { %5061 = vmatpush2.bf16.msra.mxu0 %v14192_v16  ;;  %v3615_v16 = vrot.slane %v12358_v41, %v16173_v34  ;;  %v14288_v41 = vld [vmem:[%s20875_s4 + $0x1828] ss:$204 sps:$4 sm:$0xff]  }
 0xe41   :  { %5062 = vmatprep.subr.bf16.mxu0 %v14200_v27 }
 0xea7   :  { %v3576_v40 = vpop.xlane.xlu0 %3575 }
 0xea8   :  { %v3581_v43 = vmul.f32 0.00390625, %v3576_v40 }
 0xeaa   :  { %v16898_v52 = vsub.f32 %v16774_v39, %v3581_v43  ;;  %v16901_v18 = vsub.f32 %v16777_v21, %v3581_v43 }
 0xeab   :  { %v3579_v54 = vpop.xlane.xlu0 %3578 }
 0xeac   :  { %v3582_v45 = vmul.f32 0.00390625, %v3579_v54  ;;  %v3587_v11 = vmul.f32 %v16898_v52, %v16898_v52  ;;  %v3588_v20 = vmul.f32 %v16901_v18, %v16901_v18 }
 0xeae   :  { %v16908_v46 = vsub.f32 %v16782_v23, %v3582_v45  ;;  %v16911_v47 = vsub.f32 %v16785_v55, %v3582_v45  ;;  %v3591_v48 = vadd.f32 %v3588_v20, %v3587_v11  ;;  %v14195_v23 = vld [vmem:[%s20875_s4 + $0x1678] ss:$204 sps:$4 sm:$0xff]   ;;  %v14198_v55 = vld [vmem:[%s20875_s4 + $0x1680] ss:$204 sps:$4 sm:$0xff]   ;;  %v3626_v45 = vrot.slane %v12359_v29, %v16170_v33 }
 0xeaf   :  { %5020 = vmatpush2.bf16.msra.mxu1 %v14195_v23  ;;  %5063 = vmatpush2.bf16.msra.mxu0 %v14198_v55  ;;  %v3630_v11 = vrot.slane %v12359_v29, %v16173_v34  ;;  %v14296_v29 = vld [vmem:[%s20875_s4 + $0x1694] ss:$204 sps:$4 sm:$0xff]  }
 0xeb0   :  { %3592 = vadd.xlane.f32.xlu0 %v3591_v48  ;;  %v3589_v49 = vmul.f32 %v16908_v46, %v16908_v46  ;;  %v3590_v39 = vmul.f32 %v16911_v47, %v16911_v47  ;;  %5021 = vmatprep.subr.bf16.mxu1 %v14203_v56 }
 0xeb1   :  { %5064 = vmatprep.subr.bf16.mxu0 %v14206_v30  ;;  %v14245_v30 = vld [vmem:[%s20875_s4 + $0x9cc] ss:$204 sps:$4 sm:$0xff]  }
 0xeb2   :  { %v3594_v21 = vadd.f32 %v3590_v39, %v3589_v49 }
 0xeb3   :  { %5022 = vmatpush2.bf16.msra.mxu1 %v14201_v35  ;;  %5065 = vmatpush2.bf16.msra.mxu0 %v14204_v32  ;;  %v14248_v35 = vld [vmem:[%s20875_s4 + $0x9d4] ss:$204 sps:$4 sm:$0xff]  }
 0xeb4   :  { %3595 = vadd.xlane.f32.xlu1 %v3594_v21  ;;  %5023 = vmatprep.subr.bf16.mxu1 %v14209_v53  ;;  %v14243_v32 = vld [vmem:[%s20875_s4 + $0x9c8] ss:$204 sps:$4 sm:$0xff]   ;;  %v14246_v53 = vld [vmem:[%s20875_s4 + $0x9d0] ss:$204 sps:$4 sm:$0xff]  }
 0xeb5   :  { %5066 = vmatprep.subr.bf16.mxu0 %v14212_v57  ;;  %v14251_v57 = vld [vmem:[%s20875_s4 + $0x834] ss:$204 sps:$4 sm:$0xff]  }
 0xeb7   :  { %5024 = vmatpush2.bf16.msra.mxu1 %v14207_v19  ;;  %5067 = vmatpush2.bf16.msra.mxu0 %v14210_v58  ;;  %v14254_v19 = vld [vmem:[%s20875_s4 + $0x83c] ss:$204 sps:$4 sm:$0xff]  }
 0xeb8   :  { %5025 = vmatprep.subr.bf16.mxu1 %v14215_v59  ;;  %5068 = vmatprep.subr.bf16.mxu0 %v14218_v60  ;;  %v14249_v58 = vld [vmem:[%s20875_s4 + $0x830] ss:$204 sps:$4 sm:$0xff]   ;;  %v14252_v59 = vld [vmem:[%s20875_s4 + $0x838] ss:$204 sps:$4 sm:$0xff]  }
 0xeb9   :  { %v14257_v60 = vld [vmem:[%s20875_s4 + $0x69c] ss:$204 sps:$4 sm:$0xff]  }
 0xebb   :  { %5026 = vmatpush2.bf16.msra.mxu1 %v14213_v61  ;;  %5069 = vmatpush2.bf16.msra.mxu0 %v14216_v62  ;;  %v14260_v61 = vld [vmem:[%s20875_s4 + $0x6a4] ss:$204 sps:$4 sm:$0xff]  }
 0xebc   :  { %5027 = vmatprep.subr.bf16.mxu1 %v14221_v63  ;;  %5070 = vmatprep.subr.bf16.mxu0 %v14224_v1  ;;  %v14255_v62 = vld [vmem:[%s20875_s4 + $0x698] ss:$204 sps:$4 sm:$0xff]   ;;  %v14258_v63 = vld [vmem:[%s20875_s4 + $0x6a0] ss:$204 sps:$4 sm:$0xff]  }
 0xebd   :  { %v14263_v1 = vld [vmem:[%s20875_s4 + $0x504] ss:$204 sps:$4 sm:$0xff]  }
 0xebf   :  { %5028 = vmatpush2.bf16.msra.mxu1 %v14219_v2  ;;  %5071 = vmatpush2.bf16.msra.mxu0 %v14222_v3  ;;  %v14266_v2 = vld [vmem:[%s20875_s4 + $0x50c] ss:$204 sps:$4 sm:$0xff]  }
 0xec0   :  { %5029 = vmatprep.subr.bf16.mxu1 %v14227_v4  ;;  %5072 = vmatprep.subr.bf16.mxu0 %v14230_v5  ;;  %v14261_v3 = vld [vmem:[%s20875_s4 + $0x500] ss:$204 sps:$4 sm:$0xff]   ;;  %v14264_v4 = vld [vmem:[%s20875_s4 + $0x508] ss:$204 sps:$4 sm:$0xff]  }
 0xec1   :  { %v14269_v5 = vld [vmem:[%s20875_s4 + $0x36c] ss:$204 sps:$4 sm:$0xff]  }
 0xec3   :  { %5030 = vmatpush2.bf16.msra.mxu1 %v14225_v7  ;;  %5073 = vmatpush2.bf16.msra.mxu0 %v14228_v9  ;;  %v14272_v7 = vld [vmem:[%s20875_s4 + $0x374] ss:$204 sps:$4 sm:$0xff]  }
 0xec4   :  { %5031 = vmatprep.subr.bf16.mxu1 %v14233_v10  ;;  %5074 = vmatprep.subr.bf16.mxu0 %v14236_v13  ;;  %v14267_v9 = vld [vmem:[%s20875_s4 + $0x368] ss:$204 sps:$4 sm:$0xff]   ;;  %v14270_v10 = vld [vmem:[%s20875_s4 + $0x370] ss:$204 sps:$4 sm:$0xff]  }
 0xec5   :  { %v14275_v13 = vld [vmem:[%s20875_s4 + $0x1d4] ss:$204 sps:$4 sm:$0xff]  }
 0xec7   :  { %5032 = vmatpush2.bf16.msra.mxu1 %v14231_v14  ;;  %5075 = vmatpush2.bf16.msra.mxu0 %v14234_v15  ;;  %v14278_v14 = vld [vmem:[%s20875_s4 + $0x1dc] ss:$204 sps:$4 sm:$0xff]  }
 0xec8   :  { %5087 = vmatprep.subr.bf16.mxu1 %v14239_v44  ;;  %5130 = vmatprep.subr.bf16.mxu0 %v14242_v24  ;;  %v14273_v15 = vld [vmem:[%s20875_s4 + $0x1d0] ss:$204 sps:$4 sm:$0xff]   ;;  %v14276_v44 = vld [vmem:[%s20875_s4 + $0x1d8] ss:$204 sps:$4 sm:$0xff]  }
 0xec9   :  { %v14281_v24 = vld [vmem:[%s20875_s4 + $0x3c] ss:$204 sps:$4 sm:$0xff]  }
 0xf39   :  { %v3593_v25 = vpop.xlane.xlu0 %3592 }
 0xf3a   :  { %v3597_v37 = vmul.f32 0.00390625, %v3593_v25  ;;  %v14284_v25 = vld [vmem:[%s20875_s4 + $0x44] ss:$204 sps:$4 sm:$0xff]  }
 0xf3c   :  { %v3599_v26 = vadd.f32 1e-05, %v3597_v37  ;;  %v14279_v37 = vld [vmem:[%s20875_s4 + $0x38] ss:$204 sps:$4 sm:$0xff]  }
 0xf3d   :  { %v3596_v51 = vpop.xlane.xlu1 %3595 }
 0xf3e   :  { %15927 = vrsqrt.f32 %v3599_v26  ;;  %v3598_v36 = vmul.f32 0.00390625, %v3596_v51  ;;  %v14282_v26 = vld [vmem:[%s20875_s4 + $0x40] ss:$204 sps:$4 sm:$0xff]   ;;  %v14287_v51 = vld [vmem:[%s20875_s4 + $0x1824] ss:$204 sps:$4 sm:$0xff]  }
 0xf40   :  { %v3600_v38 = vadd.f32 1e-05, %v3598_v36  ;;  %v14290_v36 = vld [vmem:[%s20875_s4 + $0x182c] ss:$204 sps:$4 sm:$0xff]  }
 0xf42   :  { %15929 = vrsqrt.f32 %v3600_v38  ;;  %v14285_v38 = vld [vmem:[%s20875_s4 + $0x1820] ss:$204 sps:$4 sm:$0xff]  }
 0xf4b   :  { %v15928_v42 = vpop.eup %15927 }
 0xf4c   :  { %v3603_v40 = vmul.f32 %v15928_v42, %v16898_v52  ;;  %v3604_v43 = vmul.f32 %v15928_v42, %v16901_v18  ;;  %v14293_v42 = vld [vmem:[%s20875_s4 + $0x168c] ss:$204 sps:$4 sm:$0xff]  }
 0xf4e   :  { %v3618_v20 = vmul.f32 %v3611_v17, %v3603_v40  ;;  %v3619_v48 = vmul.f32 %v3615_v16, %v3604_v43  ;;  %v14299_v40 = vld [vmem:[%s20875_s4 + $0x14f4] ss:$204 sps:$4 sm:$0xff]   ;;  %v14302_v43 = vld [vmem:[%s20875_s4 + $0x14fc] ss:$204 sps:$4 sm:$0xff]  }
 0xf4f   :  { %v15930_v54 = vpop.eup %15929 }
 0xf50   :  { %v3605_v49 = vmul.f32 %v15930_v54, %v16908_v46  ;;  %v3606_v39 = vmul.f32 %v15930_v54, %v16911_v47  ;;  %v17021_v27 = vadd.f32 %v3626_v45, %v3618_v20  ;;  %v17023_v23 = vadd.f32 %v3630_v11, %v3619_v48  ;;  %v14237_v46 = vld [vmem:[%s20875_s4 + $0xb60] ss:$204 sps:$4 sm:$0xff]   ;;  %v14240_v47 = vld [vmem:[%s20875_s4 + $0xb68] ss:$204 sps:$4 sm:$0xff]   ;;  %v14297_v54 = vld [vmem:[%s20875_s4 + $0x14f0] ss:$204 sps:$4 sm:$0xff]  }
 0xf51   :  { %v14308_v20 = vld [vmem:[%s20875_s4 + $0x1364] ss:$204 sps:$4 sm:$0xff]  }
 0xf52   :  { %v3620_v21 = vmul.f32 %v3611_v17, %v3605_v49  ;;  %v3621_v50 = vmul.f32 %v3615_v16, %v3606_v39  ;;  %v14291_v17 = vld [vmem:[%s20875_s4 + $0x1688] ss:$204 sps:$4 sm:$0xff]   ;;  %v14294_v16 = vld [vmem:[%s20875_s4 + $0x1690] ss:$204 sps:$4 sm:$0xff]   ;;  %v14303_v48 = vld [vmem:[%s20875_s4 + $0x1358] ss:$204 sps:$4 sm:$0xff]  }
 0xf53   :  { %v14306_v49 = vld [vmem:[%s20875_s4 + $0x1360] ss:$204 sps:$4 sm:$0xff]   ;;  %v14311_v39 = vld [vmem:[%s20875_s4 + $0x11c4] ss:$204 sps:$4 sm:$0xff]  }
 0xf54   :  { %v17025_v52 = vadd.f32 %v3626_v45, %v3620_v21  ;;  %v17027_v18 = vadd.f32 %v3630_v11, %v3621_v50  ;;  %v14300_v45 = vld [vmem:[%s20875_s4 + $0x14f8] ss:$204 sps:$4 sm:$0xff]   ;;  %v14305_v11 = vld [vmem:[%s20875_s4 + $0x135c] ss:$204 sps:$4 sm:$0xff]   ;;  %v14309_v50 = vld [vmem:[%s20875_s4 + $0x11c0] ss:$204 sps:$4 sm:$0xff]  }
 0xf55   :  { %v14314_v21 = vld [vmem:[%s20875_s4 + $0x11cc] ss:$204 sps:$4 sm:$0xff]  }
 0xf56   :  { %v17031_v55 = vpack.c.bf16 %v17025_v52, %v17021_v27  ;;  %v17035_v56 = vpack.c.bf16 %v17027_v18, %v17023_v23 }
 0xf58   :  { %5033 = vmatprep.mubr.bf16.mxu1 %v17035_v56  ;;  %5076 = vmatprep.mubr.bf16.mxu0 %v17035_v56 }
 0xf59   :  { %5034 = vmatmul.mubr.bf16.vlgmr.msra.gmra.mxu1 %v17031_v55  ;;  %5077 = vmatmul.mubr.bf16.vlgmr.msra.gmra.mxu0 %v17031_v55 }
 0xf5a   :  { %5088 = vmatpush1.bf16.msra.mxu1 %v14237_v46  ;;  %5131 = vmatpush1.bf16.msra.mxu0 %v14240_v47  ;;  %v14312_v46 = vld [vmem:[%s20875_s4 + $0x11c8] ss:$204 sps:$4 sm:$0xff]   ;;  %v14317_v47 = vld [vmem:[%s20875_s4 + $0x102c] ss:$204 sps:$4 sm:$0xff]  }
 0xf5b   :  { %5119 = vmatprep.mubr.bf16.mxu1 %v17035_v56  ;;  %5162 = vmatprep.mubr.bf16.mxu0 %v17035_v56 }
 0xf5c   :  { %5089 = vmatprep.subr.bf16.mxu1 %v14245_v30  ;;  %5132 = vmatprep.subr.bf16.mxu0 %v14248_v35  ;;  %v14320_v30 = vld [vmem:[%s20875_s4 + $0x1034] ss:$204 sps:$4 sm:$0xff]  }
 0xf5d   :  { %v14315_v35 = vld [vmem:[%s20875_s4 + $0x1028] ss:$204 sps:$4 sm:$0xff]  }
 0xf5e   :  { %5090 = vmatpush1.bf16.msra.mxu1 %v14243_v32  ;;  %5133 = vmatpush1.bf16.msra.mxu0 %v14246_v53  ;;  %v14318_v32 = vld [vmem:[%s20875_s4 + $0x1030] ss:$204 sps:$4 sm:$0xff]   ;;  %v14323_v53 = vld [vmem:[%s20875_s4 + $0xe94] ss:$204 sps:$4 sm:$0xff]  }
 0xf5f   :  { %5091 = vmatprep.subr.bf16.mxu1 %v14251_v57  ;;  %5134 = vmatprep.subr.bf16.mxu0 %v14254_v19  ;;  %v14326_v57 = vld [vmem:[%s20875_s4 + $0xe9c] ss:$204 sps:$4 sm:$0xff]  }
 0xf60   :  { %v14321_v19 = vld [vmem:[%s20875_s4 + $0xe90] ss:$204 sps:$4 sm:$0xff]  }
 0xf62   :  { %5092 = vmatpush1.bf16.msra.mxu1 %v14249_v58  ;;  %5135 = vmatpush1.bf16.msra.mxu0 %v14252_v59  ;;  %v14324_v58 = vld [vmem:[%s20875_s4 + $0xe98] ss:$204 sps:$4 sm:$0xff]   ;;  %v14329_v59 = vld [vmem:[%s20875_s4 + $0xcfc] ss:$204 sps:$4 sm:$0xff]  }
 0xf63   :  { %5093 = vmatprep.subr.bf16.mxu1 %v14257_v60  ;;  %5136 = vmatprep.subr.bf16.mxu0 %v14260_v61  ;;  %v14332_v60 = vld [vmem:[%s20875_s4 + $0xd04] ss:$204 sps:$4 sm:$0xff]  }
 0xf64   :  { %v14327_v61 = vld [vmem:[%s20875_s4 + $0xcf8] ss:$204 sps:$4 sm:$0xff]  }
 0xf66   :  { %5094 = vmatpush1.bf16.msra.mxu1 %v14255_v62  ;;  %5137 = vmatpush1.bf16.msra.mxu0 %v14258_v63  ;;  %v14330_v62 = vld [vmem:[%s20875_s4 + $0xd00] ss:$204 sps:$4 sm:$0xff]  }
 0xf67   :  { %5095 = vmatprep.subr.bf16.mxu1 %v14263_v1  ;;  %5138 = vmatprep.subr.bf16.mxu0 %v14266_v2  ;;  %v14335_v63 = vld [vmem:[%s20875_s4 + $0xb74] ss:$204 sps:$4 sm:$0xff]   ;;  %v14338_v1 = vld [vmem:[%s20875_s4 + $0xb7c] ss:$204 sps:$4 sm:$0xff]  }
 0xf68   :  { %v14333_v2 = vld [vmem:[%s20875_s4 + $0xb70] ss:$204 sps:$4 sm:$0xff]  }
 0xf6a   :  { %5096 = vmatpush1.bf16.msra.mxu1 %v14261_v3  ;;  %5139 = vmatpush1.bf16.msra.mxu0 %v14264_v4  ;;  %v14336_v3 = vld [vmem:[%s20875_s4 + $0xb78] ss:$204 sps:$4 sm:$0xff]   ;;  %v14341_v4 = vld [vmem:[%s20875_s4 + $0x9dc] ss:$204 sps:$4 sm:$0xff]  }
 0xf6b   :  { %5097 = vmatprep.subr.bf16.mxu1 %v14269_v5  ;;  %5140 = vmatprep.subr.bf16.mxu0 %v14272_v7  ;;  %v14344_v5 = vld [vmem:[%s20875_s4 + $0x9e4] ss:$204 sps:$4 sm:$0xff]  }
 0xf6c   :  { %v14339_v7 = vld [vmem:[%s20875_s4 + $0x9d8] ss:$204 sps:$4 sm:$0xff]  }
 0xf6e   :  { %5098 = vmatpush1.bf16.msra.mxu1 %v14267_v9  ;;  %5141 = vmatpush1.bf16.msra.mxu0 %v14270_v10  ;;  %v14342_v9 = vld [vmem:[%s20875_s4 + $0x9e0] ss:$204 sps:$4 sm:$0xff]   ;;  %v14347_v10 = vld [vmem:[%s20875_s4 + $0x844] ss:$204 sps:$4 sm:$0xff]  }
 0xf6f   :  { %5099 = vmatprep.subr.bf16.mxu1 %v14275_v13  ;;  %5142 = vmatprep.subr.bf16.mxu0 %v14278_v14  ;;  %v14350_v13 = vld [vmem:[%s20875_s4 + $0x84c] ss:$204 sps:$4 sm:$0xff]  }
 0xf70   :  { %v14345_v14 = vld [vmem:[%s20875_s4 + $0x840] ss:$204 sps:$4 sm:$0xff]  }
 0xf72   :  { %5100 = vmatpush1.bf16.msra.mxu1 %v14273_v15  ;;  %5143 = vmatpush1.bf16.msra.mxu0 %v14276_v44  ;;  %v14348_v15 = vld [vmem:[%s20875_s4 + $0x848] ss:$204 sps:$4 sm:$0xff]   ;;  %v14353_v44 = vld [vmem:[%s20875_s4 + $0x6ac] ss:$204 sps:$4 sm:$0xff]  }
 0xf73   :  { %5101 = vmatprep.subr.bf16.mxu1 %v14281_v24  ;;  %5144 = vmatprep.subr.bf16.mxu0 %v14284_v25  ;;  %v14356_v24 = vld [vmem:[%s20875_s4 + $0x6b4] ss:$204 sps:$4 sm:$0xff]  }
 0xf74   :  { %v14351_v25 = vld [vmem:[%s20875_s4 + $0x6a8] ss:$204 sps:$4 sm:$0xff]  }
 0xf76   :  { %5102 = vmatpush1.bf16.msra.mxu1 %v14279_v37  ;;  %5145 = vmatpush1.bf16.msra.mxu0 %v14282_v26  ;;  %v14354_v37 = vld [vmem:[%s20875_s4 + $0x6b0] ss:$204 sps:$4 sm:$0xff]   ;;  %v14359_v26 = vld [vmem:[%s20875_s4 + $0x514] ss:$204 sps:$4 sm:$0xff]  }
 0xf77   :  { %5103 = vmatprep.subr.bf16.mxu1 %v14287_v51  ;;  %5146 = vmatprep.subr.bf16.mxu0 %v14290_v36  ;;  %v14362_v51 = vld [vmem:[%s20875_s4 + $0x51c] ss:$204 sps:$4 sm:$0xff]  }
 0xf78   :  { %v14357_v36 = vld [vmem:[%s20875_s4 + $0x510] ss:$204 sps:$4 sm:$0xff]  }
 0xf7a   :  { %5104 = vmatpush2.bf16.msra.mxu1 %v14285_v38  ;;  %5147 = vmatpush2.bf16.msra.mxu0 %v14288_v41  ;;  %v14360_v38 = vld [vmem:[%s20875_s4 + $0x518] ss:$204 sps:$4 sm:$0xff]   ;;  %v14365_v41 = vld [vmem:[%s20875_s4 + $0x37c] ss:$204 sps:$4 sm:$0xff]  }
 0xf7b   :  { %5105 = vmatprep.subr.bf16.mxu1 %v14293_v42  ;;  %5148 = vmatprep.subr.bf16.mxu0 %v14296_v29  ;;  %v14368_v42 = vld [vmem:[%s20875_s4 + $0x384] ss:$204 sps:$4 sm:$0xff]  }
 0xf7c   :  { %v14363_v29 = vld [vmem:[%s20875_s4 + $0x378] ss:$204 sps:$4 sm:$0xff]  }
 0xf7e   :  { %5106 = vmatpush2.bf16.msra.mxu1 %v14291_v17  ;;  %5149 = vmatpush2.bf16.msra.mxu0 %v14294_v16  ;;  %v14366_v17 = vld [vmem:[%s20875_s4 + $0x380] ss:$204 sps:$4 sm:$0xff]   ;;  %v14371_v16 = vld [vmem:[%s20875_s4 + $0x1e4] ss:$204 sps:$4 sm:$0xff]  }
 0xf7f   :  { %5107 = vmatprep.subr.bf16.mxu1 %v14299_v40  ;;  %5150 = vmatprep.subr.bf16.mxu0 %v14302_v43  ;;  %v14374_v40 = vld [vmem:[%s20875_s4 + $0x1ec] ss:$204 sps:$4 sm:$0xff]  }
 0xf80   :  { %v14369_v43 = vld [vmem:[%s20875_s4 + $0x1e0] ss:$204 sps:$4 sm:$0xff]  }
 0xf82   :  { %5108 = vmatpush2.bf16.msra.mxu1 %v14297_v54  ;;  %5151 = vmatpush2.bf16.msra.mxu0 %v14300_v45  ;;  %v14372_v54 = vld [vmem:[%s20875_s4 + $0x1e8] ss:$204 sps:$4 sm:$0xff]   ;;  %v14377_v45 = vld [vmem:[%s20875_s4 + $0x4c] ss:$204 sps:$4 sm:$0xff]  }
 0xf83   :  { %5109 = vmatprep.subr.bf16.mxu1 %v14305_v11  ;;  %5152 = vmatprep.subr.bf16.mxu0 %v14308_v20  ;;  %v14380_v11 = vld [vmem:[%s20875_s4 + $0x54] ss:$204 sps:$4 sm:$0xff]  }
 0xf84   :  { %v14375_v20 = vld [vmem:[%s20875_s4 + $0x48] ss:$204 sps:$4 sm:$0xff]  }
 0xf86   :  { %5110 = vmatpush2.bf16.msra.mxu1 %v14303_v48  ;;  %5153 = vmatpush2.bf16.msra.mxu0 %v14306_v49  ;;  %v14378_v48 = vld [vmem:[%s20875_s4 + $0x50] ss:$204 sps:$4 sm:$0xff]   ;;  %v14383_v49 = vld [vmem:[%s20875_s4 + $0x1834] ss:$204 sps:$4 sm:$0xff]  }
 0xf87   :  { %5111 = vmatprep.subr.bf16.mxu1 %v14311_v39  ;;  %5154 = vmatprep.subr.bf16.mxu0 %v14314_v21  ;;  %v14386_v39 = vld [vmem:[%s20875_s4 + $0x183c] ss:$204 sps:$4 sm:$0xff]  }
 0xf88   :  { %v14381_v21 = vld [vmem:[%s20875_s4 + $0x1830] ss:$204 sps:$4 sm:$0xff]  }
 0xf8a   :  { %5112 = vmatpush2.bf16.msra.mxu1 %v14309_v50  ;;  %5155 = vmatpush2.bf16.msra.mxu0 %v14312_v46  ;;  %v14384_v50 = vld [vmem:[%s20875_s4 + $0x1838] ss:$204 sps:$4 sm:$0xff]   ;;  %v14389_v46 = vld [vmem:[%s20875_s4 + $0x169c] ss:$204 sps:$4 sm:$0xff]  }
 0xf8b   :  { %5113 = vmatprep.subr.bf16.mxu1 %v14317_v47  ;;  %5156 = vmatprep.subr.bf16.mxu0 %v14320_v30  ;;  %v14392_v47 = vld [vmem:[%s20875_s4 + $0x16a4] ss:$204 sps:$4 sm:$0xff]  }
 0xf8c   :  { %v14387_v30 = vld [vmem:[%s20875_s4 + $0x1698] ss:$204 sps:$4 sm:$0xff]  }
 0xf8e   :  { %5114 = vmatpush2.bf16.msra.mxu1 %v14315_v35  ;;  %5157 = vmatpush2.bf16.msra.mxu0 %v14318_v32  ;;  %v14390_v35 = vld [vmem:[%s20875_s4 + $0x16a0] ss:$204 sps:$4 sm:$0xff]   ;;  %v14395_v32 = vld [vmem:[%s20875_s4 + $0x1504] ss:$204 sps:$4 sm:$0xff]  }
 0xf8f   :  { %5115 = vmatprep.subr.bf16.mxu1 %v14323_v53  ;;  %5158 = vmatprep.subr.bf16.mxu0 %v14326_v57  ;;  %v14398_v53 = vld [vmem:[%s20875_s4 + $0x150c] ss:$204 sps:$4 sm:$0xff]  }
 0xf90   :  { %v14393_v57 = vld [vmem:[%s20875_s4 + $0x1500] ss:$204 sps:$4 sm:$0xff]  }
 0xf92   :  { %5116 = vmatpush2.bf16.msra.mxu1 %v14321_v19  ;;  %5159 = vmatpush2.bf16.msra.mxu0 %v14324_v58  ;;  %v14396_v19 = vld [vmem:[%s20875_s4 + $0x1508] ss:$204 sps:$4 sm:$0xff]   ;;  %v14401_v58 = vld [vmem:[%s20875_s4 + $0x136c] ss:$204 sps:$4 sm:$0xff]  }
 0xf93   :  { %5117 = vmatprep.subr.bf16.mxu1 %v14329_v59  ;;  %5160 = vmatprep.subr.bf16.mxu0 %v14332_v60  ;;  %v14404_v59 = vld [vmem:[%s20875_s4 + $0x1374] ss:$204 sps:$4 sm:$0xff]  }
 0xf94   :  { %v14399_v60 = vld [vmem:[%s20875_s4 + $0x1368] ss:$204 sps:$4 sm:$0xff]  }
 0xf96   :  { %5118 = vmatpush2.bf16.msra.mxu1 %v14327_v61  ;;  %5161 = vmatpush2.bf16.msra.mxu0 %v14330_v62  ;;  %v14402_v61 = vld [vmem:[%s20875_s4 + $0x1370] ss:$204 sps:$4 sm:$0xff]   ;;  %v14407_v62 = vld [vmem:[%s20875_s4 + $0x11d4] ss:$204 sps:$4 sm:$0xff]  }
 0xf97   :  { %5173 = vmatprep.subr.bf16.mxu1 %v14335_v63  ;;  %5216 = vmatprep.subr.bf16.mxu0 %v14338_v1  ;;  %v14410_v63 = vld [vmem:[%s20875_s4 + $0x11dc] ss:$204 sps:$4 sm:$0xff]  }
 0xf98   :  { %v14405_v1 = vld [vmem:[%s20875_s4 + $0x11d0] ss:$204 sps:$4 sm:$0xff]  }
 0xf99   :  { %5120 = vmatmul.mubr.bf16.vlgmr.msra.gmra.mxu1 %v17031_v55  ;;  %5163 = vmatmul.mubr.bf16.vlgmr.msra.gmra.mxu0 %v17031_v55 }
 0xf9a   :  { %5174 = vmatpush1.bf16.msra.mxu1 %v14333_v2  ;;  %5205 = vmatprep.mubr.bf16.mxu1 %v17035_v56  ;;  %v14408_v2 = vld [vmem:[%s20875_s4 + $0x11d8] ss:$204 sps:$4 sm:$0xff]  }
 0xf9b   :  { %5217 = vmatpush1.bf16.msra.mxu0 %v14336_v3  ;;  %5248 = vmatprep.mubr.bf16.mxu0 %v17035_v56  ;;  %v14413_v3 = vld [vmem:[%s20875_s4 + $0x103c] ss:$204 sps:$4 sm:$0xff]  }
 0xf9c   :  { %5175 = vmatprep.subr.bf16.mxu1 %v14341_v4  ;;  %5218 = vmatprep.subr.bf16.mxu0 %v14344_v5  ;;  %v14416_v4 = vld [vmem:[%s20875_s4 + $0x1044] ss:$204 sps:$4 sm:$0xff]  }
 0xf9d   :  { %v14411_v5 = vld [vmem:[%s20875_s4 + $0x1038] ss:$204 sps:$4 sm:$0xff]  }
 0xf9e   :  { %5176 = vmatpush1.bf16.msra.mxu1 %v14339_v7  ;;  %v14414_v7 = vld [vmem:[%s20875_s4 + $0x1040] ss:$204 sps:$4 sm:$0xff]  }
 0xf9f   :  { %5219 = vmatpush1.bf16.msra.mxu0 %v14342_v9  ;;  %5177 = vmatprep.subr.bf16.mxu1 %v14347_v10  ;;  %v14419_v9 = vld [vmem:[%s20875_s4 + $0xea4] ss:$204 sps:$4 sm:$0xff]   ;;  %v14422_v10 = vld [vmem:[%s20875_s4 + $0xeac] ss:$204 sps:$4 sm:$0xff]  }
 0xfa0   :  { %5220 = vmatprep.subr.bf16.mxu0 %v14350_v13  ;;  %v14417_v13 = vld [vmem:[%s20875_s4 + $0xea0] ss:$204 sps:$4 sm:$0xff]  }
 0xfa2   :  { %5178 = vmatpush1.bf16.msra.mxu1 %v14345_v14  ;;  %v14420_v14 = vld [vmem:[%s20875_s4 + $0xea8] ss:$204 sps:$4 sm:$0xff]  }
 0xfa3   :  { %5221 = vmatpush1.bf16.msra.mxu0 %v14348_v15  ;;  %5179 = vmatprep.subr.bf16.mxu1 %v14353_v44  ;;  %v14425_v15 = vld [vmem:[%s20875_s4 + $0xd0c] ss:$204 sps:$4 sm:$0xff]   ;;  %v14428_v44 = vld [vmem:[%s20875_s4 + $0xd14] ss:$204 sps:$4 sm:$0xff]  }
 0xfa4   :  { %5222 = vmatprep.subr.bf16.mxu0 %v14356_v24  ;;  %v14423_v24 = vld [vmem:[%s20875_s4 + $0xd08] ss:$204 sps:$4 sm:$0xff]  }
 0xfa6   :  { %5180 = vmatpush1.bf16.msra.mxu1 %v14351_v25  ;;  %v14426_v25 = vld [vmem:[%s20875_s4 + $0xd10] ss:$204 sps:$4 sm:$0xff]  }
 0xfa7   :  { %5223 = vmatpush1.bf16.msra.mxu0 %v14354_v37  ;;  %5181 = vmatprep.subr.bf16.mxu1 %v14359_v26  ;;  %v14431_v37 = vld [vmem:[%s20875_s4 + $0xb84] ss:$204 sps:$4 sm:$0xff]   ;;  %v14434_v26 = vld [vmem:[%s20875_s4 + $0xb8c] ss:$204 sps:$4 sm:$0xff]  }
 0xfa8   :  { %5224 = vmatprep.subr.bf16.mxu0 %v14362_v51  ;;  %v14429_v51 = vld [vmem:[%s20875_s4 + $0xb80] ss:$204 sps:$4 sm:$0xff]  }
 0xfaa   :  { %5182 = vmatpush1.bf16.msra.mxu1 %v14357_v36  ;;  %v14432_v36 = vld [vmem:[%s20875_s4 + $0xb88] ss:$204 sps:$4 sm:$0xff]  }
 0xfab   :  { %5225 = vmatpush1.bf16.msra.mxu0 %v14360_v38  ;;  %5183 = vmatprep.subr.bf16.mxu1 %v14365_v41  ;;  %v14437_v38 = vld [vmem:[%s20875_s4 + $0x9ec] ss:$204 sps:$4 sm:$0xff]   ;;  %v14440_v41 = vld [vmem:[%s20875_s4 + $0x9f4] ss:$204 sps:$4 sm:$0xff]  }
 0xfac   :  { %5226 = vmatprep.subr.bf16.mxu0 %v14368_v42  ;;  %v14435_v42 = vld [vmem:[%s20875_s4 + $0x9e8] ss:$204 sps:$4 sm:$0xff]  }
 0xfae   :  { %5184 = vmatpush1.bf16.msra.mxu1 %v14363_v29  ;;  %v14438_v29 = vld [vmem:[%s20875_s4 + $0x9f0] ss:$204 sps:$4 sm:$0xff]  }
 0xfaf   :  { %5227 = vmatpush1.bf16.msra.mxu0 %v14366_v17  ;;  %5185 = vmatprep.subr.bf16.mxu1 %v14371_v16  ;;  %v14443_v17 = vld [vmem:[%s20875_s4 + $0x854] ss:$204 sps:$4 sm:$0xff]   ;;  %v14446_v16 = vld [vmem:[%s20875_s4 + $0x85c] ss:$204 sps:$4 sm:$0xff]  }
 0xfb0   :  { %5228 = vmatprep.subr.bf16.mxu0 %v14374_v40  ;;  %v14441_v40 = vld [vmem:[%s20875_s4 + $0x850] ss:$204 sps:$4 sm:$0xff]  }
 0xfb2   :  { %5186 = vmatpush1.bf16.msra.mxu1 %v14369_v43  ;;  %v14444_v43 = vld [vmem:[%s20875_s4 + $0x858] ss:$204 sps:$4 sm:$0xff]  }
 0xfb3   :  { %5229 = vmatpush1.bf16.msra.mxu0 %v14372_v54  ;;  %5187 = vmatprep.subr.bf16.mxu1 %v14377_v45  ;;  %v14452_v54 = vld [vmem:[%s20875_s4 + $0x6c4] ss:$204 sps:$4 sm:$0xff]  }
 0xfb4   :  { %5230 = vmatprep.subr.bf16.mxu0 %v14380_v11  ;;  %v14447_v45 = vld [vmem:[%s20875_s4 + $0x6b8] ss:$204 sps:$4 sm:$0xff]   ;;  %v14450_v11 = vld [vmem:[%s20875_s4 + $0x6c0] ss:$204 sps:$4 sm:$0xff]  }
 0xfb6   :  { %5188 = vmatpush1.bf16.msra.mxu1 %v14375_v20  ;;  %v14455_v20 = vld [vmem:[%s20875_s4 + $0x524] ss:$204 sps:$4 sm:$0xff]  }
 0xfb7   :  { %5231 = vmatpush1.bf16.msra.mxu0 %v14378_v48  ;;  %5189 = vmatprep.subr.bf16.mxu1 %v14383_v49  ;;  %v14458_v48 = vld [vmem:[%s20875_s4 + $0x52c] ss:$204 sps:$4 sm:$0xff]  }
 0xfb8   :  { %5232 = vmatprep.subr.bf16.mxu0 %v14386_v39  ;;  %v14453_v49 = vld [vmem:[%s20875_s4 + $0x520] ss:$204 sps:$4 sm:$0xff]   ;;  %v14456_v39 = vld [vmem:[%s20875_s4 + $0x528] ss:$204 sps:$4 sm:$0xff]  }
 0xfba   :  { %5190 = vmatpush2.bf16.msra.mxu1 %v14381_v21  ;;  %v14461_v21 = vld [vmem:[%s20875_s4 + $0x38c] ss:$204 sps:$4 sm:$0xff]  }
 0xfbb   :  { %5233 = vmatpush2.bf16.msra.mxu0 %v14384_v50  ;;  %5191 = vmatprep.subr.bf16.mxu1 %v14389_v46  ;;  %v14464_v50 = vld [vmem:[%s20875_s4 + $0x394] ss:$204 sps:$4 sm:$0xff]  }
 0xfbc   :  { %5234 = vmatprep.subr.bf16.mxu0 %v14392_v47  ;;  %v14459_v46 = vld [vmem:[%s20875_s4 + $0x388] ss:$204 sps:$4 sm:$0xff]   ;;  %v14462_v47 = vld [vmem:[%s20875_s4 + $0x390] ss:$204 sps:$4 sm:$0xff]  }
 0xfbe   :  { %5192 = vmatpush2.bf16.msra.mxu1 %v14387_v30  ;;  %v14467_v30 = vld [vmem:[%s20875_s4 + $0x1f4] ss:$204 sps:$4 sm:$0xff]  }
 0xfbf   :  { %5235 = vmatpush2.bf16.msra.mxu0 %v14390_v35  ;;  %5193 = vmatprep.subr.bf16.mxu1 %v14395_v32  ;;  %v14470_v35 = vld [vmem:[%s20875_s4 + $0x1fc] ss:$204 sps:$4 sm:$0xff]  }
 0xfc0   :  { %5236 = vmatprep.subr.bf16.mxu0 %v14398_v53  ;;  %v14465_v32 = vld [vmem:[%s20875_s4 + $0x1f0] ss:$204 sps:$4 sm:$0xff]   ;;  %v14468_v53 = vld [vmem:[%s20875_s4 + $0x1f8] ss:$204 sps:$4 sm:$0xff]  }
 0xfc2   :  { %5194 = vmatpush2.bf16.msra.mxu1 %v14393_v57  ;;  %v14473_v57 = vld [vmem:[%s20875_s4 + $0x5c] ss:$204 sps:$4 sm:$0xff]  }
 0xfc3   :  { %5237 = vmatpush2.bf16.msra.mxu0 %v14396_v19  ;;  %5195 = vmatprep.subr.bf16.mxu1 %v14401_v58  ;;  %v14476_v19 = vld [vmem:[%s20875_s4 + $0x64] ss:$204 sps:$4 sm:$0xff]  }
 0xfc4   :  { %5238 = vmatprep.subr.bf16.mxu0 %v14404_v59  ;;  %v14471_v58 = vld [vmem:[%s20875_s4 + $0x58] ss:$204 sps:$4 sm:$0xff]   ;;  %v14474_v59 = vld [vmem:[%s20875_s4 + $0x60] ss:$204 sps:$4 sm:$0xff]  }
 0xfc6   :  { %5196 = vmatpush2.bf16.msra.mxu1 %v14399_v60  ;;  %v14479_v60 = vld [vmem:[%s20875_s4 + $0x1844] ss:$204 sps:$4 sm:$0xff]  }
 0xfc7   :  { %5239 = vmatpush2.bf16.msra.mxu0 %v14402_v61  ;;  %5197 = vmatprep.subr.bf16.mxu1 %v14407_v62  ;;  %v14482_v61 = vld [vmem:[%s20875_s4 + $0x184c] ss:$204 sps:$4 sm:$0xff]  }
 0xfc8   :  { %5240 = vmatprep.subr.bf16.mxu0 %v14410_v63  ;;  %v14477_v62 = vld [vmem:[%s20875_s4 + $0x1840] ss:$204 sps:$4 sm:$0xff]   ;;  %v14480_v63 = vld [vmem:[%s20875_s4 + $0x1848] ss:$204 sps:$4 sm:$0xff]  }
 0xfca   :  { %5198 = vmatpush2.bf16.msra.mxu1 %v14405_v1  ;;  %v14485_v1 = vld [vmem:[%s20875_s4 + $0x16ac] ss:$204 sps:$4 sm:$0xff]  }
 0xfcb   :  { %5241 = vmatpush2.bf16.msra.mxu0 %v14408_v2  ;;  %5199 = vmatprep.subr.bf16.mxu1 %v14413_v3  ;;  %v14488_v2 = vld [vmem:[%s20875_s4 + $0x16b4] ss:$204 sps:$4 sm:$0xff]  }
 0xfcc   :  { %5242 = vmatprep.subr.bf16.mxu0 %v14416_v4  ;;  %v14483_v3 = vld [vmem:[%s20875_s4 + $0x16a8] ss:$204 sps:$4 sm:$0xff]   ;;  %v14486_v4 = vld [vmem:[%s20875_s4 + $0x16b0] ss:$204 sps:$4 sm:$0xff]  }
 0xfce   :  { %5200 = vmatpush2.bf16.msra.mxu1 %v14411_v5  ;;  %v14491_v5 = vld [vmem:[%s20875_s4 + $0x1514] ss:$204 sps:$4 sm:$0xff]  }
 0xfcf   :  { %5243 = vmatpush2.bf16.msra.mxu0 %v14414_v7  ;;  %5201 = vmatprep.subr.bf16.mxu1 %v14419_v9  ;;  %v14494_v7 = vld [vmem:[%s20875_s4 + $0x151c] ss:$204 sps:$4 sm:$0xff]  }
 0xfd0   :  { %5244 = vmatprep.subr.bf16.mxu0 %v14422_v10  ;;  %v14489_v9 = vld [vmem:[%s20875_s4 + $0x1510] ss:$204 sps:$4 sm:$0xff]   ;;  %v14492_v10 = vld [vmem:[%s20875_s4 + $0x1518] ss:$204 sps:$4 sm:$0xff]  }
 0xfd2   :  { %5202 = vmatpush2.bf16.msra.mxu1 %v14417_v13  ;;  %v14497_v13 = vld [vmem:[%s20875_s4 + $0x137c] ss:$204 sps:$4 sm:$0xff]  }
 0xfd3   :  { %5245 = vmatpush2.bf16.msra.mxu0 %v14420_v14  ;;  %5203 = vmatprep.subr.bf16.mxu1 %v14425_v15  ;;  %v14500_v14 = vld [vmem:[%s20875_s4 + $0x1384] ss:$204 sps:$4 sm:$0xff]  }
 0xfd4   :  { %5246 = vmatprep.subr.bf16.mxu0 %v14428_v44  ;;  %v14495_v15 = vld [vmem:[%s20875_s4 + $0x1378] ss:$204 sps:$4 sm:$0xff]   ;;  %v14498_v44 = vld [vmem:[%s20875_s4 + $0x1380] ss:$204 sps:$4 sm:$0xff]  }
 0xfd6   :  { %5204 = vmatpush2.bf16.msra.mxu1 %v14423_v24  ;;  %v14503_v24 = vld [vmem:[%s20875_s4 + $0x11e4] ss:$204 sps:$4 sm:$0xff]  }
 0xfd7   :  { %5247 = vmatpush2.bf16.msra.mxu0 %v14426_v25  ;;  %5259 = vmatprep.subr.bf16.mxu1 %v14431_v37  ;;  %v14506_v25 = vld [vmem:[%s20875_s4 + $0x11ec] ss:$204 sps:$4 sm:$0xff]  }
 0xfd8   :  { %5302 = vmatprep.subr.bf16.mxu0 %v14434_v26  ;;  %v14501_v37 = vld [vmem:[%s20875_s4 + $0x11e0] ss:$204 sps:$4 sm:$0xff]   ;;  %v14504_v26 = vld [vmem:[%s20875_s4 + $0x11e8] ss:$204 sps:$4 sm:$0xff]  }
 0xfd9   :  { %5206 = vmatmul.mubr.bf16.vlgmr.msra.gmra.mxu1 %v17031_v55 }
 0xfda   :  { %5249 = vmatmul.mubr.bf16.vlgmr.msra.gmra.mxu0 %v17031_v55  ;;  %5260 = vmatpush1.bf16.msra.mxu1 %v14429_v51  ;;  %v14509_v51 = vld [vmem:[%s20875_s4 + $0x104c] ss:$204 sps:$4 sm:$0xff]  }
 0xfdb   :  { %5291 = vmatprep.mubr.bf16.mxu1 %v17035_v56  ;;  %5303 = vmatpush1.bf16.msra.mxu0 %v14432_v36  ;;  %v14512_v36 = vld [vmem:[%s20875_s4 + $0x1054] ss:$204 sps:$4 sm:$0xff]  }
 0xfdc   :  { %5334 = vmatprep.mubr.bf16.mxu0 %v17035_v56  ;;  %5261 = vmatprep.subr.bf16.mxu1 %v14437_v38  ;;  %v14449_v56 = vld [vmem:[%s20875_s4 + $0x6bc] ss:$204 sps:$4 sm:$0xff]  }
 0xfdd   :  { %5304 = vmatprep.subr.bf16.mxu0 %v14440_v41  ;;  %v14507_v38 = vld [vmem:[%s20875_s4 + $0x1048] ss:$204 sps:$4 sm:$0xff]   ;;  %v14510_v41 = vld [vmem:[%s20875_s4 + $0x1050] ss:$204 sps:$4 sm:$0xff]  }
 0xfde   :  { %5262 = vmatpush1.bf16.msra.mxu1 %v14435_v42  ;;  %v14515_v42 = vld [vmem:[%s20875_s4 + $0xeb4] ss:$204 sps:$4 sm:$0xff]  }
 0xfdf   :  { %5305 = vmatpush1.bf16.msra.mxu0 %v14438_v29  ;;  %5263 = vmatprep.subr.bf16.mxu1 %v14443_v17  ;;  %v14518_v29 = vld [vmem:[%s20875_s4 + $0xebc] ss:$204 sps:$4 sm:$0xff]  }
 0xfe0   :  { %5306 = vmatprep.subr.bf16.mxu0 %v14446_v16  ;;  %v14513_v17 = vld [vmem:[%s20875_s4 + $0xeb0] ss:$204 sps:$4 sm:$0xff]   ;;  %v14516_v16 = vld [vmem:[%s20875_s4 + $0xeb8] ss:$204 sps:$4 sm:$0xff]  }
 0xfe2   :  { %5264 = vmatpush1.bf16.msra.mxu1 %v14441_v40  ;;  %v14521_v40 = vld [vmem:[%s20875_s4 + $0xd1c] ss:$204 sps:$4 sm:$0xff]  }
 0xfe3   :  { %5307 = vmatpush1.bf16.msra.mxu0 %v14444_v43  ;;  %5265 = vmatprep.subr.bf16.mxu1 %v14449_v56  ;;  %v14524_v43 = vld [vmem:[%s20875_s4 + $0xd24] ss:$204 sps:$4 sm:$0xff]  }
 0xfe4   :  { %5308 = vmatprep.subr.bf16.mxu0 %v14452_v54  ;;  %v14519_v56 = vld [vmem:[%s20875_s4 + $0xd18] ss:$204 sps:$4 sm:$0xff]   ;;  %v14522_v54 = vld [vmem:[%s20875_s4 + $0xd20] ss:$204 sps:$4 sm:$0xff]  }
 0xfe6   :  { %5266 = vmatpush1.bf16.msra.mxu1 %v14447_v45  ;;  %v14527_v45 = vld [vmem:[%s20871_s5 + $0x94] ss:$8 sps:$4 sm:$0xff]  }
 0xfe7   :  { %5309 = vmatpush1.bf16.msra.mxu0 %v14450_v11  ;;  %5267 = vmatprep.subr.bf16.mxu1 %v14455_v20  ;;  %v14530_v11 = vld [vmem:[%s20871_s5 + $0x194] ss:$8 sps:$4 sm:$0xff]   ;;  %v12362_v20 = vld [vmem:[%s20872_s3 + $0x102] ss:$8 sm:$0xf] }
 0xfe8   :  { %5310 = vmatprep.subr.bf16.mxu0 %v14458_v48  ;;  %v12363_v48 = vld [vmem:[%s20872_s3 + $0x102] ss:$8 sm:$0xf0] }
 0xfea   :  { %5268 = vmatpush1.bf16.msra.mxu1 %v14453_v49  ;;  %v14525_v49 = vld [vmem:[%s20871_s5 + $0x90] ss:$8 sps:$4 sm:$0xff]  }
 0xfeb   :  { %5311 = vmatpush1.bf16.msra.mxu0 %v14456_v39  ;;  %5269 = vmatprep.subr.bf16.mxu1 %v14461_v21  ;;  %v14528_v39 = vld [vmem:[%s20871_s5 + $0x190] ss:$8 sps:$4 sm:$0xff]   ;;  %v14533_v21 = vld [vmem:[%s20871_s5 + $0x84] ss:$8 sps:$4 sm:$0xff]  }
 0xfec   :  { %5312 = vmatprep.subr.bf16.mxu0 %v14464_v50  ;;  %v17642_v50 = vor.u32 %v12363_v48, %v12362_v20  ;;  %v14567_v20 = vld [vmem:[%s20871_s5 + $0x20] ss:$8 sps:$4 sm:$0xff]  }
 0xfed   :  { %v14570_v48 = vld [vmem:[%s20871_s5 + $0x120] ss:$8 sps:$4 sm:$0xff]  }
 0xfee   :  { %5270 = vmatpush1.bf16.msra.mxu1 %v14459_v46  ;;  %v14536_v46 = vld [vmem:[%s20871_s5 + $0x184] ss:$8 sps:$4 sm:$0xff]  }
 0xfef   :  { %5313 = vmatpush1.bf16.msra.mxu0 %v14462_v47  ;;  %5271 = vmatprep.subr.bf16.mxu1 %v14467_v30 }
 0xff0   :  { %5314 = vmatprep.subr.bf16.mxu0 %v14470_v35  ;;  %v3648_v35 = vrot.slane %v17642_v50, %v16173_v34 }
 0xff2   :  { %5272 = vmatpush1.bf16.msra.mxu1 %v14465_v32  ;;  %v3656_v32 = vrot.slane %v17642_v50, %v16583_v22 }
 0xff3   :  { %5315 = vmatpush1.bf16.msra.mxu0 %v14468_v53  ;;  %5273 = vmatprep.subr.bf16.mxu1 %v14473_v57  ;;  %v14531_v53 = vld [vmem:[%s20871_s5 + $0x80] ss:$8 sps:$4 sm:$0xff]  }
 0xff4   :  { %5316 = vmatprep.subr.bf16.mxu0 %v14476_v19 }
 0xff6   :  { %5274 = vmatpush1.bf16.msra.mxu1 %v14471_v58  ;;  %v14534_v58 = vld [vmem:[%s20871_s5 + $0x180] ss:$8 sps:$4 sm:$0xff]  }
 0xff7   :  { %5317 = vmatpush1.bf16.msra.mxu0 %v14474_v59  ;;  %5275 = vmatprep.subr.bf16.mxu1 %v14479_v60  ;;  %v14542_v59 = vld [vmem:[%s20871_s5 + $0x174] ss:$8 sps:$4 sm:$0xff]  }
 0xff8   :  { %5318 = vmatprep.subr.bf16.mxu0 %v14482_v61 }
 0xffa   :  { %5276 = vmatpush2.bf16.msra.mxu1 %v14477_v62 }
 0xffb   :  { %5319 = vmatpush2.bf16.msra.mxu0 %v14480_v63  ;;  %5277 = vmatprep.subr.bf16.mxu1 %v14485_v1  ;;  %v14537_v1 = vld [vmem:[%s20871_s5 + $0x70] ss:$8 sps:$4 sm:$0xff]  }
 0xffc   :  { %5320 = vmatprep.subr.bf16.mxu0 %v14488_v2 }
 0xffe   :  { %5278 = vmatpush2.bf16.msra.mxu1 %v14483_v3 }
 0xfff   :  { %5321 = vmatpush2.bf16.msra.mxu0 %v14486_v4  ;;  %5279 = vmatprep.subr.bf16.mxu1 %v14491_v5  ;;  %v14540_v4 = vld [vmem:[%s20871_s5 + $0x170] ss:$8 sps:$4 sm:$0xff]   ;;  %v14545_v5 = vld [vmem:[%s20871_s5 + $0x64] ss:$8 sps:$4 sm:$0xff]  }
0x1000   :  { %5322 = vmatprep.subr.bf16.mxu0 %v14494_v7 }
0x1002   :  { %5280 = vmatpush2.bf16.msra.mxu1 %v14489_v9 }
0x1003   :  { %5323 = vmatpush2.bf16.msra.mxu0 %v14492_v10  ;;  %5281 = vmatprep.subr.bf16.mxu1 %v14497_v13  ;;  %v14548_v10 = vld [vmem:[%s20871_s5 + $0x164] ss:$8 sps:$4 sm:$0xff]  }
0x1004   :  { %5324 = vmatprep.subr.bf16.mxu0 %v14500_v14 }
0x1006   :  { %5282 = vmatpush2.bf16.msra.mxu1 %v14495_v15 }
0x1007   :  { %5325 = vmatpush2.bf16.msra.mxu0 %v14498_v44  ;;  %5283 = vmatprep.subr.bf16.mxu1 %v14503_v24  ;;  %v14543_v24 = vld [vmem:[%s20871_s5 + $0x60] ss:$8 sps:$4 sm:$0xff]  }
0x1008   :  { %5326 = vmatprep.subr.bf16.mxu0 %v14506_v25  ;;  %v14546_v25 = vld [vmem:[%s20871_s5 + $0x160] ss:$8 sps:$4 sm:$0xff]  }
0x100a   :  { %5284 = vmatpush2.bf16.msra.mxu1 %v14501_v37 }
0x100b   :  { %5327 = vmatpush2.bf16.msra.mxu0 %v14504_v26  ;;  %5285 = vmatprep.subr.bf16.mxu1 %v14509_v51  ;;  %v14551_v51 = vld [vmem:[%s20871_s5 + $0x54] ss:$8 sps:$4 sm:$0xff]  }
0x100c   :  { %5328 = vmatprep.subr.bf16.mxu0 %v14512_v36  ;;  %v14554_v36 = vld [vmem:[%s20871_s5 + $0x154] ss:$8 sps:$4 sm:$0xff]  }
0x100e   :  { %5286 = vmatpush2.bf16.msra.mxu1 %v14507_v38  ;;  %v14549_v38 = vld [vmem:[%s20871_s5 + $0x50] ss:$8 sps:$4 sm:$0xff]  }
0x100f   :  { %5329 = vmatpush2.bf16.msra.mxu0 %v14510_v41  ;;  %5287 = vmatprep.subr.bf16.mxu1 %v14515_v42  ;;  %v14552_v41 = vld [vmem:[%s20871_s5 + $0x150] ss:$8 sps:$4 sm:$0xff]   ;;  %v14557_v42 = vld [vmem:[%s20871_s5 + $0x44] ss:$8 sps:$4 sm:$0xff]  }
0x1010   :  { %5330 = vmatprep.subr.bf16.mxu0 %v14518_v29  ;;  %v14560_v29 = vld [vmem:[%s20871_s5 + $0x144] ss:$8 sps:$4 sm:$0xff]  }
0x1012   :  { %5288 = vmatpush2.bf16.msra.mxu1 %v14513_v17  ;;  %v14555_v17 = vld [vmem:[%s20871_s5 + $0x40] ss:$8 sps:$4 sm:$0xff]  }
0x1013   :  { %5331 = vmatpush2.bf16.msra.mxu0 %v14516_v16  ;;  %5289 = vmatprep.subr.bf16.mxu1 %v14521_v40  ;;  %v14558_v16 = vld [vmem:[%s20871_s5 + $0x140] ss:$8 sps:$4 sm:$0xff]   ;;  %v14563_v40 = vld [vmem:[%s20871_s5 + $0x34] ss:$8 sps:$4 sm:$0xff]  }
0x1014   :  { %5332 = vmatprep.subr.bf16.mxu0 %v14524_v43  ;;  %v14566_v43 = vld [vmem:[%s20871_s5 + $0x134] ss:$8 sps:$4 sm:$0xff]  }
0x1016   :  { %5290 = vmatpush2.bf16.msra.mxu1 %v14519_v56  ;;  %v14561_v56 = vld [vmem:[%s20871_s5 + $0x30] ss:$8 sps:$4 sm:$0xff]  }
0x1017   :  { %5333 = vmatpush2.bf16.msra.mxu0 %v14522_v54  ;;  %6684 = vmatprep.subr.bf16.mxu1 %v14527_v45  ;;  %v14564_v54 = vld [vmem:[%s20871_s5 + $0x130] ss:$8 sps:$4 sm:$0xff]   ;;  %v14569_v45 = vld [vmem:[%s20871_s5 + $0x24] ss:$8 sps:$4 sm:$0xff]  }
0x1018   :  { %6727 = vmatprep.subr.bf16.mxu0 %v14530_v11  ;;  %v14572_v11 = vld [vmem:[%s20871_s5 + $0x124] ss:$8 sps:$4 sm:$0xff]  }
0x1019   :  { %5292 = vmatmul.mubr.bf16.vlgmr.msra.gmra.mxu1 %v17031_v55  ;;  %v17648_v47 = vpop.f32.mrf.mxu1  ;;  %v17650_v30 = vpop.f32.mrf.mxu0 }
0x101a   :  { %5335 = vmatmul.mubr.bf16.vlgmr.msra.gmra.mxu0 %v17031_v55  ;;  %6685 = vmatpush1.bf16.msra.mxu1 %v14525_v49  ;;  %v14539_v55 = vld [vmem:[%s20871_s5 + $0x74] ss:$8 sps:$4 sm:$0xff]  }
0x101b   :  { %6728 = vmatpush1.bf16.msra.mxu0 %v14528_v39  ;;  %v5037_v57 = vpop.f32.mrf.mxu1  ;;  %v5080_v19 = vpop.f32.mrf.mxu0  ;;  %6686 = vmatprep.subr.bf16.mxu1 %v14533_v21  ;;  %v14575_v49 = vld [vmem:[%s20871_s5 + $0x114] ss:$8 sps:$4 sm:$0xff]   ;;  %v14573_v21 = vld [vmem:[%s20871_s5 + $0x110] ss:$8 sps:$4 sm:$0xff]  }
0x101c   :  { %6729 = vmatprep.subr.bf16.mxu0 %v14536_v46  ;;  %v5038_v62 = vadd.f32 %v5037_v57, %v3648_v35  ;;  %v5081_v63 = vadd.f32 %v5080_v19, %v3656_v32  ;;  %v14578_v39 = vld [vmem:[%s20871_s5 + $0x214] ss:$8 sps:$4 sm:$0xff]   ;;  %v14576_v46 = vld [vmem:[%s20871_s5 + $0x210] ss:$8 sps:$4 sm:$0xff]   ;;  %v14582_v57 = vld [vmem:[%s20871_s5 + $0x200] ss:$8 sps:$4 sm:$0xff]  }
0x101d   :  { %v17669_v60 = vpop.f32.mrf.mxu1  ;;  %v17671_v61 = vpop.f32.mrf.mxu0  ;;  %v14587_v19 = vld [vmem:[%s20871_s5 + $0xf4] ss:$8 sps:$4 sm:$0xff]  }
0x101e   :  { %6687 = vmatpush1.bf16.msra.mxu1 %v14531_v53  ;;  %v5346_v13 = vmax.f32 %v5038_v62, 0.0  ;;  %v5348_v14 = vmax.f32 %v5081_v63, 0.0  ;;  %v14579_v53 = vld [vmem:[%s20871_s5 + $0x100] ss:$8 sps:$4 sm:$0xff]   ;;  %v14593_v62 = vld [vmem:[%s20871_s5 + $0xe4] ss:$8 sps:$4 sm:$0xff]  }
0x101f   :  { %6730 = vmatpush1.bf16.msra.mxu0 %v14534_v58  ;;  %v5041_v2 = vpop.f32.mrf.mxu1  ;;  %v5084_v3 = vpop.f32.mrf.mxu0  ;;  %6688 = vmatprep.subr.bf16.mxu1 %v14539_v55  ;;  %v14590_v58 = vld [vmem:[%s20871_s5 + $0x1f4] ss:$8 sps:$4 sm:$0xff]   ;;  %v14585_v55 = vld [vmem:[%s20871_s5 + $0xf0] ss:$8 sps:$4 sm:$0xff]   ;;  %v14596_v63 = vld [vmem:[%s20871_s5 + $0x1e4] ss:$8 sps:$4 sm:$0xff]  }
0x1020   :  { %v5042_v7 = vadd.f32 %v5041_v2, %v3648_v35  ;;  %v5085_v9 = vadd.f32 %v5084_v3, %v3656_v32  ;;  %6731 = vmatprep.subr.bf16.mxu0 %v14542_v59  ;;  %v14581_v35 = vld [vmem:[%s20871_s5 + $0x104] ss:$8 sps:$4 sm:$0xff]   ;;  %v14588_v59 = vld [vmem:[%s20871_s5 + $0x1f0] ss:$8 sps:$4 sm:$0xff]   ;;  %v14594_v2 = vld [vmem:[%s20871_s5 + $0x1e0] ss:$8 sps:$4 sm:$0xff]  }
0x1021   :  { %v14584_v32 = vld [vmem:[%s20871_s5 + $0x204] ss:$8 sps:$4 sm:$0xff]   ;;  %v14599_v3 = vld [vmem:[%s20871_s5 + $0xd4] ss:$8 sps:$4 sm:$0xff]  }
0x1022   :  { %v5362_v15 = vmax.f32 %v5042_v7, 0.0  ;;  %v5364_v44 = vmax.f32 %v5085_v9, 0.0  ;;  %6689 = vmatpush1.bf16.msra.mxu1 %v14537_v1  ;;  %v14591_v1 = vld [vmem:[%s20871_s5 + $0xe0] ss:$8 sps:$4 sm:$0xff]   ;;  %v14600_v7 = vld [vmem:[%s20871_s5 + $0x1d0] ss:$8 sps:$4 sm:$0xff]  }
0x1023   :  { %6732 = vmatpush1.bf16.msra.mxu0 %v14540_v4  ;;  %6690 = vmatprep.subr.bf16.mxu1 %v14545_v5  ;;  %v14602_v4 = vld [vmem:[%s20871_s5 + $0x1d4] ss:$8 sps:$4 sm:$0xff]   ;;  %v14597_v5 = vld [vmem:[%s20871_s5 + $0xd0] ss:$8 sps:$4 sm:$0xff]   ;;  %v14605_v9 = vld [vmem:[%s20871_s5 + $0xc4] ss:$8 sps:$4 sm:$0xff]  }
0x1024   :  { %v5378_v37 = vpack.c.bf16 %v5362_v15, %v5346_v13  ;;  %v5380_v26 = vpack.c.bf16 %v5364_v44, %v5348_v14  ;;  %6733 = vmatprep.subr.bf16.mxu0 %v14548_v10  ;;  %v14608_v10 = vld [vmem:[%s20871_s5 + $0x1c4] ss:$8 sps:$4 sm:$0xff]   ;;  %v14603_v13 = vld [vmem:[%s20871_s5 + $0xc0] ss:$8 sps:$4 sm:$0xff]   ;;  %v14611_v15 = vld [vmem:[%s20871_s5 + $0xb4] ss:$8 sps:$4 sm:$0xff]  }
0x1025   :  { %v14606_v14 = vld [vmem:[%s20871_s5 + $0x1c0] ss:$8 sps:$4 sm:$0xff]   ;;  %v14614_v44 = vld [vmem:[%s20871_s5 + $0x1b4] ss:$8 sps:$4 sm:$0xff]  }
0x1026   :  { %6691 = vmatpush1.bf16.msra.mxu1 %v14543_v24  ;;  %6716 = vmatprep.mubr.bf16.mxu1 %v5378_v37  ;;  %v3644_v24 = vrot.slane %v17642_v50, %v16170_v33  ;;  %v14609_v37 = vld [vmem:[%s20871_s5 + $0xb0] ss:$8 sps:$4 sm:$0xff]  }
0x1027   :  { %6734 = vmatpush1.bf16.msra.mxu0 %v14546_v25  ;;  %6759 = vmatprep.mubr.bf16.mxu0 %v5380_v26  ;;  %v3652_v25 = vrot.slane %v17642_v50, %v16542_v12 }
0x1028   :  { %6692 = vmatprep.subr.bf16.mxu1 %v14551_v51  ;;  %6735 = vmatprep.subr.bf16.mxu0 %v14554_v36  ;;  %v5040_v26 = vadd.f32 %v17669_v60, %v3644_v24  ;;  %v14612_v51 = vld [vmem:[%s20871_s5 + $0x1b0] ss:$8 sps:$4 sm:$0xff]   ;;  %v14617_v36 = vld [vmem:[%s20871_s5 + $0xa4] ss:$8 sps:$4 sm:$0xff]  }
0x1029   :  { %v5079_v60 = vadd.f32 %v17650_v30, %v3652_v25 }
0x102a   :  { %6693 = vmatpush1.bf16.msra.mxu1 %v14549_v38  ;;  %v5083_v38 = vadd.f32 %v17671_v61, %v3652_v25  ;;  %v14618_v61 = vld [vmem:[%s20871_s5 + $0x1a0] ss:$8 sps:$4 sm:$0xff]  }
0x102b   :  { %6736 = vmatpush1.bf16.msra.mxu0 %v14552_v41  ;;  %6694 = vmatprep.subr.bf16.mxu1 %v14557_v42  ;;  %v14620_v41 = vld [vmem:[%s20871_s5 + $0x1a4] ss:$8 sps:$4 sm:$0xff]   ;;  %v5036_v42 = vadd.f32 %v17648_v47, %v3644_v24  ;;  %v14626_v47 = vld [vmem:[%s20871_s5 + $0x394] ss:$8 sps:$4 sm:$0xff]   ;;  %v14639_v25 = vld [vmem:[%s20871_s5 + $0x260] ss:$8 sps:$4 sm:$0xff]  }
0x102c   :  { %6737 = vmatprep.subr.bf16.mxu0 %v14560_v29  ;;  %v14615_v29 = vld [vmem:[%s20871_s5 + $0xa0] ss:$8 sps:$4 sm:$0xff]  }
0x102d   :  { %v5345_v30 = vmax.f32 %v5036_v42, 0.0  ;;  %v14648_v42 = vld [vmem:[%s20871_s5 + $0x350] ss:$8 sps:$4 sm:$0xff]  }
0x102e   :  { %6695 = vmatpush1.bf16.msra.mxu1 %v14555_v17  ;;  %v5361_v17 = vmax.f32 %v5040_v26, 0.0 }
0x102f   :  { %6738 = vmatpush1.bf16.msra.mxu0 %v14558_v16  ;;  %6696 = vmatprep.subr.bf16.mxu1 %v14563_v40  ;;  %v14623_v16 = vld [vmem:[%s20871_s5 + $0x294] ss:$8 sps:$4 sm:$0xff]   ;;  %v5363_v40 = vmax.f32 %v5083_v38, 0.0 }
0x1030   :  { %6739 = vmatprep.subr.bf16.mxu0 %v14566_v43  ;;  %v5347_v43 = vmax.f32 %v5079_v60, 0.0  ;;  %v14650_v38 = vld [vmem:[%s20871_s5 + $0x354] ss:$8 sps:$4 sm:$0xff]   ;;  %v14653_v60 = vld [vmem:[%s20871_s5 + $0x244] ss:$8 sps:$4 sm:$0xff]  }
0x1032   :  { %6697 = vmatpush1.bf16.msra.mxu1 %v14561_v56  ;;  %v14621_v56 = vld [vmem:[%s20871_s5 + $0x290] ss:$8 sps:$4 sm:$0xff]  }
0x1033   :  { %6740 = vmatpush1.bf16.msra.mxu0 %v14564_v54  ;;  %6698 = vmatprep.subr.bf16.mxu1 %v14569_v45  ;;  %v17853_v54 = vsub.s32 7, %v16164_v31  ;;  %v5377_v45 = vpack.c.bf16 %v5361_v17, %v5345_v30  ;;  %v14651_v17 = vld [vmem:[%s20871_s5 + $0x240] ss:$8 sps:$4 sm:$0xff]   ;;  %v14660_v30 = vld [vmem:[%s20871_s5 + $0x330] ss:$8 sps:$4 sm:$0xff]  }
0x1034   :  { %6741 = vmatprep.subr.bf16.mxu0 %v14572_v11  ;;  %v14624_v11 = vld [vmem:[%s20871_s5 + $0x390] ss:$8 sps:$4 sm:$0xff]  }
0x1036   :  { %6699 = vmatpush1.bf16.msra.mxu1 %v14567_v20  ;;  %v14629_v20 = vld [vmem:[%s20871_s5 + $0x284] ss:$8 sps:$4 sm:$0xff]  }
0x1037   :  { %6742 = vmatpush1.bf16.msra.mxu0 %v14570_v48  ;;  %6700 = vmatprep.subr.bf16.mxu1 %v14575_v49  ;;  %v5379_v48 = vpack.c.bf16 %v5363_v40, %v5347_v43  ;;  %v14632_v49 = vld [vmem:[%s20871_s5 + $0x384] ss:$8 sps:$4 sm:$0xff]   ;;  %v14662_v40 = vld [vmem:[%s20871_s5 + $0x334] ss:$8 sps:$4 sm:$0xff]  }
0x1038   :  { %6743 = vmatprep.subr.bf16.mxu0 %v14578_v39  ;;  %v14665_v43 = vld [vmem:[%s20871_s5 + $0x224] ss:$8 sps:$4 sm:$0xff]  }
0x103a   :  { %6701 = vmatpush2.bf16.msra.mxu1 %v14573_v21 }
0x103b   :  { %6744 = vmatpush2.bf16.msra.mxu0 %v14576_v46  ;;  %6702 = vmatprep.subr.bf16.mxu1 %v14581_v35  ;;  %v3664_v46 = vrot.slane %v17642_v50, %v16649_v6  ;;  %v3672_v35 = vrot.slane %v17642_v50, %v17853_v54 }
0x103c   :  { %6745 = vmatprep.subr.bf16.mxu0 %v14584_v32  ;;  %v14627_v32 = vld [vmem:[%s20871_s5 + $0x280] ss:$8 sps:$4 sm:$0xff]  }
0x103e   :  { %6703 = vmatpush2.bf16.msra.mxu1 %v14579_v53 }
0x103f   :  { %6746 = vmatpush2.bf16.msra.mxu0 %v14582_v57  ;;  %6704 = vmatprep.subr.bf16.mxu1 %v14587_v19  ;;  %v14630_v19 = vld [vmem:[%s20871_s5 + $0x380] ss:$8 sps:$4 sm:$0xff]  }
0x1040   :  { %6747 = vmatprep.subr.bf16.mxu0 %v14590_v58  ;;  %v14635_v58 = vld [vmem:[%s20871_s5 + $0x274] ss:$8 sps:$4 sm:$0xff]  }
0x1042   :  { %6705 = vmatpush2.bf16.msra.mxu1 %v14585_v55  ;;  %v14638_v55 = vld [vmem:[%s20871_s5 + $0x374] ss:$8 sps:$4 sm:$0xff]  }
0x1043   :  { %6748 = vmatpush2.bf16.msra.mxu0 %v14588_v59  ;;  %6706 = vmatprep.subr.bf16.mxu1 %v14593_v62 }
0x1044   :  { %6749 = vmatprep.subr.bf16.mxu0 %v14596_v63 }
0x1046   :  { %6707 = vmatpush2.bf16.msra.mxu1 %v14591_v1 }
0x1047   :  { %6750 = vmatpush2.bf16.msra.mxu0 %v14594_v2  ;;  %6708 = vmatprep.subr.bf16.mxu1 %v14599_v3  ;;  %v14633_v2 = vld [vmem:[%s20871_s5 + $0x270] ss:$8 sps:$4 sm:$0xff]  }
0x1048   :  { %6751 = vmatprep.subr.bf16.mxu0 %v14602_v4 }
0x104a   :  { %6709 = vmatpush2.bf16.msra.mxu1 %v14597_v5  ;;  %v14636_v5 = vld [vmem:[%s20871_s5 + $0x370] ss:$8 sps:$4 sm:$0xff]  }
0x104b   :  { %6752 = vmatpush2.bf16.msra.mxu0 %v14600_v7  ;;  %6710 = vmatprep.subr.bf16.mxu1 %v14605_v9  ;;  %v14641_v7 = vld [vmem:[%s20871_s5 + $0x264] ss:$8 sps:$4 sm:$0xff]  }
0x104c   :  { %6753 = vmatprep.subr.bf16.mxu0 %v14608_v10 }
0x104e   :  { %6711 = vmatpush2.bf16.msra.mxu1 %v14603_v13  ;;  %v14644_v13 = vld [vmem:[%s20871_s5 + $0x364] ss:$8 sps:$4 sm:$0xff]  }
0x104f   :  { %6754 = vmatpush2.bf16.msra.mxu0 %v14606_v14  ;;  %6712 = vmatprep.subr.bf16.mxu1 %v14611_v15 }
0x1050   :  { %6755 = vmatprep.subr.bf16.mxu0 %v14614_v44 }
0x1052   :  { %6713 = vmatpush2.bf16.msra.mxu1 %v14609_v37  ;;  %v14642_v37 = vld [vmem:[%s20871_s5 + $0x360] ss:$8 sps:$4 sm:$0xff]  }
0x1053   :  { %6756 = vmatpush2.bf16.msra.mxu0 %v14612_v51  ;;  %6714 = vmatprep.subr.bf16.mxu1 %v14617_v36  ;;  %v14647_v36 = vld [vmem:[%s20871_s5 + $0x254] ss:$8 sps:$4 sm:$0xff]  }
0x1054   :  { %6757 = vmatprep.subr.bf16.mxu0 %v14620_v41  ;;  %v14645_v41 = vld [vmem:[%s20871_s5 + $0x250] ss:$8 sps:$4 sm:$0xff]  }
0x1056   :  { %6715 = vmatpush2.bf16.msra.mxu1 %v14615_v29  ;;  %v14656_v29 = vld [vmem:[%s20871_s5 + $0x344] ss:$8 sps:$4 sm:$0xff]  }
0x1057   :  { %6758 = vmatpush2.bf16.msra.mxu0 %v14618_v61  ;;  %6770 = vmatprep.subr.bf16.mxu1 %v14623_v16  ;;  %v14654_v61 = vld [vmem:[%s20871_s5 + $0x340] ss:$8 sps:$4 sm:$0xff]   ;;  %v14659_v16 = vld [vmem:[%s20871_s5 + $0x234] ss:$8 sps:$4 sm:$0xff]  }
0x1058   :  { %6813 = vmatprep.subr.bf16.mxu0 %v14626_v47  ;;  %v14657_v47 = vld [vmem:[%s20871_s5 + $0x230] ss:$8 sps:$4 sm:$0xff]  }
0x1059   :  { %v17864_v39 = vpop.f32.mrf.mxu1  ;;  %v17866_v21 = vpop.f32.mrf.mxu0  ;;  %6717 = vmatmul.mubr.bf16.vlgmr.msra.gmra.mxu1 %v5377_v45  ;;  %v14663_v45 = vld [vmem:[%s20871_s5 + $0x220] ss:$8 sps:$4 sm:$0xff]  }
0x105a   :  { %6760 = vmatmul.mubr.bf16.vlgmr.msra.gmra.mxu0 %v5379_v48  ;;  %6771 = vmatpush1.bf16.msra.mxu1 %v14621_v56  ;;  %v14668_v56 = vld [vmem:[%s20871_s5 + $0x324] ss:$8 sps:$4 sm:$0xff]   ;;  %v14674_v48 = vld [vmem:[%s20871_s5 + $0x414] ss:$8 sps:$4 sm:$0xff]  }
0x105b   :  { %6814 = vmatpush1.bf16.msra.mxu0 %v14624_v11  ;;  %v5123_v53 = vpop.f32.mrf.mxu1  ;;  %v5166_v57 = vpop.f32.mrf.mxu0  ;;  %6772 = vmatprep.subr.bf16.mxu1 %v14629_v20  ;;  %v14666_v11 = vld [vmem:[%s20871_s5 + $0x320] ss:$8 sps:$4 sm:$0xff]   ;;  %v14671_v20 = vld [vmem:[%s20871_s5 + $0x314] ss:$8 sps:$4 sm:$0xff]  }
0x105c   :  { %6815 = vmatprep.subr.bf16.mxu0 %v14632_v49  ;;  %v5124_v63 = vadd.f32 %v5123_v53, %v3664_v46  ;;  %v5167_v1 = vadd.f32 %v5166_v57, %v3672_v35  ;;  %v14669_v49 = vld [vmem:[%s20871_s5 + $0x310] ss:$8 sps:$4 sm:$0xff]   ;;  %v14675_v53 = vld [vmem:[%s20871_s5 + $0x300] ss:$8 sps:$4 sm:$0xff]  }
0x105d   :  { %v17884_v59 = vpop.f32.mrf.mxu1  ;;  %v17886_v62 = vpop.f32.mrf.mxu0  ;;  %v14678_v57 = vld [vmem:[%s20871_s5 + $0x400] ss:$8 sps:$4 sm:$0xff]  }
0x105e   :  { %6773 = vmatpush1.bf16.msra.mxu1 %v14627_v32  ;;  %v5350_v14 = vmax.f32 %v5124_v63, 0.0  ;;  %v5352_v15 = vmax.f32 %v5167_v1, 0.0  ;;  %v14680_v32 = vld [vmem:[%s20871_s5 + $0x404] ss:$8 sps:$4 sm:$0xff]   ;;  %v14684_v63 = vld [vmem:[%s20871_s5 + $0x3f0] ss:$8 sps:$4 sm:$0xff]  }
0x105f   :  { %6816 = vmatpush1.bf16.msra.mxu0 %v14630_v19  ;;  %v5127_v3 = vpop.f32.mrf.mxu1  ;;  %v5170_v4 = vpop.f32.mrf.mxu0  ;;  %6774 = vmatprep.subr.bf16.mxu1 %v14635_v58  ;;  %v14683_v19 = vld [vmem:[%s20871_s5 + $0x2f4] ss:$8 sps:$4 sm:$0xff]   ;;  %v14689_v1 = vld [vmem:[%s20871_s5 + $0x2e4] ss:$8 sps:$4 sm:$0xff]  }
0x1060   :  { %v5128_v9 = vadd.f32 %v5127_v3, %v3664_v46  ;;  %v5171_v10 = vadd.f32 %v5170_v4, %v3672_v35  ;;  %6817 = vmatprep.subr.bf16.mxu0 %v14638_v55  ;;  %v14672_v46 = vld [vmem:[%s20871_s5 + $0x410] ss:$8 sps:$4 sm:$0xff]   ;;  %v14677_v35 = vld [vmem:[%s20871_s5 + $0x304] ss:$8 sps:$4 sm:$0xff]   ;;  %v14686_v58 = vld [vmem:[%s20871_s5 + $0x3f4] ss:$8 sps:$4 sm:$0xff]  }
0x1061   :  { %v14681_v55 = vld [vmem:[%s20871_s5 + $0x2f0] ss:$8 sps:$4 sm:$0xff]   ;;  %v14687_v3 = vld [vmem:[%s20871_s5 + $0x2e0] ss:$8 sps:$4 sm:$0xff]  }
0x1062   :  { %v5366_v44 = vmax.f32 %v5128_v9, 0.0  ;;  %v5368_v24 = vmax.f32 %v5171_v10, 0.0  ;;  %6775 = vmatpush1.bf16.msra.mxu1 %v14633_v2  ;;  %v14692_v2 = vld [vmem:[%s20871_s5 + $0x3e4] ss:$8 sps:$4 sm:$0xff]   ;;  %v14690_v4 = vld [vmem:[%s20871_s5 + $0x3e0] ss:$8 sps:$4 sm:$0xff]  }
0x1063   :  { %6818 = vmatpush1.bf16.msra.mxu0 %v14636_v5  ;;  %6776 = vmatprep.subr.bf16.mxu1 %v14641_v7  ;;  %v14695_v5 = vld [vmem:[%s20871_s5 + $0x2d4] ss:$8 sps:$4 sm:$0xff]   ;;  %v14693_v9 = vld [vmem:[%s20871_s5 + $0x2d0] ss:$8 sps:$4 sm:$0xff]  }
0x1064   :  { %v5382_v26 = vpack.c.bf16 %v5366_v44, %v5350_v14  ;;  %v5384_v51 = vpack.c.bf16 %v5368_v24, %v5352_v15  ;;  %6819 = vmatprep.subr.bf16.mxu0 %v14644_v13  ;;  %v14698_v7 = vld [vmem:[%s20871_s5 + $0x3d4] ss:$8 sps:$4 sm:$0xff]   ;;  %v14696_v10 = vld [vmem:[%s20871_s5 + $0x3d0] ss:$8 sps:$4 sm:$0xff]   ;;  %v14701_v13 = vld [vmem:[%s20871_s5 + $0x2c4] ss:$8 sps:$4 sm:$0xff]  }
0x1065   :  { %v14704_v14 = vld [vmem:[%s20871_s5 + $0x3c4] ss:$8 sps:$4 sm:$0xff]   ;;  %v18021_v15 = vsub.s32 6, %v16164_v31  ;;  %v14699_v44 = vld [vmem:[%s20871_s5 + $0x2c0] ss:$8 sps:$4 sm:$0xff]  }
0x1066   :  { %6777 = vmatpush1.bf16.msra.mxu1 %v14639_v25  ;;  %6802 = vmatprep.mubr.bf16.mxu1 %v5382_v26  ;;  %v14702_v24 = vld [vmem:[%s20871_s5 + $0x3c0] ss:$8 sps:$4 sm:$0xff]   ;;  %v14707_v25 = vld [vmem:[%s20871_s5 + $0x2b4] ss:$8 sps:$4 sm:$0xff]  }
0x1067   :  { %6820 = vmatpush1.bf16.msra.mxu0 %v14642_v37  ;;  %6845 = vmatprep.mubr.bf16.mxu0 %v5384_v51  ;;  %v14710_v31 = vld [vmem:[%s20871_s5 + $0x3b4] ss:$8 sps:$4 sm:$0xff]   ;;  %v3660_v37 = vrot.slane %v17642_v50, %v16560_v28  ;;  %v3668_v26 = vrot.slane %v17642_v50, %v18021_v15  ;;  %v14705_v51 = vld [vmem:[%s20871_s5 + $0x2b0] ss:$8 sps:$4 sm:$0xff]   ;;  %v14716_v50 = vld [vmem:[%s20871_s5 + $0x3a4] ss:$8 sps:$4 sm:$0xff]  }
0x1068   :  { %6778 = vmatprep.subr.bf16.mxu1 %v14647_v36  ;;  %6821 = vmatprep.subr.bf16.mxu0 %v14650_v38  ;;  %v14708_v38 = vld [vmem:[%s20871_s5 + $0x3b0] ss:$8 sps:$4 sm:$0xff]  }
0x1069   :  { %v5126_v36 = vadd.f32 %v17884_v59, %v3660_v37  ;;  %v5165_v59 = vadd.f32 %v17866_v21, %v3668_v26  ;;  %v14722_v21 = vld [vmem:[%s20871_s5 + $0x594] ss:$8 sps:$4 sm:$0xff]  }
0x106a   :  { %6779 = vmatpush1.bf16.msra.mxu1 %v14645_v41  ;;  %v14713_v41 = vld [vmem:[%s20871_s5 + $0x2a4] ss:$8 sps:$4 sm:$0xff]  }
0x106b   :  { %6822 = vmatpush1.bf16.msra.mxu0 %v14648_v42  ;;  %6780 = vmatprep.subr.bf16.mxu1 %v14653_v60  ;;  %v5169_v42 = vadd.f32 %v17886_v62, %v3668_v26  ;;  %v5122_v60 = vadd.f32 %v17864_v39, %v3660_v37  ;;  %v14714_v62 = vld [vmem:[%s20871_s5 + $0x3a0] ss:$8 sps:$4 sm:$0xff]  }
0x106c   :  { %6823 = vmatprep.subr.bf16.mxu0 %v14656_v29  ;;  %v14711_v29 = vld [vmem:[%s20871_s5 + $0x2a0] ss:$8 sps:$4 sm:$0xff]  }
0x106d   :  { %v12364_v39 = vld [vmem:[%s20872_s3 + $0x142] ss:$8 sm:$0xf] }
0x106e   :  { %6781 = vmatpush1.bf16.msra.mxu1 %v14651_v17  ;;  %v5365_v17 = vmax.f32 %v5126_v36, 0.0  ;;  %v14735_v26 = vld [vmem:[%s20871_s5 + $0x460] ss:$8 sps:$4 sm:$0xff]  }
0x106f   :  { %6824 = vmatpush1.bf16.msra.mxu0 %v14654_v61  ;;  %6782 = vmatprep.subr.bf16.mxu1 %v14659_v16  ;;  %v14719_v61 = vld [vmem:[%s20871_s5 + $0x494] ss:$8 sps:$4 sm:$0xff]   ;;  %v5367_v16 = vmax.f32 %v5169_v42, 0.0 }
0x1070   :  { %6825 = vmatprep.subr.bf16.mxu0 %v14662_v40  ;;  %v5349_v40 = vmax.f32 %v5122_v60, 0.0  ;;  %v14743_v42 = vld [vmem:[%s20871_s5 + $0x454] ss:$8 sps:$4 sm:$0xff]  }
0x1072   :  { %6783 = vmatpush1.bf16.msra.mxu1 %v14657_v47  ;;  %v12365_v47 = vld [vmem:[%s20872_s3 + $0x142] ss:$8 sm:$0xf0] }
0x1073   :  { %6826 = vmatpush1.bf16.msra.mxu0 %v14660_v30  ;;  %6784 = vmatprep.subr.bf16.mxu1 %v14665_v43  ;;  %v5351_v30 = vmax.f32 %v5165_v59, 0.0  ;;  %v14717_v43 = vld [vmem:[%s20871_s5 + $0x490] ss:$8 sps:$4 sm:$0xff]  }
0x1074   :  { %6827 = vmatprep.subr.bf16.mxu0 %v14668_v56  ;;  %v5381_v56 = vpack.c.bf16 %v5365_v17, %v5349_v40  ;;  %v14741_v59 = vld [vmem:[%s20871_s5 + $0x450] ss:$8 sps:$4 sm:$0xff]   ;;  %v14749_v17 = vld [vmem:[%s20871_s5 + $0x444] ss:$8 sps:$4 sm:$0xff]  }
0x1075   :  { %v14753_v40 = vld [vmem:[%s20871_s5 + $0x430] ss:$8 sps:$4 sm:$0xff]  }
0x1076   :  { %6785 = vmatpush1.bf16.msra.mxu1 %v14663_v45  ;;  %v14720_v45 = vld [vmem:[%s20871_s5 + $0x590] ss:$8 sps:$4 sm:$0xff]  }
0x1077   :  { %6828 = vmatpush1.bf16.msra.mxu0 %v14666_v11  ;;  %6786 = vmatprep.subr.bf16.mxu1 %v14671_v20  ;;  %v14725_v11 = vld [vmem:[%s20871_s5 + $0x484] ss:$8 sps:$4 sm:$0xff]   ;;  %v5383_v20 = vpack.c.bf16 %v5367_v16, %v5351_v30  ;;  %v14750_v16 = vld [vmem:[%s20871_s5 + $0x540] ss:$8 sps:$4 sm:$0xff]  }
0x1078   :  { %6829 = vmatprep.subr.bf16.mxu0 %v14674_v48  ;;  %v18082_v48 = vor.u32 %v12365_v47, %v12364_v39  ;;  %v14755_v39 = vld [vmem:[%s20871_s5 + $0x434] ss:$8 sps:$4 sm:$0xff]   ;;  %v14756_v47 = vld [vmem:[%s20871_s5 + $0x530] ss:$8 sps:$4 sm:$0xff]   ;;  %v14761_v30 = vld [vmem:[%s20871_s5 + $0x424] ss:$8 sps:$4 sm:$0xff]  }
0x107a   :  { %6787 = vmatpush2.bf16.msra.mxu1 %v14669_v49  ;;  %v14728_v49 = vld [vmem:[%s20871_s5 + $0x584] ss:$8 sps:$4 sm:$0xff]  }
0x107b   :  { %6830 = vmatpush2.bf16.msra.mxu0 %v14672_v46  ;;  %6788 = vmatprep.subr.bf16.mxu1 %v14677_v35 }
0x107c   :  { %6831 = vmatprep.subr.bf16.mxu0 %v14680_v32  ;;  %v3680_v32 = vrot.slane %v18082_v48, %v16173_v34 }
0x107e   :  { %6789 = vmatpush2.bf16.msra.mxu1 %v14675_v53  ;;  %v14723_v53 = vld [vmem:[%s20871_s5 + $0x480] ss:$8 sps:$4 sm:$0xff]  }
0x107f   :  { %6832 = vmatpush2.bf16.msra.mxu0 %v14678_v57  ;;  %6790 = vmatprep.subr.bf16.mxu1 %v14683_v19  ;;  %v3688_v19 = vrot.slane %v18082_v48, %v16583_v22 }
0x1080   :  { %6833 = vmatprep.subr.bf16.mxu0 %v14686_v58  ;;  %v14726_v58 = vld [vmem:[%s20871_s5 + $0x580] ss:$8 sps:$4 sm:$0xff]  }
0x1082   :  { %6791 = vmatpush2.bf16.msra.mxu1 %v14681_v55  ;;  %v14731_v55 = vld [vmem:[%s20871_s5 + $0x474] ss:$8 sps:$4 sm:$0xff]  }
0x1083   :  { %6834 = vmatpush2.bf16.msra.mxu0 %v14684_v63  ;;  %6792 = vmatprep.subr.bf16.mxu1 %v14689_v1  ;;  %v14734_v1 = vld [vmem:[%s20871_s5 + $0x574] ss:$8 sps:$4 sm:$0xff]  }
0x1084   :  { %6835 = vmatprep.subr.bf16.mxu0 %v14692_v2 }
0x1086   :  { %6793 = vmatpush2.bf16.msra.mxu1 %v14687_v3 }
0x1087   :  { %6836 = vmatpush2.bf16.msra.mxu0 %v14690_v4  ;;  %6794 = vmatprep.subr.bf16.mxu1 %v14695_v5  ;;  %v14729_v5 = vld [vmem:[%s20871_s5 + $0x470] ss:$8 sps:$4 sm:$0xff]  }
0x1088   :  { %6837 = vmatprep.subr.bf16.mxu0 %v14698_v7 }
0x108a   :  { %6795 = vmatpush2.bf16.msra.mxu1 %v14693_v9 }
0x108b   :  { %6838 = vmatpush2.bf16.msra.mxu0 %v14696_v10  ;;  %6796 = vmatprep.subr.bf16.mxu1 %v14701_v13  ;;  %v14732_v10 = vld [vmem:[%s20871_s5 + $0x570] ss:$8 sps:$4 sm:$0xff]   ;;  %v14737_v13 = vld [vmem:[%s20871_s5 + $0x464] ss:$8 sps:$4 sm:$0xff]  }
0x108c   :  { %6839 = vmatprep.subr.bf16.mxu0 %v14704_v14 }
0x108e   :  { %6797 = vmatpush2.bf16.msra.mxu1 %v14699_v44 }
0x108f   :  { %6840 = vmatpush2.bf16.msra.mxu0 %v14702_v24  ;;  %6798 = vmatprep.subr.bf16.mxu1 %v14707_v25  ;;  %v14740_v24 = vld [vmem:[%s20871_s5 + $0x564] ss:$8 sps:$4 sm:$0xff]  }
0x1090   :  { %6841 = vmatprep.subr.bf16.mxu0 %v14710_v31 }
0x1092   :  { %6799 = vmatpush2.bf16.msra.mxu1 %v14705_v51 }
0x1093   :  { %6842 = vmatpush2.bf16.msra.mxu0 %v14708_v38  ;;  %6800 = vmatprep.subr.bf16.mxu1 %v14713_v41  ;;  %v14738_v38 = vld [vmem:[%s20871_s5 + $0x560] ss:$8 sps:$4 sm:$0xff]  }
0x1094   :  { %6843 = vmatprep.subr.bf16.mxu0 %v14716_v50  ;;  %v14746_v50 = vld [vmem:[%s20871_s5 + $0x554] ss:$8 sps:$4 sm:$0xff]  }
0x1096   :  { %6801 = vmatpush2.bf16.msra.mxu1 %v14711_v29  ;;  %v14744_v29 = vld [vmem:[%s20871_s5 + $0x550] ss:$8 sps:$4 sm:$0xff]  }
0x1097   :  { %6844 = vmatpush2.bf16.msra.mxu0 %v14714_v62  ;;  %6856 = vmatprep.subr.bf16.mxu1 %v14719_v61  ;;  %v14752_v62 = vld [vmem:[%s20871_s5 + $0x544] ss:$8 sps:$4 sm:$0xff]   ;;  %v14747_v61 = vld [vmem:[%s20871_s5 + $0x440] ss:$8 sps:$4 sm:$0xff]  }
0x1098   :  { %6899 = vmatprep.subr.bf16.mxu0 %v14722_v21  ;;  %v14758_v21 = vld [vmem:[%s20871_s5 + $0x534] ss:$8 sps:$4 sm:$0xff]  }
0x1099   :  { %v18087_v46 = vpop.f32.mrf.mxu1  ;;  %6803 = vmatmul.mubr.bf16.vlgmr.msra.gmra.mxu1 %v5381_v56  ;;  %v14759_v56 = vld [vmem:[%s20871_s5 + $0x420] ss:$8 sps:$4 sm:$0xff]  }
0x109a   :  { %v18089_v35 = vpop.f32.mrf.mxu0  ;;  %6846 = vmatmul.mubr.bf16.vlgmr.msra.gmra.mxu0 %v5383_v20  ;;  %6857 = vmatpush1.bf16.msra.mxu1 %v14717_v43  ;;  %v14764_v43 = vld [vmem:[%s20871_s5 + $0x524] ss:$8 sps:$4 sm:$0xff]   ;;  %v14770_v20 = vld [vmem:[%s20871_s5 + $0x614] ss:$8 sps:$4 sm:$0xff]  }
0x109b   :  { %6900 = vmatpush1.bf16.msra.mxu0 %v14720_v45  ;;  %v5209_v57 = vpop.f32.mrf.mxu1  ;;  %6858 = vmatprep.subr.bf16.mxu1 %v14725_v11  ;;  %v14762_v45 = vld [vmem:[%s20871_s5 + $0x520] ss:$8 sps:$4 sm:$0xff]   ;;  %v14767_v11 = vld [vmem:[%s20871_s5 + $0x514] ss:$8 sps:$4 sm:$0xff]  }
0x109c   :  { %v5252_v63 = vpop.f32.mrf.mxu0  ;;  %6901 = vmatprep.subr.bf16.mxu0 %v14728_v49  ;;  %v5210_v3 = vadd.f32 %v5209_v57, %v3680_v32  ;;  %v14765_v49 = vld [vmem:[%s20871_s5 + $0x510] ss:$8 sps:$4 sm:$0xff]   ;;  %v14776_v57 = vld [vmem:[%s20871_s5 + $0x604] ss:$8 sps:$4 sm:$0xff]  }
0x109d   :  { %v18107_v2 = vpop.f32.mrf.mxu1  ;;  %v5253_v7 = vadd.f32 %v5252_v63, %v3688_v19  ;;  %v14782_v63 = vld [vmem:[%s20871_s5 + $0x5f4] ss:$8 sps:$4 sm:$0xff]  }
0x109e   :  { %v18109_v4 = vpop.f32.mrf.mxu0  ;;  %6859 = vmatpush1.bf16.msra.mxu1 %v14723_v53  ;;  %v5354_v31 = vmax.f32 %v5210_v3, 0.0  ;;  %v14773_v53 = vld [vmem:[%s20871_s5 + $0x504] ss:$8 sps:$4 sm:$0xff]   ;;  %v14780_v3 = vld [vmem:[%s20871_s5 + $0x5f0] ss:$8 sps:$4 sm:$0xff]  }
0x109f   :  { %6902 = vmatpush1.bf16.msra.mxu0 %v14726_v58  ;;  %v5213_v9 = vpop.f32.mrf.mxu1  ;;  %6860 = vmatprep.subr.bf16.mxu1 %v14731_v55  ;;  %v5356_v51 = vmax.f32 %v5253_v7, 0.0  ;;  %v14774_v58 = vld [vmem:[%s20871_s5 + $0x600] ss:$8 sps:$4 sm:$0xff]   ;;  %v14779_v55 = vld [vmem:[%s20871_s5 + $0x4f4] ss:$8 sps:$4 sm:$0xff]  }
0x10a0   :  { %v5214_v14 = vadd.f32 %v5213_v9, %v3680_v32  ;;  %v5256_v44 = vpop.f32.mrf.mxu0  ;;  %6903 = vmatprep.subr.bf16.mxu0 %v14734_v1  ;;  %v14768_v32 = vld [vmem:[%s20871_s5 + $0x610] ss:$8 sps:$4 sm:$0xff]   ;;  %v14788_v7 = vld [vmem:[%s20871_s5 + $0x5e4] ss:$8 sps:$4 sm:$0xff]   ;;  %v14783_v9 = vld [vmem:[%s20871_s5 + $0x4e0] ss:$8 sps:$4 sm:$0xff]  }
0x10a1   :  { %v5257_v25 = vadd.f32 %v5256_v44, %v3688_v19  ;;  %v14771_v19 = vld [vmem:[%s20871_s5 + $0x500] ss:$8 sps:$4 sm:$0xff]   ;;  %v14777_v1 = vld [vmem:[%s20871_s5 + $0x4f0] ss:$8 sps:$4 sm:$0xff]  }
0x10a2   :  { %v5370_v37 = vmax.f32 %v5214_v14, 0.0  ;;  %6861 = vmatpush1.bf16.msra.mxu1 %v14729_v5  ;;  %v14785_v5 = vld [vmem:[%s20871_s5 + $0x4e4] ss:$8 sps:$4 sm:$0xff]   ;;  %v14794_v14 = vld [vmem:[%s20871_s5 + $0x5d4] ss:$8 sps:$4 sm:$0xff]  }
0x10a3   :  { %v5372_v36 = vmax.f32 %v5257_v25, 0.0  ;;  %6904 = vmatpush1.bf16.msra.mxu0 %v14732_v10  ;;  %6862 = vmatprep.subr.bf16.mxu1 %v14737_v13  ;;  %v14786_v10 = vld [vmem:[%s20871_s5 + $0x5e0] ss:$8 sps:$4 sm:$0xff]   ;;  %v14791_v13 = vld [vmem:[%s20871_s5 + $0x4d4] ss:$8 sps:$4 sm:$0xff]  }
0x10a4   :  { %v5386_v41 = vpack.c.bf16 %v5370_v37, %v5354_v31  ;;  %6905 = vmatprep.subr.bf16.mxu0 %v14740_v24  ;;  %v14789_v44 = vld [vmem:[%s20871_s5 + $0x4d0] ss:$8 sps:$4 sm:$0xff]   ;;  %v14797_v25 = vld [vmem:[%s20871_s5 + $0x4c4] ss:$8 sps:$4 sm:$0xff]   ;;  %v14795_v37 = vld [vmem:[%s20871_s5 + $0x4c0] ss:$8 sps:$4 sm:$0xff]  }
0x10a5   :  { %v5388_v60 = vpack.c.bf16 %v5372_v36, %v5356_v51  ;;  %v14792_v24 = vld [vmem:[%s20871_s5 + $0x5d0] ss:$8 sps:$4 sm:$0xff]   ;;  %v14800_v31 = vld [vmem:[%s20871_s5 + $0x5c4] ss:$8 sps:$4 sm:$0xff]   ;;  %v14803_v51 = vld [vmem:[%s20871_s5 + $0x4b4] ss:$8 sps:$4 sm:$0xff]  }
0x10a6   :  { %6863 = vmatpush1.bf16.msra.mxu1 %v14735_v26  ;;  %6888 = vmatprep.mubr.bf16.mxu1 %v5386_v41  ;;  %v14798_v26 = vld [vmem:[%s20871_s5 + $0x5c0] ss:$8 sps:$4 sm:$0xff]   ;;  %v14806_v36 = vld [vmem:[%s20871_s5 + $0x5b4] ss:$8 sps:$4 sm:$0xff]   ;;  %v3684_v41 = vrot.slane %v18082_v48, %v16542_v12 }
0x10a7   :  { %6906 = vmatpush1.bf16.msra.mxu0 %v14738_v38  ;;  %6931 = vmatprep.mubr.bf16.mxu0 %v5388_v60  ;;  %v3676_v38 = vrot.slane %v18082_v48, %v16170_v33  ;;  %v14804_v60 = vld [vmem:[%s20871_s5 + $0x5b0] ss:$8 sps:$4 sm:$0xff]  }
0x10a8   :  { %6864 = vmatprep.subr.bf16.mxu1 %v14743_v42  ;;  %6907 = vmatprep.subr.bf16.mxu0 %v14746_v50  ;;  %v14801_v42 = vld [vmem:[%s20871_s5 + $0x4b0] ss:$8 sps:$4 sm:$0xff]  }
0x10a9   :  { %v5212_v50 = vadd.f32 %v18107_v2, %v3676_v38  ;;  %v5251_v2 = vadd.f32 %v18089_v35, %v3684_v41 }
0x10aa   :  { %6865 = vmatpush1.bf16.msra.mxu1 %v14741_v59  ;;  %v14809_v59 = vld [vmem:[%s20871_s5 + $0x4a4] ss:$8 sps:$4 sm:$0xff]  }
0x10ab   :  { %6908 = vmatpush1.bf16.msra.mxu0 %v14744_v29  ;;  %6866 = vmatprep.subr.bf16.mxu1 %v14749_v17  ;;  %v5255_v29 = vadd.f32 %v18109_v4, %v3684_v41  ;;  %v14812_v17 = vld [vmem:[%s20871_s5 + $0x5a4] ss:$8 sps:$4 sm:$0xff]   ;;  %v14810_v4 = vld [vmem:[%s20871_s5 + $0x5a0] ss:$8 sps:$4 sm:$0xff]  }
0x10ac   :  { %6909 = vmatprep.subr.bf16.mxu0 %v14752_v62  ;;  %v5208_v62 = vadd.f32 %v18087_v46, %v3676_v38  ;;  %v14818_v46 = vld [vmem:[%s20871_s5 + $0x794] ss:$8 sps:$4 sm:$0xff]  }
0x10ae   :  { %6867 = vmatpush1.bf16.msra.mxu1 %v14747_v61  ;;  %v14807_v61 = vld [vmem:[%s20871_s5 + $0x4a0] ss:$8 sps:$4 sm:$0xff]   ;;  %v5353_v35 = vmax.f32 %v5208_v62, 0.0  ;;  %v14840_v62 = vld [vmem:[%s20871_s5 + $0x750] ss:$8 sps:$4 sm:$0xff]  }
0x10af   :  { %6910 = vmatpush1.bf16.msra.mxu0 %v14750_v16  ;;  %6868 = vmatprep.subr.bf16.mxu1 %v14755_v39  ;;  %v5369_v16 = vmax.f32 %v5212_v50, 0.0  ;;  %v14815_v39 = vld [vmem:[%s20871_s5 + $0x694] ss:$8 sps:$4 sm:$0xff]  }
0x10b0   :  { %6911 = vmatprep.subr.bf16.mxu0 %v14758_v21  ;;  %v5371_v21 = vmax.f32 %v5255_v29, 0.0 }
0x10b2   :  { %6869 = vmatpush1.bf16.msra.mxu1 %v14753_v40  ;;  %v5355_v40 = vmax.f32 %v5251_v2, 0.0  ;;  %v14845_v2 = vld [vmem:[%s20871_s5 + $0x644] ss:$8 sps:$4 sm:$0xff]  }
0x10b3   :  { %6912 = vmatpush1.bf16.msra.mxu0 %v14756_v47  ;;  %6870 = vmatprep.subr.bf16.mxu1 %v14761_v30  ;;  %v14813_v47 = vld [vmem:[%s20871_s5 + $0x690] ss:$8 sps:$4 sm:$0xff]   ;;  %v5385_v30 = vpack.c.bf16 %v5369_v16, %v5353_v35  ;;  %v14843_v16 = vld [vmem:[%s20871_s5 + $0x640] ss:$8 sps:$4 sm:$0xff]  }
0x10b4   :  { %6913 = vmatprep.subr.bf16.mxu0 %v14764_v43  ;;  %v14816_v43 = vld [vmem:[%s20871_s5 + $0x790] ss:$8 sps:$4 sm:$0xff]  }
0x10b5   :  { %v14852_v35 = vld [vmem:[%s20871_s5 + $0x730] ss:$8 sps:$4 sm:$0xff]  }
0x10b6   :  { %6871 = vmatpush1.bf16.msra.mxu1 %v14759_v56  ;;  %v14821_v56 = vld [vmem:[%s20871_s5 + $0x684] ss:$8 sps:$4 sm:$0xff]  }
0x10b7   :  { %6914 = vmatpush1.bf16.msra.mxu0 %v14762_v45  ;;  %6872 = vmatprep.subr.bf16.mxu1 %v14767_v11  ;;  %v5387_v45 = vpack.c.bf16 %v5371_v21, %v5355_v40  ;;  %v14824_v11 = vld [vmem:[%s20871_s5 + $0x784] ss:$8 sps:$4 sm:$0xff]   ;;  %v14854_v21 = vld [vmem:[%s20871_s5 + $0x734] ss:$8 sps:$4 sm:$0xff]  }
0x10b8   :  { %6915 = vmatprep.subr.bf16.mxu0 %v14770_v20  ;;  %v14857_v40 = vld [vmem:[%s20871_s5 + $0x624] ss:$8 sps:$4 sm:$0xff]  }
0x10ba   :  { %6873 = vmatpush2.bf16.msra.mxu1 %v14765_v49 }
0x10bb   :  { %6916 = vmatpush2.bf16.msra.mxu0 %v14768_v32  ;;  %6874 = vmatprep.subr.bf16.mxu1 %v14773_v53  ;;  %v3696_v32 = vrot.slane %v18082_v48, %v16649_v6  ;;  %v14819_v53 = vld [vmem:[%s20871_s5 + $0x680] ss:$8 sps:$4 sm:$0xff]  }
0x10bc   :  { %6917 = vmatprep.subr.bf16.mxu0 %v14776_v57 }
0x10be   :  { %6875 = vmatpush2.bf16.msra.mxu1 %v14771_v19  ;;  %v3704_v19 = vrot.slane %v18082_v48, %v17853_v54 }
0x10bf   :  { %6918 = vmatpush2.bf16.msra.mxu0 %v14774_v58  ;;  %6876 = vmatprep.subr.bf16.mxu1 %v14779_v55  ;;  %v14822_v58 = vld [vmem:[%s20871_s5 + $0x780] ss:$8 sps:$4 sm:$0xff]   ;;  %v14827_v55 = vld [vmem:[%s20871_s5 + $0x674] ss:$8 sps:$4 sm:$0xff]  }
0x10c0   :  { %6919 = vmatprep.subr.bf16.mxu0 %v14782_v63 }
0x10c2   :  { %6877 = vmatpush2.bf16.msra.mxu1 %v14777_v1  ;;  %v14830_v1 = vld [vmem:[%s20871_s5 + $0x774] ss:$8 sps:$4 sm:$0xff]  }
0x10c3   :  { %6920 = vmatpush2.bf16.msra.mxu0 %v14780_v3  ;;  %6878 = vmatprep.subr.bf16.mxu1 %v14785_v5 }
0x10c4   :  { %6921 = vmatprep.subr.bf16.mxu0 %v14788_v7 }
0x10c6   :  { %6879 = vmatpush2.bf16.msra.mxu1 %v14783_v9  ;;  %v14825_v9 = vld [vmem:[%s20871_s5 + $0x670] ss:$8 sps:$4 sm:$0xff]  }
0x10c7   :  { %6922 = vmatpush2.bf16.msra.mxu0 %v14786_v10  ;;  %6880 = vmatprep.subr.bf16.mxu1 %v14791_v13 }
0x10c8   :  { %6923 = vmatprep.subr.bf16.mxu0 %v14794_v14  ;;  %v14828_v14 = vld [vmem:[%s20871_s5 + $0x770] ss:$8 sps:$4 sm:$0xff]  }
0x10ca   :  { %6881 = vmatpush2.bf16.msra.mxu1 %v14789_v44  ;;  %v14833_v44 = vld [vmem:[%s20871_s5 + $0x664] ss:$8 sps:$4 sm:$0xff]  }
0x10cb   :  { %6924 = vmatpush2.bf16.msra.mxu0 %v14792_v24  ;;  %6882 = vmatprep.subr.bf16.mxu1 %v14797_v25 }
0x10cc   :  { %6925 = vmatprep.subr.bf16.mxu0 %v14800_v31  ;;  %v14836_v31 = vld [vmem:[%s20871_s5 + $0x764] ss:$8 sps:$4 sm:$0xff]  }
0x10ce   :  { %6883 = vmatpush2.bf16.msra.mxu1 %v14795_v37 }
0x10cf   :  { %6926 = vmatpush2.bf16.msra.mxu0 %v14798_v26  ;;  %6884 = vmatprep.subr.bf16.mxu1 %v14803_v51 }
0x10d0   :  { %6927 = vmatprep.subr.bf16.mxu0 %v14806_v36  ;;  %v14831_v36 = vld [vmem:[%s20871_s5 + $0x660] ss:$8 sps:$4 sm:$0xff]  }
0x10d2   :  { %6885 = vmatpush2.bf16.msra.mxu1 %v14801_v42  ;;  %v14834_v42 = vld [vmem:[%s20871_s5 + $0x760] ss:$8 sps:$4 sm:$0xff]  }
0x10d3   :  { %6928 = vmatpush2.bf16.msra.mxu0 %v14804_v60  ;;  %6886 = vmatprep.subr.bf16.mxu1 %v14809_v59  ;;  %v14839_v60 = vld [vmem:[%s20871_s5 + $0x654] ss:$8 sps:$4 sm:$0xff]  }
0x10d4   :  { %6929 = vmatprep.subr.bf16.mxu0 %v14812_v17  ;;  %v14842_v59 = vld [vmem:[%s20871_s5 + $0x754] ss:$8 sps:$4 sm:$0xff]   ;;  %v14837_v17 = vld [vmem:[%s20871_s5 + $0x650] ss:$8 sps:$4 sm:$0xff]  }
0x10d6   :  { %6887 = vmatpush2.bf16.msra.mxu1 %v14807_v61  ;;  %v14848_v61 = vld [vmem:[%s20871_s5 + $0x744] ss:$8 sps:$4 sm:$0xff]  }
0x10d7   :  { %6930 = vmatpush2.bf16.msra.mxu0 %v14810_v4  ;;  %6942 = vmatprep.subr.bf16.mxu1 %v14815_v39  ;;  %v14846_v4 = vld [vmem:[%s20871_s5 + $0x740] ss:$8 sps:$4 sm:$0xff]   ;;  %v14851_v39 = vld [vmem:[%s20871_s5 + $0x634] ss:$8 sps:$4 sm:$0xff]  }
0x10d8   :  { %6985 = vmatprep.subr.bf16.mxu0 %v14818_v46  ;;  %v14849_v46 = vld [vmem:[%s20871_s5 + $0x630] ss:$8 sps:$4 sm:$0xff]  }
0x10d9   :  { %v18299_v20 = vpop.f32.mrf.mxu1  ;;  %6889 = vmatmul.mubr.bf16.vlgmr.msra.gmra.mxu1 %v5385_v30  ;;  %v14855_v30 = vld [vmem:[%s20871_s5 + $0x620] ss:$8 sps:$4 sm:$0xff]  }
0x10da   :  { %v18301_v49 = vpop.f32.mrf.mxu0  ;;  %6932 = vmatmul.mubr.bf16.vlgmr.msra.gmra.mxu0 %v5387_v45  ;;  %6943 = vmatpush1.bf16.msra.mxu1 %v14813_v47  ;;  %v14860_v47 = vld [vmem:[%s20871_s5 + $0x724] ss:$8 sps:$4 sm:$0xff]   ;;  %v14866_v45 = vld [vmem:[%s20871_s5 + $0x814] ss:$8 sps:$4 sm:$0xff]  }
0x10db   :  { %6986 = vmatpush1.bf16.msra.mxu0 %v14816_v43  ;;  %v5295_v57 = vpop.f32.mrf.mxu1  ;;  %6944 = vmatprep.subr.bf16.mxu1 %v14821_v56  ;;  %v14858_v43 = vld [vmem:[%s20871_s5 + $0x720] ss:$8 sps:$4 sm:$0xff]   ;;  %v14863_v56 = vld [vmem:[%s20871_s5 + $0x714] ss:$8 sps:$4 sm:$0xff]  }
0x10dc   :  { %v5338_v63 = vpop.f32.mrf.mxu0  ;;  %6987 = vmatprep.subr.bf16.mxu0 %v14824_v11  ;;  %v5296_v5 = vadd.f32 %v5295_v57, %v3696_v32  ;;  %v14861_v11 = vld [vmem:[%s20871_s5 + $0x710] ss:$8 sps:$4 sm:$0xff]   ;;  %v14872_v57 = vld [vmem:[%s20871_s5 + $0x804] ss:$8 sps:$4 sm:$0xff]  }
0x10dd   :  { %v18319_v3 = vpop.f32.mrf.mxu1  ;;  %v5339_v10 = vadd.f32 %v5338_v63, %v3704_v19  ;;  %v14878_v63 = vld [vmem:[%s20871_s5 + $0x7f4] ss:$8 sps:$4 sm:$0xff]  }
0x10de   :  { %v18321_v7 = vpop.f32.mrf.mxu0  ;;  %6945 = vmatpush1.bf16.msra.mxu1 %v14819_v53  ;;  %v5358_v26 = vmax.f32 %v5296_v5, 0.0  ;;  %v14869_v53 = vld [vmem:[%s20871_s5 + $0x704] ss:$8 sps:$4 sm:$0xff]   ;;  %v14876_v5 = vld [vmem:[%s20871_s5 + $0x7f0] ss:$8 sps:$4 sm:$0xff]  }
0x10df   :  { %6988 = vmatpush1.bf16.msra.mxu0 %v14822_v58  ;;  %v5299_v13 = vpop.f32.mrf.mxu1  ;;  %6946 = vmatprep.subr.bf16.mxu1 %v14827_v55  ;;  %v5360_v38 = vmax.f32 %v5339_v10, 0.0  ;;  %v14870_v58 = vld [vmem:[%s20871_s5 + $0x800] ss:$8 sps:$4 sm:$0xff]   ;;  %v14875_v55 = vld [vmem:[%s20871_s5 + $0x6f4] ss:$8 sps:$4 sm:$0xff]  }
0x10e0   :  { %v5300_v24 = vadd.f32 %v5299_v13, %v3696_v32  ;;  %v5342_v25 = vpop.f32.mrf.mxu0  ;;  %6989 = vmatprep.subr.bf16.mxu0 %v14830_v1  ;;  %v14864_v32 = vld [vmem:[%s20871_s5 + $0x810] ss:$8 sps:$4 sm:$0xff]   ;;  %v14884_v10 = vld [vmem:[%s20871_s5 + $0x7e4] ss:$8 sps:$4 sm:$0xff]   ;;  %v14879_v13 = vld [vmem:[%s20871_s5 + $0x6e0] ss:$8 sps:$4 sm:$0xff]  }
0x10e1   :  { %v5343_v37 = vadd.f32 %v5342_v25, %v3704_v19  ;;  %v14867_v19 = vld [vmem:[%s20871_s5 + $0x700] ss:$8 sps:$4 sm:$0xff]   ;;  %v14873_v1 = vld [vmem:[%s20871_s5 + $0x6f0] ss:$8 sps:$4 sm:$0xff]  }
0x10e2   :  { %v5374_v51 = vmax.f32 %v5300_v24, 0.0  ;;  %6947 = vmatpush1.bf16.msra.mxu1 %v14825_v9  ;;  %v14881_v9 = vld [vmem:[%s20871_s5 + $0x6e4] ss:$8 sps:$4 sm:$0xff]   ;;  %v14890_v24 = vld [vmem:[%s20871_s5 + $0x7d4] ss:$8 sps:$4 sm:$0xff]  }
0x10e3   :  { %v5376_v41 = vmax.f32 %v5343_v37, 0.0  ;;  %6990 = vmatpush1.bf16.msra.mxu0 %v14828_v14  ;;  %6948 = vmatprep.subr.bf16.mxu1 %v14833_v44  ;;  %v14882_v14 = vld [vmem:[%s20871_s5 + $0x7e0] ss:$8 sps:$4 sm:$0xff]   ;;  %v14887_v44 = vld [vmem:[%s20871_s5 + $0x6d4] ss:$8 sps:$4 sm:$0xff]  }
0x10e4   :  { %v5390_v50 = vpack.c.bf16 %v5374_v51, %v5358_v26  ;;  %6991 = vmatprep.subr.bf16.mxu0 %v14836_v31  ;;  %v14885_v25 = vld [vmem:[%s20871_s5 + $0x6d0] ss:$8 sps:$4 sm:$0xff]   ;;  %v14893_v37 = vld [vmem:[%s20871_s5 + $0x6c4] ss:$8 sps:$4 sm:$0xff]   ;;  %v14891_v51 = vld [vmem:[%s20871_s5 + $0x6c0] ss:$8 sps:$4 sm:$0xff]  }
0x10e5   :  { %v5392_v29 = vpack.c.bf16 %v5376_v41, %v5360_v38  ;;  %v14888_v31 = vld [vmem:[%s20871_s5 + $0x7d0] ss:$8 sps:$4 sm:$0xff]   ;;  %v14896_v26 = vld [vmem:[%s20871_s5 + $0x7c4] ss:$8 sps:$4 sm:$0xff]   ;;  %v14899_v38 = vld [vmem:[%s20871_s5 + $0x6b4] ss:$8 sps:$4 sm:$0xff]  }
0x10e6   :  { %6949 = vmatpush1.bf16.msra.mxu1 %v14831_v36  ;;  %6974 = vmatprep.mubr.bf16.mxu1 %v5390_v50  ;;  %v14894_v36 = vld [vmem:[%s20871_s5 + $0x7c0] ss:$8 sps:$4 sm:$0xff]   ;;  %v14902_v41 = vld [vmem:[%s20871_s5 + $0x7b4] ss:$8 sps:$4 sm:$0xff]   ;;  %v3700_v50 = vrot.slane %v18082_v48, %v18021_v15 }
0x10e7   :  { %6992 = vmatpush1.bf16.msra.mxu0 %v14834_v42  ;;  %7017 = vmatprep.mubr.bf16.mxu0 %v5392_v29  ;;  %v3692_v42 = vrot.slane %v18082_v48, %v16560_v28  ;;  %v14900_v29 = vld [vmem:[%s20871_s5 + $0x7b0] ss:$8 sps:$4 sm:$0xff]   ;;  %v14908_v48 = vld [vmem:[%s20871_s5 + $0x7a4] ss:$8 sps:$4 sm:$0xff]  }
0x10e8   :  { %6950 = vmatprep.subr.bf16.mxu1 %v14839_v60  ;;  %6993 = vmatprep.subr.bf16.mxu0 %v14842_v59  ;;  %v14897_v60 = vld [vmem:[%s20871_s5 + $0x6b0] ss:$8 sps:$4 sm:$0xff]  }
0x10e9   :  { %v5298_v59 = vadd.f32 %v18319_v3, %v3692_v42  ;;  %v5337_v3 = vadd.f32 %v18301_v49, %v3700_v50 }
0x10ea   :  { %6951 = vmatpush1.bf16.msra.mxu1 %v14837_v17  ;;  %v14905_v17 = vld [vmem:[%s20871_s5 + $0x6a4] ss:$8 sps:$4 sm:$0xff]  }
0x10eb   :  { %6994 = vmatpush1.bf16.msra.mxu0 %v14840_v62  ;;  %6952 = vmatprep.subr.bf16.mxu1 %v14845_v2  ;;  %v5341_v62 = vadd.f32 %v18321_v7, %v3700_v50  ;;  %v5294_v2 = vadd.f32 %v18299_v20, %v3692_v42  ;;  %v14906_v7 = vld [vmem:[%s20871_s5 + $0x7a0] ss:$8 sps:$4 sm:$0xff]  }
0x10ec   :  { %6995 = vmatprep.subr.bf16.mxu0 %v14848_v61  ;;  %v14903_v61 = vld [vmem:[%s20871_s5 + $0x6a0] ss:$8 sps:$4 sm:$0xff]  }
0x10ee   :  { %6953 = vmatpush1.bf16.msra.mxu1 %v14843_v16  ;;  %v5373_v16 = vmax.f32 %v5298_v59, 0.0 }
0x10ef   :  { %6996 = vmatpush1.bf16.msra.mxu0 %v14846_v4  ;;  %6954 = vmatprep.subr.bf16.mxu1 %v14851_v39  ;;  %v5375_v4 = vmax.f32 %v5341_v62, 0.0  ;;  %v5357_v39 = vmax.f32 %v5294_v2, 0.0 }
0x10f0   :  { %6997 = vmatprep.subr.bf16.mxu0 %v14854_v21  ;;  %v5359_v21 = vmax.f32 %v5337_v3, 0.0 }
0x10f1   :  { %v5389_v20 = vpack.c.bf16 %v5373_v16, %v5357_v39 }
0x10f2   :  { %6955 = vmatpush1.bf16.msra.mxu1 %v14849_v46  ;;  %v5391_v49 = vpack.c.bf16 %v5375_v4, %v5359_v21 }
0x10f3   :  { %6998 = vmatpush1.bf16.msra.mxu0 %v14852_v35  ;;  %6956 = vmatprep.subr.bf16.mxu1 %v14857_v40 }
0x10f4   :  { %6999 = vmatprep.subr.bf16.mxu0 %v14860_v47 }
0x10f6   :  { %6957 = vmatpush1.bf16.msra.mxu1 %v14855_v30 }
0x10f7   :  { %7000 = vmatpush1.bf16.msra.mxu0 %v14858_v43  ;;  %6958 = vmatprep.subr.bf16.mxu1 %v14863_v56 }
0x10f8   :  { %7001 = vmatprep.subr.bf16.mxu0 %v14866_v45 }
0x10fa   :  { %6959 = vmatpush2.bf16.msra.mxu1 %v14861_v11 }
0x10fb   :  { %7002 = vmatpush2.bf16.msra.mxu0 %v14864_v32  ;;  %6960 = vmatprep.subr.bf16.mxu1 %v14869_v53  ;;  %v12366_v53 = vld [vmem:[%s20872_s3 + $0x103] ss:$8 sm:$0x3] }
0x10fc   :  { %7003 = vmatprep.subr.bf16.mxu0 %v14872_v57 }
0x10fe   :  { %6961 = vmatpush2.bf16.msra.mxu1 %v14867_v19 }
0x10ff   :  { %7004 = vmatpush2.bf16.msra.mxu0 %v14870_v58  ;;  %6962 = vmatprep.subr.bf16.mxu1 %v14875_v55  ;;  %v5397_v58 = vrot.slane %v12366_v53, %v16170_v33 }
0x1100   :  { %7005 = vmatprep.subr.bf16.mxu0 %v14878_v63  ;;  %v5401_v63 = vrot.slane %v12366_v53, %v16173_v34 }
0x1102   :  { %6963 = vmatpush2.bf16.msra.mxu1 %v14873_v1 }
0x1103   :  { %7006 = vmatpush2.bf16.msra.mxu0 %v14876_v5  ;;  %6964 = vmatprep.subr.bf16.mxu1 %v14881_v9 }
0x1104   :  { %7007 = vmatprep.subr.bf16.mxu0 %v14884_v10 }
0x1106   :  { %6965 = vmatpush2.bf16.msra.mxu1 %v14879_v13 }
0x1107   :  { %7008 = vmatpush2.bf16.msra.mxu0 %v14882_v14  ;;  %6966 = vmatprep.subr.bf16.mxu1 %v14887_v44 }
0x1108   :  { %7009 = vmatprep.subr.bf16.mxu0 %v14890_v24 }
0x110a   :  { %6967 = vmatpush2.bf16.msra.mxu1 %v14885_v25 }
0x110b   :  { %7010 = vmatpush2.bf16.msra.mxu0 %v14888_v31  ;;  %6968 = vmatprep.subr.bf16.mxu1 %v14893_v37 }
0x110c   :  { %7011 = vmatprep.subr.bf16.mxu0 %v14896_v26 }
0x110e   :  { %6969 = vmatpush2.bf16.msra.mxu1 %v14891_v51 }
0x110f   :  { %7012 = vmatpush2.bf16.msra.mxu0 %v14894_v36  ;;  %6970 = vmatprep.subr.bf16.mxu1 %v14899_v38 }
0x1110   :  { %7013 = vmatprep.subr.bf16.mxu0 %v14902_v41 }
0x1112   :  { %6971 = vmatpush2.bf16.msra.mxu1 %v14897_v60 }
0x1113   :  { %7014 = vmatpush2.bf16.msra.mxu0 %v14900_v29  ;;  %6972 = vmatprep.subr.bf16.mxu1 %v14905_v17 }
0x1114   :  { %7015 = vmatprep.subr.bf16.mxu0 %v14908_v48 }
0x1116   :  { %6973 = vmatpush2.bf16.msra.mxu1 %v14903_v61 }
0x1117   :  { %7016 = vmatpush2.bf16.msra.mxu0 %v14906_v7 }
0x1119   :  { %6975 = vmatmul.mubr.bf16.vlgmr.msra.gmra.mxu1 %v5389_v20  ;;  %v6718_v46 = vpop.f32.mrf.mxu1 }
0x111a   :  { %7018 = vmatmul.mubr.bf16.vlgmr.msra.gmra.mxu0 %v5391_v49  ;;  %v6761_v35 = vpop.f32.mrf.mxu0  ;;  %v6719_v5 = vadd.f32 %v6718_v46, %v5397_v58 }
0x111b   :  { %v6720_v40 = vpop.f32.mrf.mxu1 }
0x111c   :  { %v6763_v47 = vpop.f32.mrf.mxu0  ;;  %v6721_v10 = vadd.f32 %v6720_v40, %v5401_v63  ;;  %v6762_v44 = vadd.f32 %v6761_v35, %v6719_v5 }
0x111d   :  { %v6722_v30 = vpop.f32.mrf.mxu1 }
0x111e   :  { %v6765_v43 = vpop.f32.mrf.mxu0  ;;  %v6723_v24 = vadd.f32 %v6722_v30, %v5397_v58  ;;  %v6764_v31 = vadd.f32 %v6763_v47, %v6721_v10 }
0x111f   :  { %v6724_v56 = vpop.f32.mrf.mxu1 }
0x1120   :  { %v6767_v45 = vpop.f32.mrf.mxu0  ;;  %v6725_v37 = vadd.f32 %v6724_v56, %v5401_v63  ;;  %v6766_v36 = vadd.f32 %v6765_v43, %v6723_v24  ;;  %v14917_v24 = vld [vmem:[%s20875_s4 + $0x9fc] ss:$204 sps:$4 sm:$0xff]  }
0x1122   :  { %v6768_v42 = vadd.f32 %v6767_v45, %v6725_v37  ;;  %v14918_v37 = vld [vmem:[%s20875_s4 + $0xa00] ss:$204 sps:$4 sm:$0xff]  }
0x1159   :  { %v6804_v11 = vpop.f32.mrf.mxu1 }
0x115a   :  { %v6847_v32 = vpop.f32.mrf.mxu0  ;;  %v6805_v26 = vadd.f32 %v6804_v11, %v6762_v44  ;;  %v14911_v44 = vld [vmem:[%s20875_s4 + $0xb94] ss:$204 sps:$4 sm:$0xff]  }
0x115b   :  { %v6806_v57 = vpop.f32.mrf.mxu1  ;;  %7607 = vmatprep.subr.bf16.mxu1 %v14911_v44  ;;  %v14969_v44 = vld [vmem:[%s20875_s4 + $0x1520] ss:$204 sps:$4 sm:$0xff]  }
0x115c   :  { %v6849_v19 = vpop.f32.mrf.mxu0  ;;  %v6807_v38 = vadd.f32 %v6806_v57, %v6764_v31  ;;  %v6848_v50 = vadd.f32 %v6847_v32, %v6805_v26  ;;  %v14915_v31 = vld [vmem:[%s20875_s4 + $0x9f8] ss:$204 sps:$4 sm:$0xff]  }
0x115d   :  { %v6808_v55 = vpop.f32.mrf.mxu1  ;;  %v14923_v26 = vld [vmem:[%s20875_s4 + $0x864] ss:$204 sps:$4 sm:$0xff]  }
0x115e   :  { %v6851_v1 = vpop.f32.mrf.mxu0  ;;  %v6809_v60 = vadd.f32 %v6808_v55, %v6766_v36  ;;  %v6850_v29 = vadd.f32 %v6849_v19, %v6807_v38  ;;  %v14921_v36 = vld [vmem:[%s20875_s4 + $0x860] ss:$204 sps:$4 sm:$0xff]   ;;  %v14924_v38 = vld [vmem:[%s20875_s4 + $0x868] ss:$204 sps:$4 sm:$0xff]  }
0x115f   :  { %v6810_v9 = vpop.f32.mrf.mxu1 }
0x1160   :  { %v6853_v13 = vpop.f32.mrf.mxu0  ;;  %v6811_v17 = vadd.f32 %v6810_v9, %v6768_v42  ;;  %v6852_v2 = vadd.f32 %v6851_v1, %v6809_v60  ;;  %v14932_v42 = vld [vmem:[%s20875_s4 + $0x6d4] ss:$204 sps:$4 sm:$0xff]   ;;  %v14930_v60 = vld [vmem:[%s20875_s4 + $0x6d0] ss:$204 sps:$4 sm:$0xff]  }
0x1162   :  { %v6854_v16 = vadd.f32 %v6853_v13, %v6811_v17  ;;  %v14933_v17 = vld [vmem:[%s20875_s4 + $0x530] ss:$204 sps:$4 sm:$0xff]  }
0x1199   :  { %v6890_v14 = vpop.f32.mrf.mxu1 }
0x119a   :  { %v6933_v25 = vpop.f32.mrf.mxu0  ;;  %v6891_v62 = vadd.f32 %v6890_v14, %v6848_v50  ;;  %v14927_v50 = vld [vmem:[%s20875_s4 + $0x6c8] ss:$204 sps:$4 sm:$0xff]  }
0x119b   :  { %v6892_v51 = vpop.f32.mrf.mxu1 }
0x119c   :  { %v6935_v41 = vpop.f32.mrf.mxu0  ;;  %v6893_v3 = vadd.f32 %v6892_v51, %v6850_v29  ;;  %v6934_v7 = vadd.f32 %v6933_v25, %v6891_v62  ;;  %v14920_v25 = vld [vmem:[%s20875_s4 + $0xa04] ss:$204 sps:$4 sm:$0xff]   ;;  %v14926_v51 = vld [vmem:[%s20875_s4 + $0x86c] ss:$204 sps:$4 sm:$0xff]   ;;  %v14938_v29 = vld [vmem:[%s20875_s4 + $0x53c] ss:$204 sps:$4 sm:$0xff]  }
0x119d   :  { %v6894_v59 = vpop.f32.mrf.mxu1  ;;  %v14936_v62 = vld [vmem:[%s20875_s4 + $0x538] ss:$204 sps:$4 sm:$0xff]  }
0x119e   :  { %v6937_v48 = vpop.f32.mrf.mxu0  ;;  %v6895_v4 = vadd.f32 %v6894_v59, %v6852_v2  ;;  %v6936_v20 = vadd.f32 %v6935_v41, %v6893_v3  ;;  %v14929_v41 = vld [vmem:[%s20875_s4 + $0x6cc] ss:$204 sps:$4 sm:$0xff]   ;;  %v14935_v59 = vld [vmem:[%s20875_s4 + $0x534] ss:$204 sps:$4 sm:$0xff]   ;;  %v14944_v2 = vld [vmem:[%s20875_s4 + $0x3a4] ss:$204 sps:$4 sm:$0xff]  }
0x119f   :  { %v6896_v61 = vpop.f32.mrf.mxu1  ;;  %v14939_v3 = vld [vmem:[%s20875_s4 + $0x398] ss:$204 sps:$4 sm:$0xff]  }
0x11a0   :  { %v6939_v39 = vpop.f32.mrf.mxu0  ;;  %v6897_v49 = vadd.f32 %v6896_v61, %v6854_v16  ;;  %v6938_v47 = vadd.f32 %v6937_v48, %v6895_v4  ;;  %v14941_v48 = vld [vmem:[%s20875_s4 + $0x39c] ss:$204 sps:$4 sm:$0xff]   ;;  %v14942_v61 = vld [vmem:[%s20875_s4 + $0x3a0] ss:$204 sps:$4 sm:$0xff]   ;;  %v14947_v16 = vld [vmem:[%s20875_s4 + $0x204] ss:$204 sps:$4 sm:$0xff]  }
0x11a1   :  { %v14945_v4 = vld [vmem:[%s20875_s4 + $0x200] ss:$204 sps:$4 sm:$0xff]  }
0x11a2   :  { %v6940_v11 = vadd.f32 %v6939_v39, %v6897_v49  ;;  %v14948_v39 = vld [vmem:[%s20875_s4 + $0x208] ss:$204 sps:$4 sm:$0xff]  }
0x11a3   :  { %v14951_v49 = vld [vmem:[%s20875_s4 + $0x68] ss:$204 sps:$4 sm:$0xff]  }
0x11d9   :  { %v6976_v21 = vpop.f32.mrf.mxu1 }
0x11da   :  { %v6977_v46 = vadd.f32 %v6976_v21, %v6934_v7  ;;  %v7019_v35 = vpop.f32.mrf.mxu0  ;;  %v14950_v7 = vld [vmem:[%s20875_s4 + $0x20c] ss:$204 sps:$4 sm:$0xff]  }
0x11db   :  { %v6978_v40 = vpop.f32.mrf.mxu1  ;;  %v14953_v21 = vld [vmem:[%s20875_s4 + $0x6c] ss:$204 sps:$4 sm:$0xff]  }
0x11dc   :  { %v7020_v30 = vadd.f32 %v7019_v35, %v6977_v46  ;;  %v6979_v43 = vadd.f32 %v6978_v40, %v6936_v20  ;;  %v7021_v56 = vpop.f32.mrf.mxu0  ;;  %v14956_v20 = vld [vmem:[%s20875_s4 + $0x74] ss:$204 sps:$4 sm:$0xff]   ;;  %v14954_v46 = vld [vmem:[%s20875_s4 + $0x70] ss:$204 sps:$4 sm:$0xff]  }
0x11dd   :  { %v6980_v45 = vpop.f32.mrf.mxu1  ;;  %v14959_v35 = vld [vmem:[%s20875_s4 + $0x1854] ss:$204 sps:$4 sm:$0xff]   ;;  %v14962_v40 = vld [vmem:[%s20875_s4 + $0x185c] ss:$204 sps:$4 sm:$0xff]  }
0x11de   :  { %v7022_v32 = vadd.f32 %v7021_v56, %v6979_v43  ;;  %v6981_v53 = vadd.f32 %v6980_v45, %v6938_v47  ;;  %v7023_v57 = vpop.f32.mrf.mxu0  ;;  %v18499_v58 = vadd.f32 %v7020_v30, %v17021_v27  ;;  %v14957_v47 = vld [vmem:[%s20875_s4 + $0x1850] ss:$204 sps:$4 sm:$0xff]   ;;  %v14960_v30 = vld [vmem:[%s20875_s4 + $0x1858] ss:$204 sps:$4 sm:$0xff]  }
0x11df   :  { %v6982_v19 = vpop.f32.mrf.mxu1 }
0x11e0   :  { %v18502_v55 = vadd.f32 %v7022_v32, %v17023_v23  ;;  %v7024_v63 = vadd.f32 %v7023_v57, %v6981_v53  ;;  %v6983_v1 = vadd.f32 %v6982_v19, %v6940_v11  ;;  %v7025_v5 = vpop.f32.mrf.mxu0  ;;  %v14909_v23 = vld [vmem:[%s20875_s4 + $0xb90] ss:$204 sps:$4 sm:$0xff]  }
0x11e1   :  { %7608 = vmatpush1.bf16.msra.mxu1 %v14909_v23  ;;  %v14971_v23 = vld [vmem:[%s20875_s4 + $0x1524] ss:$204 sps:$4 sm:$0xff]  }
0x11e2   :  { %v7026_v9 = vadd.f32 %v7025_v5, %v6983_v1  ;;  %v7032_v10 = vadd.f32 %v18502_v55, %v18499_v58  ;;  %v18507_v13 = vadd.f32 %v7024_v63, %v17025_v52  ;;  %v14912_v52 = vld [vmem:[%s20875_s4 + $0xb98] ss:$204 sps:$4 sm:$0xff]   ;;  %7609 = vmatprep.subr.bf16.mxu1 %v14917_v24 }
0x11e3   :  { %v14977_v24 = vld [vmem:[%s20875_s4 + $0x138c] ss:$204 sps:$4 sm:$0xff]  }
0x11e4   :  { %v18510_v14 = vadd.f32 %v7026_v9, %v17027_v18  ;;  %7033 = vadd.xlane.f32.xlu0 %v7032_v10  ;;  %v14914_v18 = vld [vmem:[%s20875_s4 + $0xb9c] ss:$204 sps:$4 sm:$0xff]  }
0x11e5   :  { %7650 = vmatprep.subr.bf16.mxu0 %v14914_v18  ;;  %7610 = vmatpush1.bf16.msra.mxu1 %v14915_v31  ;;  %v14965_v10 = vld [vmem:[%s20875_s4 + $0x16bc] ss:$204 sps:$4 sm:$0xff]   ;;  %v14980_v31 = vld [vmem:[%s20875_s4 + $0x1394] ss:$204 sps:$4 sm:$0xff]  }
0x11e6   :  { %v7035_v27 = vadd.f32 %v18510_v14, %v18507_v13  ;;  %7651 = vmatpush1.bf16.msra.mxu0 %v14912_v52  ;;  %7611 = vmatprep.subr.bf16.mxu1 %v14923_v26  ;;  %v14974_v52 = vld [vmem:[%s20875_s4 + $0x152c] ss:$204 sps:$4 sm:$0xff]   ;;  %v14972_v18 = vld [vmem:[%s20875_s4 + $0x1528] ss:$204 sps:$4 sm:$0xff]  }
0x11e7   :  { %7652 = vmatprep.subr.bf16.mxu0 %v14920_v25  ;;  %v14975_v25 = vld [vmem:[%s20875_s4 + $0x1388] ss:$204 sps:$4 sm:$0xff]  }
0x11e8   :  { %7036 = vadd.xlane.f32.xlu0 %v7035_v27  ;;  %v14966_v27 = vld [vmem:[%s20875_s4 + $0x16c0] ss:$204 sps:$4 sm:$0xff]  }
0x11e9   :  { %7612 = vmatpush1.bf16.msra.mxu1 %v14921_v36  ;;  %v14983_v26 = vld [vmem:[%s20875_s4 + $0x11f4] ss:$204 sps:$4 sm:$0xff]   ;;  %v14981_v36 = vld [vmem:[%s20875_s4 + $0x11f0] ss:$204 sps:$4 sm:$0xff]  }
0x11ea   :  { %7653 = vmatpush1.bf16.msra.mxu0 %v14918_v37  ;;  %7613 = vmatprep.subr.bf16.mxu1 %v14929_v41  ;;  %v14978_v37 = vld [vmem:[%s20875_s4 + $0x1390] ss:$204 sps:$4 sm:$0xff]  }
0x11eb   :  { %7654 = vmatprep.subr.bf16.mxu0 %v14926_v51  ;;  %v14986_v51 = vld [vmem:[%s20875_s4 + $0x11fc] ss:$204 sps:$4 sm:$0xff]  }
0x11ec   :  { %v14989_v41 = vld [vmem:[%s20875_s4 + $0x105c] ss:$204 sps:$4 sm:$0xff]  }
0x11ed   :  { %7614 = vmatpush1.bf16.msra.mxu1 %v14927_v50  ;;  %v14987_v50 = vld [vmem:[%s20875_s4 + $0x1058] ss:$204 sps:$4 sm:$0xff]  }
0x11ee   :  { %7655 = vmatpush1.bf16.msra.mxu0 %v14924_v38  ;;  %7615 = vmatprep.subr.bf16.mxu1 %v14935_v59  ;;  %v14984_v38 = vld [vmem:[%s20875_s4 + $0x11f8] ss:$204 sps:$4 sm:$0xff]  }
0x11ef   :  { %7656 = vmatprep.subr.bf16.mxu0 %v14932_v42  ;;  %v14992_v42 = vld [vmem:[%s20875_s4 + $0x1064] ss:$204 sps:$4 sm:$0xff]  }
0x11f0   :  { %v14995_v59 = vld [vmem:[%s20875_s4 + $0xec4] ss:$204 sps:$4 sm:$0xff]  }
0x11f1   :  { %7616 = vmatpush1.bf16.msra.mxu1 %v14933_v17  ;;  %v14993_v17 = vld [vmem:[%s20875_s4 + $0xec0] ss:$204 sps:$4 sm:$0xff]  }
0x11f2   :  { %7657 = vmatpush1.bf16.msra.mxu0 %v14930_v60  ;;  %7617 = vmatprep.subr.bf16.mxu1 %v14941_v48  ;;  %v14990_v60 = vld [vmem:[%s20875_s4 + $0x1060] ss:$204 sps:$4 sm:$0xff]  }
0x11f3   :  { %7658 = vmatprep.subr.bf16.mxu0 %v14938_v29  ;;  %v14998_v29 = vld [vmem:[%s20875_s4 + $0xecc] ss:$204 sps:$4 sm:$0xff]  }
0x11f4   :  { %v15001_v48 = vld [vmem:[%s20875_s4 + $0xd2c] ss:$204 sps:$4 sm:$0xff]  }
0x11f5   :  { %7618 = vmatpush1.bf16.msra.mxu1 %v14939_v3  ;;  %v14999_v3 = vld [vmem:[%s20875_s4 + $0xd28] ss:$204 sps:$4 sm:$0xff]  }
0x11f6   :  { %7659 = vmatpush1.bf16.msra.mxu0 %v14936_v62  ;;  %7619 = vmatprep.subr.bf16.mxu1 %v14947_v16  ;;  %v14996_v62 = vld [vmem:[%s20875_s4 + $0xec8] ss:$204 sps:$4 sm:$0xff]   ;;  %v15007_v16 = vld [vmem:[%s20875_s4 + $0xba4] ss:$204 sps:$4 sm:$0xff]  }
0x11f7   :  { %7660 = vmatprep.subr.bf16.mxu0 %v14944_v2  ;;  %v15004_v2 = vld [vmem:[%s20875_s4 + $0xd34] ss:$204 sps:$4 sm:$0xff]  }
0x11f9   :  { %7620 = vmatpush1.bf16.msra.mxu1 %v14945_v4 }
0x11fa   :  { %7661 = vmatpush1.bf16.msra.mxu0 %v14942_v61  ;;  %7621 = vmatprep.subr.bf16.mxu1 %v14953_v21  ;;  %v15002_v61 = vld [vmem:[%s20875_s4 + $0xd30] ss:$204 sps:$4 sm:$0xff]  }
0x11fb   :  { %7662 = vmatprep.subr.bf16.mxu0 %v14950_v7 }
0x11fd   :  { %7622 = vmatpush1.bf16.msra.mxu1 %v14951_v49 }
0x11fe   :  { %7663 = vmatpush1.bf16.msra.mxu0 %v14948_v39  ;;  %7623 = vmatprep.subr.bf16.mxu1 %v14959_v35 }
0x11ff   :  { %7664 = vmatprep.subr.bf16.mxu0 %v14956_v20 }
0x1201   :  { %7624 = vmatpush2.bf16.msra.mxu1 %v14957_v47 }
0x1202   :  { %7665 = vmatpush1.bf16.msra.mxu0 %v14954_v46  ;;  %7625 = vmatprep.subr.bf16.mxu1 %v14965_v10  ;;  %v12360_v46 = vld [vmem:[%s20872_s3 + $0x100] ss:$8 sm:$0x3] }
0x1203   :  { %7666 = vmatprep.subr.bf16.mxu0 %v14962_v40  ;;  %v12361_v40 = vld [vmem:[%s20872_s3 + $0x101] ss:$8 sm:$0x3] }
0x1206   :  { %7667 = vmatpush2.bf16.msra.mxu0 %v14960_v30  ;;  %v7068_v30 = vrot.slane %v12360_v46, %v16170_v33 }
0x126d   :  { %v7034_v43 = vpop.xlane.xlu0 %7033 }
0x126e   :  { %v7038_v56 = vmul.f32 0.00390625, %v7034_v43  ;;  %v7072_v43 = vrot.slane %v12360_v46, %v16173_v34  ;;  %v12368_v46 = vld [vmem:[%s20872_s3 + $0x104] ss:$8 sm:$0x30] }
0x1270   :  { %v18623_v45 = vsub.f32 %v18499_v58, %v7038_v56  ;;  %v18626_v11 = vsub.f32 %v18502_v55, %v7038_v56 }
0x1271   :  { %v7037_v32 = vpop.xlane.xlu0 %7036 }
0x1272   :  { %v7039_v53 = vmul.f32 0.00390625, %v7037_v32  ;;  %v7044_v57 = vmul.f32 %v18623_v45, %v18623_v45  ;;  %v7045_v19 = vmul.f32 %v18626_v11, %v18626_v11 }
0x1274   :  { %v18633_v63 = vsub.f32 %v18507_v13, %v7039_v53  ;;  %v18636_v1 = vsub.f32 %v18510_v14, %v7039_v53  ;;  %v7048_v5 = vadd.f32 %v7045_v19, %v7044_v57  ;;  %v14963_v13 = vld [vmem:[%s20875_s4 + $0x16b8] ss:$204 sps:$4 sm:$0xff]   ;;  %v7083_v53 = vrot.slane %v12361_v40, %v16170_v33 }
0x1275   :  { %v14968_v14 = vld [vmem:[%s20875_s4 + $0x16c4] ss:$204 sps:$4 sm:$0xff]   ;;  %7626 = vmatpush2.bf16.msra.mxu1 %v14963_v13  ;;  %v7087_v57 = vrot.slane %v12361_v40, %v16173_v34 }
0x1276   :  { %7049 = vadd.xlane.f32.xlu0 %v7048_v5  ;;  %v7046_v58 = vmul.f32 %v18633_v63, %v18633_v63  ;;  %v7047_v55 = vmul.f32 %v18636_v1, %v18636_v1  ;;  %7668 = vmatprep.subr.bf16.mxu0 %v14968_v14 }
0x1277   :  { %7669 = vmatpush2.bf16.msra.mxu0 %v14966_v27  ;;  %7627 = vmatprep.subr.bf16.mxu1 %v14971_v23  ;;  %v15010_v23 = vld [vmem:[%s20875_s4 + $0xa0c] ss:$204 sps:$4 sm:$0xff]  }
0x1278   :  { %v7051_v9 = vadd.f32 %v7047_v55, %v7046_v58  ;;  %7670 = vmatprep.subr.bf16.mxu0 %v14974_v52  ;;  %v15013_v52 = vld [vmem:[%s20875_s4 + $0x874] ss:$204 sps:$4 sm:$0xff]  }
0x1279   :  { %7628 = vmatpush2.bf16.msra.mxu1 %v14969_v44  ;;  %v15008_v44 = vld [vmem:[%s20875_s4 + $0xa08] ss:$204 sps:$4 sm:$0xff]  }
0x127a   :  { %7052 = vadd.xlane.f32.xlu0 %v7051_v9  ;;  %7629 = vmatprep.subr.bf16.mxu1 %v14977_v24  ;;  %v15016_v24 = vld [vmem:[%s20875_s4 + $0x6dc] ss:$204 sps:$4 sm:$0xff]  }
0x127b   :  { %7671 = vmatpush2.bf16.msra.mxu0 %v14972_v18  ;;  %v15011_v18 = vld [vmem:[%s20875_s4 + $0x870] ss:$204 sps:$4 sm:$0xff]  }
0x127c   :  { %7672 = vmatprep.subr.bf16.mxu0 %v14980_v31  ;;  %v15019_v31 = vld [vmem:[%s20875_s4 + $0x544] ss:$204 sps:$4 sm:$0xff]  }
0x127d   :  { %7630 = vmatpush2.bf16.msra.mxu1 %v14975_v25  ;;  %v15014_v25 = vld [vmem:[%s20875_s4 + $0x6d8] ss:$204 sps:$4 sm:$0xff]  }
0x127e   :  { %7631 = vmatprep.subr.bf16.mxu1 %v14983_v26  ;;  %v15022_v26 = vld [vmem:[%s20875_s4 + $0x3ac] ss:$204 sps:$4 sm:$0xff]  }
0x127f   :  { %7673 = vmatpush2.bf16.msra.mxu0 %v14978_v37  ;;  %v15017_v37 = vld [vmem:[%s20875_s4 + $0x540] ss:$204 sps:$4 sm:$0xff]  }
0x1280   :  { %7674 = vmatprep.subr.bf16.mxu0 %v14986_v51  ;;  %v15020_v51 = vld [vmem:[%s20875_s4 + $0x3a8] ss:$204 sps:$4 sm:$0xff]  }
0x1281   :  { %7632 = vmatpush2.bf16.msra.mxu1 %v14981_v36  ;;  %v15025_v36 = vld [vmem:[%s20875_s4 + $0x214] ss:$204 sps:$4 sm:$0xff]  }
0x1282   :  { %7633 = vmatprep.subr.bf16.mxu1 %v14989_v41  ;;  %v15028_v41 = vld [vmem:[%s20875_s4 + $0x7c] ss:$204 sps:$4 sm:$0xff]  }
0x1283   :  { %7675 = vmatpush2.bf16.msra.mxu0 %v14984_v38  ;;  %v15023_v38 = vld [vmem:[%s20875_s4 + $0x210] ss:$204 sps:$4 sm:$0xff]  }
0x1284   :  { %7676 = vmatprep.subr.bf16.mxu0 %v14992_v42  ;;  %v15026_v42 = vld [vmem:[%s20875_s4 + $0x78] ss:$204 sps:$4 sm:$0xff]  }
0x1285   :  { %7634 = vmatpush2.bf16.msra.mxu1 %v14987_v50  ;;  %v15031_v50 = vld [vmem:[%s20875_s4 + $0x1864] ss:$204 sps:$4 sm:$0xff]  }
0x1286   :  { %7635 = vmatprep.subr.bf16.mxu1 %v14995_v59  ;;  %v15034_v59 = vld [vmem:[%s20875_s4 + $0x16cc] ss:$204 sps:$4 sm:$0xff]  }
0x1287   :  { %7677 = vmatpush2.bf16.msra.mxu0 %v14990_v60  ;;  %v15029_v60 = vld [vmem:[%s20875_s4 + $0x1860] ss:$204 sps:$4 sm:$0xff]  }
0x1288   :  { %7678 = vmatprep.subr.bf16.mxu0 %v14998_v29  ;;  %v15032_v29 = vld [vmem:[%s20875_s4 + $0x16c8] ss:$204 sps:$4 sm:$0xff]  }
0x1289   :  { %7636 = vmatpush2.bf16.msra.mxu1 %v14993_v17  ;;  %v15037_v17 = vld [vmem:[%s20875_s4 + $0x1534] ss:$204 sps:$4 sm:$0xff]  }
0x128a   :  { %7637 = vmatprep.subr.bf16.mxu1 %v15001_v48  ;;  %v15040_v48 = vld [vmem:[%s20875_s4 + $0x139c] ss:$204 sps:$4 sm:$0xff]  }
0x128b   :  { %7679 = vmatpush2.bf16.msra.mxu0 %v14996_v62  ;;  %v15035_v62 = vld [vmem:[%s20875_s4 + $0x1530] ss:$204 sps:$4 sm:$0xff]  }
0x128c   :  { %7680 = vmatprep.subr.bf16.mxu0 %v15004_v2  ;;  %v15038_v2 = vld [vmem:[%s20875_s4 + $0x1398] ss:$204 sps:$4 sm:$0xff]  }
0x128d   :  { %7638 = vmatpush2.bf16.msra.mxu1 %v14999_v3  ;;  %v15043_v3 = vld [vmem:[%s20875_s4 + $0x1204] ss:$204 sps:$4 sm:$0xff]  }
0x128e   :  { %7693 = vmatprep.subr.bf16.mxu1 %v15007_v16  ;;  %v15046_v16 = vld [vmem:[%s20875_s4 + $0x106c] ss:$204 sps:$4 sm:$0xff]  }
0x128f   :  { %7681 = vmatpush2.bf16.msra.mxu0 %v15002_v61  ;;  %v15041_v61 = vld [vmem:[%s20875_s4 + $0x1200] ss:$204 sps:$4 sm:$0xff]  }
0x1290   :  { %13841 = vmatprep.subr.bf16.mxu0 %v15981_v8 }
0x12ff   :  { %v7050_v7 = vpop.xlane.xlu0 %7049 }
0x1300   :  { %v7054_v4 = vmul.f32 0.00390625, %v7050_v7  ;;  %v15044_v7 = vld [vmem:[%s20875_s4 + $0x1068] ss:$204 sps:$4 sm:$0xff]  }
0x1302   :  { %v7056_v39 = vadd.f32 1e-05, %v7054_v4  ;;  %v15049_v4 = vld [vmem:[%s20875_s4 + $0xed4] ss:$204 sps:$4 sm:$0xff]  }
0x1303   :  { %v7053_v21 = vpop.xlane.xlu0 %7052 }
0x1304   :  { %15931 = vrsqrt.f32 %v7056_v39  ;;  %v7055_v20 = vmul.f32 0.00390625, %v7053_v21  ;;  %v15047_v39 = vld [vmem:[%s20875_s4 + $0xed0] ss:$204 sps:$4 sm:$0xff]  }
0x1305   :  { %v15052_v21 = vld [vmem:[%s20875_s4 + $0xd3c] ss:$204 sps:$4 sm:$0xff]  }
0x1306   :  { %v7057_v49 = vadd.f32 1e-05, %v7055_v20  ;;  %v15050_v20 = vld [vmem:[%s20875_s4 + $0xd38] ss:$204 sps:$4 sm:$0xff]  }
0x1308   :  { %15933 = vrsqrt.f32 %v7057_v49  ;;  %v12367_v49 = vld [vmem:[%s20872_s3 + $0x104] ss:$8 sm:$0xf] }
0x1311   :  { %v15932_v35 = vpop.eup %15931 }
0x1312   :  { %v7061_v47 = vmul.f32 %v15932_v35, %v18626_v11  ;;  %v7060_v56 = vmul.f32 %v15932_v35, %v18623_v45  ;;  %v71_v35 = vor.u32 %v12368_v46, %v12367_v49 }
0x1314   :  { %v7076_v5 = vmul.f32 %v7072_v43, %v7061_v47  ;;  %v7075_v55 = vmul.f32 %v7068_v30, %v7060_v56 }
0x1315   :  { %v15934_v32 = vpop.eup %15933 }
0x1316   :  { %v7063_v19 = vmul.f32 %v15934_v32, %v18636_v1  ;;  %v7062_v58 = vmul.f32 %v15934_v32, %v18633_v63  ;;  %v18744_v11 = vadd.f32 %v7087_v57, %v7076_v5  ;;  %v18748_v14 = vadd.f32 %v7083_v53, %v7075_v55  ;;  %v15005_v1 = vld [vmem:[%s20875_s4 + $0xba0] ss:$204 sps:$4 sm:$0xff]  }
0x1317   :  { %v7112_v32 = vrot.slane %v71_v35, %v16583_v22 }
0x1318   :  { %v7078_v9 = vmul.f32 %v7072_v43, %v7063_v19  ;;  %v7077_v10 = vmul.f32 %v7068_v30, %v7062_v58  ;;  %v7108_v30 = vrot.slane %v71_v35, %v16542_v12 }
0x131a   :  { %v18746_v13 = vadd.f32 %v7087_v57, %v7078_v9  ;;  %v18750_v45 = vadd.f32 %v7083_v53, %v7077_v10 }
0x131c   :  { %v7095_v27 = vpack.c.bf16 %v18746_v13, %v18744_v11  ;;  %v18759_v63 = vpack.c.bf16 %v18750_v45, %v18748_v14 }
0x131e   :  { %7639 = vmatprep.mubr.bf16.mxu1 %v7095_v27  ;;  %7682 = vmatprep.mubr.bf16.mxu0 %v7095_v27 }
0x131f   :  { %7640 = vmatmul.mubr.bf16.vlgmr.msra.gmra.mxu1 %v18759_v63  ;;  %7683 = vmatmul.mubr.bf16.vlgmr.msra.gmra.mxu0 %v18759_v63 }
0x1320   :  { %7694 = vmatpush1.bf16.msra.mxu1 %v15005_v1  ;;  %7725 = vmatprep.mubr.bf16.mxu1 %v7095_v27  ;;  %v7100_v27 = vrot.slane %v71_v35, %v16170_v33 }
0x1321   :  { %7695 = vmatprep.subr.bf16.mxu1 %v15010_v23  ;;  %13843 = vmatprep.mubr.msk.bf16.mxu0 %vm15982_vm10, %v15981_v8 }
0x1324   :  { %7696 = vmatpush1.bf16.msra.mxu1 %v15008_v44  ;;  %v7104_v44 = vrot.slane %v71_v35, %v16173_v34 }
0x1325   :  { %7697 = vmatprep.subr.bf16.mxu1 %v15013_v52 }
0x1328   :  { %7698 = vmatpush1.bf16.msra.mxu1 %v15011_v18 }
0x1329   :  { %7699 = vmatprep.subr.bf16.mxu1 %v15016_v24 }
0x132c   :  { %7700 = vmatpush1.bf16.msra.mxu1 %v15014_v25 }
0x132d   :  { %7701 = vmatprep.subr.bf16.mxu1 %v15019_v31 }
0x1330   :  { %7702 = vmatpush1.bf16.msra.mxu1 %v15017_v37 }
0x1331   :  { %7703 = vmatprep.subr.bf16.mxu1 %v15022_v26 }
0x1334   :  { %7704 = vmatpush1.bf16.msra.mxu1 %v15020_v51 }
0x1335   :  { %7705 = vmatprep.subr.bf16.mxu1 %v15025_v36  ;;  %v7116_v36 = vrot.slane %v71_v35, %v16560_v28 }
0x1338   :  { %7706 = vmatpush1.bf16.msra.mxu1 %v15023_v38 }
0x1339   :  { %7707 = vmatprep.subr.bf16.mxu1 %v15028_v41  ;;  %v7120_v41 = vrot.slane %v71_v35, %v16649_v6 }
0x133c   :  { %7708 = vmatpush1.bf16.msra.mxu1 %v15026_v42 }
0x133d   :  { %7709 = vmatprep.subr.bf16.mxu1 %v15031_v50 }
0x1340   :  { %7710 = vmatpush2.bf16.msra.mxu1 %v15029_v60 }
0x1341   :  { %7711 = vmatprep.subr.bf16.mxu1 %v15034_v59 }
0x1344   :  { %7712 = vmatpush2.bf16.msra.mxu1 %v15032_v29 }
0x1345   :  { %7713 = vmatprep.subr.bf16.mxu1 %v15037_v17 }
0x1348   :  { %7714 = vmatpush2.bf16.msra.mxu1 %v15035_v62 }
0x1349   :  { %7715 = vmatprep.subr.bf16.mxu1 %v15040_v48 }
0x134c   :  { %7716 = vmatpush2.bf16.msra.mxu1 %v15038_v2 }
0x134d   :  { %7717 = vmatprep.subr.bf16.mxu1 %v15043_v3 }
0x1350   :  { %7718 = vmatpush2.bf16.msra.mxu1 %v15041_v61 }
0x1351   :  { %7719 = vmatprep.subr.bf16.mxu1 %v15046_v16 }
0x1354   :  { %7720 = vmatpush2.bf16.msra.mxu1 %v15044_v7 }
0x1355   :  { %7721 = vmatprep.subr.bf16.mxu1 %v15049_v4 }
0x1358   :  { %7722 = vmatpush2.bf16.msra.mxu1 %v15047_v39 }
0x1359   :  { %7723 = vmatprep.subr.bf16.mxu1 %v15052_v21 }
0x135c   :  { %7724 = vmatpush2.bf16.msra.mxu1 %v15050_v20 }
0x135d   :  { %13865 = vmatprep.subr.bf16.mxu1 %v15981_v8 }
0x135f   :  { %7726 = vmatmul.mubr.bf16.vlgmr.msra.gmra.mxu1 %v18759_v63 }
0x1360   :  { %13867 = vmatprep.mubr.msk.bf16.mxu1 %vm15982_vm10, %v15981_v8 }
0x13df   :  { %v7641_v40 = vpop.f32.mrf.mxu1  ;;  %v7684_v47 = vpop.f32.mrf.mxu0 }
0x13e0   :  { %v7685_v57 = vadd.f32 %v7684_v47, %v7108_v30  ;;  %v7642_v24 = vadd.f32 %v7641_v40, %v7100_v27 }
0x13e1   :  { %v7643_v43 = vpop.f32.mrf.mxu1  ;;  %v7686_v56 = vpop.f32.mrf.mxu0 }
0x13e2   :  { %v7687_v55 = vadd.f32 %v7686_v56, %v7112_v32  ;;  %v7644_v31 = vadd.f32 %v7643_v43, %v7104_v44 }
0x13e3   :  { %v7688_v53 = vpop.f32.mrf.mxu0  ;;  %v7645_v5 = vpop.f32.mrf.mxu1 }
0x13e4   :  { %v7689_v19 = vadd.f32 %v7688_v53, %v7108_v30  ;;  %v7646_v52 = vadd.f32 %v7645_v5, %v7100_v27 }
0x13e5   :  { %v7690_v58 = vpop.f32.mrf.mxu0  ;;  %v7647_v23 = vpop.f32.mrf.mxu1 }
0x13e6   :  { %v18867_v9 = vpack.c.bf16 %v7689_v19, %v7685_v57  ;;  %v7691_v10 = vadd.f32 %v7690_v58, %v7112_v32  ;;  %v7648_v25 = vadd.f32 %v7647_v23, %v7104_v44  ;;  %v7736_v37 = vpack.c.bf16 %v7646_v52, %v7642_v24 }
0x13e8   :  { %v18870_v1 = vpack.c.bf16 %v7691_v10, %v7687_v55  ;;  %v7743_v63 = vsel %vm2719_vm11, %v18867_v9, 0  ;;  %v18879_v26 = vpack.c.bf16 %v7648_v25, %v7644_v31 }
0x13e9   :  { %13842 = vmatpush3.bf16.xpose.msra.mxu0 %v7743_v63 }
0x13ea   :  { %v8158_v18 = vsel %vm2719_vm11, %v18870_v1, 0  ;;  %13847 = vmatprep.subr.bf16.mxu0 %v15981_v8 }
0x13eb   :  { %13866 = vmatpush3.bf16.xpose.msra.mxu1 %v8158_v18 }
0x13ec   :  { %13871 = vmatprep.subr.bf16.mxu1 %v15981_v8 }
0x13f0   :  { %13844 = vmatmul.mubr.msk.bf16.vlgmr.msra.gmra.mxu0 %vm2719_vm11, %v7736_v37 }
0x13f1   :  { %13849 = vmatprep.mubr.msk.bf16.mxu0 %vm15982_vm10, %v15981_v8 }
0x13f2   :  { %13868 = vmatmul.mubr.msk.bf16.vlgmr.msra.gmra.mxu1 %vm2719_vm11, %v18879_v26 }
0x13f3   :  { %13873 = vmatprep.mubr.msk.bf16.mxu1 %vm15982_vm10, %v15981_v8 }
0x141f   :  { %v7727_v51 = vpop.f32.mrf.mxu1 }
0x1420   :  { %v7728_v50 = vadd.f32 %v7727_v51, %v7116_v36 }
0x1421   :  { %v7729_v38 = vpop.f32.mrf.mxu1 }
0x1422   :  { %v7730_v29 = vadd.f32 %v7729_v38, %v7120_v41 }
0x1423   :  { %v7731_v42 = vpop.f32.mrf.mxu1 }
0x1424   :  { %v7732_v60 = vadd.f32 %v7731_v42, %v7116_v36 }
0x1425   :  { %v7733_v59 = vpop.f32.mrf.mxu1 }
0x1426   :  { %v18890_v17 = vpack.c.bf16 %v7732_v60, %v7728_v50  ;;  %v7734_v62 = vadd.f32 %v7733_v59, %v7120_v41 }
0x1428   :  { %v18892_v48 = vpack.c.bf16 %v7734_v62, %v7730_v29  ;;  %13848 = vmatpush3.bf16.msra.mxu0 %v18890_v17 }
0x1429   :  { %13853 = vmatprep.subr.bf16.mxu0 %v15981_v8 }
0x142a   :  { %13872 = vmatpush3.bf16.msra.mxu1 %v18892_v48 }
0x142b   :  { %13877 = vmatprep.subr.bf16.mxu1 %v15981_v8 }
0x14b0   :  { %v7779_v2 = vpop.f32.mrf.mxu0 }
0x14b1   :  { %v7786_v3 = vsel %vm1582_vm1, %v7779_v2, -inf }
0x14b2   :  { %v8194_v61 = vpop.f32.mrf.mxu1  ;;  %7787 = vmax.xlane.f32.xlu0 %v7786_v3  ;;  %v13845_v16 = vpop.f32.mrf.mxu0 }
0x14b3   :  { %v8201_v46 = vsel %vm1582_vm1, %v8194_v61, -inf }
0x14b4   :  { %v7782_v7 = vpop.f32.mrf.mxu0  ;;  %v13869_v4 = vpop.f32.mrf.mxu1 }
0x14b5   :  { %v7789_v39 = vsel %vm1582_vm1, %v7782_v7, -inf }
0x14b6   :  { %v8197_v21 = vpop.f32.mrf.mxu1  ;;  %7790 = vmax.xlane.f32.xlu0 %v7789_v39  ;;  %v13846_v20 = vpop.f32.mrf.mxu0 }
0x14b7   :  { %v8204_v35 = vsel %vm1582_vm1, %v8197_v21, -inf }
0x14b8   :  { %v13870_v49 = vpop.f32.mrf.mxu1 }
0x14ba   :  { %8202 = vmax.xlane.f32.xlu0 %v8201_v46 }
0x14be   :  { %8205 = vmax.xlane.f32.xlu0 %v8204_v35 }
0x153b   :  { %v7788_v40 = vpop.xlane.xlu0 %7787 }
0x153c   :  { %v7792_v47 = vsub.f32 %v7779_v2, %v7788_v40 }
0x153e   :  { %v7794_v30 = vmul.f32 1.442695, %v7792_v47 }
0x153f   :  { %v7791_v43 = vpop.xlane.xlu0 %7790 }
0x1540   :  { %15935 = vpow2.f32 %v7794_v30  ;;  %v7793_v56 = vsub.f32 %v7782_v7, %v7791_v43 }
0x1542   :  { %v7796_v32 = vmul.f32 1.442695, %v7793_v56 }
0x1543   :  { %v8203_v58 = vpop.xlane.xlu0 %8202 }
0x1544   :  { %15937 = vpow2.f32 %v7796_v32  ;;  %v8207_v27 = vsub.f32 %v8194_v61, %v8203_v58 }
0x1546   :  { %v8209_v23 = vmul.f32 1.442695, %v8207_v27 }
0x1547   :  { %v8206_v55 = vpop.xlane.xlu0 %8205 }
0x1548   :  { %v8208_v10 = vsub.f32 %v8197_v21, %v8206_v55 }
0x154a   :  { %v8211_v63 = vmul.f32 1.442695, %v8208_v10 }
0x154c   :  { %15939 = vpow2.f32 %v8211_v63 }
0x154d   :  { %v15936_v53 = vpop.eup %15935  ;;  %15941 = vpow2.f32 %v8209_v23 }
0x154e   :  { %v7798_v57 = vsel %vm1582_vm1, %v15936_v53, 0.0 }
0x154f   :  { %7799 = vadd.xlane.f32.xlu0 %v7798_v57 }
0x1551   :  { %v15938_v19 = vpop.eup %15937 }
0x1552   :  { %v7801_v5 = vsel %vm1582_vm1, %v15938_v19, 0.0 }
0x1553   :  { %7802 = vadd.xlane.f32.xlu1 %v7801_v5 }
0x1559   :  { %v15940_v44 = vpop.eup %15939 }
0x155a   :  { %v8216_v52 = vsel %vm1582_vm1, %v15940_v44, 0.0  ;;  %v15942_v18 = vpop.eup %15941 }
0x155b   :  { %v8213_v24 = vsel %vm1582_vm1, %v15942_v18, 0.0 }
0x1564   :  { %7855 = vrot.lane.b32.xlu1 %v7736_v37, %s15983_s27 }
0x1565   :  { %7858 = vrot.lane.b32.xlu0 %v18867_v9, %s15983_s27 }
0x1584   :  { %8217 = vadd.xlane.f32.xlu0 %v8216_v52 }
0x1588   :  { %8214 = vadd.xlane.f32.xlu1 %v8213_v24 }
0x1599   :  { %8360 = vrot.lane.b32.xlu1 %v18879_v26, %s15983_s27 }
0x159a   :  { %8363 = vrot.lane.b32.xlu0 %v18870_v1, %s15983_s27 }
0x15d8   :  { %v7800_v9 = vpop.xlane.xlu0 %7799 }
0x15d9   :  { %15943 = vrcp.f32 %v7800_v9 }
0x15dc   :  { %v7803_v25 = vpop.xlane.xlu1 %7802  ;;  %v7859_v38 = vpop.permute.xlu0 %7858 }
0x15dd   :  { %15945 = vrcp.f32 %v7803_v25  ;;  %v7864_v42 = vsel %vm2719_vm11, %v7859_v38, 0 }
0x15e0   :  { %v7856_v1 = vpop.permute.xlu1 %7855 }
0x15e6   :  { %v15944_v31 = vpop.eup %15943 }
0x15e7   :  { %v7806_v51 = vmul.f32 %v15944_v31, %v15936_v53 }
0x15ea   :  { %v15946_v37 = vpop.eup %15945 }
0x15eb   :  { %v7807_v36 = vmul.f32 %v15946_v37, %v15938_v19 }
0x15ed   :  { %v7808_v41 = vpack.c.bf16 %v7807_v36, %v7806_v51 }
0x15ef   :  { %13850 = vmatmul.mubr.msk.bf16.vlgmr.msra.gmra.mxu0 %vm1582_vm1, %v7808_v41 }
0x15f0   :  { %13854 = vmatpush3.bf16.xpose.msra.mxu0 %v7864_v42  ;;  %13855 = vmatprep.mubr.msk.bf16.mxu0 %vm15982_vm10, %v15981_v8 }
0x15f1   :  { %13859 = vmatprep.subr.bf16.mxu0 %v15981_v8 }
0x15f7   :  { %13856 = vmatmul.mubr.msk.bf16.vlgmr.msra.gmra.mxu0 %vm2719_vm11, %v7856_v1 }
0x15f8   :  { %13861 = vmatprep.mubr.msk.bf16.mxu0 %vm15982_vm10, %v15981_v8 }
0x160d   :  { %v8218_v26 = vpop.xlane.xlu0 %8217 }
0x160e   :  { %15947 = vrcp.f32 %v8218_v26 }
0x1611   :  { %v8215_v50 = vpop.xlane.xlu1 %8214  ;;  %v8364_v2 = vpop.permute.xlu0 %8363 }
0x1612   :  { %15949 = vrcp.f32 %v8215_v50  ;;  %v8369_v61 = vsel %vm2719_vm11, %v8364_v2, 0 }
0x1615   :  { %v8361_v16 = vpop.permute.xlu1 %8360 }
0x161b   :  { %v15948_v60 = vpop.eup %15947 }
0x161c   :  { %v8222_v62 = vmul.f32 %v15948_v60, %v15940_v44 }
0x161f   :  { %v15950_v59 = vpop.eup %15949 }
0x1620   :  { %v8221_v29 = vmul.f32 %v15950_v59, %v15942_v18  ;;  %v15055_v59 = vld [vmem:[%s20875_s4 + $0xbac] ss:$204 sps:$4 sm:$0xff]  }
0x1622   :  { %v8223_v3 = vpack.c.bf16 %v8222_v62, %v8221_v29 }
0x1624   :  { %13874 = vmatmul.mubr.msk.bf16.vlgmr.msra.gmra.mxu1 %vm1582_vm1, %v8223_v3 }
0x1625   :  { %13878 = vmatpush3.bf16.xpose.msra.mxu1 %v8369_v61  ;;  %13879 = vmatprep.mubr.msk.bf16.mxu1 %vm15982_vm10, %v15981_v8 }
0x1626   :  { %13883 = vmatprep.subr.bf16.mxu1 %v15981_v8 }
0x162c   :  { %13880 = vmatmul.mubr.msk.bf16.vlgmr.msra.gmra.mxu1 %vm2719_vm11, %v8361_v16 }
0x162d   :  { %13885 = vmatprep.mubr.msk.bf16.mxu1 %vm15982_vm10, %v15981_v8 }
0x16af   :  { %v18929_v7 = vpop.f32.mrf.mxu0 }
0x16b1   :  { %v13851_v4 = vpop.f32.mrf.mxu0 }
0x16b2   :  { %v15053_v4 = vld [vmem:[%s20875_s4 + $0xba8] ss:$204 sps:$4 sm:$0xff]  }
0x16b3   :  { %v18931_v39 = vpop.f32.mrf.mxu0 }
0x16b4   :  { %v7853_v21 = vpack.c.bf16 %v18931_v39, %v18929_v7  ;;  %v15088_v7 = vld [vmem:[%s20875_s4 + $0xd44] ss:$204 sps:$4 sm:$0xff]   ;;  %v15086_v39 = vld [vmem:[%s20875_s4 + $0xd40] ss:$204 sps:$4 sm:$0xff]  }
0x16b5   :  { %v13852_v20 = vpop.f32.mrf.mxu0 }
0x16b6   :  { %v15058_v20 = vld [vmem:[%s20875_s4 + $0xa14] ss:$204 sps:$4 sm:$0xff]  }
0x16b7   :  { %v7900_v49 = vpop.f32.mrf.mxu0 }
0x16b8   :  { %v7907_v46 = vsel %vm1582_vm1, %v7900_v49, -inf }
0x16b9   :  { %7908 = vmax.xlane.f32.xlu1 %v7907_v46  ;;  %v13857_v35 = vpop.f32.mrf.mxu0  ;;  %v15061_v46 = vld [vmem:[%s20875_s4 + $0x87c] ss:$204 sps:$4 sm:$0xff]  }
0x16ba   :  { %v15059_v35 = vld [vmem:[%s20875_s4 + $0x878] ss:$204 sps:$4 sm:$0xff]  }
0x16bb   :  { %v7903_v40 = vpop.f32.mrf.mxu0 }
0x16bc   :  { %v7910_v47 = vsel %vm1582_vm1, %v7903_v40, -inf }
0x16bd   :  { %7911 = vmax.xlane.f32.xlu0 %v7910_v47  ;;  %v13858_v30 = vpop.f32.mrf.mxu0 }
0x16e4   :  { %v18937_v8 = vpop.f32.mrf.mxu1 }
0x16e6   :  { %v13875_v43 = vpop.f32.mrf.mxu1 }
0x16e8   :  { %v18939_v56 = vpop.f32.mrf.mxu1 }
0x16e9   :  { %v8268_v32 = vpack.c.bf16 %v18939_v56, %v18937_v8  ;;  %v15100_v8 = vld [vmem:[%s20875_s4 + $0x13a4] ss:$204 sps:$4 sm:$0xff]  }
0x16ea   :  { %v13876_v53 = vpop.f32.mrf.mxu1 }
0x16ec   :  { %v8405_v57 = vpop.f32.mrf.mxu1 }
0x16ed   :  { %v8412_v19 = vsel %vm1582_vm1, %v8405_v57, -inf }
0x16ee   :  { %v13881_v5 = vpop.f32.mrf.mxu1  ;;  %8413 = vmax.xlane.f32.xlu0 %v8412_v19 }
0x16f0   :  { %v8408_v58 = vpop.f32.mrf.mxu1 }
0x16f1   :  { %v8415_v55 = vsel %vm1582_vm1, %v8408_v58, -inf }
0x16f2   :  { %v13882_v10 = vpop.f32.mrf.mxu1  ;;  %8416 = vmax.xlane.f32.xlu1 %v8415_v55  ;;  %v15064_v55 = vld [vmem:[%s20875_s4 + $0x6e4] ss:$204 sps:$4 sm:$0xff]  }
0x16f3   :  { %v15067_v10 = vld [vmem:[%s20875_s4 + $0x54c] ss:$204 sps:$4 sm:$0xff]  }
0x1742   :  { %v7909_v27 = vpop.xlane.xlu1 %7908 }
0x1743   :  { %v7913_v63 = vsub.f32 %v7900_v49, %v7909_v27  ;;  %v15056_v49 = vld [vmem:[%s20875_s4 + $0xa10] ss:$204 sps:$4 sm:$0xff]  }
0x1745   :  { %v7915_v23 = vmul.f32 1.442695, %v7913_v63 }
0x1746   :  { %v7912_v44 = vpop.xlane.xlu0 %7911 }
0x1747   :  { %15951 = vpow2.f32 %v7915_v23  ;;  %v7914_v52 = vsub.f32 %v7903_v40, %v7912_v44  ;;  %v15065_v44 = vld [vmem:[%s20875_s4 + $0x548] ss:$204 sps:$4 sm:$0xff]  }
0x1749   :  { %v7917_v18 = vmul.f32 1.442695, %v7914_v52 }
0x174b   :  { %15953 = vpow2.f32 %v7917_v18  ;;  %v15070_v18 = vld [vmem:[%s20875_s4 + $0x3b4] ss:$204 sps:$4 sm:$0xff]  }
0x1754   :  { %v15952_v24 = vpop.eup %15951 }
0x1755   :  { %v7919_v9 = vsel %vm1582_vm1, %v15952_v24, 0.0 }
0x1756   :  { %7920 = vadd.xlane.f32.xlu0 %v7919_v9  ;;  %v15068_v9 = vld [vmem:[%s20875_s4 + $0x3b0] ss:$204 sps:$4 sm:$0xff]  }
0x1758   :  { %v15954_v25 = vpop.eup %15953 }
0x1759   :  { %v7922_v31 = vsel %vm1582_vm1, %v15954_v25, 0.0 }
0x175a   :  { %7923 = vadd.xlane.f32.xlu1 %v7922_v31  ;;  %v15071_v31 = vld [vmem:[%s20875_s4 + $0x218] ss:$204 sps:$4 sm:$0xff]  }
0x176c   :  { %7931 = vrot.lane.b32.xlu0 %v18890_v17, %s15983_s27 }
0x1777   :  { %v8414_v37 = vpop.xlane.xlu0 %8413 }
0x1778   :  { %v8418_v51 = vsub.f32 %v8405_v57, %v8414_v37  ;;  %v15076_v37 = vld [vmem:[%s20875_s4 + $0x84] ss:$204 sps:$4 sm:$0xff]  }
0x177a   :  { %v8420_v36 = vmul.f32 1.442695, %v8418_v51  ;;  %v15074_v51 = vld [vmem:[%s20875_s4 + $0x80] ss:$204 sps:$4 sm:$0xff]  }
0x177b   :  { %v8417_v38 = vpop.xlane.xlu1 %8416 }
0x177c   :  { %15955 = vpow2.f32 %v8420_v36  ;;  %v8419_v41 = vsub.f32 %v8408_v58, %v8417_v38  ;;  %v15062_v58 = vld [vmem:[%s20875_s4 + $0x6e0] ss:$204 sps:$4 sm:$0xff]   ;;  %v15077_v38 = vld [vmem:[%s20875_s4 + $0x1208] ss:$204 sps:$4 sm:$0xff]  }
0x177d   :  { %v15079_v36 = vld [vmem:[%s20875_s4 + $0x120c] ss:$204 sps:$4 sm:$0xff]  }
0x177e   :  { %v8422_v42 = vmul.f32 1.442695, %v8419_v41  ;;  %v15082_v41 = vld [vmem:[%s20875_s4 + $0x1074] ss:$204 sps:$4 sm:$0xff]  }
0x1780   :  { %15957 = vpow2.f32 %v8422_v42  ;;  %v15080_v42 = vld [vmem:[%s20875_s4 + $0x1070] ss:$204 sps:$4 sm:$0xff]  }
0x1789   :  { %v15956_v1 = vpop.eup %15955 }
0x178a   :  { %v8424_v26 = vsel %vm1582_vm1, %v15956_v1, 0.0 }
0x178b   :  { %8425 = vadd.xlane.f32.xlu1 %v8424_v26  ;;  %v15083_v26 = vld [vmem:[%s20875_s4 + $0xed8] ss:$204 sps:$4 sm:$0xff]  }
0x178d   :  { %v15958_v50 = vpop.eup %15957 }
0x178e   :  { %v8427_v60 = vsel %vm1582_vm1, %v15958_v50, 0.0 }
0x178f   :  { %8428 = vadd.xlane.f32.xlu1 %v8427_v60  ;;  %v15094_v60 = vld [vmem:[%s20875_s4 + $0x16d4] ss:$204 sps:$4 sm:$0xff]  }
0x17a0   :  { %8436 = vrot.lane.b32.xlu1 %v18892_v48, %s15983_s27 }
0x17df   :  { %v7921_v17 = vpop.xlane.xlu0 %7920 }
0x17e0   :  { %15959 = vrcp.f32 %v7921_v17  ;;  %v15092_v17 = vld [vmem:[%s20875_s4 + $0x16d0] ss:$204 sps:$4 sm:$0xff]  }
0x17e3   :  { %v7924_v29 = vpop.xlane.xlu1 %7923  ;;  %v7932_v62 = vpop.permute.xlu0 %7931 }
0x17e4   :  { %15961 = vrcp.f32 %v7924_v29  ;;  %13860 = vmatpush3.bf16.msra.mxu0 %v7932_v62  ;;  %v15095_v29 = vld [vmem:[%s20875_s4 + $0x1538] ss:$204 sps:$4 sm:$0xff]  }
0x17e5   :  { %8030 = vmatprep.subr.bf16.mxu0 %v15055_v59  ;;  %v15097_v59 = vld [vmem:[%s20875_s4 + $0x153c] ss:$204 sps:$4 sm:$0xff]  }
0x17ed   :  { %v15960_v2 = vpop.eup %15959 }
0x17ee   :  { %v7927_v61 = vmul.f32 %v15960_v2, %v15952_v24 }
0x17f1   :  { %v15962_v3 = vpop.eup %15961 }
0x17f2   :  { %v7928_v16 = vmul.f32 %v15962_v3, %v15954_v25  ;;  %v15073_v25 = vld [vmem:[%s20875_s4 + $0x21c] ss:$204 sps:$4 sm:$0xff]  }
0x17f4   :  { %v7929_v48 = vpack.c.bf16 %v7928_v16, %v7927_v61 }
0x17f6   :  { %13862 = vmatmul.mubr.msk.bf16.vlgmr.msra.gmra.mxu0 %vm1582_vm1, %v7929_v48 }
0x17f7   :  { %8031 = vmatpush1.bf16.msra.mxu0 %v15053_v4  ;;  %8054 = vmatprep.mubr.bf16.mxu0 %v15980_v0 }
0x17f8   :  { %8032 = vmatprep.subr.bf16.mxu0 %v15058_v20 }
0x17fb   :  { %8033 = vmatpush1.bf16.msra.mxu0 %v15056_v49 }
0x17fc   :  { %8034 = vmatprep.subr.bf16.mxu0 %v15061_v46 }
0x17ff   :  { %8035 = vmatpush1.bf16.msra.mxu0 %v15059_v35 }
0x1800   :  { %8036 = vmatprep.subr.bf16.mxu0 %v15064_v55 }
0x1803   :  { %8037 = vmatpush1.bf16.msra.mxu0 %v15062_v58 }
0x1804   :  { %8116 = vmatprep.subr.bf16.mxu0 %v15067_v10 }
0x1814   :  { %v8426_v40 = vpop.xlane.xlu1 %8425 }
0x1815   :  { %15963 = vrcp.f32 %v8426_v40 }
0x1818   :  { %v8429_v47 = vpop.xlane.xlu1 %8428 }
0x1819   :  { %15965 = vrcp.f32 %v8429_v47 }
0x181c   :  { %v8437_v30 = vpop.permute.xlu1 %8436 }
0x181d   :  { %13884 = vmatpush3.bf16.msra.mxu1 %v8437_v30 }
0x1822   :  { %v15964_v43 = vpop.eup %15963 }
0x1823   :  { %v8432_v57 = vmul.f32 %v15964_v43, %v15956_v1  ;;  %v15085_v1 = vld [vmem:[%s20875_s4 + $0xedc] ss:$204 sps:$4 sm:$0xff]   ;;  %v12369_v43 = vld [vmem:[%s20872_s3 + $0x105] ss:$8 sm:$0x3] }
0x1824   :  { %v8578_v58 = vrot.slane %v12369_v43, %v16170_v33 }
0x1826   :  { %v15966_v53 = vpop.eup %15965 }
0x1827   :  { %v8433_v19 = vmul.f32 %v15966_v53, %v15958_v50  ;;  %v15089_v50 = vld [vmem:[%s20875_s4 + $0x1868] ss:$204 sps:$4 sm:$0xff]  }
0x1829   :  { %v8434_v5 = vpack.c.bf16 %v8433_v19, %v8432_v57 }
0x182b   :  { %13886 = vmatmul.mubr.msk.bf16.vlgmr.msra.gmra.mxu1 %vm1582_vm1, %v8434_v5 }
0x18b6   :  { %v7971_v27 = vpop.f32.mrf.mxu0 }
0x18b8   :  { %v13863_v63 = vpop.f32.mrf.mxu0 }
0x18ba   :  { %v7974_v23 = vpop.f32.mrf.mxu0 }
0x18bb   :  { %v7978_v52 = vpack.c.bf16 %v7974_v23, %v7971_v27  ;;  %v8582_v23 = vrot.slane %v12369_v43, %v16173_v34  ;;  %v15137_v43 = vld [vmem:[%s20875_s4 + $0x220] ss:$204 sps:$4 sm:$0xff]  }
0x18bc   :  { %v13864_v24 = vpop.f32.mrf.mxu0 }
0x18bd   :  { %13179 = vmatmul.mubr.msk.bf16.vlgmr.msra.gmra.mxu0 %vm2719_vm11, %v7978_v52 }
0x18be   :  { %8117 = vmatpush1.bf16.msra.mxu0 %v15065_v44  ;;  %8140 = vmatprep.mubr.bf16.mxu0 %v15980_v0 }
0x18bf   :  { %8118 = vmatprep.subr.bf16.mxu0 %v15070_v18 }
0x18c2   :  { %8119 = vmatpush1.bf16.msra.mxu0 %v15068_v9 }
0x18c3   :  { %8120 = vmatprep.subr.bf16.mxu0 %v15073_v25 }
0x18c6   :  { %8121 = vmatpush1.bf16.msra.mxu0 %v15071_v31 }
0x18c7   :  { %8122 = vmatprep.subr.bf16.mxu0 %v15076_v37 }
0x18ca   :  { %8123 = vmatpush1.bf16.msra.mxu0 %v15074_v51 }
0x18cb   :  { %8320 = vmatprep.subr.bf16.mxu0 %v15079_v36 }
0x18cd   :  { %13188 = vmatmul.mubr.msk.bf16.vlgmr.msra.gmra.mxu0 %vm2719_vm11, %v7853_v21  ;;  %v15091_v21 = vld [vmem:[%s20875_s4 + $0x186c] ss:$204 sps:$4 sm:$0xff]  }
0x18ce   :  { %8321 = vmatpush1.bf16.msra.mxu0 %v15077_v38  ;;  %8344 = vmatprep.mubr.bf16.mxu0 %v15980_v0 }
0x18cf   :  { %8322 = vmatprep.subr.bf16.mxu0 %v15082_v41 }
0x18d2   :  { %8323 = vmatpush1.bf16.msra.mxu0 %v15080_v42 }
0x18d3   :  { %8324 = vmatprep.subr.bf16.mxu0 %v15085_v1 }
0x18d6   :  { %8325 = vmatpush1.bf16.msra.mxu0 %v15083_v26 }
0x18d7   :  { %8326 = vmatprep.subr.bf16.mxu0 %v15088_v7 }
0x18da   :  { %8327 = vmatpush1.bf16.msra.mxu0 %v15086_v39 }
0x18db   :  { %8535 = vmatprep.subr.bf16.mxu0 %v15091_v21 }
0x18dd   :  { %13199 = vmatmul.mubr.msk.bf16.vlgmr.msra.gmra.mxu0 %vm2719_vm11, %v8268_v32 }
0x18de   :  { %8536 = vmatpush1.bf16.msra.mxu0 %v15089_v50  ;;  %8559 = vmatprep.mubr.bf16.mxu0 %v15980_v0  ;;  %v15098_v0 = vld [vmem:[%s20875_s4 + $0x13a0] ss:$204 sps:$4 sm:$0xff]  }
0x18df   :  { %8537 = vmatprep.subr.bf16.mxu0 %v15094_v60  ;;  %v15109_v60 = vld [vmem:[%s20875_s4 + $0xa1c] ss:$204 sps:$4 sm:$0xff]  }
0x18e2   :  { %8538 = vmatpush1.bf16.msra.mxu0 %v15092_v17  ;;  %v15112_v17 = vld [vmem:[%s20875_s4 + $0xa24] ss:$204 sps:$4 sm:$0xff]  }
0x18e3   :  { %8539 = vmatprep.subr.bf16.mxu0 %v15097_v59  ;;  %v15107_v59 = vld [vmem:[%s20875_s4 + $0xa18] ss:$204 sps:$4 sm:$0xff]  }
0x18e6   :  { %8540 = vmatpush1.bf16.msra.mxu0 %v15095_v29  ;;  %v15110_v29 = vld [vmem:[%s20875_s4 + $0xa20] ss:$204 sps:$4 sm:$0xff]  }
0x18e7   :  { %8541 = vmatprep.subr.bf16.mxu0 %v15100_v8  ;;  %v15115_v8 = vld [vmem:[%s20875_s4 + $0x884] ss:$204 sps:$4 sm:$0xff]  }
0x18ea   :  { %8542 = vmatpush1.bf16.msra.mxu0 %v15098_v0  ;;  %v15118_v0 = vld [vmem:[%s20875_s4 + $0x88c] ss:$204 sps:$4 sm:$0xff]  }
0x18eb   :  { %v8476_v56 = vpop.f32.mrf.mxu1 }
0x18ed   :  { %v13887_v32 = vpop.f32.mrf.mxu1 }
0x18ee   :  { %v15116_v32 = vld [vmem:[%s20875_s4 + $0x888] ss:$204 sps:$4 sm:$0xff]  }
0x18ef   :  { %v8479_v62 = vpop.f32.mrf.mxu1 }
0x18f0   :  { %v8483_v2 = vpack.c.bf16 %v8479_v62, %v8476_v56  ;;  %v15113_v56 = vld [vmem:[%s20875_s4 + $0x880] ss:$204 sps:$4 sm:$0xff]  }
0x18f1   :  { %v13888_v3 = vpop.f32.mrf.mxu1  ;;  %v15121_v62 = vld [vmem:[%s20875_s4 + $0x6ec] ss:$204 sps:$4 sm:$0xff]  }
0x18f2   :  { %13210 = vmatmul.mubr.msk.bf16.vlgmr.msra.gmra.mxu0 %vm2719_vm11, %v8483_v2  ;;  %v15124_v2 = vld [vmem:[%s20875_s4 + $0x6f4] ss:$204 sps:$4 sm:$0xff]  }
0x18f3   :  { %v15119_v3 = vld [vmem:[%s20875_s4 + $0x6e8] ss:$204 sps:$4 sm:$0xff]  }
0x197d   :  { %v8056_v61 = vpop.f32.mrf.mxu0 }
0x197f   :  { %v8058_v16 = vpop.f32.mrf.mxu0 }
0x1981   :  { %v8060_v4 = vpop.f32.mrf.mxu0 }
0x1983   :  { %v8062_v48 = vpop.f32.mrf.mxu0 }
0x198d   :  { %v8142_v20 = vpop.f32.mrf.mxu0 }
0x198e   :  { %v8143_v53 = vadd.f32 %v8142_v20, %v8056_v61  ;;  %v15122_v61 = vld [vmem:[%s20875_s4 + $0x6f0] ss:$204 sps:$4 sm:$0xff]   ;;  %v15128_v20 = vld [vmem:[%s20875_s4 + $0x558] ss:$204 sps:$4 sm:$0xff]  }
0x198f   :  { %v8144_v49 = vpop.f32.mrf.mxu0 }
0x1990   :  { %v8145_v19 = vadd.f32 %v8144_v49, %v8058_v16  ;;  %v15127_v16 = vld [vmem:[%s20875_s4 + $0x554] ss:$204 sps:$4 sm:$0xff]   ;;  %v15133_v49 = vld [vmem:[%s20875_s4 + $0x3bc] ss:$204 sps:$4 sm:$0xff]  }
0x1991   :  { %v8146_v46 = vpop.f32.mrf.mxu0 }
0x1992   :  { %v8147_v10 = vadd.f32 %v8146_v46, %v8060_v4  ;;  %v15130_v4 = vld [vmem:[%s20875_s4 + $0x55c] ss:$204 sps:$4 sm:$0xff]   ;;  %v15136_v46 = vld [vmem:[%s20875_s4 + $0x3c4] ss:$204 sps:$4 sm:$0xff]  }
0x1993   :  { %v8148_v35 = vpop.f32.mrf.mxu0 }
0x1994   :  { %v8149_v52 = vadd.f32 %v8148_v35, %v8062_v48  ;;  %v15125_v48 = vld [vmem:[%s20875_s4 + $0x550] ss:$204 sps:$4 sm:$0xff]   ;;  %v15131_v35 = vld [vmem:[%s20875_s4 + $0x3b8] ss:$204 sps:$4 sm:$0xff]  }
0x199d   :  { %v8346_v40 = vpop.f32.mrf.mxu0 }
0x199e   :  { %v8355_v5 = vadd.f32 %v8346_v40, %v8143_v53  ;;  %v15134_v40 = vld [vmem:[%s20875_s4 + $0x3c0] ss:$204 sps:$4 sm:$0xff]   ;;  %v15140_v53 = vld [vmem:[%s20875_s4 + $0x228] ss:$204 sps:$4 sm:$0xff]  }
0x199f   :  { %v8348_v47 = vpop.f32.mrf.mxu0 }
0x19a0   :  { %v8356_v27 = vadd.f32 %v8348_v47, %v8145_v19  ;;  %v15139_v47 = vld [vmem:[%s20875_s4 + $0x224] ss:$204 sps:$4 sm:$0xff]   ;;  %v15148_v19 = vld [vmem:[%s20875_s4 + $0x94] ss:$204 sps:$4 sm:$0xff]  }
0x19a1   :  { %v8350_v30 = vpop.f32.mrf.mxu0 }
0x19a2   :  { %v8357_v18 = vadd.f32 %v8350_v30, %v8147_v10  ;;  %v15142_v30 = vld [vmem:[%s20875_s4 + $0x22c] ss:$204 sps:$4 sm:$0xff]   ;;  %v15154_v10 = vld [vmem:[%s20875_s4 + $0x187c] ss:$204 sps:$4 sm:$0xff]  }
0x19a3   :  { %v8352_v57 = vpop.f32.mrf.mxu0 }
0x19a4   :  { %v8358_v31 = vadd.f32 %v8352_v57, %v8149_v52  ;;  %v15145_v57 = vld [vmem:[%s20875_s4 + $0x8c] ss:$204 sps:$4 sm:$0xff]  }
0x19b2   :  { %v8561_v55 = vpop.f32.mrf.mxu0 }
0x19b3   :  { %v8570_v63 = vadd.f32 %v8561_v55, %v8355_v5  ;;  %v15143_v5 = vld [vmem:[%s20875_s4 + $0x88] ss:$204 sps:$4 sm:$0xff]  }
0x19b4   :  { %v8563_v44 = vpop.f32.mrf.mxu0  ;;  %v15151_v55 = vld [vmem:[%s20875_s4 + $0x1874] ss:$204 sps:$4 sm:$0xff]  }
0x19b5   :  { %v8585_v24 = vadd.f32 %v8578_v58, %v8570_v63  ;;  %v8571_v9 = vadd.f32 %v8563_v44, %v8356_v27  ;;  %v15149_v27 = vld [vmem:[%s20875_s4 + $0x1870] ss:$204 sps:$4 sm:$0xff]   ;;  %v15152_v63 = vld [vmem:[%s20875_s4 + $0x1878] ss:$204 sps:$4 sm:$0xff]  }
0x19b6   :  { %v8565_v25 = vpop.f32.mrf.mxu0 }
0x19b7   :  { %v8586_v37 = vadd.f32 %v8582_v23, %v8571_v9  ;;  %v8572_v51 = vadd.f32 %v8565_v25, %v8357_v18  ;;  %v19071_v42 = vadd.f32 %v8585_v24, %v18748_v14  ;;  %v15103_v14 = vld [vmem:[%s20875_s4 + $0xbb4] ss:$204 sps:$4 sm:$0xff]  }
0x19b8   :  { %v8567_v36 = vpop.f32.mrf.mxu0  ;;  %10019 = vmatprep.subr.bf16.mxu1 %v15103_v14  ;;  %v15164_v14 = vld [vmem:[%s20875_s4 + $0x1548] ss:$204 sps:$4 sm:$0xff]  }
0x19b9   :  { %v8587_v38 = vadd.f32 %v8578_v58, %v8572_v51  ;;  %v8573_v41 = vadd.f32 %v8567_v36, %v8358_v31  ;;  %v19074_v1 = vadd.f32 %v8586_v37, %v18744_v11  ;;  %v15101_v11 = vld [vmem:[%s20875_s4 + $0xbb0] ss:$204 sps:$4 sm:$0xff]  }
0x19ba   :  { %10020 = vmatpush1.bf16.msra.mxu1 %v15101_v11  ;;  %v15146_v58 = vld [vmem:[%s20875_s4 + $0x90] ss:$204 sps:$4 sm:$0xff]   ;;  %v15161_v11 = vld [vmem:[%s20875_s4 + $0x1540] ss:$204 sps:$4 sm:$0xff]  }
0x19bb   :  { %v8588_v26 = vadd.f32 %v8582_v23, %v8573_v41  ;;  %v8593_v7 = vadd.f32 %v19074_v1, %v19071_v42  ;;  %v19079_v39 = vadd.f32 %v8587_v38, %v18750_v45  ;;  %v15104_v45 = vld [vmem:[%s20875_s4 + $0xbb8] ss:$204 sps:$4 sm:$0xff]   ;;  %10021 = vmatprep.subr.bf16.mxu1 %v15109_v60  ;;  %v15167_v60 = vld [vmem:[%s20875_s4 + $0x13a8] ss:$204 sps:$4 sm:$0xff]  }
0x19bd   :  { %8594 = vadd.xlane.f32.xlu0 %v8593_v7  ;;  %v19082_v21 = vadd.f32 %v8588_v26, %v18746_v13  ;;  %v15106_v13 = vld [vmem:[%s20875_s4 + $0xbbc] ss:$204 sps:$4 sm:$0xff]   ;;  %v15160_v26 = vld [vmem:[%s20875_s4 + $0x16e4] ss:$204 sps:$4 sm:$0xff]  }
0x19be   :  { %10062 = vmatprep.subr.bf16.mxu0 %v15106_v13  ;;  %10022 = vmatpush1.bf16.msra.mxu1 %v15107_v59  ;;  %v15155_v7 = vld [vmem:[%s20875_s4 + $0x16d8] ss:$204 sps:$4 sm:$0xff]   ;;  %v15172_v13 = vld [vmem:[%s20875_s4 + $0x13b4] ss:$204 sps:$4 sm:$0xff]  }
0x19bf   :  { %v8596_v50 = vadd.f32 %v19082_v21, %v19079_v39  ;;  %10063 = vmatpush1.bf16.msra.mxu0 %v15104_v45  ;;  %10023 = vmatprep.subr.bf16.mxu1 %v15115_v8  ;;  %v15169_v45 = vld [vmem:[%s20875_s4 + $0x13ac] ss:$204 sps:$4 sm:$0xff]   ;;  %v15175_v59 = vld [vmem:[%s20875_s4 + $0x1214] ss:$204 sps:$4 sm:$0xff]   ;;  %v15173_v8 = vld [vmem:[%s20875_s4 + $0x1210] ss:$204 sps:$4 sm:$0xff]  }
0x19c0   :  { %10064 = vmatprep.subr.bf16.mxu0 %v15112_v17  ;;  %v15170_v17 = vld [vmem:[%s20875_s4 + $0x13b0] ss:$204 sps:$4 sm:$0xff]  }
0x19c1   :  { %8597 = vadd.xlane.f32.xlu1 %v8596_v50  ;;  %v15166_v50 = vld [vmem:[%s20875_s4 + $0x154c] ss:$204 sps:$4 sm:$0xff]  }
0x19c2   :  { %10024 = vmatpush1.bf16.msra.mxu1 %v15113_v56  ;;  %v15181_v56 = vld [vmem:[%s20875_s4 + $0x107c] ss:$204 sps:$4 sm:$0xff]  }
0x19c3   :  { %10065 = vmatpush1.bf16.msra.mxu0 %v15110_v29  ;;  %10025 = vmatprep.subr.bf16.mxu1 %v15121_v62  ;;  %v15178_v29 = vld [vmem:[%s20875_s4 + $0x121c] ss:$204 sps:$4 sm:$0xff]   ;;  %v15179_v62 = vld [vmem:[%s20875_s4 + $0x1078] ss:$204 sps:$4 sm:$0xff]  }
0x19c4   :  { %10066 = vmatprep.subr.bf16.mxu0 %v15118_v0  ;;  %v15176_v0 = vld [vmem:[%s20875_s4 + $0x1218] ss:$204 sps:$4 sm:$0xff]  }
0x19c6   :  { %10026 = vmatpush1.bf16.msra.mxu1 %v15119_v3  ;;  %v15187_v3 = vld [vmem:[%s20875_s4 + $0xee4] ss:$204 sps:$4 sm:$0xff]  }
0x19c7   :  { %10067 = vmatpush1.bf16.msra.mxu0 %v15116_v32  ;;  %10027 = vmatprep.subr.bf16.mxu1 %v15127_v16  ;;  %v15184_v32 = vld [vmem:[%s20875_s4 + $0x1084] ss:$204 sps:$4 sm:$0xff]   ;;  %v15185_v16 = vld [vmem:[%s20875_s4 + $0xee0] ss:$204 sps:$4 sm:$0xff]  }
0x19c8   :  { %10068 = vmatprep.subr.bf16.mxu0 %v15124_v2  ;;  %v15182_v2 = vld [vmem:[%s20875_s4 + $0x1080] ss:$204 sps:$4 sm:$0xff]  }
0x19ca   :  { %10028 = vmatpush1.bf16.msra.mxu1 %v15125_v48  ;;  %v15193_v48 = vld [vmem:[%s20875_s4 + $0xd4c] ss:$204 sps:$4 sm:$0xff]  }
0x19cb   :  { %10069 = vmatpush1.bf16.msra.mxu0 %v15122_v61  ;;  %10029 = vmatprep.subr.bf16.mxu1 %v15133_v49  ;;  %v15190_v61 = vld [vmem:[%s20875_s4 + $0xeec] ss:$204 sps:$4 sm:$0xff]   ;;  %v15191_v49 = vld [vmem:[%s20875_s4 + $0xd48] ss:$204 sps:$4 sm:$0xff]  }
0x19cc   :  { %10070 = vmatprep.subr.bf16.mxu0 %v15130_v4  ;;  %v15188_v4 = vld [vmem:[%s20875_s4 + $0xee8] ss:$204 sps:$4 sm:$0xff]  }
0x19ce   :  { %10030 = vmatpush1.bf16.msra.mxu1 %v15131_v35  ;;  %v15199_v35 = vld [vmem:[%s20875_s4 + $0xbc4] ss:$204 sps:$4 sm:$0xff]  }
0x19cf   :  { %10071 = vmatpush1.bf16.msra.mxu0 %v15128_v20  ;;  %10031 = vmatprep.subr.bf16.mxu1 %v15139_v47  ;;  %v15196_v20 = vld [vmem:[%s20875_s4 + $0xd54] ss:$204 sps:$4 sm:$0xff]  }
0x19d0   :  { %10072 = vmatprep.subr.bf16.mxu0 %v15136_v46  ;;  %v15194_v46 = vld [vmem:[%s20875_s4 + $0xd50] ss:$204 sps:$4 sm:$0xff]  }
0x19d2   :  { %10032 = vmatpush1.bf16.msra.mxu1 %v15137_v43 }
0x19d3   :  { %10073 = vmatpush1.bf16.msra.mxu0 %v15134_v40  ;;  %10033 = vmatprep.subr.bf16.mxu1 %v15145_v57  ;;  %v15202_v40 = vld [vmem:[%s20875_s4 + $0xbcc] ss:$204 sps:$4 sm:$0xff]  }
0x19d4   :  { %10074 = vmatprep.subr.bf16.mxu0 %v15142_v30 }
0x19d6   :  { %10034 = vmatpush1.bf16.msra.mxu1 %v15143_v5  ;;  %v12370_v5 = vld [vmem:[%s20872_s3 + $0x106] ss:$8 sm:$0x3] }
0x19d7   :  { %10075 = vmatpush1.bf16.msra.mxu0 %v15140_v53  ;;  %10035 = vmatprep.subr.bf16.mxu1 %v15151_v55  ;;  %v12371_v55 = vld [vmem:[%s20872_s3 + $0x107] ss:$8 sm:$0x3] }
0x19d8   :  { %10076 = vmatprep.subr.bf16.mxu0 %v15148_v19 }
0x19da   :  { %10036 = vmatpush2.bf16.msra.mxu1 %v15149_v27  ;;  %v8633_v27 = vrot.slane %v12370_v5, %v16173_v34 }
0x19db   :  { %10077 = vmatpush1.bf16.msra.mxu0 %v15146_v58 }
0x19dc   :  { %10078 = vmatprep.subr.bf16.mxu0 %v15154_v10  ;;  %v8629_v10 = vrot.slane %v12370_v5, %v16170_v33  ;;  %v15253_v5 = vld [vmem:[%s20875_s4 + $0x16ec] ss:$204 sps:$4 sm:$0xff]  }
0x19df   :  { %10079 = vmatpush2.bf16.msra.mxu0 %v15152_v63 }
0x19e0   :  { %10080 = vmatprep.subr.bf16.mxu0 %v15160_v26 }
0x1a46   :  { %v8595_v23 = vpop.xlane.xlu0 %8594 }
0x1a47   :  { %v8599_v44 = vmul.f32 0.00390625, %v8595_v23 }
0x1a49   :  { %v19195_v52 = vsub.f32 %v19071_v42, %v8599_v44  ;;  %v19198_v18 = vsub.f32 %v19074_v1, %v8599_v44  ;;  %v15157_v1 = vld [vmem:[%s20875_s4 + $0x16dc] ss:$204 sps:$4 sm:$0xff]  }
0x1a4a   :  { %v8598_v24 = vpop.xlane.xlu1 %8597  ;;  %10037 = vmatprep.subr.bf16.mxu1 %v15157_v1 }
0x1a4b   :  { %v8600_v9 = vmul.f32 0.00390625, %v8598_v24  ;;  %v8605_v25 = vmul.f32 %v19195_v52, %v19195_v52  ;;  %v8606_v31 = vmul.f32 %v19198_v18, %v19198_v18  ;;  %10038 = vmatpush2.bf16.msra.mxu1 %v15155_v7  ;;  %v8644_v24 = vrot.slane %v12371_v55, %v16170_v33 }
0x1a4d   :  { %v19205_v37 = vsub.f32 %v19079_v39, %v8600_v9  ;;  %v19208_v51 = vsub.f32 %v19082_v21, %v8600_v9  ;;  %v8609_v36 = vadd.f32 %v8606_v31, %v8605_v25  ;;  %v15158_v39 = vld [vmem:[%s20875_s4 + $0x16e0] ss:$204 sps:$4 sm:$0xff]   ;;  %v15163_v21 = vld [vmem:[%s20875_s4 + $0x1544] ss:$204 sps:$4 sm:$0xff]   ;;  %v8648_v9 = vrot.slane %v12371_v55, %v16173_v34  ;;  %v15251_v55 = vld [vmem:[%s20875_s4 + $0x16e8] ss:$204 sps:$4 sm:$0xff]  }
0x1a4e   :  { %10081 = vmatpush2.bf16.msra.mxu0 %v15158_v39  ;;  %10039 = vmatprep.subr.bf16.mxu1 %v15163_v21  ;;  %v15205_v21 = vld [vmem:[%s20875_s4 + $0xa2c] ss:$204 sps:$4 sm:$0xff]  }
0x1a4f   :  { %8610 = vadd.xlane.f32.xlu0 %v8609_v36  ;;  %v8607_v38 = vmul.f32 %v19205_v37, %v19205_v37  ;;  %v8608_v41 = vmul.f32 %v19208_v51, %v19208_v51  ;;  %10082 = vmatprep.subr.bf16.mxu0 %v15166_v50  ;;  %v15208_v50 = vld [vmem:[%s20875_s4 + $0xa34] ss:$204 sps:$4 sm:$0xff]  }
0x1a50   :  { %10040 = vmatpush2.bf16.msra.mxu1 %v15161_v11  ;;  %v15203_v11 = vld [vmem:[%s20875_s4 + $0xa28] ss:$204 sps:$4 sm:$0xff]  }
0x1a51   :  { %v8612_v42 = vadd.f32 %v8608_v41, %v8607_v38  ;;  %10041 = vmatprep.subr.bf16.mxu1 %v15169_v45  ;;  %v15211_v45 = vld [vmem:[%s20875_s4 + $0x894] ss:$204 sps:$4 sm:$0xff]  }
0x1a52   :  { %10083 = vmatpush2.bf16.msra.mxu0 %v15164_v14  ;;  %v15206_v14 = vld [vmem:[%s20875_s4 + $0xa30] ss:$204 sps:$4 sm:$0xff]  }
0x1a53   :  { %8613 = vadd.xlane.f32.xlu0 %v8612_v42  ;;  %10084 = vmatprep.subr.bf16.mxu0 %v15172_v13  ;;  %v15214_v13 = vld [vmem:[%s20875_s4 + $0x89c] ss:$204 sps:$4 sm:$0xff]  }
0x1a54   :  { %10042 = vmatpush2.bf16.msra.mxu1 %v15167_v60  ;;  %v15209_v60 = vld [vmem:[%s20875_s4 + $0x890] ss:$204 sps:$4 sm:$0xff]  }
0x1a55   :  { %10043 = vmatprep.subr.bf16.mxu1 %v15175_v59  ;;  %v15217_v59 = vld [vmem:[%s20875_s4 + $0x6fc] ss:$204 sps:$4 sm:$0xff]  }
0x1a56   :  { %10085 = vmatpush2.bf16.msra.mxu0 %v15170_v17  ;;  %v15212_v17 = vld [vmem:[%s20875_s4 + $0x898] ss:$204 sps:$4 sm:$0xff]  }
0x1a57   :  { %10086 = vmatprep.subr.bf16.mxu0 %v15178_v29  ;;  %v15220_v29 = vld [vmem:[%s20875_s4 + $0x704] ss:$204 sps:$4 sm:$0xff]  }
0x1a58   :  { %10044 = vmatpush2.bf16.msra.mxu1 %v15173_v8  ;;  %v15215_v8 = vld [vmem:[%s20875_s4 + $0x6f8] ss:$204 sps:$4 sm:$0xff]  }
0x1a59   :  { %10045 = vmatprep.subr.bf16.mxu1 %v15181_v56  ;;  %v15223_v56 = vld [vmem:[%s20875_s4 + $0x564] ss:$204 sps:$4 sm:$0xff]  }
0x1a5a   :  { %10087 = vmatpush2.bf16.msra.mxu0 %v15176_v0  ;;  %v15218_v0 = vld [vmem:[%s20875_s4 + $0x700] ss:$204 sps:$4 sm:$0xff]  }
0x1a5b   :  { %10088 = vmatprep.subr.bf16.mxu0 %v15184_v32  ;;  %v15226_v32 = vld [vmem:[%s20875_s4 + $0x56c] ss:$204 sps:$4 sm:$0xff]  }
0x1a5c   :  { %10046 = vmatpush2.bf16.msra.mxu1 %v15179_v62  ;;  %v15221_v62 = vld [vmem:[%s20875_s4 + $0x560] ss:$204 sps:$4 sm:$0xff]  }
0x1a5d   :  { %10047 = vmatprep.subr.bf16.mxu1 %v15187_v3  ;;  %v15229_v3 = vld [vmem:[%s20875_s4 + $0x3cc] ss:$204 sps:$4 sm:$0xff]  }
0x1a5e   :  { %10089 = vmatpush2.bf16.msra.mxu0 %v15182_v2  ;;  %v15224_v2 = vld [vmem:[%s20875_s4 + $0x568] ss:$204 sps:$4 sm:$0xff]  }
0x1a5f   :  { %10090 = vmatprep.subr.bf16.mxu0 %v15190_v61  ;;  %v15232_v61 = vld [vmem:[%s20875_s4 + $0x3d4] ss:$204 sps:$4 sm:$0xff]  }
0x1a60   :  { %10048 = vmatpush2.bf16.msra.mxu1 %v15185_v16  ;;  %v15227_v16 = vld [vmem:[%s20875_s4 + $0x3c8] ss:$204 sps:$4 sm:$0xff]  }
0x1a61   :  { %10049 = vmatprep.subr.bf16.mxu1 %v15193_v48  ;;  %v15235_v48 = vld [vmem:[%s20875_s4 + $0x234] ss:$204 sps:$4 sm:$0xff]  }
0x1a62   :  { %10091 = vmatpush2.bf16.msra.mxu0 %v15188_v4  ;;  %v15230_v4 = vld [vmem:[%s20875_s4 + $0x3d0] ss:$204 sps:$4 sm:$0xff]  }
0x1a63   :  { %10092 = vmatprep.subr.bf16.mxu0 %v15196_v20  ;;  %v15238_v20 = vld [vmem:[%s20875_s4 + $0x23c] ss:$204 sps:$4 sm:$0xff]  }
0x1a64   :  { %10050 = vmatpush2.bf16.msra.mxu1 %v15191_v49  ;;  %v15233_v49 = vld [vmem:[%s20875_s4 + $0x230] ss:$204 sps:$4 sm:$0xff]  }
0x1a65   :  { %10105 = vmatprep.subr.bf16.mxu1 %v15199_v35  ;;  %v15241_v35 = vld [vmem:[%s20875_s4 + $0x9c] ss:$204 sps:$4 sm:$0xff]  }
0x1a66   :  { %10093 = vmatpush2.bf16.msra.mxu0 %v15194_v46  ;;  %v15236_v46 = vld [vmem:[%s20875_s4 + $0x238] ss:$204 sps:$4 sm:$0xff]  }
0x1a67   :  { %10148 = vmatprep.subr.bf16.mxu0 %v15202_v40  ;;  %v15244_v40 = vld [vmem:[%s20875_s4 + $0xa4] ss:$204 sps:$4 sm:$0xff]  }
0x1ad8   :  { %v8611_v47 = vpop.xlane.xlu0 %8610 }
0x1ad9   :  { %v8615_v30 = vmul.f32 0.00390625, %v8611_v47  ;;  %v15239_v47 = vld [vmem:[%s20875_s4 + $0x98] ss:$204 sps:$4 sm:$0xff]  }
0x1adb   :  { %v8617_v43 = vadd.f32 1e-05, %v8615_v30  ;;  %v15242_v30 = vld [vmem:[%s20875_s4 + $0xa0] ss:$204 sps:$4 sm:$0xff]  }
0x1adc   :  { %v8614_v53 = vpop.xlane.xlu0 %8613 }
0x1add   :  { %15967 = vrsqrt.f32 %v8617_v43  ;;  %v8616_v57 = vmul.f32 0.00390625, %v8614_v53  ;;  %v15247_v43 = vld [vmem:[%s20875_s4 + $0x1884] ss:$204 sps:$4 sm:$0xff]   ;;  %v15250_v53 = vld [vmem:[%s20875_s4 + $0x188c] ss:$204 sps:$4 sm:$0xff]  }
0x1adf   :  { %v8618_v19 = vadd.f32 1e-05, %v8616_v57  ;;  %v15245_v57 = vld [vmem:[%s20875_s4 + $0x1880] ss:$204 sps:$4 sm:$0xff]  }
0x1ae1   :  { %15969 = vrsqrt.f32 %v8618_v19  ;;  %v15248_v19 = vld [vmem:[%s20875_s4 + $0x1888] ss:$204 sps:$4 sm:$0xff]  }
0x1aea   :  { %v15968_v58 = vpop.eup %15967 }
0x1aeb   :  { %v8621_v63 = vmul.f32 %v15968_v58, %v19195_v52  ;;  %v8622_v23 = vmul.f32 %v15968_v58, %v19198_v18  ;;  %v15256_v58 = vld [vmem:[%s20875_s4 + $0x16f4] ss:$204 sps:$4 sm:$0xff]  }
0x1aed   :  { %v8636_v25 = vmul.f32 %v8629_v10, %v8621_v63  ;;  %v8637_v31 = vmul.f32 %v8633_v27, %v8622_v23  ;;  %v15262_v63 = vld [vmem:[%s20875_s4 + $0x155c] ss:$204 sps:$4 sm:$0xff]  }
0x1aee   :  { %v15970_v44 = vpop.eup %15969  ;;  %v15257_v23 = vld [vmem:[%s20875_s4 + $0x1550] ss:$204 sps:$4 sm:$0xff]  }
0x1aef   :  { %v8623_v36 = vmul.f32 %v15970_v44, %v19205_v37  ;;  %v8624_v38 = vmul.f32 %v15970_v44, %v19208_v51  ;;  %v19318_v1 = vadd.f32 %v8644_v24, %v8636_v25  ;;  %v19320_v26 = vadd.f32 %v8648_v9, %v8637_v31  ;;  %v15197_v37 = vld [vmem:[%s20875_s4 + $0xbc0] ss:$204 sps:$4 sm:$0xff]   ;;  %v15200_v51 = vld [vmem:[%s20875_s4 + $0xbc8] ss:$204 sps:$4 sm:$0xff]   ;;  %v15260_v44 = vld [vmem:[%s20875_s4 + $0x1558] ss:$204 sps:$4 sm:$0xff]  }
0x1af0   :  { %v15263_v25 = vld [vmem:[%s20875_s4 + $0x13b8] ss:$204 sps:$4 sm:$0xff]   ;;  %v15266_v31 = vld [vmem:[%s20875_s4 + $0x13c0] ss:$204 sps:$4 sm:$0xff]  }
0x1af1   :  { %v8638_v41 = vmul.f32 %v8629_v10, %v8623_v36  ;;  %v8639_v42 = vmul.f32 %v8633_v27, %v8624_v38  ;;  %v15254_v10 = vld [vmem:[%s20875_s4 + $0x16f0] ss:$204 sps:$4 sm:$0xff]   ;;  %v15259_v27 = vld [vmem:[%s20875_s4 + $0x1554] ss:$204 sps:$4 sm:$0xff]   ;;  %v15274_v38 = vld [vmem:[%s20875_s4 + $0x122c] ss:$204 sps:$4 sm:$0xff]  }
0x1af2   :  { %v15271_v36 = vld [vmem:[%s20875_s4 + $0x1224] ss:$204 sps:$4 sm:$0xff]  }
0x1af3   :  { %v19322_v52 = vadd.f32 %v8644_v24, %v8638_v41  ;;  %v19324_v18 = vadd.f32 %v8648_v9, %v8639_v42  ;;  %v15265_v24 = vld [vmem:[%s20875_s4 + $0x13bc] ss:$204 sps:$4 sm:$0xff]   ;;  %v15268_v9 = vld [vmem:[%s20875_s4 + $0x13c4] ss:$204 sps:$4 sm:$0xff]   ;;  %v15269_v41 = vld [vmem:[%s20875_s4 + $0x1220] ss:$204 sps:$4 sm:$0xff]  }
0x1af4   :  { %v15272_v42 = vld [vmem:[%s20875_s4 + $0x1228] ss:$204 sps:$4 sm:$0xff]  }
0x1af5   :  { %v19328_v7 = vpack.c.bf16 %v19322_v52, %v19318_v1  ;;  %v19332_v39 = vpack.c.bf16 %v19324_v18, %v19320_v26 }
0x1af7   :  { %10051 = vmatprep.mubr.bf16.mxu1 %v19332_v39  ;;  %10094 = vmatprep.mubr.bf16.mxu0 %v19332_v39 }
0x1af8   :  { %10052 = vmatmul.mubr.bf16.vlgmr.msra.gmra.mxu1 %v19328_v7  ;;  %10095 = vmatmul.mubr.bf16.vlgmr.msra.gmra.mxu0 %v19328_v7 }
0x1af9   :  { %10106 = vmatpush1.bf16.msra.mxu1 %v15197_v37  ;;  %10149 = vmatpush1.bf16.msra.mxu0 %v15200_v51  ;;  %v15277_v37 = vld [vmem:[%s20875_s4 + $0x108c] ss:$204 sps:$4 sm:$0xff]   ;;  %v15280_v51 = vld [vmem:[%s20875_s4 + $0x1094] ss:$204 sps:$4 sm:$0xff]  }
0x1afa   :  { %10137 = vmatprep.mubr.bf16.mxu1 %v19332_v39  ;;  %10180 = vmatprep.mubr.bf16.mxu0 %v19332_v39 }
0x1afb   :  { %10107 = vmatprep.subr.bf16.mxu1 %v15205_v21  ;;  %10150 = vmatprep.subr.bf16.mxu0 %v15208_v50  ;;  %v15275_v21 = vld [vmem:[%s20875_s4 + $0x1088] ss:$204 sps:$4 sm:$0xff]   ;;  %v15278_v50 = vld [vmem:[%s20875_s4 + $0x1090] ss:$204 sps:$4 sm:$0xff]  }
0x1afd   :  { %10108 = vmatpush1.bf16.msra.mxu1 %v15203_v11  ;;  %10151 = vmatpush1.bf16.msra.mxu0 %v15206_v14  ;;  %v15283_v11 = vld [vmem:[%s20875_s4 + $0xef4] ss:$204 sps:$4 sm:$0xff]   ;;  %v15286_v14 = vld [vmem:[%s20875_s4 + $0xefc] ss:$204 sps:$4 sm:$0xff]  }
0x1afe   :  { %10109 = vmatprep.subr.bf16.mxu1 %v15211_v45  ;;  %10152 = vmatprep.subr.bf16.mxu0 %v15214_v13  ;;  %v15281_v45 = vld [vmem:[%s20875_s4 + $0xef0] ss:$204 sps:$4 sm:$0xff]   ;;  %v15284_v13 = vld [vmem:[%s20875_s4 + $0xef8] ss:$204 sps:$4 sm:$0xff]  }
0x1b01   :  { %10110 = vmatpush1.bf16.msra.mxu1 %v15209_v60  ;;  %10153 = vmatpush1.bf16.msra.mxu0 %v15212_v17  ;;  %v15289_v60 = vld [vmem:[%s20875_s4 + $0xd5c] ss:$204 sps:$4 sm:$0xff]   ;;  %v15292_v17 = vld [vmem:[%s20875_s4 + $0xd64] ss:$204 sps:$4 sm:$0xff]  }
0x1b02   :  { %10111 = vmatprep.subr.bf16.mxu1 %v15217_v59  ;;  %10154 = vmatprep.subr.bf16.mxu0 %v15220_v29  ;;  %v15287_v59 = vld [vmem:[%s20875_s4 + $0xd58] ss:$204 sps:$4 sm:$0xff]   ;;  %v15290_v29 = vld [vmem:[%s20875_s4 + $0xd60] ss:$204 sps:$4 sm:$0xff]  }
0x1b05   :  { %10112 = vmatpush1.bf16.msra.mxu1 %v15215_v8  ;;  %10155 = vmatpush1.bf16.msra.mxu0 %v15218_v0  ;;  %v15295_v8 = vld [vmem:[%s20875_s4 + $0xbd4] ss:$204 sps:$4 sm:$0xff]   ;;  %v15298_v0 = vld [vmem:[%s20875_s4 + $0xbdc] ss:$204 sps:$4 sm:$0xff]  }
0x1b06   :  { %10113 = vmatprep.subr.bf16.mxu1 %v15223_v56  ;;  %10156 = vmatprep.subr.bf16.mxu0 %v15226_v32  ;;  %v15293_v56 = vld [vmem:[%s20875_s4 + $0xbd0] ss:$204 sps:$4 sm:$0xff]   ;;  %v15296_v32 = vld [vmem:[%s20875_s4 + $0xbd8] ss:$204 sps:$4 sm:$0xff]  }
0x1b09   :  { %10114 = vmatpush1.bf16.msra.mxu1 %v15221_v62  ;;  %10157 = vmatpush1.bf16.msra.mxu0 %v15224_v2  ;;  %v15301_v62 = vld [vmem:[%s20875_s4 + $0xa3c] ss:$204 sps:$4 sm:$0xff]   ;;  %v15304_v2 = vld [vmem:[%s20875_s4 + $0xa44] ss:$204 sps:$4 sm:$0xff]  }
0x1b0a   :  { %10115 = vmatprep.subr.bf16.mxu1 %v15229_v3  ;;  %10158 = vmatprep.subr.bf16.mxu0 %v15232_v61  ;;  %v15299_v3 = vld [vmem:[%s20875_s4 + $0xa38] ss:$204 sps:$4 sm:$0xff]   ;;  %v15302_v61 = vld [vmem:[%s20875_s4 + $0xa40] ss:$204 sps:$4 sm:$0xff]  }
0x1b0d   :  { %10116 = vmatpush1.bf16.msra.mxu1 %v15227_v16  ;;  %10159 = vmatpush1.bf16.msra.mxu0 %v15230_v4  ;;  %v15307_v16 = vld [vmem:[%s20875_s4 + $0x8a4] ss:$204 sps:$4 sm:$0xff]   ;;  %v15310_v4 = vld [vmem:[%s20875_s4 + $0x8ac] ss:$204 sps:$4 sm:$0xff]  }
0x1b0e   :  { %10117 = vmatprep.subr.bf16.mxu1 %v15235_v48  ;;  %10160 = vmatprep.subr.bf16.mxu0 %v15238_v20  ;;  %v15305_v48 = vld [vmem:[%s20875_s4 + $0x8a0] ss:$204 sps:$4 sm:$0xff]   ;;  %v15308_v20 = vld [vmem:[%s20875_s4 + $0x8a8] ss:$204 sps:$4 sm:$0xff]  }
0x1b11   :  { %10118 = vmatpush1.bf16.msra.mxu1 %v15233_v49  ;;  %10161 = vmatpush1.bf16.msra.mxu0 %v15236_v46  ;;  %v15313_v49 = vld [vmem:[%s20875_s4 + $0x70c] ss:$204 sps:$4 sm:$0xff]   ;;  %v15316_v46 = vld [vmem:[%s20875_s4 + $0x714] ss:$204 sps:$4 sm:$0xff]  }
0x1b12   :  { %10119 = vmatprep.subr.bf16.mxu1 %v15241_v35  ;;  %10162 = vmatprep.subr.bf16.mxu0 %v15244_v40  ;;  %v15311_v35 = vld [vmem:[%s20875_s4 + $0x708] ss:$204 sps:$4 sm:$0xff]   ;;  %v15314_v40 = vld [vmem:[%s20875_s4 + $0x710] ss:$204 sps:$4 sm:$0xff]  }
0x1b15   :  { %10120 = vmatpush1.bf16.msra.mxu1 %v15239_v47  ;;  %10163 = vmatpush1.bf16.msra.mxu0 %v15242_v30  ;;  %v15319_v47 = vld [vmem:[%s20875_s4 + $0x574] ss:$204 sps:$4 sm:$0xff]   ;;  %v15322_v30 = vld [vmem:[%s20875_s4 + $0x57c] ss:$204 sps:$4 sm:$0xff]  }
0x1b16   :  { %10121 = vmatprep.subr.bf16.mxu1 %v15247_v43  ;;  %10164 = vmatprep.subr.bf16.mxu0 %v15250_v53  ;;  %v15317_v43 = vld [vmem:[%s20875_s4 + $0x570] ss:$204 sps:$4 sm:$0xff]   ;;  %v15320_v53 = vld [vmem:[%s20875_s4 + $0x578] ss:$204 sps:$4 sm:$0xff]  }
0x1b19   :  { %10122 = vmatpush2.bf16.msra.mxu1 %v15245_v57  ;;  %10165 = vmatpush2.bf16.msra.mxu0 %v15248_v19  ;;  %v15325_v57 = vld [vmem:[%s20875_s4 + $0x3dc] ss:$204 sps:$4 sm:$0xff]   ;;  %v15328_v19 = vld [vmem:[%s20875_s4 + $0x3e4] ss:$204 sps:$4 sm:$0xff]  }
0x1b1a   :  { %10123 = vmatprep.subr.bf16.mxu1 %v15253_v5  ;;  %10166 = vmatprep.subr.bf16.mxu0 %v15256_v58  ;;  %v15323_v5 = vld [vmem:[%s20875_s4 + $0x3d8] ss:$204 sps:$4 sm:$0xff]   ;;  %v15326_v58 = vld [vmem:[%s20875_s4 + $0x3e0] ss:$204 sps:$4 sm:$0xff]  }
0x1b1d   :  { %10124 = vmatpush2.bf16.msra.mxu1 %v15251_v55  ;;  %10167 = vmatpush2.bf16.msra.mxu0 %v15254_v10  ;;  %v15331_v55 = vld [vmem:[%s20875_s4 + $0x244] ss:$204 sps:$4 sm:$0xff]   ;;  %v15334_v10 = vld [vmem:[%s20875_s4 + $0x24c] ss:$204 sps:$4 sm:$0xff]  }
0x1b1e   :  { %10125 = vmatprep.subr.bf16.mxu1 %v15259_v27  ;;  %10168 = vmatprep.subr.bf16.mxu0 %v15262_v63  ;;  %v15329_v27 = vld [vmem:[%s20875_s4 + $0x240] ss:$204 sps:$4 sm:$0xff]   ;;  %v15332_v63 = vld [vmem:[%s20875_s4 + $0x248] ss:$204 sps:$4 sm:$0xff]  }
0x1b21   :  { %10126 = vmatpush2.bf16.msra.mxu1 %v15257_v23  ;;  %10169 = vmatpush2.bf16.msra.mxu0 %v15260_v44  ;;  %v15337_v23 = vld [vmem:[%s20875_s4 + $0xac] ss:$204 sps:$4 sm:$0xff]   ;;  %v15340_v44 = vld [vmem:[%s20875_s4 + $0xb4] ss:$204 sps:$4 sm:$0xff]  }
0x1b22   :  { %10127 = vmatprep.subr.bf16.mxu1 %v15265_v24  ;;  %10170 = vmatprep.subr.bf16.mxu0 %v15268_v9  ;;  %v15335_v24 = vld [vmem:[%s20875_s4 + $0xa8] ss:$204 sps:$4 sm:$0xff]   ;;  %v15338_v9 = vld [vmem:[%s20875_s4 + $0xb0] ss:$204 sps:$4 sm:$0xff]  }
0x1b25   :  { %10128 = vmatpush2.bf16.msra.mxu1 %v15263_v25  ;;  %10171 = vmatpush2.bf16.msra.mxu0 %v15266_v31  ;;  %v15343_v25 = vld [vmem:[%s20875_s4 + $0x1894] ss:$204 sps:$4 sm:$0xff]   ;;  %v15346_v31 = vld [vmem:[%s20875_s4 + $0x189c] ss:$204 sps:$4 sm:$0xff]  }
0x1b26   :  { %10129 = vmatprep.subr.bf16.mxu1 %v15271_v36  ;;  %10172 = vmatprep.subr.bf16.mxu0 %v15274_v38  ;;  %v15341_v36 = vld [vmem:[%s20875_s4 + $0x1890] ss:$204 sps:$4 sm:$0xff]   ;;  %v15344_v38 = vld [vmem:[%s20875_s4 + $0x1898] ss:$204 sps:$4 sm:$0xff]  }
0x1b29   :  { %10130 = vmatpush2.bf16.msra.mxu1 %v15269_v41  ;;  %10173 = vmatpush2.bf16.msra.mxu0 %v15272_v42  ;;  %v15349_v41 = vld [vmem:[%s20875_s4 + $0x16fc] ss:$204 sps:$4 sm:$0xff]   ;;  %v15352_v42 = vld [vmem:[%s20875_s4 + $0x1704] ss:$204 sps:$4 sm:$0xff]  }
0x1b2a   :  { %10131 = vmatprep.subr.bf16.mxu1 %v15277_v37  ;;  %10174 = vmatprep.subr.bf16.mxu0 %v15280_v51  ;;  %v15347_v37 = vld [vmem:[%s20875_s4 + $0x16f8] ss:$204 sps:$4 sm:$0xff]   ;;  %v15350_v51 = vld [vmem:[%s20875_s4 + $0x1700] ss:$204 sps:$4 sm:$0xff]  }
0x1b2d   :  { %10132 = vmatpush2.bf16.msra.mxu1 %v15275_v21  ;;  %10175 = vmatpush2.bf16.msra.mxu0 %v15278_v50  ;;  %v15355_v21 = vld [vmem:[%s20875_s4 + $0x1564] ss:$204 sps:$4 sm:$0xff]   ;;  %v15358_v50 = vld [vmem:[%s20875_s4 + $0x156c] ss:$204 sps:$4 sm:$0xff]  }
0x1b2e   :  { %10133 = vmatprep.subr.bf16.mxu1 %v15283_v11  ;;  %10176 = vmatprep.subr.bf16.mxu0 %v15286_v14  ;;  %v15353_v11 = vld [vmem:[%s20875_s4 + $0x1560] ss:$204 sps:$4 sm:$0xff]   ;;  %v15356_v14 = vld [vmem:[%s20875_s4 + $0x1568] ss:$204 sps:$4 sm:$0xff]  }
0x1b31   :  { %10134 = vmatpush2.bf16.msra.mxu1 %v15281_v45  ;;  %10177 = vmatpush2.bf16.msra.mxu0 %v15284_v13  ;;  %v15361_v45 = vld [vmem:[%s20875_s4 + $0x13cc] ss:$204 sps:$4 sm:$0xff]   ;;  %v15364_v13 = vld [vmem:[%s20875_s4 + $0x13d4] ss:$204 sps:$4 sm:$0xff]  }
0x1b32   :  { %10135 = vmatprep.subr.bf16.mxu1 %v15289_v60  ;;  %10178 = vmatprep.subr.bf16.mxu0 %v15292_v17  ;;  %v15359_v60 = vld [vmem:[%s20875_s4 + $0x13c8] ss:$204 sps:$4 sm:$0xff]   ;;  %v15362_v17 = vld [vmem:[%s20875_s4 + $0x13d0] ss:$204 sps:$4 sm:$0xff]  }
0x1b35   :  { %10136 = vmatpush2.bf16.msra.mxu1 %v15287_v59  ;;  %10179 = vmatpush2.bf16.msra.mxu0 %v15290_v29  ;;  %v15367_v59 = vld [vmem:[%s20875_s4 + $0x1234] ss:$204 sps:$4 sm:$0xff]   ;;  %v15370_v29 = vld [vmem:[%s20875_s4 + $0x123c] ss:$204 sps:$4 sm:$0xff]  }
0x1b36   :  { %10191 = vmatprep.subr.bf16.mxu1 %v15295_v8  ;;  %10234 = vmatprep.subr.bf16.mxu0 %v15298_v0  ;;  %v15365_v8 = vld [vmem:[%s20875_s4 + $0x1230] ss:$204 sps:$4 sm:$0xff]   ;;  %v15368_v0 = vld [vmem:[%s20875_s4 + $0x1238] ss:$204 sps:$4 sm:$0xff]  }
0x1b38   :  { %10138 = vmatmul.mubr.bf16.vlgmr.msra.gmra.mxu1 %v19328_v7  ;;  %10181 = vmatmul.mubr.bf16.vlgmr.msra.gmra.mxu0 %v19328_v7 }
0x1b39   :  { %10192 = vmatpush1.bf16.msra.mxu1 %v15293_v56  ;;  %10223 = vmatprep.mubr.bf16.mxu1 %v19332_v39  ;;  %v15373_v56 = vld [vmem:[%s20875_s4 + $0x109c] ss:$204 sps:$4 sm:$0xff]  }
0x1b3a   :  { %10235 = vmatpush1.bf16.msra.mxu0 %v15296_v32  ;;  %10266 = vmatprep.mubr.bf16.mxu0 %v19332_v39  ;;  %v15376_v32 = vld [vmem:[%s20875_s4 + $0x10a4] ss:$204 sps:$4 sm:$0xff]  }
0x1b3b   :  { %10193 = vmatprep.subr.bf16.mxu1 %v15301_v62  ;;  %10236 = vmatprep.subr.bf16.mxu0 %v15304_v2  ;;  %v15371_v62 = vld [vmem:[%s20875_s4 + $0x1098] ss:$204 sps:$4 sm:$0xff]   ;;  %v15374_v2 = vld [vmem:[%s20875_s4 + $0x10a0] ss:$204 sps:$4 sm:$0xff]  }
0x1b3d   :  { %10194 = vmatpush1.bf16.msra.mxu1 %v15299_v3  ;;  %v15379_v3 = vld [vmem:[%s20875_s4 + $0xf04] ss:$204 sps:$4 sm:$0xff]  }
0x1b3e   :  { %10237 = vmatpush1.bf16.msra.mxu0 %v15302_v61  ;;  %10195 = vmatprep.subr.bf16.mxu1 %v15307_v16  ;;  %v15382_v61 = vld [vmem:[%s20875_s4 + $0xf0c] ss:$204 sps:$4 sm:$0xff]  }
0x1b3f   :  { %10238 = vmatprep.subr.bf16.mxu0 %v15310_v4  ;;  %v15377_v16 = vld [vmem:[%s20875_s4 + $0xf00] ss:$204 sps:$4 sm:$0xff]   ;;  %v15380_v4 = vld [vmem:[%s20875_s4 + $0xf08] ss:$204 sps:$4 sm:$0xff]  }
0x1b41   :  { %10196 = vmatpush1.bf16.msra.mxu1 %v15305_v48  ;;  %v15385_v48 = vld [vmem:[%s20875_s4 + $0xd6c] ss:$204 sps:$4 sm:$0xff]  }
0x1b42   :  { %10239 = vmatpush1.bf16.msra.mxu0 %v15308_v20  ;;  %10197 = vmatprep.subr.bf16.mxu1 %v15313_v49  ;;  %v15388_v20 = vld [vmem:[%s20875_s4 + $0xd74] ss:$204 sps:$4 sm:$0xff]  }
0x1b43   :  { %10240 = vmatprep.subr.bf16.mxu0 %v15316_v46  ;;  %v15383_v49 = vld [vmem:[%s20875_s4 + $0xd68] ss:$204 sps:$4 sm:$0xff]   ;;  %v15386_v46 = vld [vmem:[%s20875_s4 + $0xd70] ss:$204 sps:$4 sm:$0xff]  }
0x1b45   :  { %10198 = vmatpush1.bf16.msra.mxu1 %v15311_v35  ;;  %v15391_v35 = vld [vmem:[%s20875_s4 + $0xbe4] ss:$204 sps:$4 sm:$0xff]  }
0x1b46   :  { %10241 = vmatpush1.bf16.msra.mxu0 %v15314_v40  ;;  %10199 = vmatprep.subr.bf16.mxu1 %v15319_v47  ;;  %v15394_v40 = vld [vmem:[%s20875_s4 + $0xbec] ss:$204 sps:$4 sm:$0xff]  }
0x1b47   :  { %10242 = vmatprep.subr.bf16.mxu0 %v15322_v30  ;;  %v15389_v47 = vld [vmem:[%s20875_s4 + $0xbe0] ss:$204 sps:$4 sm:$0xff]   ;;  %v15392_v30 = vld [vmem:[%s20875_s4 + $0xbe8] ss:$204 sps:$4 sm:$0xff]  }
0x1b49   :  { %10200 = vmatpush1.bf16.msra.mxu1 %v15317_v43  ;;  %v15397_v43 = vld [vmem:[%s20875_s4 + $0xa4c] ss:$204 sps:$4 sm:$0xff]  }
0x1b4a   :  { %10243 = vmatpush1.bf16.msra.mxu0 %v15320_v53  ;;  %10201 = vmatprep.subr.bf16.mxu1 %v15325_v57  ;;  %v15400_v53 = vld [vmem:[%s20875_s4 + $0xa54] ss:$204 sps:$4 sm:$0xff]  }
0x1b4b   :  { %10244 = vmatprep.subr.bf16.mxu0 %v15328_v19  ;;  %v15395_v57 = vld [vmem:[%s20875_s4 + $0xa48] ss:$204 sps:$4 sm:$0xff]   ;;  %v15398_v19 = vld [vmem:[%s20875_s4 + $0xa50] ss:$204 sps:$4 sm:$0xff]  }
0x1b4d   :  { %10202 = vmatpush1.bf16.msra.mxu1 %v15323_v5  ;;  %v15403_v5 = vld [vmem:[%s20875_s4 + $0x8b4] ss:$204 sps:$4 sm:$0xff]  }
0x1b4e   :  { %10245 = vmatpush1.bf16.msra.mxu0 %v15326_v58  ;;  %10203 = vmatprep.subr.bf16.mxu1 %v15331_v55  ;;  %v15406_v58 = vld [vmem:[%s20875_s4 + $0x8bc] ss:$204 sps:$4 sm:$0xff]  }
0x1b4f   :  { %10246 = vmatprep.subr.bf16.mxu0 %v15334_v10  ;;  %v15401_v55 = vld [vmem:[%s20875_s4 + $0x8b0] ss:$204 sps:$4 sm:$0xff]   ;;  %v15404_v10 = vld [vmem:[%s20875_s4 + $0x8b8] ss:$204 sps:$4 sm:$0xff]  }
0x1b51   :  { %10204 = vmatpush1.bf16.msra.mxu1 %v15329_v27  ;;  %v15412_v27 = vld [vmem:[%s20875_s4 + $0x724] ss:$204 sps:$4 sm:$0xff]  }
0x1b52   :  { %10247 = vmatpush1.bf16.msra.mxu0 %v15332_v63  ;;  %10205 = vmatprep.subr.bf16.mxu1 %v15337_v23  ;;  %v15407_v63 = vld [vmem:[%s20875_s4 + $0x718] ss:$204 sps:$4 sm:$0xff]   ;;  %v15410_v23 = vld [vmem:[%s20875_s4 + $0x720] ss:$204 sps:$4 sm:$0xff]  }
0x1b53   :  { %10248 = vmatprep.subr.bf16.mxu0 %v15340_v44  ;;  %v15415_v44 = vld [vmem:[%s20875_s4 + $0x584] ss:$204 sps:$4 sm:$0xff]  }
0x1b55   :  { %10206 = vmatpush1.bf16.msra.mxu1 %v15335_v24  ;;  %v15418_v24 = vld [vmem:[%s20875_s4 + $0x58c] ss:$204 sps:$4 sm:$0xff]  }
0x1b56   :  { %10249 = vmatpush1.bf16.msra.mxu0 %v15338_v9  ;;  %10207 = vmatprep.subr.bf16.mxu1 %v15343_v25  ;;  %v15413_v9 = vld [vmem:[%s20875_s4 + $0x580] ss:$204 sps:$4 sm:$0xff]   ;;  %v15416_v25 = vld [vmem:[%s20875_s4 + $0x588] ss:$204 sps:$4 sm:$0xff]  }
0x1b57   :  { %10250 = vmatprep.subr.bf16.mxu0 %v15346_v31  ;;  %v15421_v31 = vld [vmem:[%s20875_s4 + $0x3ec] ss:$204 sps:$4 sm:$0xff]  }
0x1b59   :  { %10208 = vmatpush2.bf16.msra.mxu1 %v15341_v36  ;;  %v15424_v36 = vld [vmem:[%s20875_s4 + $0x3f4] ss:$204 sps:$4 sm:$0xff]  }
0x1b5a   :  { %10251 = vmatpush2.bf16.msra.mxu0 %v15344_v38  ;;  %10209 = vmatprep.subr.bf16.mxu1 %v15349_v41  ;;  %v15419_v38 = vld [vmem:[%s20875_s4 + $0x3e8] ss:$204 sps:$4 sm:$0xff]   ;;  %v15422_v41 = vld [vmem:[%s20875_s4 + $0x3f0] ss:$204 sps:$4 sm:$0xff]  }
0x1b5b   :  { %10252 = vmatprep.subr.bf16.mxu0 %v15352_v42  ;;  %v15427_v42 = vld [vmem:[%s20875_s4 + $0x254] ss:$204 sps:$4 sm:$0xff]  }
0x1b5d   :  { %10210 = vmatpush2.bf16.msra.mxu1 %v15347_v37  ;;  %v15430_v37 = vld [vmem:[%s20875_s4 + $0x25c] ss:$204 sps:$4 sm:$0xff]  }
0x1b5e   :  { %10253 = vmatpush2.bf16.msra.mxu0 %v15350_v51  ;;  %10211 = vmatprep.subr.bf16.mxu1 %v15355_v21  ;;  %v15425_v51 = vld [vmem:[%s20875_s4 + $0x250] ss:$204 sps:$4 sm:$0xff]   ;;  %v15428_v21 = vld [vmem:[%s20875_s4 + $0x258] ss:$204 sps:$4 sm:$0xff]  }
0x1b5f   :  { %10254 = vmatprep.subr.bf16.mxu0 %v15358_v50  ;;  %v15433_v50 = vld [vmem:[%s20875_s4 + $0xbc] ss:$204 sps:$4 sm:$0xff]  }
0x1b61   :  { %10212 = vmatpush2.bf16.msra.mxu1 %v15353_v11  ;;  %v15436_v11 = vld [vmem:[%s20875_s4 + $0xc4] ss:$204 sps:$4 sm:$0xff]  }
0x1b62   :  { %10255 = vmatpush2.bf16.msra.mxu0 %v15356_v14  ;;  %10213 = vmatprep.subr.bf16.mxu1 %v15361_v45  ;;  %v15431_v14 = vld [vmem:[%s20875_s4 + $0xb8] ss:$204 sps:$4 sm:$0xff]   ;;  %v15434_v45 = vld [vmem:[%s20875_s4 + $0xc0] ss:$204 sps:$4 sm:$0xff]  }
0x1b63   :  { %10256 = vmatprep.subr.bf16.mxu0 %v15364_v13  ;;  %v15439_v13 = vld [vmem:[%s20875_s4 + $0x18a4] ss:$204 sps:$4 sm:$0xff]  }
0x1b65   :  { %10214 = vmatpush2.bf16.msra.mxu1 %v15359_v60  ;;  %v15442_v60 = vld [vmem:[%s20875_s4 + $0x18ac] ss:$204 sps:$4 sm:$0xff]  }
0x1b66   :  { %10257 = vmatpush2.bf16.msra.mxu0 %v15362_v17  ;;  %10215 = vmatprep.subr.bf16.mxu1 %v15367_v59  ;;  %v15437_v17 = vld [vmem:[%s20875_s4 + $0x18a0] ss:$204 sps:$4 sm:$0xff]   ;;  %v15440_v59 = vld [vmem:[%s20875_s4 + $0x18a8] ss:$204 sps:$4 sm:$0xff]  }
0x1b67   :  { %10258 = vmatprep.subr.bf16.mxu0 %v15370_v29  ;;  %v15445_v29 = vld [vmem:[%s20875_s4 + $0x170c] ss:$204 sps:$4 sm:$0xff]  }
0x1b69   :  { %10216 = vmatpush2.bf16.msra.mxu1 %v15365_v8  ;;  %v15448_v8 = vld [vmem:[%s20875_s4 + $0x1714] ss:$204 sps:$4 sm:$0xff]  }
0x1b6a   :  { %10259 = vmatpush2.bf16.msra.mxu0 %v15368_v0  ;;  %10217 = vmatprep.subr.bf16.mxu1 %v15373_v56  ;;  %v15443_v0 = vld [vmem:[%s20875_s4 + $0x1708] ss:$204 sps:$4 sm:$0xff]   ;;  %v15446_v56 = vld [vmem:[%s20875_s4 + $0x1710] ss:$204 sps:$4 sm:$0xff]  }
0x1b6b   :  { %10260 = vmatprep.subr.bf16.mxu0 %v15376_v32  ;;  %v15451_v32 = vld [vmem:[%s20875_s4 + $0x1574] ss:$204 sps:$4 sm:$0xff]  }
0x1b6d   :  { %10218 = vmatpush2.bf16.msra.mxu1 %v15371_v62  ;;  %v15454_v62 = vld [vmem:[%s20875_s4 + $0x157c] ss:$204 sps:$4 sm:$0xff]  }
0x1b6e   :  { %10261 = vmatpush2.bf16.msra.mxu0 %v15374_v2  ;;  %10219 = vmatprep.subr.bf16.mxu1 %v15379_v3  ;;  %v15449_v2 = vld [vmem:[%s20875_s4 + $0x1570] ss:$204 sps:$4 sm:$0xff]   ;;  %v15452_v3 = vld [vmem:[%s20875_s4 + $0x1578] ss:$204 sps:$4 sm:$0xff]  }
0x1b6f   :  { %10262 = vmatprep.subr.bf16.mxu0 %v15382_v61  ;;  %v15457_v61 = vld [vmem:[%s20875_s4 + $0x13dc] ss:$204 sps:$4 sm:$0xff]  }
0x1b71   :  { %10220 = vmatpush2.bf16.msra.mxu1 %v15377_v16  ;;  %v15460_v16 = vld [vmem:[%s20875_s4 + $0x13e4] ss:$204 sps:$4 sm:$0xff]  }
0x1b72   :  { %10263 = vmatpush2.bf16.msra.mxu0 %v15380_v4  ;;  %10221 = vmatprep.subr.bf16.mxu1 %v15385_v48  ;;  %v15455_v4 = vld [vmem:[%s20875_s4 + $0x13d8] ss:$204 sps:$4 sm:$0xff]   ;;  %v15458_v48 = vld [vmem:[%s20875_s4 + $0x13e0] ss:$204 sps:$4 sm:$0xff]  }
0x1b73   :  { %10264 = vmatprep.subr.bf16.mxu0 %v15388_v20  ;;  %v15463_v20 = vld [vmem:[%s20875_s4 + $0x1244] ss:$204 sps:$4 sm:$0xff]  }
0x1b75   :  { %10222 = vmatpush2.bf16.msra.mxu1 %v15383_v49  ;;  %v15466_v49 = vld [vmem:[%s20875_s4 + $0x124c] ss:$204 sps:$4 sm:$0xff]  }
0x1b76   :  { %10265 = vmatpush2.bf16.msra.mxu0 %v15386_v46  ;;  %10277 = vmatprep.subr.bf16.mxu1 %v15391_v35  ;;  %v15461_v46 = vld [vmem:[%s20875_s4 + $0x1240] ss:$204 sps:$4 sm:$0xff]   ;;  %v15464_v35 = vld [vmem:[%s20875_s4 + $0x1248] ss:$204 sps:$4 sm:$0xff]  }
0x1b77   :  { %10320 = vmatprep.subr.bf16.mxu0 %v15394_v40  ;;  %v15469_v40 = vld [vmem:[%s20875_s4 + $0x10ac] ss:$204 sps:$4 sm:$0xff]  }
0x1b78   :  { %10224 = vmatmul.mubr.bf16.vlgmr.msra.gmra.mxu1 %v19328_v7 }
0x1b79   :  { %10267 = vmatmul.mubr.bf16.vlgmr.msra.gmra.mxu0 %v19328_v7  ;;  %10278 = vmatpush1.bf16.msra.mxu1 %v15389_v47  ;;  %v15472_v47 = vld [vmem:[%s20875_s4 + $0x10b4] ss:$204 sps:$4 sm:$0xff]  }
0x1b7a   :  { %10309 = vmatprep.mubr.bf16.mxu1 %v19332_v39  ;;  %10321 = vmatpush1.bf16.msra.mxu0 %v15392_v30  ;;  %v15467_v30 = vld [vmem:[%s20875_s4 + $0x10a8] ss:$204 sps:$4 sm:$0xff]  }
0x1b7b   :  { %10352 = vmatprep.mubr.bf16.mxu0 %v19332_v39  ;;  %10279 = vmatprep.subr.bf16.mxu1 %v15397_v43  ;;  %v15409_v39 = vld [vmem:[%s20875_s4 + $0x71c] ss:$204 sps:$4 sm:$0xff]  }
0x1b7c   :  { %10322 = vmatprep.subr.bf16.mxu0 %v15400_v53  ;;  %v15470_v43 = vld [vmem:[%s20875_s4 + $0x10b0] ss:$204 sps:$4 sm:$0xff]   ;;  %v15475_v53 = vld [vmem:[%s20875_s4 + $0xf14] ss:$204 sps:$4 sm:$0xff]  }
0x1b7d   :  { %10280 = vmatpush1.bf16.msra.mxu1 %v15395_v57  ;;  %v15478_v57 = vld [vmem:[%s20875_s4 + $0xf1c] ss:$204 sps:$4 sm:$0xff]  }
0x1b7e   :  { %10323 = vmatpush1.bf16.msra.mxu0 %v15398_v19  ;;  %10281 = vmatprep.subr.bf16.mxu1 %v15403_v5  ;;  %v15473_v19 = vld [vmem:[%s20875_s4 + $0xf10] ss:$204 sps:$4 sm:$0xff]   ;;  %v15476_v5 = vld [vmem:[%s20875_s4 + $0xf18] ss:$204 sps:$4 sm:$0xff]  }
0x1b7f   :  { %10324 = vmatprep.subr.bf16.mxu0 %v15406_v58  ;;  %v15481_v58 = vld [vmem:[%s20875_s4 + $0xd7c] ss:$204 sps:$4 sm:$0xff]  }
0x1b81   :  { %10282 = vmatpush1.bf16.msra.mxu1 %v15401_v55  ;;  %v15484_v55 = vld [vmem:[%s20875_s4 + $0xd84] ss:$204 sps:$4 sm:$0xff]  }
0x1b82   :  { %10325 = vmatpush1.bf16.msra.mxu0 %v15404_v10  ;;  %10283 = vmatprep.subr.bf16.mxu1 %v15409_v39  ;;  %v15479_v10 = vld [vmem:[%s20875_s4 + $0xd78] ss:$204 sps:$4 sm:$0xff]   ;;  %v15482_v39 = vld [vmem:[%s20875_s4 + $0xd80] ss:$204 sps:$4 sm:$0xff]  }
0x1b83   :  { %10326 = vmatprep.subr.bf16.mxu0 %v15412_v27  ;;  %v15487_v27 = vld [vmem:[%s20871_s5 + $0x894] ss:$8 sps:$4 sm:$0xff]  }
0x1b85   :  { %10284 = vmatpush1.bf16.msra.mxu1 %v15407_v63  ;;  %v15490_v63 = vld [vmem:[%s20871_s5 + $0x994] ss:$8 sps:$4 sm:$0xff]  }
0x1b86   :  { %10327 = vmatpush1.bf16.msra.mxu0 %v15410_v23  ;;  %10285 = vmatprep.subr.bf16.mxu1 %v15415_v44  ;;  %v12374_v23 = vld [vmem:[%s20872_s3 + $0x182] ss:$8 sm:$0xf] }
0x1b87   :  { %10328 = vmatprep.subr.bf16.mxu0 %v15418_v24  ;;  %v12375_v44 = vld [vmem:[%s20872_s3 + $0x182] ss:$8 sm:$0xf0] }
0x1b88   :  { %v15485_v24 = vld [vmem:[%s20871_s5 + $0x890] ss:$8 sps:$4 sm:$0xff]  }
0x1b89   :  { %10286 = vmatpush1.bf16.msra.mxu1 %v15413_v9  ;;  %v15488_v9 = vld [vmem:[%s20871_s5 + $0x990] ss:$8 sps:$4 sm:$0xff]  }
0x1b8a   :  { %10329 = vmatpush1.bf16.msra.mxu0 %v15416_v25  ;;  %10287 = vmatprep.subr.bf16.mxu1 %v15421_v31  ;;  %v15493_v25 = vld [vmem:[%s20871_s5 + $0x884] ss:$8 sps:$4 sm:$0xff]   ;;  %v19939_v31 = vor.u32 %v12375_v44, %v12374_v23  ;;  %v15530_v23 = vld [vmem:[%s20871_s5 + $0x920] ss:$8 sps:$4 sm:$0xff]   ;;  %v15535_v44 = vld [vmem:[%s20871_s5 + $0x914] ss:$8 sps:$4 sm:$0xff]  }
0x1b8b   :  { %10330 = vmatprep.subr.bf16.mxu0 %v15424_v36  ;;  %v15496_v36 = vld [vmem:[%s20871_s5 + $0x984] ss:$8 sps:$4 sm:$0xff]  }
0x1b8d   :  { %10288 = vmatpush1.bf16.msra.mxu1 %v15419_v38 }
0x1b8e   :  { %10331 = vmatpush1.bf16.msra.mxu0 %v15422_v41  ;;  %10289 = vmatprep.subr.bf16.mxu1 %v15427_v42  ;;  %v8666_v42 = vrot.slane %v19939_v31, %v16173_v34 }
0x1b8f   :  { %10332 = vmatprep.subr.bf16.mxu0 %v15430_v37  ;;  %v8674_v37 = vrot.slane %v19939_v31, %v16583_v22 }
0x1b91   :  { %10290 = vmatpush1.bf16.msra.mxu1 %v15425_v51  ;;  %v15491_v51 = vld [vmem:[%s20871_s5 + $0x880] ss:$8 sps:$4 sm:$0xff]  }
0x1b92   :  { %10333 = vmatpush1.bf16.msra.mxu0 %v15428_v21  ;;  %10291 = vmatprep.subr.bf16.mxu1 %v15433_v50 }
0x1b93   :  { %10334 = vmatprep.subr.bf16.mxu0 %v15436_v11  ;;  %v15494_v11 = vld [vmem:[%s20871_s5 + $0x980] ss:$8 sps:$4 sm:$0xff]  }
0x1b95   :  { %10292 = vmatpush1.bf16.msra.mxu1 %v15431_v14  ;;  %v15502_v14 = vld [vmem:[%s20871_s5 + $0x974] ss:$8 sps:$4 sm:$0xff]  }
0x1b96   :  { %10335 = vmatpush1.bf16.msra.mxu0 %v15434_v45  ;;  %10293 = vmatprep.subr.bf16.mxu1 %v15439_v13 }
0x1b97   :  { %10336 = vmatprep.subr.bf16.mxu0 %v15442_v60 }
0x1b99   :  { %10294 = vmatpush2.bf16.msra.mxu1 %v15437_v17 }
0x1b9a   :  { %10337 = vmatpush2.bf16.msra.mxu0 %v15440_v59  ;;  %10295 = vmatprep.subr.bf16.mxu1 %v15445_v29  ;;  %v15497_v59 = vld [vmem:[%s20871_s5 + $0x870] ss:$8 sps:$4 sm:$0xff]  }
0x1b9b   :  { %10338 = vmatprep.subr.bf16.mxu0 %v15448_v8 }
0x1b9d   :  { %10296 = vmatpush2.bf16.msra.mxu1 %v15443_v0  ;;  %v15500_v0 = vld [vmem:[%s20871_s5 + $0x970] ss:$8 sps:$4 sm:$0xff]  }
0x1b9e   :  { %10339 = vmatpush2.bf16.msra.mxu0 %v15446_v56  ;;  %10297 = vmatprep.subr.bf16.mxu1 %v15451_v32  ;;  %v15505_v56 = vld [vmem:[%s20871_s5 + $0x864] ss:$8 sps:$4 sm:$0xff]  }
0x1b9f   :  { %10340 = vmatprep.subr.bf16.mxu0 %v15454_v62 }
0x1ba1   :  { %10298 = vmatpush2.bf16.msra.mxu1 %v15449_v2  ;;  %v15508_v2 = vld [vmem:[%s20871_s5 + $0x964] ss:$8 sps:$4 sm:$0xff]  }
0x1ba2   :  { %10341 = vmatpush2.bf16.msra.mxu0 %v15452_v3  ;;  %10299 = vmatprep.subr.bf16.mxu1 %v15457_v61 }
0x1ba3   :  { %10342 = vmatprep.subr.bf16.mxu0 %v15460_v16 }
0x1ba5   :  { %10300 = vmatpush2.bf16.msra.mxu1 %v15455_v4 }
0x1ba6   :  { %10343 = vmatpush2.bf16.msra.mxu0 %v15458_v48  ;;  %10301 = vmatprep.subr.bf16.mxu1 %v15463_v20  ;;  %v15503_v48 = vld [vmem:[%s20871_s5 + $0x860] ss:$8 sps:$4 sm:$0xff]  }
0x1ba7   :  { %10344 = vmatprep.subr.bf16.mxu0 %v15466_v49  ;;  %v15506_v20 = vld [vmem:[%s20871_s5 + $0x960] ss:$8 sps:$4 sm:$0xff]  }
0x1ba9   :  { %10302 = vmatpush2.bf16.msra.mxu1 %v15461_v46 }
0x1baa   :  { %10345 = vmatpush2.bf16.msra.mxu0 %v15464_v35  ;;  %10303 = vmatprep.subr.bf16.mxu1 %v15469_v40  ;;  %v15511_v35 = vld [vmem:[%s20871_s5 + $0x854] ss:$8 sps:$4 sm:$0xff]  }
0x1bab   :  { %10346 = vmatprep.subr.bf16.mxu0 %v15472_v47  ;;  %v15514_v40 = vld [vmem:[%s20871_s5 + $0x954] ss:$8 sps:$4 sm:$0xff]   ;;  %v15509_v47 = vld [vmem:[%s20871_s5 + $0x850] ss:$8 sps:$4 sm:$0xff]  }
0x1bad   :  { %10304 = vmatpush2.bf16.msra.mxu1 %v15467_v30  ;;  %v15512_v30 = vld [vmem:[%s20871_s5 + $0x950] ss:$8 sps:$4 sm:$0xff]  }
0x1bae   :  { %10347 = vmatpush2.bf16.msra.mxu0 %v15470_v43  ;;  %10305 = vmatprep.subr.bf16.mxu1 %v15475_v53  ;;  %v15517_v43 = vld [vmem:[%s20871_s5 + $0x844] ss:$8 sps:$4 sm:$0xff]  }
0x1baf   :  { %10348 = vmatprep.subr.bf16.mxu0 %v15478_v57  ;;  %v15520_v53 = vld [vmem:[%s20871_s5 + $0x944] ss:$8 sps:$4 sm:$0xff]   ;;  %v15515_v57 = vld [vmem:[%s20871_s5 + $0x840] ss:$8 sps:$4 sm:$0xff]  }
0x1bb1   :  { %10306 = vmatpush2.bf16.msra.mxu1 %v15473_v19  ;;  %v15518_v19 = vld [vmem:[%s20871_s5 + $0x940] ss:$8 sps:$4 sm:$0xff]  }
0x1bb2   :  { %10349 = vmatpush2.bf16.msra.mxu0 %v15476_v5  ;;  %10307 = vmatprep.subr.bf16.mxu1 %v15481_v58  ;;  %v15523_v5 = vld [vmem:[%s20871_s5 + $0x834] ss:$8 sps:$4 sm:$0xff]  }
0x1bb3   :  { %10350 = vmatprep.subr.bf16.mxu0 %v15484_v55  ;;  %v15526_v58 = vld [vmem:[%s20871_s5 + $0x934] ss:$8 sps:$4 sm:$0xff]   ;;  %v15521_v55 = vld [vmem:[%s20871_s5 + $0x830] ss:$8 sps:$4 sm:$0xff]  }
0x1bb5   :  { %10308 = vmatpush2.bf16.msra.mxu1 %v15479_v10  ;;  %v15524_v10 = vld [vmem:[%s20871_s5 + $0x930] ss:$8 sps:$4 sm:$0xff]  }
0x1bb6   :  { %10351 = vmatpush2.bf16.msra.mxu0 %v15482_v39  ;;  %11702 = vmatprep.subr.bf16.mxu1 %v15487_v27  ;;  %v15529_v39 = vld [vmem:[%s20871_s5 + $0x824] ss:$8 sps:$4 sm:$0xff]  }
0x1bb7   :  { %11745 = vmatprep.subr.bf16.mxu0 %v15490_v63  ;;  %v15532_v27 = vld [vmem:[%s20871_s5 + $0x924] ss:$8 sps:$4 sm:$0xff]   ;;  %v15527_v63 = vld [vmem:[%s20871_s5 + $0x820] ss:$8 sps:$4 sm:$0xff]  }
0x1bb8   :  { %10310 = vmatmul.mubr.bf16.vlgmr.msra.gmra.mxu1 %v19328_v7  ;;  %v19945_v38 = vpop.f32.mrf.mxu1  ;;  %v19947_v41 = vpop.f32.mrf.mxu0 }
0x1bb9   :  { %10353 = vmatmul.mubr.bf16.vlgmr.msra.gmra.mxu0 %v19328_v7  ;;  %11703 = vmatpush1.bf16.msra.mxu1 %v15485_v24  ;;  %v15499_v7 = vld [vmem:[%s20871_s5 + $0x874] ss:$8 sps:$4 sm:$0xff]  }
0x1bba   :  { %11746 = vmatpush1.bf16.msra.mxu0 %v15488_v9  ;;  %v10055_v21 = vpop.f32.mrf.mxu1  ;;  %v10098_v50 = vpop.f32.mrf.mxu0  ;;  %11704 = vmatprep.subr.bf16.mxu1 %v15493_v25  ;;  %v15538_v24 = vld [vmem:[%s20871_s5 + $0xa14] ss:$8 sps:$4 sm:$0xff]   ;;  %v15533_v9 = vld [vmem:[%s20871_s5 + $0x910] ss:$8 sps:$4 sm:$0xff]  }
0x1bbb   :  { %11747 = vmatprep.subr.bf16.mxu0 %v15496_v36  ;;  %v10056_v60 = vadd.f32 %v10055_v21, %v8666_v42  ;;  %v10099_v17 = vadd.f32 %v10098_v50, %v8674_v37  ;;  %v15536_v25 = vld [vmem:[%s20871_s5 + $0xa10] ss:$8 sps:$4 sm:$0xff]   ;;  %v15541_v36 = vld [vmem:[%s20871_s5 + $0x904] ss:$8 sps:$4 sm:$0xff]   ;;  %v15547_v21 = vld [vmem:[%s20871_s5 + $0x8f4] ss:$8 sps:$4 sm:$0xff]  }
0x1bbc   :  { %v19966_v45 = vpop.f32.mrf.mxu1  ;;  %v19968_v13 = vpop.f32.mrf.mxu0  ;;  %v15550_v50 = vld [vmem:[%s20871_s5 + $0x9f4] ss:$8 sps:$4 sm:$0xff]  }
0x1bbd   :  { %11705 = vmatpush1.bf16.msra.mxu1 %v15491_v51  ;;  %v10364_v3 = vmax.f32 %v10056_v60, 0.0  ;;  %v10366_v61 = vmax.f32 %v10099_v17, 0.0  ;;  %v15542_v51 = vld [vmem:[%s20871_s5 + $0xa00] ss:$8 sps:$4 sm:$0xff]   ;;  %v15556_v60 = vld [vmem:[%s20871_s5 + $0x9e4] ss:$8 sps:$4 sm:$0xff]  }
0x1bbe   :  { %11748 = vmatpush1.bf16.msra.mxu0 %v15494_v11  ;;  %v10059_v29 = vpop.f32.mrf.mxu1  ;;  %v10102_v8 = vpop.f32.mrf.mxu0  ;;  %11706 = vmatprep.subr.bf16.mxu1 %v15499_v7  ;;  %v15545_v11 = vld [vmem:[%s20871_s5 + $0x8f0] ss:$8 sps:$4 sm:$0xff]   ;;  %v15551_v17 = vld [vmem:[%s20871_s5 + $0x8e0] ss:$8 sps:$4 sm:$0xff]  }
0x1bbf   :  { %v10060_v32 = vadd.f32 %v10059_v29, %v8666_v42  ;;  %v10103_v62 = vadd.f32 %v10102_v8, %v8674_v37  ;;  %11749 = vmatprep.subr.bf16.mxu0 %v15502_v14  ;;  %v15544_v42 = vld [vmem:[%s20871_s5 + $0xa04] ss:$8 sps:$4 sm:$0xff]   ;;  %v15539_v37 = vld [vmem:[%s20871_s5 + $0x900] ss:$8 sps:$4 sm:$0xff]   ;;  %v15548_v7 = vld [vmem:[%s20871_s5 + $0x9f0] ss:$8 sps:$4 sm:$0xff]  }
0x1bc0   :  { %v15553_v14 = vld [vmem:[%s20871_s5 + $0x8e4] ss:$8 sps:$4 sm:$0xff]   ;;  %v15559_v29 = vld [vmem:[%s20871_s5 + $0x8d4] ss:$8 sps:$4 sm:$0xff]  }
0x1bc1   :  { %v10380_v16 = vmax.f32 %v10060_v32, 0.0  ;;  %v10382_v4 = vmax.f32 %v10103_v62, 0.0  ;;  %11707 = vmatpush1.bf16.msra.mxu1 %v15497_v59  ;;  %v15554_v59 = vld [vmem:[%s20871_s5 + $0x9e0] ss:$8 sps:$4 sm:$0xff]   ;;  %v15562_v8 = vld [vmem:[%s20871_s5 + $0x9d4] ss:$8 sps:$4 sm:$0xff]  }
0x1bc2   :  { %11750 = vmatpush1.bf16.msra.mxu0 %v15500_v0  ;;  %11708 = vmatprep.subr.bf16.mxu1 %v15505_v56  ;;  %v15557_v0 = vld [vmem:[%s20871_s5 + $0x8d0] ss:$8 sps:$4 sm:$0xff]   ;;  %v15565_v32 = vld [vmem:[%s20871_s5 + $0x8c4] ss:$8 sps:$4 sm:$0xff]  }
0x1bc3   :  { %v10396_v49 = vpack.c.bf16 %v10380_v16, %v10364_v3  ;;  %v10398_v46 = vpack.c.bf16 %v10382_v4, %v10366_v61  ;;  %11751 = vmatprep.subr.bf16.mxu0 %v15508_v2  ;;  %v15560_v56 = vld [vmem:[%s20871_s5 + $0x9d0] ss:$8 sps:$4 sm:$0xff]   ;;  %v15568_v62 = vld [vmem:[%s20871_s5 + $0x9c4] ss:$8 sps:$4 sm:$0xff]   ;;  %v15563_v2 = vld [vmem:[%s20871_s5 + $0x8c0] ss:$8 sps:$4 sm:$0xff]   ;;  %v8662_v4 = vrot.slane %v19939_v31, %v16170_v33 }
0x1bc4   :  { %v15566_v3 = vld [vmem:[%s20871_s5 + $0x9c0] ss:$8 sps:$4 sm:$0xff]   ;;  %v15571_v61 = vld [vmem:[%s20871_s5 + $0x8b4] ss:$8 sps:$4 sm:$0xff]  }
0x1bc5   :  { %11709 = vmatpush1.bf16.msra.mxu1 %v15503_v48  ;;  %11734 = vmatprep.mubr.bf16.mxu1 %v10396_v49  ;;  %v15574_v16 = vld [vmem:[%s20871_s5 + $0x9b4] ss:$8 sps:$4 sm:$0xff]   ;;  %v8670_v48 = vrot.slane %v19939_v31, %v16542_v12  ;;  %v10058_v49 = vadd.f32 %v19966_v45, %v8662_v4 }
0x1bc6   :  { %11752 = vmatpush1.bf16.msra.mxu0 %v15506_v20  ;;  %11777 = vmatprep.mubr.bf16.mxu0 %v10398_v46  ;;  %v15569_v20 = vld [vmem:[%s20871_s5 + $0x8b0] ss:$8 sps:$4 sm:$0xff]  }
0x1bc7   :  { %11710 = vmatprep.subr.bf16.mxu1 %v15511_v35  ;;  %11753 = vmatprep.subr.bf16.mxu0 %v15514_v40  ;;  %v15572_v46 = vld [vmem:[%s20871_s5 + $0x9b0] ss:$8 sps:$4 sm:$0xff]   ;;  %v15577_v35 = vld [vmem:[%s20871_s5 + $0x8a4] ss:$8 sps:$4 sm:$0xff]   ;;  %v10101_v40 = vadd.f32 %v19968_v13, %v8670_v48  ;;  %v10097_v45 = vadd.f32 %v19947_v41, %v8670_v48  ;;  %v15578_v13 = vld [vmem:[%s20871_s5 + $0x9a0] ss:$8 sps:$4 sm:$0xff]  }
0x1bc9   :  { %11711 = vmatpush1.bf16.msra.mxu1 %v15509_v47  ;;  %v15580_v47 = vld [vmem:[%s20871_s5 + $0x9a4] ss:$8 sps:$4 sm:$0xff]  }
0x1bca   :  { %11754 = vmatpush1.bf16.msra.mxu0 %v15512_v30  ;;  %11712 = vmatprep.subr.bf16.mxu1 %v15517_v43  ;;  %v10054_v30 = vadd.f32 %v19945_v38, %v8662_v4  ;;  %v15575_v43 = vld [vmem:[%s20871_s5 + $0x8a0] ss:$8 sps:$4 sm:$0xff]   ;;  %v15586_v38 = vld [vmem:[%s20871_s5 + $0xb94] ss:$8 sps:$4 sm:$0xff]  }
0x1bcb   :  { %11755 = vmatprep.subr.bf16.mxu0 %v15520_v53  ;;  %v10379_v53 = vmax.f32 %v10058_v49, 0.0  ;;  %v15602_v4 = vld [vmem:[%s20871_s5 + $0xb60] ss:$8 sps:$4 sm:$0xff]   ;;  %v15607_v49 = vld [vmem:[%s20871_s5 + $0xa54] ss:$8 sps:$4 sm:$0xff]  }
0x1bcc   :  { %v10363_v41 = vmax.f32 %v10054_v30, 0.0  ;;  %v15616_v30 = vld [vmem:[%s20871_s5 + $0xb44] ss:$8 sps:$4 sm:$0xff]  }
0x1bcd   :  { %11713 = vmatpush1.bf16.msra.mxu1 %v15515_v57  ;;  %v15583_v57 = vld [vmem:[%s20871_s5 + $0xa94] ss:$8 sps:$4 sm:$0xff]  }
0x1bce   :  { %11756 = vmatpush1.bf16.msra.mxu0 %v15518_v19  ;;  %11714 = vmatprep.subr.bf16.mxu1 %v15523_v5  ;;  %v10381_v19 = vmax.f32 %v10101_v40, 0.0  ;;  %v10365_v5 = vmax.f32 %v10097_v45, 0.0  ;;  %v15608_v40 = vld [vmem:[%s20871_s5 + $0xb50] ss:$8 sps:$4 sm:$0xff]   ;;  %v15611_v45 = vld [vmem:[%s20871_s5 + $0xa40] ss:$8 sps:$4 sm:$0xff]  }
0x1bcf   :  { %11757 = vmatprep.subr.bf16.mxu0 %v15526_v58  ;;  %v15581_v58 = vld [vmem:[%s20871_s5 + $0xa90] ss:$8 sps:$4 sm:$0xff]  }
0x1bd1   :  { %11715 = vmatpush1.bf16.msra.mxu1 %v15521_v55  ;;  %v10395_v55 = vpack.c.bf16 %v10379_v53, %v10363_v41  ;;  %v15619_v53 = vld [vmem:[%s20871_s5 + $0xa34] ss:$8 sps:$4 sm:$0xff]   ;;  %v15628_v41 = vld [vmem:[%s20871_s5 + $0xb24] ss:$8 sps:$4 sm:$0xff]  }
0x1bd2   :  { %11758 = vmatpush1.bf16.msra.mxu0 %v15524_v10  ;;  %11716 = vmatprep.subr.bf16.mxu1 %v15529_v39  ;;  %v15584_v10 = vld [vmem:[%s20871_s5 + $0xb90] ss:$8 sps:$4 sm:$0xff]   ;;  %v15589_v39 = vld [vmem:[%s20871_s5 + $0xa84] ss:$8 sps:$4 sm:$0xff]  }
0x1bd3   :  { %11759 = vmatprep.subr.bf16.mxu0 %v15532_v27  ;;  %v10397_v27 = vpack.c.bf16 %v10381_v19, %v10365_v5  ;;  %v15620_v19 = vld [vmem:[%s20871_s5 + $0xb30] ss:$8 sps:$4 sm:$0xff]   ;;  %v15623_v5 = vld [vmem:[%s20871_s5 + $0xa20] ss:$8 sps:$4 sm:$0xff]  }
0x1bd5   :  { %11717 = vmatpush1.bf16.msra.mxu1 %v15527_v63  ;;  %v15592_v63 = vld [vmem:[%s20871_s5 + $0xb84] ss:$8 sps:$4 sm:$0xff]  }
0x1bd6   :  { %11760 = vmatpush1.bf16.msra.mxu0 %v15530_v23  ;;  %11718 = vmatprep.subr.bf16.mxu1 %v15535_v44 }
0x1bd7   :  { %11761 = vmatprep.subr.bf16.mxu0 %v15538_v24  ;;  %v8682_v24 = vrot.slane %v19939_v31, %v16649_v6 }
0x1bd9   :  { %11719 = vmatpush2.bf16.msra.mxu1 %v15533_v9  ;;  %v8690_v9 = vrot.slane %v19939_v31, %v17853_v54 }
0x1bda   :  { %11762 = vmatpush2.bf16.msra.mxu0 %v15536_v25  ;;  %11720 = vmatprep.subr.bf16.mxu1 %v15541_v36  ;;  %v15587_v25 = vld [vmem:[%s20871_s5 + $0xa80] ss:$8 sps:$4 sm:$0xff]  }
0x1bdb   :  { %11763 = vmatprep.subr.bf16.mxu0 %v15544_v42 }
0x1bdd   :  { %11721 = vmatpush2.bf16.msra.mxu1 %v15539_v37  ;;  %v15590_v37 = vld [vmem:[%s20871_s5 + $0xb80] ss:$8 sps:$4 sm:$0xff]  }
0x1bde   :  { %11764 = vmatpush2.bf16.msra.mxu0 %v15542_v51  ;;  %11722 = vmatprep.subr.bf16.mxu1 %v15547_v21  ;;  %v15595_v51 = vld [vmem:[%s20871_s5 + $0xa74] ss:$8 sps:$4 sm:$0xff]  }
0x1bdf   :  { %11765 = vmatprep.subr.bf16.mxu0 %v15550_v50  ;;  %v15598_v21 = vld [vmem:[%s20871_s5 + $0xb74] ss:$8 sps:$4 sm:$0xff]  }
0x1be1   :  { %11723 = vmatpush2.bf16.msra.mxu1 %v15545_v11 }
0x1be2   :  { %11766 = vmatpush2.bf16.msra.mxu0 %v15548_v7  ;;  %11724 = vmatprep.subr.bf16.mxu1 %v15553_v14 }
0x1be3   :  { %11767 = vmatprep.subr.bf16.mxu0 %v15556_v60  ;;  %v15593_v60 = vld [vmem:[%s20871_s5 + $0xa70] ss:$8 sps:$4 sm:$0xff]  }
0x1be5   :  { %11725 = vmatpush2.bf16.msra.mxu1 %v15551_v17 }
0x1be6   :  { %11768 = vmatpush2.bf16.msra.mxu0 %v15554_v59  ;;  %11726 = vmatprep.subr.bf16.mxu1 %v15559_v29  ;;  %v15596_v29 = vld [vmem:[%s20871_s5 + $0xb70] ss:$8 sps:$4 sm:$0xff]  }
0x1be7   :  { %11769 = vmatprep.subr.bf16.mxu0 %v15562_v8  ;;  %v15601_v8 = vld [vmem:[%s20871_s5 + $0xa64] ss:$8 sps:$4 sm:$0xff]  }
0x1be9   :  { %11727 = vmatpush2.bf16.msra.mxu1 %v15557_v0 }
0x1bea   :  { %11770 = vmatpush2.bf16.msra.mxu0 %v15560_v56  ;;  %11728 = vmatprep.subr.bf16.mxu1 %v15565_v32  ;;  %v15604_v32 = vld [vmem:[%s20871_s5 + $0xb64] ss:$8 sps:$4 sm:$0xff]  }
0x1beb   :  { %11771 = vmatprep.subr.bf16.mxu0 %v15568_v62 }
0x1bed   :  { %11729 = vmatpush2.bf16.msra.mxu1 %v15563_v2 }
0x1bee   :  { %11772 = vmatpush2.bf16.msra.mxu0 %v15566_v3  ;;  %11730 = vmatprep.subr.bf16.mxu1 %v15571_v61 }
0x1bef   :  { %11773 = vmatprep.subr.bf16.mxu0 %v15574_v16  ;;  %v15599_v16 = vld [vmem:[%s20871_s5 + $0xa60] ss:$8 sps:$4 sm:$0xff]  }
0x1bf1   :  { %11731 = vmatpush2.bf16.msra.mxu1 %v15569_v20 }
0x1bf2   :  { %11774 = vmatpush2.bf16.msra.mxu0 %v15572_v46  ;;  %11732 = vmatprep.subr.bf16.mxu1 %v15577_v35  ;;  %v15610_v46 = vld [vmem:[%s20871_s5 + $0xb54] ss:$8 sps:$4 sm:$0xff]   ;;  %v15605_v35 = vld [vmem:[%s20871_s5 + $0xa50] ss:$8 sps:$4 sm:$0xff]  }
0x1bf3   :  { %11775 = vmatprep.subr.bf16.mxu0 %v15580_v47  ;;  %v15613_v47 = vld [vmem:[%s20871_s5 + $0xa44] ss:$8 sps:$4 sm:$0xff]  }
0x1bf5   :  { %11733 = vmatpush2.bf16.msra.mxu1 %v15575_v43  ;;  %v15614_v43 = vld [vmem:[%s20871_s5 + $0xb40] ss:$8 sps:$4 sm:$0xff]  }
0x1bf6   :  { %11776 = vmatpush2.bf16.msra.mxu0 %v15578_v13  ;;  %11788 = vmatprep.subr.bf16.mxu1 %v15583_v57  ;;  %v15622_v13 = vld [vmem:[%s20871_s5 + $0xb34] ss:$8 sps:$4 sm:$0xff]   ;;  %v15617_v57 = vld [vmem:[%s20871_s5 + $0xa30] ss:$8 sps:$4 sm:$0xff]  }
0x1bf7   :  { %11831 = vmatprep.subr.bf16.mxu0 %v15586_v38  ;;  %v15625_v38 = vld [vmem:[%s20871_s5 + $0xa24] ss:$8 sps:$4 sm:$0xff]  }
0x1bf8   :  { %v20158_v23 = vpop.f32.mrf.mxu1  ;;  %v20160_v44 = vpop.f32.mrf.mxu0  ;;  %11735 = vmatmul.mubr.bf16.vlgmr.msra.gmra.mxu1 %v10395_v55  ;;  %v15631_v55 = vld [vmem:[%s20871_s5 + $0xb14] ss:$8 sps:$4 sm:$0xff]  }
0x1bf9   :  { %11778 = vmatmul.mubr.bf16.vlgmr.msra.gmra.mxu0 %v10397_v27  ;;  %11789 = vmatpush1.bf16.msra.mxu1 %v15581_v58  ;;  %v15626_v58 = vld [vmem:[%s20871_s5 + $0xb20] ss:$8 sps:$4 sm:$0xff]   ;;  %v15632_v27 = vld [vmem:[%s20871_s5 + $0xc10] ss:$8 sps:$4 sm:$0xff]  }
0x1bfa   :  { %11832 = vmatpush1.bf16.msra.mxu0 %v15584_v10  ;;  %v10141_v36 = vpop.f32.mrf.mxu1  ;;  %v10184_v42 = vpop.f32.mrf.mxu0  ;;  %11790 = vmatprep.subr.bf16.mxu1 %v15589_v39  ;;  %v15634_v10 = vld [vmem:[%s20871_s5 + $0xc14] ss:$8 sps:$4 sm:$0xff]   ;;  %v15629_v39 = vld [vmem:[%s20871_s5 + $0xb10] ss:$8 sps:$4 sm:$0xff]  }
0x1bfb   :  { %11833 = vmatprep.subr.bf16.mxu0 %v15592_v63  ;;  %v10142_v7 = vadd.f32 %v10141_v36, %v8682_v24  ;;  %v10185_v14 = vadd.f32 %v10184_v42, %v8690_v9  ;;  %v15637_v63 = vld [vmem:[%s20871_s5 + $0xb04] ss:$8 sps:$4 sm:$0xff]   ;;  %v15643_v36 = vld [vmem:[%s20871_s5 + $0xaf4] ss:$8 sps:$4 sm:$0xff]  }
0x1bfc   :  { %v20178_v50 = vpop.f32.mrf.mxu1  ;;  %v20180_v11 = vpop.f32.mrf.mxu0  ;;  %v15646_v42 = vld [vmem:[%s20871_s5 + $0xbf4] ss:$8 sps:$4 sm:$0xff]  }
0x1bfd   :  { %11791 = vmatpush1.bf16.msra.mxu1 %v15587_v25  ;;  %v10368_v62 = vmax.f32 %v10142_v7, 0.0  ;;  %v10370_v2 = vmax.f32 %v10185_v14, 0.0  ;;  %v15638_v25 = vld [vmem:[%s20871_s5 + $0xc00] ss:$8 sps:$4 sm:$0xff]   ;;  %v15652_v7 = vld [vmem:[%s20871_s5 + $0xbe4] ss:$8 sps:$4 sm:$0xff]  }
0x1bfe   :  { %11834 = vmatpush1.bf16.msra.mxu0 %v15590_v37  ;;  %v10145_v17 = vpop.f32.mrf.mxu1  ;;  %v10188_v59 = vpop.f32.mrf.mxu0  ;;  %11792 = vmatprep.subr.bf16.mxu1 %v15595_v51  ;;  %v15641_v37 = vld [vmem:[%s20871_s5 + $0xaf0] ss:$8 sps:$4 sm:$0xff]   ;;  %v15647_v14 = vld [vmem:[%s20871_s5 + $0xae0] ss:$8 sps:$4 sm:$0xff]  }
0x1bff   :  { %v10146_v0 = vadd.f32 %v10145_v17, %v8682_v24  ;;  %v10189_v56 = vadd.f32 %v10188_v59, %v8690_v9  ;;  %11835 = vmatprep.subr.bf16.mxu0 %v15598_v21  ;;  %v15640_v24 = vld [vmem:[%s20871_s5 + $0xc04] ss:$8 sps:$4 sm:$0xff]   ;;  %v15635_v9 = vld [vmem:[%s20871_s5 + $0xb00] ss:$8 sps:$4 sm:$0xff]   ;;  %v15644_v51 = vld [vmem:[%s20871_s5 + $0xbf0] ss:$8 sps:$4 sm:$0xff]  }
0x1c00   :  { %v15649_v21 = vld [vmem:[%s20871_s5 + $0xae4] ss:$8 sps:$4 sm:$0xff]   ;;  %v15655_v17 = vld [vmem:[%s20871_s5 + $0xad4] ss:$8 sps:$4 sm:$0xff]  }
0x1c01   :  { %v10384_v3 = vmax.f32 %v10146_v0, 0.0  ;;  %v10386_v61 = vmax.f32 %v10189_v56, 0.0  ;;  %11793 = vmatpush1.bf16.msra.mxu1 %v15593_v60  ;;  %v15650_v60 = vld [vmem:[%s20871_s5 + $0xbe0] ss:$8 sps:$4 sm:$0xff]   ;;  %v15658_v59 = vld [vmem:[%s20871_s5 + $0xbd4] ss:$8 sps:$4 sm:$0xff]  }
0x1c02   :  { %11836 = vmatpush1.bf16.msra.mxu0 %v15596_v29  ;;  %11794 = vmatprep.subr.bf16.mxu1 %v15601_v8  ;;  %v15653_v29 = vld [vmem:[%s20871_s5 + $0xad0] ss:$8 sps:$4 sm:$0xff]   ;;  %v15661_v0 = vld [vmem:[%s20871_s5 + $0xac4] ss:$8 sps:$4 sm:$0xff]  }
0x1c03   :  { %v10400_v48 = vpack.c.bf16 %v10384_v3, %v10368_v62  ;;  %v10402_v20 = vpack.c.bf16 %v10386_v61, %v10370_v2  ;;  %11837 = vmatprep.subr.bf16.mxu0 %v15604_v32  ;;  %v15656_v8 = vld [vmem:[%s20871_s5 + $0xbd0] ss:$8 sps:$4 sm:$0xff]   ;;  %v15664_v56 = vld [vmem:[%s20871_s5 + $0xbc4] ss:$8 sps:$4 sm:$0xff]   ;;  %v15659_v32 = vld [vmem:[%s20871_s5 + $0xac0] ss:$8 sps:$4 sm:$0xff]   ;;  %v8678_v61 = vrot.slane %v19939_v31, %v16560_v28 }
0x1c04   :  { %v15662_v62 = vld [vmem:[%s20871_s5 + $0xbc0] ss:$8 sps:$4 sm:$0xff]   ;;  %v15667_v2 = vld [vmem:[%s20871_s5 + $0xab4] ss:$8 sps:$4 sm:$0xff]  }
0x1c05   :  { %11795 = vmatpush1.bf16.msra.mxu1 %v15599_v16  ;;  %11820 = vmatprep.mubr.bf16.mxu1 %v10400_v48  ;;  %v15670_v3 = vld [vmem:[%s20871_s5 + $0xbb4] ss:$8 sps:$4 sm:$0xff]   ;;  %v8686_v16 = vrot.slane %v19939_v31, %v18021_v15  ;;  %v10144_v48 = vadd.f32 %v20178_v50, %v8678_v61  ;;  %v15676_v31 = vld [vmem:[%s20871_s5 + $0xba4] ss:$8 sps:$4 sm:$0xff]  }
0x1c06   :  { %11838 = vmatpush1.bf16.msra.mxu0 %v15602_v4  ;;  %11863 = vmatprep.mubr.bf16.mxu0 %v10402_v20  ;;  %v15665_v4 = vld [vmem:[%s20871_s5 + $0xab0] ss:$8 sps:$4 sm:$0xff]  }
0x1c07   :  { %11796 = vmatprep.subr.bf16.mxu1 %v15607_v49  ;;  %11839 = vmatprep.subr.bf16.mxu0 %v15610_v46  ;;  %v15668_v20 = vld [vmem:[%s20871_s5 + $0xbb0] ss:$8 sps:$4 sm:$0xff]   ;;  %v15673_v49 = vld [vmem:[%s20871_s5 + $0xaa4] ss:$8 sps:$4 sm:$0xff]   ;;  %v10187_v46 = vadd.f32 %v20180_v11, %v8686_v16  ;;  %v10183_v50 = vadd.f32 %v20160_v44, %v8686_v16  ;;  %v15674_v11 = vld [vmem:[%s20871_s5 + $0xba0] ss:$8 sps:$4 sm:$0xff]  }
0x1c08   :  { %v15682_v44 = vld [vmem:[%s20871_s5 + $0xd94] ss:$8 sps:$4 sm:$0xff]   ;;  %v15698_v16 = vld [vmem:[%s20871_s5 + $0xd60] ss:$8 sps:$4 sm:$0xff]  }
0x1c09   :  { %11797 = vmatpush1.bf16.msra.mxu1 %v15605_v35  ;;  %v10140_v35 = vadd.f32 %v20158_v23, %v8678_v61  ;;  %v12376_v23 = vld [vmem:[%s20872_s3 + $0x1c2] ss:$8 sm:$0xf] }
0x1c0a   :  { %11840 = vmatpush1.bf16.msra.mxu0 %v15608_v40  ;;  %11798 = vmatprep.subr.bf16.mxu1 %v15613_v47  ;;  %v15671_v40 = vld [vmem:[%s20871_s5 + $0xaa0] ss:$8 sps:$4 sm:$0xff]   ;;  %v10383_v47 = vmax.f32 %v10144_v48, 0.0  ;;  %v15703_v48 = vld [vmem:[%s20871_s5 + $0xc54] ss:$8 sps:$4 sm:$0xff]  }
0x1c0b   :  { %11841 = vmatprep.subr.bf16.mxu0 %v15616_v30  ;;  %v15679_v30 = vld [vmem:[%s20871_s5 + $0xc94] ss:$8 sps:$4 sm:$0xff]  }
0x1c0d   :  { %11799 = vmatpush1.bf16.msra.mxu1 %v15611_v45  ;;  %v10385_v45 = vmax.f32 %v10187_v46, 0.0  ;;  %v15701_v46 = vld [vmem:[%s20871_s5 + $0xc50] ss:$8 sps:$4 sm:$0xff]  }
0x1c0e   :  { %11842 = vmatpush1.bf16.msra.mxu0 %v15614_v43  ;;  %11800 = vmatprep.subr.bf16.mxu1 %v15619_v53  ;;  %v10367_v43 = vmax.f32 %v10140_v35, 0.0  ;;  %v12377_v53 = vld [vmem:[%s20872_s3 + $0x1c2] ss:$8 sm:$0xf0]  ;;  %v15709_v35 = vld [vmem:[%s20871_s5 + $0xc44] ss:$8 sps:$4 sm:$0xff]  }
0x1c0f   :  { %11843 = vmatprep.subr.bf16.mxu0 %v15622_v13  ;;  %v10369_v13 = vmax.f32 %v10183_v50, 0.0  ;;  %v15712_v50 = vld [vmem:[%s20871_s5 + $0xd44] ss:$8 sps:$4 sm:$0xff]  }
0x1c11   :  { %11801 = vmatpush1.bf16.msra.mxu1 %v15617_v57  ;;  %v15677_v57 = vld [vmem:[%s20871_s5 + $0xc90] ss:$8 sps:$4 sm:$0xff]  }
0x1c12   :  { %11844 = vmatpush1.bf16.msra.mxu0 %v15620_v19  ;;  %11802 = vmatprep.subr.bf16.mxu1 %v15625_v38  ;;  %v10399_v19 = vpack.c.bf16 %v10383_v47, %v10367_v43  ;;  %v15680_v38 = vld [vmem:[%s20871_s5 + $0xd90] ss:$8 sps:$4 sm:$0xff]   ;;  %v15710_v47 = vld [vmem:[%s20871_s5 + $0xd40] ss:$8 sps:$4 sm:$0xff]   ;;  %v15724_v43 = vld [vmem:[%s20871_s5 + $0xd24] ss:$8 sps:$4 sm:$0xff]  }
0x1c13   :  { %11845 = vmatprep.subr.bf16.mxu0 %v15628_v41  ;;  %v15685_v41 = vld [vmem:[%s20871_s5 + $0xc84] ss:$8 sps:$4 sm:$0xff]  }
0x1c15   :  { %11803 = vmatpush1.bf16.msra.mxu1 %v15623_v5  ;;  %v10401_v5 = vpack.c.bf16 %v10385_v45, %v10369_v13  ;;  %v15713_v45 = vld [vmem:[%s20871_s5 + $0xc30] ss:$8 sps:$4 sm:$0xff]   ;;  %v15722_v13 = vld [vmem:[%s20871_s5 + $0xd20] ss:$8 sps:$4 sm:$0xff]  }
0x1c16   :  { %11846 = vmatpush1.bf16.msra.mxu0 %v15626_v58  ;;  %11804 = vmatprep.subr.bf16.mxu1 %v15631_v55  ;;  %v20373_v58 = vor.u32 %v12377_v53, %v12376_v23  ;;  %v15688_v55 = vld [vmem:[%s20871_s5 + $0xd84] ss:$8 sps:$4 sm:$0xff]   ;;  %v15716_v23 = vld [vmem:[%s20871_s5 + $0xd30] ss:$8 sps:$4 sm:$0xff]   ;;  %v15719_v53 = vld [vmem:[%s20871_s5 + $0xc20] ss:$8 sps:$4 sm:$0xff]  }
0x1c17   :  { %11847 = vmatprep.subr.bf16.mxu0 %v15634_v10 }
0x1c19   :  { %11805 = vmatpush2.bf16.msra.mxu1 %v15629_v39 }
0x1c1a   :  { %11848 = vmatpush2.bf16.msra.mxu0 %v15632_v27  ;;  %11806 = vmatprep.subr.bf16.mxu1 %v15637_v63  ;;  %v8698_v27 = vrot.slane %v20373_v58, %v16173_v34  ;;  %v15683_v63 = vld [vmem:[%s20871_s5 + $0xc80] ss:$8 sps:$4 sm:$0xff]  }
0x1c1b   :  { %11849 = vmatprep.subr.bf16.mxu0 %v15640_v24 }
0x1c1d   :  { %11807 = vmatpush2.bf16.msra.mxu1 %v15635_v9  ;;  %v8706_v9 = vrot.slane %v20373_v58, %v16583_v22  ;;  %v15689_v22 = vld [vmem:[%s20871_s5 + $0xc70] ss:$8 sps:$4 sm:$0xff]  }
0x1c1e   :  { %11850 = vmatpush2.bf16.msra.mxu0 %v15638_v25  ;;  %11808 = vmatprep.subr.bf16.mxu1 %v15643_v36  ;;  %v15686_v25 = vld [vmem:[%s20871_s5 + $0xd80] ss:$8 sps:$4 sm:$0xff]   ;;  %v15691_v36 = vld [vmem:[%s20871_s5 + $0xc74] ss:$8 sps:$4 sm:$0xff]  }
0x1c1f   :  { %11851 = vmatprep.subr.bf16.mxu0 %v15646_v42 }
0x1c21   :  { %11809 = vmatpush2.bf16.msra.mxu1 %v15641_v37  ;;  %v15694_v37 = vld [vmem:[%s20871_s5 + $0xd74] ss:$8 sps:$4 sm:$0xff]  }
0x1c22   :  { %11852 = vmatpush2.bf16.msra.mxu0 %v15644_v51  ;;  %11810 = vmatprep.subr.bf16.mxu1 %v15649_v21 }
0x1c23   :  { %11853 = vmatprep.subr.bf16.mxu0 %v15652_v7 }
0x1c25   :  { %11811 = vmatpush2.bf16.msra.mxu1 %v15647_v14 }
0x1c26   :  { %11854 = vmatpush2.bf16.msra.mxu0 %v15650_v60  ;;  %11812 = vmatprep.subr.bf16.mxu1 %v15655_v17  ;;  %v15692_v17 = vld [vmem:[%s20871_s5 + $0xd70] ss:$8 sps:$4 sm:$0xff]  }
0x1c27   :  { %11855 = vmatprep.subr.bf16.mxu0 %v15658_v59  ;;  %v15697_v59 = vld [vmem:[%s20871_s5 + $0xc64] ss:$8 sps:$4 sm:$0xff]  }
0x1c29   :  { %11813 = vmatpush2.bf16.msra.mxu1 %v15653_v29 }
0x1c2a   :  { %11856 = vmatpush2.bf16.msra.mxu0 %v15656_v8  ;;  %11814 = vmatprep.subr.bf16.mxu1 %v15661_v0  ;;  %v15700_v0 = vld [vmem:[%s20871_s5 + $0xd64] ss:$8 sps:$4 sm:$0xff]  }
0x1c2b   :  { %11857 = vmatprep.subr.bf16.mxu0 %v15664_v56 }
0x1c2d   :  { %11815 = vmatpush2.bf16.msra.mxu1 %v15659_v32 }
0x1c2e   :  { %11858 = vmatpush2.bf16.msra.mxu0 %v15662_v62  ;;  %11816 = vmatprep.subr.bf16.mxu1 %v15667_v2  ;;  %v15695_v2 = vld [vmem:[%s20871_s5 + $0xc60] ss:$8 sps:$4 sm:$0xff]  }
0x1c2f   :  { %11859 = vmatprep.subr.bf16.mxu0 %v15670_v3 }
0x1c31   :  { %11817 = vmatpush2.bf16.msra.mxu1 %v15665_v4 }
0x1c32   :  { %11860 = vmatpush2.bf16.msra.mxu0 %v15668_v20  ;;  %11818 = vmatprep.subr.bf16.mxu1 %v15673_v49  ;;  %v15706_v20 = vld [vmem:[%s20871_s5 + $0xd54] ss:$8 sps:$4 sm:$0xff]  }
0x1c33   :  { %11861 = vmatprep.subr.bf16.mxu0 %v15676_v31  ;;  %v15704_v31 = vld [vmem:[%s20871_s5 + $0xd50] ss:$8 sps:$4 sm:$0xff]  }
0x1c35   :  { %11819 = vmatpush2.bf16.msra.mxu1 %v15671_v40  ;;  %v15707_v40 = vld [vmem:[%s20871_s5 + $0xc40] ss:$8 sps:$4 sm:$0xff]  }
0x1c36   :  { %11862 = vmatpush2.bf16.msra.mxu0 %v15674_v11  ;;  %11874 = vmatprep.subr.bf16.mxu1 %v15679_v30  ;;  %v15715_v11 = vld [vmem:[%s20871_s5 + $0xc34] ss:$8 sps:$4 sm:$0xff]  }
0x1c37   :  { %11917 = vmatprep.subr.bf16.mxu0 %v15682_v44  ;;  %v15718_v30 = vld [vmem:[%s20871_s5 + $0xd34] ss:$8 sps:$4 sm:$0xff]   ;;  %v15721_v44 = vld [vmem:[%s20871_s5 + $0xc24] ss:$8 sps:$4 sm:$0xff]  }
0x1c38   :  { %v20378_v10 = vpop.f32.mrf.mxu1  ;;  %11821 = vmatmul.mubr.bf16.vlgmr.msra.gmra.mxu1 %v10399_v19  ;;  %v15730_v19 = vld [vmem:[%s20871_s5 + $0xe14] ss:$8 sps:$4 sm:$0xff]  }
0x1c39   :  { %v20380_v39 = vpop.f32.mrf.mxu0  ;;  %11864 = vmatmul.mubr.bf16.vlgmr.msra.gmra.mxu0 %v10401_v5  ;;  %11875 = vmatpush1.bf16.msra.mxu1 %v15677_v57  ;;  %v15727_v57 = vld [vmem:[%s20871_s5 + $0xd14] ss:$8 sps:$4 sm:$0xff]   ;;  %v15733_v5 = vld [vmem:[%s20871_s5 + $0xd04] ss:$8 sps:$4 sm:$0xff]  }
0x1c3a   :  { %11918 = vmatpush1.bf16.msra.mxu0 %v15680_v38  ;;  %v10227_v24 = vpop.f32.mrf.mxu1  ;;  %11876 = vmatprep.subr.bf16.mxu1 %v15685_v41  ;;  %v15725_v38 = vld [vmem:[%s20871_s5 + $0xd10] ss:$8 sps:$4 sm:$0xff]  }
0x1c3b   :  { %v10270_v42 = vpop.f32.mrf.mxu0  ;;  %11919 = vmatprep.subr.bf16.mxu0 %v15688_v55  ;;  %v10228_v21 = vadd.f32 %v10227_v24, %v8698_v27  ;;  %v15728_v41 = vld [vmem:[%s20871_s5 + $0xe10] ss:$8 sps:$4 sm:$0xff]   ;;  %v15736_v55 = vld [vmem:[%s20871_s5 + $0xe04] ss:$8 sps:$4 sm:$0xff]   ;;  %v15739_v24 = vld [vmem:[%s20871_s5 + $0xcf4] ss:$8 sps:$4 sm:$0xff]  }
0x1c3c   :  { %v20398_v51 = vpop.f32.mrf.mxu1  ;;  %v10271_v14 = vadd.f32 %v10270_v42, %v8706_v9  ;;  %v15745_v42 = vld [vmem:[%s20871_s5 + $0xce4] ss:$8 sps:$4 sm:$0xff]  }
0x1c3d   :  { %v20400_v7 = vpop.f32.mrf.mxu0  ;;  %11877 = vmatpush1.bf16.msra.mxu1 %v15683_v63  ;;  %v10372_v32 = vmax.f32 %v10228_v21, 0.0  ;;  %v15734_v63 = vld [vmem:[%s20871_s5 + $0xe00] ss:$8 sps:$4 sm:$0xff]  }
0x1c3e   :  { %11920 = vmatpush1.bf16.msra.mxu0 %v15686_v25  ;;  %v10231_v60 = vpop.f32.mrf.mxu1  ;;  %11878 = vmatprep.subr.bf16.mxu1 %v15691_v36  ;;  %v10374_v3 = vmax.f32 %v10271_v14, 0.0  ;;  %v15737_v25 = vld [vmem:[%s20871_s5 + $0xcf0] ss:$8 sps:$4 sm:$0xff]   ;;  %v15743_v21 = vld [vmem:[%s20871_s5 + $0xce0] ss:$8 sps:$4 sm:$0xff]  }
0x1c3f   :  { %v10232_v29 = vadd.f32 %v10231_v60, %v8698_v27  ;;  %v10274_v8 = vpop.f32.mrf.mxu0  ;;  %11921 = vmatprep.subr.bf16.mxu0 %v15694_v37  ;;  %v15731_v27 = vld [vmem:[%s20871_s5 + $0xd00] ss:$8 sps:$4 sm:$0xff]   ;;  %v15740_v36 = vld [vmem:[%s20871_s5 + $0xdf0] ss:$8 sps:$4 sm:$0xff]   ;;  %v15748_v37 = vld [vmem:[%s20871_s5 + $0xde4] ss:$8 sps:$4 sm:$0xff]  }
0x1c40   :  { %v10275_v56 = vadd.f32 %v10274_v8, %v8706_v9  ;;  %v15742_v9 = vld [vmem:[%s20871_s5 + $0xdf4] ss:$8 sps:$4 sm:$0xff]   ;;  %v15760_v8 = vld [vmem:[%s20871_s5 + $0xdc4] ss:$8 sps:$4 sm:$0xff]  }
0x1c41   :  { %v10388_v62 = vmax.f32 %v10232_v29, 0.0  ;;  %11879 = vmatpush1.bf16.msra.mxu1 %v15689_v22  ;;  %v15746_v22 = vld [vmem:[%s20871_s5 + $0xde0] ss:$8 sps:$4 sm:$0xff]   ;;  %v15751_v14 = vld [vmem:[%s20871_s5 + $0xcd4] ss:$8 sps:$4 sm:$0xff]  }
0x1c42   :  { %v10390_v61 = vmax.f32 %v10275_v56, 0.0  ;;  %11922 = vmatpush1.bf16.msra.mxu0 %v15692_v17  ;;  %11880 = vmatprep.subr.bf16.mxu1 %v15697_v59  ;;  %v15754_v60 = vld [vmem:[%s20871_s5 + $0xdd4] ss:$8 sps:$4 sm:$0xff]   ;;  %v15749_v17 = vld [vmem:[%s20871_s5 + $0xcd0] ss:$8 sps:$4 sm:$0xff]  }
0x1c43   :  { %v10404_v4 = vpack.c.bf16 %v10388_v62, %v10372_v32  ;;  %11923 = vmatprep.subr.bf16.mxu0 %v15700_v0  ;;  %v15752_v59 = vld [vmem:[%s20871_s5 + $0xdd0] ss:$8 sps:$4 sm:$0xff]   ;;  %v15757_v29 = vld [vmem:[%s20871_s5 + $0xcc4] ss:$8 sps:$4 sm:$0xff]   ;;  %v15755_v0 = vld [vmem:[%s20871_s5 + $0xcc0] ss:$8 sps:$4 sm:$0xff]  }
0x1c44   :  { %v10406_v49 = vpack.c.bf16 %v10390_v61, %v10374_v3  ;;  %v15758_v56 = vld [vmem:[%s20871_s5 + $0xdc0] ss:$8 sps:$4 sm:$0xff]   ;;  %v15763_v32 = vld [vmem:[%s20871_s5 + $0xcb4] ss:$8 sps:$4 sm:$0xff]   ;;  %v8702_v3 = vrot.slane %v20373_v58, %v16542_v12  ;;  %v15761_v61 = vld [vmem:[%s20871_s5 + $0xcb0] ss:$8 sps:$4 sm:$0xff]  }
0x1c45   :  { %11881 = vmatpush1.bf16.msra.mxu1 %v15695_v2  ;;  %11906 = vmatprep.mubr.bf16.mxu1 %v10404_v4  ;;  %v15766_v62 = vld [vmem:[%s20871_s5 + $0xdb4] ss:$8 sps:$4 sm:$0xff]   ;;  %v8694_v2 = vrot.slane %v20373_v58, %v16170_v33  ;;  %v15764_v4 = vld [vmem:[%s20871_s5 + $0xdb0] ss:$8 sps:$4 sm:$0xff]   ;;  %v15772_v12 = vld [vmem:[%s20871_s5 + $0xda4] ss:$8 sps:$4 sm:$0xff]  }
0x1c46   :  { %11924 = vmatpush1.bf16.msra.mxu0 %v15698_v16  ;;  %11949 = vmatprep.mubr.bf16.mxu0 %v10406_v49 }
0x1c47   :  { %11882 = vmatprep.subr.bf16.mxu1 %v15703_v48  ;;  %11925 = vmatprep.subr.bf16.mxu0 %v15706_v20  ;;  %v10230_v16 = vadd.f32 %v20398_v51, %v8694_v2  ;;  %v15769_v48 = vld [vmem:[%s20871_s5 + $0xca4] ss:$8 sps:$4 sm:$0xff]   ;;  %v10273_v20 = vadd.f32 %v20400_v7, %v8702_v3  ;;  %v10226_v49 = vadd.f32 %v20378_v10, %v8694_v2  ;;  %v15770_v7 = vld [vmem:[%s20871_s5 + $0xda0] ss:$8 sps:$4 sm:$0xff]   ;;  %v15778_v10 = vld [vmem:[%s20871_s5 + $0xf94] ss:$8 sps:$4 sm:$0xff]  }
0x1c48   :  { %v10269_v51 = vadd.f32 %v20380_v39, %v8702_v3  ;;  %v15797_v3 = vld [vmem:[%s20871_s5 + $0xe50] ss:$8 sps:$4 sm:$0xff]  }
0x1c49   :  { %11883 = vmatpush1.bf16.msra.mxu1 %v15701_v46  ;;  %v15767_v46 = vld [vmem:[%s20871_s5 + $0xca0] ss:$8 sps:$4 sm:$0xff]   ;;  %v10371_v39 = vmax.f32 %v10226_v49, 0.0  ;;  %v15814_v49 = vld [vmem:[%s20871_s5 + $0xf34] ss:$8 sps:$4 sm:$0xff]  }
0x1c4a   :  { %11926 = vmatpush1.bf16.msra.mxu0 %v15704_v31  ;;  %11884 = vmatprep.subr.bf16.mxu1 %v15709_v35  ;;  %v10387_v31 = vmax.f32 %v10230_v16, 0.0  ;;  %v15775_v35 = vld [vmem:[%s20871_s5 + $0xe94] ss:$8 sps:$4 sm:$0xff]   ;;  %v15805_v16 = vld [vmem:[%s20871_s5 + $0xe44] ss:$8 sps:$4 sm:$0xff]  }
0x1c4b   :  { %11927 = vmatprep.subr.bf16.mxu0 %v15712_v50  ;;  %v10389_v50 = vmax.f32 %v10273_v20, 0.0  ;;  %v15806_v20 = vld [vmem:[%s20871_s5 + $0xf40] ss:$8 sps:$4 sm:$0xff]  }
0x1c4d   :  { %11885 = vmatpush1.bf16.msra.mxu1 %v15707_v40  ;;  %v10373_v40 = vmax.f32 %v10269_v51, 0.0  ;;  %v15809_v51 = vld [vmem:[%s20871_s5 + $0xe30] ss:$8 sps:$4 sm:$0xff]  }
0x1c4e   :  { %11928 = vmatpush1.bf16.msra.mxu0 %v15710_v47  ;;  %11886 = vmatprep.subr.bf16.mxu1 %v15715_v11  ;;  %v15773_v47 = vld [vmem:[%s20871_s5 + $0xe90] ss:$8 sps:$4 sm:$0xff]   ;;  %v10403_v11 = vpack.c.bf16 %v10387_v31, %v10371_v39  ;;  %v15817_v31 = vld [vmem:[%s20871_s5 + $0xe24] ss:$8 sps:$4 sm:$0xff]   ;;  %v15826_v39 = vld [vmem:[%s20871_s5 + $0x1014] ss:$8 sps:$4 sm:$0xff]  }
0x1c4f   :  { %11929 = vmatprep.subr.bf16.mxu0 %v15718_v30  ;;  %v15776_v30 = vld [vmem:[%s20871_s5 + $0xf90] ss:$8 sps:$4 sm:$0xff]  }
0x1c51   :  { %11887 = vmatpush1.bf16.msra.mxu1 %v15713_v45  ;;  %v15781_v45 = vld [vmem:[%s20871_s5 + $0xe84] ss:$8 sps:$4 sm:$0xff]  }
0x1c52   :  { %11930 = vmatpush1.bf16.msra.mxu0 %v15716_v23  ;;  %11888 = vmatprep.subr.bf16.mxu1 %v15721_v44  ;;  %v10405_v23 = vpack.c.bf16 %v10389_v50, %v10373_v40  ;;  %v15784_v44 = vld [vmem:[%s20871_s5 + $0xf84] ss:$8 sps:$4 sm:$0xff]   ;;  %v15818_v50 = vld [vmem:[%s20871_s5 + $0xf20] ss:$8 sps:$4 sm:$0xff]   ;;  %v15821_v40 = vld [vmem:[%s20871_s5 + $0xf10] ss:$8 sps:$4 sm:$0xff]  }
0x1c53   :  { %11931 = vmatprep.subr.bf16.mxu0 %v15724_v43 }
0x1c55   :  { %11889 = vmatpush1.bf16.msra.mxu1 %v15719_v53 }
0x1c56   :  { %11932 = vmatpush1.bf16.msra.mxu0 %v15722_v13  ;;  %11890 = vmatprep.subr.bf16.mxu1 %v15727_v57  ;;  %v8714_v13 = vrot.slane %v20373_v58, %v16649_v6  ;;  %v15779_v57 = vld [vmem:[%s20871_s5 + $0xe80] ss:$8 sps:$4 sm:$0xff]   ;;  %v15790_v6 = vld [vmem:[%s20871_s5 + $0xf74] ss:$8 sps:$4 sm:$0xff]  }
0x1c57   :  { %11933 = vmatprep.subr.bf16.mxu0 %v15730_v19 }
0x1c59   :  { %11891 = vmatpush2.bf16.msra.mxu1 %v15725_v38  ;;  %v8722_v38 = vrot.slane %v20373_v58, %v17853_v54  ;;  %v15785_v54 = vld [vmem:[%s20871_s5 + $0xe70] ss:$8 sps:$4 sm:$0xff]  }
0x1c5a   :  { %11934 = vmatpush2.bf16.msra.mxu0 %v15728_v41  ;;  %11892 = vmatprep.subr.bf16.mxu1 %v15733_v5  ;;  %v15782_v41 = vld [vmem:[%s20871_s5 + $0xf80] ss:$8 sps:$4 sm:$0xff]   ;;  %v15787_v5 = vld [vmem:[%s20871_s5 + $0xe74] ss:$8 sps:$4 sm:$0xff]  }
0x1c5b   :  { %11935 = vmatprep.subr.bf16.mxu0 %v15736_v55 }
0x1c5d   :  { %11893 = vmatpush2.bf16.msra.mxu1 %v15731_v27 }
0x1c5e   :  { %11936 = vmatpush2.bf16.msra.mxu0 %v15734_v63  ;;  %11894 = vmatprep.subr.bf16.mxu1 %v15739_v24 }
0x1c5f   :  { %11937 = vmatprep.subr.bf16.mxu0 %v15742_v9 }
0x1c61   :  { %11895 = vmatpush2.bf16.msra.mxu1 %v15737_v25 }
0x1c62   :  { %11938 = vmatpush2.bf16.msra.mxu0 %v15740_v36  ;;  %11896 = vmatprep.subr.bf16.mxu1 %v15745_v42  ;;  %v15788_v36 = vld [vmem:[%s20871_s5 + $0xf70] ss:$8 sps:$4 sm:$0xff]   ;;  %v15793_v42 = vld [vmem:[%s20871_s5 + $0xe64] ss:$8 sps:$4 sm:$0xff]  }
0x1c63   :  { %11939 = vmatprep.subr.bf16.mxu0 %v15748_v37 }
0x1c65   :  { %11897 = vmatpush2.bf16.msra.mxu1 %v15743_v21 }
0x1c66   :  { %11940 = vmatpush2.bf16.msra.mxu0 %v15746_v22  ;;  %11898 = vmatprep.subr.bf16.mxu1 %v15751_v14  ;;  %v15796_v22 = vld [vmem:[%s20871_s5 + $0xf64] ss:$8 sps:$4 sm:$0xff]  }
0x1c67   :  { %11941 = vmatprep.subr.bf16.mxu0 %v15754_v60 }
0x1c69   :  { %11899 = vmatpush2.bf16.msra.mxu1 %v15749_v17 }
0x1c6a   :  { %11942 = vmatpush2.bf16.msra.mxu0 %v15752_v59  ;;  %11900 = vmatprep.subr.bf16.mxu1 %v15757_v29  ;;  %v15791_v59 = vld [vmem:[%s20871_s5 + $0xe60] ss:$8 sps:$4 sm:$0xff]  }
0x1c6b   :  { %11943 = vmatprep.subr.bf16.mxu0 %v15760_v8 }
0x1c6d   :  { %11901 = vmatpush2.bf16.msra.mxu1 %v15755_v0  ;;  %v15794_v0 = vld [vmem:[%s20871_s5 + $0xf60] ss:$8 sps:$4 sm:$0xff]  }
0x1c6e   :  { %11944 = vmatpush2.bf16.msra.mxu0 %v15758_v56  ;;  %11902 = vmatprep.subr.bf16.mxu1 %v15763_v32  ;;  %v15799_v32 = vld [vmem:[%s20871_s5 + $0xe54] ss:$8 sps:$4 sm:$0xff]  }
0x1c6f   :  { %11945 = vmatprep.subr.bf16.mxu0 %v15766_v62  ;;  %v15802_v62 = vld [vmem:[%s20871_s5 + $0xf54] ss:$8 sps:$4 sm:$0xff]  }
0x1c71   :  { %11903 = vmatpush2.bf16.msra.mxu1 %v15761_v61  ;;  %v15800_v61 = vld [vmem:[%s20871_s5 + $0xf50] ss:$8 sps:$4 sm:$0xff]  }
0x1c72   :  { %11946 = vmatpush2.bf16.msra.mxu0 %v15764_v4  ;;  %11904 = vmatprep.subr.bf16.mxu1 %v15769_v48  ;;  %v15808_v4 = vld [vmem:[%s20871_s5 + $0xf44] ss:$8 sps:$4 sm:$0xff]   ;;  %v15803_v48 = vld [vmem:[%s20871_s5 + $0xe40] ss:$8 sps:$4 sm:$0xff]  }
0x1c73   :  { %11947 = vmatprep.subr.bf16.mxu0 %v15772_v12  ;;  %v15811_v12 = vld [vmem:[%s20871_s5 + $0xe34] ss:$8 sps:$4 sm:$0xff]  }
0x1c75   :  { %11905 = vmatpush2.bf16.msra.mxu1 %v15767_v46  ;;  %v15812_v46 = vld [vmem:[%s20871_s5 + $0xf30] ss:$8 sps:$4 sm:$0xff]  }
0x1c76   :  { %11948 = vmatpush2.bf16.msra.mxu0 %v15770_v7  ;;  %11960 = vmatprep.subr.bf16.mxu1 %v15775_v35  ;;  %v15820_v7 = vld [vmem:[%s20871_s5 + $0xf24] ss:$8 sps:$4 sm:$0xff]   ;;  %v15815_v35 = vld [vmem:[%s20871_s5 + $0xe20] ss:$8 sps:$4 sm:$0xff]  }
0x1c77   :  { %12003 = vmatprep.subr.bf16.mxu0 %v15778_v10  ;;  %v15823_v10 = vld [vmem:[%s20871_s5 + $0xf14] ss:$8 sps:$4 sm:$0xff]  }
0x1c78   :  { %v20590_v43 = vpop.f32.mrf.mxu1  ;;  %11907 = vmatmul.mubr.bf16.vlgmr.msra.gmra.mxu1 %v10403_v11  ;;  %v15829_v11 = vld [vmem:[%s20871_s5 + $0xf04] ss:$8 sps:$4 sm:$0xff]  }
0x1c79   :  { %v20592_v53 = vpop.f32.mrf.mxu0  ;;  %11950 = vmatmul.mubr.bf16.vlgmr.msra.gmra.mxu0 %v10405_v23  ;;  %11961 = vmatpush1.bf16.msra.mxu1 %v15773_v47  ;;  %v15824_v47 = vld [vmem:[%s20871_s5 + $0x1010] ss:$8 sps:$4 sm:$0xff]   ;;  %v15830_v23 = vld [vmem:[%s20871_s5 + $0x1000] ss:$8 sps:$4 sm:$0xff]  }
0x1c7a   :  { %12004 = vmatpush1.bf16.msra.mxu0 %v15776_v30  ;;  %v10313_v19 = vpop.f32.mrf.mxu1  ;;  %11962 = vmatprep.subr.bf16.mxu1 %v15781_v45  ;;  %v15832_v30 = vld [vmem:[%s20871_s5 + $0x1004] ss:$8 sps:$4 sm:$0xff]   ;;  %v15827_v45 = vld [vmem:[%s20871_s5 + $0xf00] ss:$8 sps:$4 sm:$0xff]  }
0x1c7b   :  { %v10356_v55 = vpop.f32.mrf.mxu0  ;;  %12005 = vmatprep.subr.bf16.mxu0 %v15784_v44  ;;  %v10314_v63 = vadd.f32 %v10313_v19, %v8714_v13  ;;  %v15835_v44 = vld [vmem:[%s20871_s5 + $0xef4] ss:$8 sps:$4 sm:$0xff]   ;;  %v15836_v19 = vld [vmem:[%s20871_s5 + $0xff0] ss:$8 sps:$4 sm:$0xff]  }
0x1c7c   :  { %v20610_v27 = vpop.f32.mrf.mxu1  ;;  %v10357_v9 = vadd.f32 %v10356_v55, %v8722_v38  ;;  %v15842_v55 = vld [vmem:[%s20871_s5 + $0xfe0] ss:$8 sps:$4 sm:$0xff]  }
0x1c7d   :  { %v20612_v24 = vpop.f32.mrf.mxu0  ;;  %11963 = vmatpush1.bf16.msra.mxu1 %v15779_v57  ;;  %v10376_v60 = vmax.f32 %v10314_v63, 0.0  ;;  %v15833_v57 = vld [vmem:[%s20871_s5 + $0xef0] ss:$8 sps:$4 sm:$0xff]   ;;  %v15850_v63 = vld [vmem:[%s20871_s5 + $0xfd4] ss:$8 sps:$4 sm:$0xff]  }
0x1c7e   :  { %12006 = vmatpush1.bf16.msra.mxu0 %v15782_v41  ;;  %v10317_v25 = vpop.f32.mrf.mxu1  ;;  %11964 = vmatprep.subr.bf16.mxu1 %v15787_v5  ;;  %v10378_v29 = vmax.f32 %v10357_v9, 0.0  ;;  %v15844_v41 = vld [vmem:[%s20871_s5 + $0xfe4] ss:$8 sps:$4 sm:$0xff]   ;;  %v15839_v5 = vld [vmem:[%s20871_s5 + $0xee0] ss:$8 sps:$4 sm:$0xff]  }
0x1c7f   :  { %v10318_v37 = vadd.f32 %v10317_v25, %v8714_v13  ;;  %v10360_v21 = vpop.f32.mrf.mxu0  ;;  %12007 = vmatprep.subr.bf16.mxu0 %v15790_v6  ;;  %v15838_v13 = vld [vmem:[%s20871_s5 + $0xff4] ss:$8 sps:$4 sm:$0xff]   ;;  %v15848_v9 = vld [vmem:[%s20871_s5 + $0xfd0] ss:$8 sps:$4 sm:$0xff]   ;;  %v15853_v25 = vld [vmem:[%s20871_s5 + $0xec4] ss:$8 sps:$4 sm:$0xff]  }
0x1c80   :  { %v10361_v14 = vadd.f32 %v10360_v21, %v8722_v38  ;;  %v15841_v38 = vld [vmem:[%s20871_s5 + $0xee4] ss:$8 sps:$4 sm:$0xff]   ;;  %v15847_v6 = vld [vmem:[%s20871_s5 + $0xed4] ss:$8 sps:$4 sm:$0xff]  }
0x1c81   :  { %v10392_v17 = vmax.f32 %v10318_v37, 0.0  ;;  %11965 = vmatpush1.bf16.msra.mxu1 %v15785_v54  ;;  %v15845_v54 = vld [vmem:[%s20871_s5 + $0xed0] ss:$8 sps:$4 sm:$0xff]   ;;  %v15854_v37 = vld [vmem:[%s20871_s5 + $0xfc0] ss:$8 sps:$4 sm:$0xff]  }
0x1c82   :  { %v10394_v8 = vmax.f32 %v10361_v14, 0.0  ;;  %12008 = vmatpush1.bf16.msra.mxu0 %v15788_v36  ;;  %11966 = vmatprep.subr.bf16.mxu1 %v15793_v42  ;;  %v15856_v36 = vld [vmem:[%s20871_s5 + $0xfc4] ss:$8 sps:$4 sm:$0xff]   ;;  %v15851_v42 = vld [vmem:[%s20871_s5 + $0xec0] ss:$8 sps:$4 sm:$0xff]   ;;  %v8710_v14 = vrot.slane %v20373_v58, %v16560_v28 }
0x1c83   :  { %v10408_v56 = vpack.c.bf16 %v10392_v17, %v10376_v60  ;;  %12009 = vmatprep.subr.bf16.mxu0 %v15796_v22  ;;  %v15859_v21 = vld [vmem:[%s20871_s5 + $0xeb4] ss:$8 sps:$4 sm:$0xff]   ;;  %v8718_v60 = vrot.slane %v20373_v58, %v18021_v15  ;;  %v15857_v17 = vld [vmem:[%s20871_s5 + $0xeb0] ss:$8 sps:$4 sm:$0xff]   ;;  %v15865_v28 = vld [vmem:[%s20871_s5 + $0xea4] ss:$8 sps:$4 sm:$0xff]  }
0x1c84   :  { %v10410_v2 = vpack.c.bf16 %v10394_v8, %v10378_v29  ;;  %v15862_v22 = vld [vmem:[%s20871_s5 + $0xfb4] ss:$8 sps:$4 sm:$0xff]   ;;  %v15860_v29 = vld [vmem:[%s20871_s5 + $0xfb0] ss:$8 sps:$4 sm:$0xff]   ;;  %v15868_v15 = vld [vmem:[%s20871_s5 + $0xfa4] ss:$8 sps:$4 sm:$0xff]   ;;  %v10312_v58 = vadd.f32 %v20590_v43, %v8710_v14 }
0x1c85   :  { %11967 = vmatpush1.bf16.msra.mxu1 %v15791_v59  ;;  %11992 = vmatprep.mubr.bf16.mxu1 %v10408_v56  ;;  %v10316_v59 = vadd.f32 %v20610_v27, %v8710_v14  ;;  %v10359_v8 = vadd.f32 %v20612_v24, %v8718_v60  ;;  %v10355_v27 = vadd.f32 %v20592_v53, %v8718_v60  ;;  %v15866_v24 = vld [vmem:[%s20871_s5 + $0xfa0] ss:$8 sps:$4 sm:$0xff]  }
0x1c86   :  { %12010 = vmatpush1.bf16.msra.mxu0 %v15794_v0  ;;  %12035 = vmatprep.mubr.bf16.mxu0 %v10410_v2  ;;  %v15863_v0 = vld [vmem:[%s20871_s5 + $0xea0] ss:$8 sps:$4 sm:$0xff]  }
0x1c87   :  { %11968 = vmatprep.subr.bf16.mxu1 %v15799_v32  ;;  %12011 = vmatprep.subr.bf16.mxu0 %v15802_v62  ;;  %v10391_v56 = vmax.f32 %v10316_v59, 0.0  ;;  %v10393_v32 = vmax.f32 %v10359_v8, 0.0  ;;  %v10375_v62 = vmax.f32 %v10312_v58, 0.0  ;;  %v10377_v2 = vmax.f32 %v10355_v27, 0.0 }
0x1c89   :  { %11969 = vmatpush1.bf16.msra.mxu1 %v15797_v3  ;;  %v10407_v43 = vpack.c.bf16 %v10391_v56, %v10375_v62  ;;  %v10409_v53 = vpack.c.bf16 %v10393_v32, %v10377_v2 }
0x1c8a   :  { %12012 = vmatpush1.bf16.msra.mxu0 %v15800_v61  ;;  %11970 = vmatprep.subr.bf16.mxu1 %v15805_v16 }
0x1c8b   :  { %12013 = vmatprep.subr.bf16.mxu0 %v15808_v4 }
0x1c8d   :  { %11971 = vmatpush1.bf16.msra.mxu1 %v15803_v48 }
0x1c8e   :  { %12014 = vmatpush1.bf16.msra.mxu0 %v15806_v20  ;;  %11972 = vmatprep.subr.bf16.mxu1 %v15811_v12 }
0x1c8f   :  { %12015 = vmatprep.subr.bf16.mxu0 %v15814_v49 }
0x1c91   :  { %11973 = vmatpush1.bf16.msra.mxu1 %v15809_v51 }
0x1c92   :  { %12016 = vmatpush1.bf16.msra.mxu0 %v15812_v46  ;;  %11974 = vmatprep.subr.bf16.mxu1 %v15817_v31  ;;  %v12378_v31 = vld [vmem:[%s20872_s3 + $0x183] ss:$8 sm:$0x3] }
0x1c93   :  { %12017 = vmatprep.subr.bf16.mxu0 %v15820_v7 }
0x1c95   :  { %11975 = vmatpush1.bf16.msra.mxu1 %v15815_v35 }
0x1c96   :  { %12018 = vmatpush1.bf16.msra.mxu0 %v15818_v50  ;;  %11976 = vmatprep.subr.bf16.mxu1 %v15823_v10  ;;  %v10415_v50 = vrot.slane %v12378_v31, %v16170_v33 }
0x1c97   :  { %12019 = vmatprep.subr.bf16.mxu0 %v15826_v39  ;;  %v10419_v39 = vrot.slane %v12378_v31, %v16173_v34 }
0x1c99   :  { %11977 = vmatpush2.bf16.msra.mxu1 %v15821_v40 }
0x1c9a   :  { %12020 = vmatpush2.bf16.msra.mxu0 %v15824_v47  ;;  %11978 = vmatprep.subr.bf16.mxu1 %v15829_v11 }
0x1c9b   :  { %12021 = vmatprep.subr.bf16.mxu0 %v15832_v30 }
0x1c9d   :  { %11979 = vmatpush2.bf16.msra.mxu1 %v15827_v45 }
0x1c9e   :  { %12022 = vmatpush2.bf16.msra.mxu0 %v15830_v23  ;;  %11980 = vmatprep.subr.bf16.mxu1 %v15835_v44 }
0x1c9f   :  { %12023 = vmatprep.subr.bf16.mxu0 %v15838_v13 }
0x1ca1   :  { %11981 = vmatpush2.bf16.msra.mxu1 %v15833_v57 }
0x1ca2   :  { %12024 = vmatpush2.bf16.msra.mxu0 %v15836_v19  ;;  %11982 = vmatprep.subr.bf16.mxu1 %v15841_v38 }
0x1ca3   :  { %12025 = vmatprep.subr.bf16.mxu0 %v15844_v41 }
0x1ca5   :  { %11983 = vmatpush2.bf16.msra.mxu1 %v15839_v5 }
0x1ca6   :  { %12026 = vmatpush2.bf16.msra.mxu0 %v15842_v55  ;;  %11984 = vmatprep.subr.bf16.mxu1 %v15847_v6 }
0x1ca7   :  { %12027 = vmatprep.subr.bf16.mxu0 %v15850_v63 }
0x1ca9   :  { %11985 = vmatpush2.bf16.msra.mxu1 %v15845_v54 }
0x1caa   :  { %12028 = vmatpush2.bf16.msra.mxu0 %v15848_v9  ;;  %11986 = vmatprep.subr.bf16.mxu1 %v15853_v25 }
0x1cab   :  { %12029 = vmatprep.subr.bf16.mxu0 %v15856_v36 }
0x1cad   :  { %11987 = vmatpush2.bf16.msra.mxu1 %v15851_v42 }
0x1cae   :  { %12030 = vmatpush2.bf16.msra.mxu0 %v15854_v37  ;;  %11988 = vmatprep.subr.bf16.mxu1 %v15859_v21 }
0x1caf   :  { %12031 = vmatprep.subr.bf16.mxu0 %v15862_v22 }
0x1cb1   :  { %11989 = vmatpush2.bf16.msra.mxu1 %v15857_v17 }
0x1cb2   :  { %12032 = vmatpush2.bf16.msra.mxu0 %v15860_v29  ;;  %11990 = vmatprep.subr.bf16.mxu1 %v15865_v28 }
0x1cb3   :  { %12033 = vmatprep.subr.bf16.mxu0 %v15868_v15 }
0x1cb5   :  { %11991 = vmatpush2.bf16.msra.mxu1 %v15863_v0 }
0x1cb6   :  { %12034 = vmatpush2.bf16.msra.mxu0 %v15866_v24 }
0x1cb8   :  { %11993 = vmatmul.mubr.bf16.vlgmr.msra.gmra.mxu1 %v10407_v43  ;;  %v11736_v3 = vpop.f32.mrf.mxu1 }
0x1cb9   :  { %12036 = vmatmul.mubr.bf16.vlgmr.msra.gmra.mxu0 %v10409_v53  ;;  %v11779_v61 = vpop.f32.mrf.mxu0  ;;  %v11737_v47 = vadd.f32 %v11736_v3, %v10415_v50 }
0x1cba   :  { %v11738_v16 = vpop.f32.mrf.mxu1 }
0x1cbb   :  { %v11781_v4 = vpop.f32.mrf.mxu0  ;;  %v11739_v30 = vadd.f32 %v11738_v16, %v10419_v39  ;;  %v11780_v44 = vadd.f32 %v11779_v61, %v11737_v47 }
0x1cbc   :  { %v11740_v48 = vpop.f32.mrf.mxu1 }
0x1cbd   :  { %v11783_v20 = vpop.f32.mrf.mxu0  ;;  %v11741_v13 = vadd.f32 %v11740_v48, %v10415_v50  ;;  %v11782_v19 = vadd.f32 %v11781_v4, %v11739_v30 }
0x1cbe   :  { %v11742_v12 = vpop.f32.mrf.mxu1 }
0x1cbf   :  { %v11785_v49 = vpop.f32.mrf.mxu0  ;;  %v11743_v38 = vadd.f32 %v11742_v12, %v10419_v39  ;;  %v11784_v55 = vadd.f32 %v11783_v20, %v11741_v13 }
0x1cc1   :  { %v11786_v54 = vadd.f32 %v11785_v49, %v11743_v38  ;;  %v15870_v38 = vld [vmem:[%s20875_s4 + $0xbf0] ss:$204 sps:$4 sm:$0xff]  }
0x1cf8   :  { %v11822_v51 = vpop.f32.mrf.mxu1 }
0x1cf9   :  { %v11865_v46 = vpop.f32.mrf.mxu0  ;;  %v11823_v41 = vadd.f32 %v11822_v51, %v11780_v44 }
0x1cfa   :  { %v11824_v7 = vpop.f32.mrf.mxu1 }
0x1cfb   :  { %v11867_v35 = vpop.f32.mrf.mxu0  ;;  %v11825_v6 = vadd.f32 %v11824_v7, %v11782_v19  ;;  %v11866_v9 = vadd.f32 %v11865_v46, %v11823_v41  ;;  %v15871_v41 = vld [vmem:[%s20875_s4 + $0x1718] ss:$204 sps:$4 sm:$0xff]  }
0x1cfc   :  { %v11826_v10 = vpop.f32.mrf.mxu1 }
0x1cfd   :  { %v11869_v40 = vpop.f32.mrf.mxu0  ;;  %v11827_v25 = vadd.f32 %v11826_v10, %v11784_v55  ;;  %v11868_v42 = vadd.f32 %v11867_v35, %v11825_v6  ;;  %v15873_v55 = vld [vmem:[%s20875_s4 + $0x1580] ss:$204 sps:$4 sm:$0xff]  }
0x1cfe   :  { %v11828_v11 = vpop.f32.mrf.mxu1  ;;  %v15874_v6 = vld [vmem:[%s20875_s4 + $0x8c0] ss:$204 sps:$4 sm:$0xff]  }
0x1cff   :  { %v11871_v45 = vpop.f32.mrf.mxu0  ;;  %v11829_v37 = vadd.f32 %v11828_v11, %v11786_v54  ;;  %v11870_v14 = vadd.f32 %v11869_v40, %v11827_v25  ;;  %v15876_v54 = vld [vmem:[%s20875_s4 + $0x728] ss:$204 sps:$4 sm:$0xff]   ;;  %v15878_v25 = vld [vmem:[%s20875_s4 + $0x590] ss:$204 sps:$4 sm:$0xff]  }
0x1d01   :  { %v11872_v59 = vadd.f32 %v11871_v45, %v11829_v37  ;;  %v15881_v37 = vld [vmem:[%s20875_s4 + $0xf20] ss:$204 sps:$4 sm:$0xff]  }
0x1d38   :  { %v11908_v23 = vpop.f32.mrf.mxu1 }
0x1d39   :  { %v11951_v57 = vpop.f32.mrf.mxu0  ;;  %v11909_v21 = vadd.f32 %v11908_v23, %v11866_v9  ;;  %v15877_v9 = vld [vmem:[%s20875_s4 + $0x1250] ss:$204 sps:$4 sm:$0xff]  }
0x1d3a   :  { %v11910_v5 = vpop.f32.mrf.mxu1 }
0x1d3b   :  { %v11953_v63 = vpop.f32.mrf.mxu0  ;;  %v11911_v60 = vadd.f32 %v11910_v5, %v11868_v42  ;;  %v11952_v29 = vadd.f32 %v11951_v57, %v11909_v21  ;;  %v15872_v5 = vld [vmem:[%s20875_s4 + $0xa58] ss:$204 sps:$4 sm:$0xff]   ;;  %v15882_v21 = vld [vmem:[%s20875_s4 + $0x260] ss:$204 sps:$4 sm:$0xff]  }
0x1d3c   :  { %v11912_v36 = vpop.f32.mrf.mxu1  ;;  %v15880_v42 = vld [vmem:[%s20875_s4 + $0x3f8] ss:$204 sps:$4 sm:$0xff]  }
0x1d3d   :  { %v11955_v22 = vpop.f32.mrf.mxu0  ;;  %v11913_v28 = vadd.f32 %v11912_v36, %v11870_v14  ;;  %v11954_v58 = vadd.f32 %v11953_v63, %v11911_v60  ;;  %v15875_v63 = vld [vmem:[%s20875_s4 + $0x13e8] ss:$204 sps:$4 sm:$0xff]   ;;  %v15879_v36 = vld [vmem:[%s20875_s4 + $0x10b8] ss:$204 sps:$4 sm:$0xff]  }
0x1d3e   :  { %v11914_v17 = vpop.f32.mrf.mxu1  ;;  %v15884_v14 = vld [vmem:[%s20875_s4 + $0xc8] ss:$204 sps:$4 sm:$0xff]  }
0x1d3f   :  { %v11957_v8 = vpop.f32.mrf.mxu0  ;;  %v11915_v27 = vadd.f32 %v11914_v17, %v11872_v59  ;;  %v11956_v32 = vadd.f32 %v11955_v22, %v11913_v28  ;;  %v15883_v22 = vld [vmem:[%s20875_s4 + $0xd88] ss:$204 sps:$4 sm:$0xff]  }
0x1d41   :  { %v11958_v3 = vadd.f32 %v11957_v8, %v11915_v27 }
0x1d78   :  { %v11994_v15 = vpop.f32.mrf.mxu1 }
0x1d79   :  { %v11995_v0 = vadd.f32 %v11994_v15, %v11952_v29  ;;  %v12037_v56 = vpop.f32.mrf.mxu0  ;;  %v12372_v15 = vld [vmem:[%s20872_s3 + $0x180] ss:$8 sm:$0x3] }
0x1d7a   :  { %v11996_v24 = vpop.f32.mrf.mxu1  ;;  %v12086_v27 = vrot.slane %v12372_v15, %v16170_v33 }
0x1d7b   :  { %v12038_v62 = vadd.f32 %v12037_v56, %v11995_v0  ;;  %v11997_v2 = vadd.f32 %v11996_v24, %v11954_v58  ;;  %v12039_v43 = vpop.f32.mrf.mxu0  ;;  %v12373_v58 = vld [vmem:[%s20872_s3 + $0x181] ss:$8 sm:$0x3]  ;;  %v12090_v0 = vrot.slane %v12372_v15, %v16173_v34 }
0x1d7c   :  { %v11998_v53 = vpop.f32.mrf.mxu1  ;;  %v12101_v24 = vrot.slane %v12373_v58, %v16170_v33 }
0x1d7d   :  { %v12040_v61 = vadd.f32 %v12039_v43, %v11997_v2  ;;  %v11999_v16 = vadd.f32 %v11998_v53, %v11956_v32  ;;  %v12041_v4 = vpop.f32.mrf.mxu0  ;;  %v12046_v20 = vadd.f32 %v12038_v62, %v19318_v1  ;;  %v12105_v2 = vrot.slane %v12373_v58, %v16173_v34 }
0x1d7e   :  { %v12000_v48 = vpop.f32.mrf.mxu1 }
0x1d7f   :  { %v12047_v12 = vadd.f32 %v12040_v61, %v19320_v26  ;;  %v12042_v49 = vadd.f32 %v12041_v4, %v11999_v16  ;;  %v12001_v51 = vadd.f32 %v12000_v48, %v11958_v3  ;;  %v12043_v46 = vpop.f32.mrf.mxu0 }
0x1d81   :  { %v12044_v31 = vadd.f32 %v12043_v46, %v12001_v51  ;;  %v12050_v7 = vadd.f32 %v12047_v12, %v12046_v20  ;;  %v12048_v35 = vadd.f32 %v12042_v49, %v19322_v52 }
0x1d83   :  { %v12049_v50 = vadd.f32 %v12044_v31, %v19324_v18  ;;  %12051 = vadd.xlane.f32.xlu0 %v12050_v7  ;;  %v15869_v18 = vld [vmem:[%s20875_s4 + $0x18b0] ss:$204 sps:$4 sm:$0xff]  }
0x1d84   :  { %13771 = vmatprep.subr.bf16.mxu1 %v15869_v18 }
0x1d85   :  { %v12053_v10 = vadd.f32 %v12049_v50, %v12048_v35  ;;  %13772 = vmatpush3.bf16.msra.mxu1 %v15870_v38 }
0x1d86   :  { %13773 = vmatprep.subr.bf16.mxu1 %v15871_v41 }
0x1d87   :  { %12054 = vadd.xlane.f32.xlu1 %v12053_v10 }
0x1d89   :  { %13774 = vmatpush3.bf16.msra.mxu1 %v15872_v5 }
0x1d8a   :  { %13775 = vmatprep.subr.bf16.mxu1 %v15873_v55 }
0x1d8d   :  { %13776 = vmatpush3.bf16.msra.mxu1 %v15874_v6 }
0x1d8e   :  { %13777 = vmatprep.subr.bf16.mxu1 %v15875_v63 }
0x1d91   :  { %13778 = vmatpush3.bf16.msra.mxu1 %v15876_v54 }
0x1d92   :  { %13779 = vmatprep.subr.bf16.mxu1 %v15877_v9 }
0x1d95   :  { %13780 = vmatpush3.bf16.msra.mxu1 %v15878_v25 }
0x1d96   :  { %13781 = vmatprep.subr.bf16.mxu1 %v15879_v36 }
0x1d99   :  { %13782 = vmatpush3.bf16.msra.mxu1 %v15880_v42 }
0x1d9a   :  { %13783 = vmatprep.subr.bf16.mxu1 %v15881_v37 }
0x1d9d   :  { %13784 = vmatpush3.bf16.msra.mxu1 %v15882_v21 }
0x1d9e   :  { %13785 = vmatprep.subr.bf16.mxu1 %v15883_v22 }
0x1da1   :  { %13786 = vmatpush3.bf16.msra.mxu1 %v15884_v14 }
0x1e0c   :  { %v12052_v39 = vpop.xlane.xlu0 %12051 }
0x1e0d   :  { %v12056_v40 = vmul.f32 0.00390625, %v12052_v39 }
0x1e0f   :  { %v12058_v47 = vsub.f32 %v12046_v20, %v12056_v40  ;;  %v12059_v11 = vsub.f32 %v12047_v12, %v12056_v40 }
0x1e10   :  { %v12055_v30 = vpop.xlane.xlu1 %12054 }
0x1e11   :  { %v12057_v1 = vmul.f32 0.00390625, %v12055_v30  ;;  %v12062_v45 = vmul.f32 %v12058_v47, %v12058_v47  ;;  %v12063_v26 = vmul.f32 %v12059_v11, %v12059_v11 }
0x1e13   :  { %v12060_v23 = vsub.f32 %v12048_v35, %v12057_v1  ;;  %v12061_v44 = vsub.f32 %v12049_v50, %v12057_v1  ;;  %v12066_v13 = vadd.f32 %v12063_v26, %v12062_v45 }
0x1e15   :  { %12067 = vadd.xlane.f32.xlu0 %v12066_v13  ;;  %v12064_v57 = vmul.f32 %v12060_v23, %v12060_v23  ;;  %v12065_v19 = vmul.f32 %v12061_v44, %v12061_v44 }
0x1e17   :  { %v12069_v52 = vadd.f32 %v12065_v19, %v12064_v57 }
0x1e19   :  { %12070 = vadd.xlane.f32.xlu1 %v12069_v52 }
0x1e9e   :  { %v12068_v60 = vpop.xlane.xlu0 %12067 }
0x1e9f   :  { %v12072_v17 = vmul.f32 0.00390625, %v12068_v60 }
0x1ea1   :  { %v12074_v59 = vadd.f32 1e-05, %v12072_v17 }
0x1ea2   :  { %v12071_v29 = vpop.xlane.xlu1 %12070 }
0x1ea3   :  { %15971 = vrsqrt.f32 %v12074_v59  ;;  %v12073_v28 = vmul.f32 0.00390625, %v12071_v29 }
0x1ea5   :  { %v12075_v8 = vadd.f32 1e-05, %v12073_v28 }
0x1ea7   :  { %15973 = vrsqrt.f32 %v12075_v8 }
0x1eb0   :  { %v15972_v56 = vpop.eup %15971 }
0x1eb1   :  { %v12078_v32 = vmul.f32 %v15972_v56, %v12058_v47  ;;  %v12079_v62 = vmul.f32 %v15972_v56, %v12059_v11 }
0x1eb3   :  { %v12093_v43 = vmul.f32 %v12086_v27, %v12078_v32  ;;  %v12094_v53 = vmul.f32 %v12090_v0, %v12079_v62 }
0x1eb4   :  { %v15974_v3 = vpop.eup %15973 }
0x1eb5   :  { %v12108_v61 = vadd.f32 %v12101_v24, %v12093_v43  ;;  %v12080_v16 = vmul.f32 %v15974_v3, %v12060_v23  ;;  %v12081_v4 = vmul.f32 %v15974_v3, %v12061_v44  ;;  %v12109_v48 = vadd.f32 %v12105_v2, %v12094_v53  ;;  %v12354_v43 = vld [vmem:[%s20872_s3 + $0x83] ss:$8 sm:$0x3] }
0x1eb7   :  { %v12095_v20 = vmul.f32 %v12086_v27, %v12080_v16  ;;  %v12096_v12 = vmul.f32 %v12090_v0, %v12081_v4  ;;  %v12116_v49 = vmul.f32 0.01, %v12108_v61  ;;  %v12117_v31 = vmul.f32 0.01, %v12109_v48 }
0x1eb8   :  { %vm12112_vm12 = vcmp.gt.f32.partialorder %v12108_v61, 0.0  ;;  %vm12113_vm13 = vcmp.gt.f32.partialorder %v12109_v48, 0.0 }
0x1eb9   :  { %v12110_v51 = vadd.f32 %v12101_v24, %v12095_v20  ;;  %v12111_v46 = vadd.f32 %v12105_v2, %v12096_v12  ;;  %v12120_v50 = vsel %vm12112_vm12, %v12108_v61, %v12116_v49  ;;  %v12121_v10 = vsel %vm12113_vm13, %v12109_v48, %v12117_v31  ;;  %v12353_v2 = vld [vmem:[%s20872_s3 + $0x82] ss:$8 sm:$0x3] }
0x1eba   :  { %v12176_v53 = vrot.slane %v12353_v2, %v16170_v33  ;;  %v12180_v61 = vrot.slane %v12353_v2, %v16173_v34  ;;  %v12191_v20 = vrot.slane %v12354_v43, %v16170_v33  ;;  %v92_v33 = vld [vmem:[%s20872_s3 + $0x184] ss:$0 sm:$0xff] }
0x1ebb   :  { %v12118_v7 = vmul.f32 0.01, %v12110_v51  ;;  %vm12114_vm14 = vcmp.gt.f32.partialorder %v12110_v51, 0.0  ;;  %vm12115_vm15 = vcmp.gt.f32.partialorder %v12111_v46, 0.0  ;;  %v12119_v35 = vmul.f32 0.01, %v12111_v46 }
0x1ebd   :  { %v12122_v39 = vsel %vm12114_vm14, %v12110_v51, %v12118_v7  ;;  %v12123_v40 = vsel %vm12115_vm15, %v12111_v46, %v12119_v35  ;;  %v12195_v51 = vrot.slane %v12354_v43, %v16173_v34 }
0x1ebe   :  { %v12124_v47 = vadd.f32 %v12122_v39, %v12120_v50  ;;  %v12131_v11 = vadd.f32 %v12123_v40, %v12121_v10 }
0x1ec0   :  { %v12125_v30 = vrot.slane %v12124_v47, 4  ;;  %v12132_v1 = vrot.slane %v12131_v11, 4 }
0x1ec2   :  { %v12126_v45 = vadd.f32 %v12125_v30, %v12124_v47  ;;  %v12133_v26 = vadd.f32 %v12132_v1, %v12131_v11 }
0x1ec4   :  { %v12127_v23 = vrot.slane %v12126_v45, 2  ;;  %v12134_v44 = vrot.slane %v12133_v26, 2 }
0x1ec6   :  { %v12128_v13 = vadd.f32 %v12127_v23, %v12126_v45  ;;  %v12135_v57 = vadd.f32 %v12134_v44, %v12133_v26 }
0x1ec8   :  { %v12129_v19 = vrot.slane %v12128_v13, 1  ;;  %v12136_v52 = vrot.slane %v12135_v57, 1 }
0x1eca   :  { %v12130_v18 = vadd.f32 %v12129_v19, %v12128_v13  ;;  %v12137_v38 = vadd.f32 %v12136_v52, %v12135_v57 }
0x1ecc   :  { %v12138_v41 = vmul.f32 0.0625, %v12130_v18  ;;  %v12139_v5 = vmul.f32 0.0625, %v12137_v38 }
0x1ece   :  { %v12140_v55 = vsub.f32 %v12120_v50, %v12138_v41  ;;  %v12141_v6 = vsub.f32 %v12121_v10, %v12139_v5  ;;  %v12142_v63 = vsub.f32 %v12122_v39, %v12138_v41  ;;  %v12143_v54 = vsub.f32 %v12123_v40, %v12139_v5 }
0x1ed0   :  { %v12144_v9 = vmul.f32 %v12140_v55, %v12140_v55  ;;  %v12145_v25 = vmul.f32 %v12141_v6, %v12141_v6  ;;  %v12146_v36 = vmul.f32 %v12142_v63, %v12142_v63  ;;  %v12147_v42 = vmul.f32 %v12143_v54, %v12143_v54 }
0x1ed2   :  { %v12148_v37 = vadd.f32 %v12146_v36, %v12144_v9  ;;  %v12155_v21 = vadd.f32 %v12147_v42, %v12145_v25 }
0x1ed4   :  { %v12149_v22 = vrot.slane %v12148_v37, 4  ;;  %v12156_v14 = vrot.slane %v12155_v21, 4 }
0x1ed6   :  { %v12150_v60 = vadd.f32 %v12149_v22, %v12148_v37  ;;  %v12157_v17 = vadd.f32 %v12156_v14, %v12155_v21 }
0x1ed8   :  { %v12151_v59 = vrot.slane %v12150_v60, 2  ;;  %v12158_v29 = vrot.slane %v12157_v17, 2 }
0x1eda   :  { %v12152_v28 = vadd.f32 %v12151_v59, %v12150_v60  ;;  %v12159_v8 = vadd.f32 %v12158_v29, %v12157_v17 }
0x1edc   :  { %v12153_v15 = vrot.slane %v12152_v28, 1  ;;  %v12160_v58 = vrot.slane %v12159_v8, 1 }
0x1ede   :  { %v12154_v27 = vadd.f32 %v12153_v15, %v12152_v28  ;;  %v12161_v0 = vadd.f32 %v12160_v58, %v12159_v8 }
0x1ee0   :  { %v12162_v56 = vmul.f32 0.0625, %v12154_v27  ;;  %v12163_v24 = vmul.f32 0.0625, %v12161_v0 }
0x1ee2   :  { %v12164_v32 = vadd.f32 1e-06, %v12162_v56  ;;  %v12165_v62 = vadd.f32 1e-06, %v12163_v24 }
0x1ee4   :  { %15975 = vrsqrt.f32 %v12164_v32 }
0x1ee5   :  { %15977 = vrsqrt.f32 %v12165_v62 }
0x1ef1   :  { %v15976_v3 = vpop.eup %15975 }
0x1ef2   :  { %v15978_v16 = vpop.eup %15977  ;;  %v12168_v4 = vmul.f32 %v15976_v3, %v12140_v55  ;;  %v12170_v48 = vmul.f32 %v15976_v3, %v12142_v63 }
0x1ef3   :  { %v12169_v12 = vmul.f32 %v15978_v16, %v12141_v6  ;;  %v12171_v49 = vmul.f32 %v15978_v16, %v12143_v54 }
0x1ef4   :  { %v12183_v46 = vmul.f32 %v12176_v53, %v12168_v4  ;;  %v12185_v31 = vmul.f32 %v12176_v53, %v12170_v48 }
0x1ef5   :  { %v12184_v7 = vmul.f32 %v12180_v61, %v12169_v12  ;;  %v12186_v35 = vmul.f32 %v12180_v61, %v12171_v49 }
0x1ef6   :  { %v12198_v50 = vadd.f32 %v12191_v20, %v12183_v46  ;;  %v12200_v10 = vadd.f32 %v12191_v20, %v12185_v31 }
0x1ef7   :  { %v12199_v39 = vadd.f32 %v12195_v51, %v12184_v7  ;;  %v12201_v40 = vadd.f32 %v12195_v51, %v12186_v35 }
0x1ef8   :  { %v12202_v47 = vpack.c.bf16 %v12200_v10, %v12198_v50 }
0x1ef9   :  { %v12203_v11 = vpack.c.bf16 %v12201_v40, %v12199_v39 }
0x1efb   :  { %12332 = vmatprep.mubr.bf16.mxu1 %v12203_v11 }
0x1efc   :  { %12333 = vmatmul.mubr.bf16.vlgmr.msra.gmra.mxu1 %v12202_v47 }
0x1fbc   :  { %v13787_v30 = vpop.f32.mrf.mxu1 }
0x1fbe   :  { %v13788_v1 = vpop.f32.mrf.mxu1 }
0x1fbf   :  { %v13789_v45 = vadd.f32 %v13788_v1, %v13787_v30 }
0x1fc0   :  { %v13790_v34 = vpop.f32.mrf.mxu1 }
0x1fc1   :  { %v12335_v26 = vadd.f32 %v13789_v45, %v92_v33 }
0x1fc2   :  { %v13791_v23 = vpop.f32.mrf.mxu1 }
0x1fc3   :  { %12341 = vst [vmem:[%s20876_s6] sm:$0xff] %v12335_v26  ;;  %v13792_v44 = vadd.f32 %v13791_v23, %v13790_v34 }
0x1fc5   :  { %v12338_v13 = vadd.f32 %v13792_v44, %v92_v33 }
0x1fc7   :  { %12342 = vst [vmem:[%s20876_s6 + $0x8] sm:$0xff] %v12338_v13 }

</bundles_post_ra>
